<compile_context>
chip_gen: v7x
topology: tpu7x:2x2x1
jax: 0.10.0
libtpu: 0.0.40
codegen_flags: <defaults>
</compile_context>

<pallas_src>
import functools

import numpy as np

import jax
import jax.numpy as jnp
from jax.experimental import pallas as pl
from jax.experimental.pallas import tpu as pltpu

EPS = 1e-5


def _residual3_kernel(x_ref, coord_ref, w1_ref, b1_ref, w2_ref, b2_ref,
                      bng_ref, bnb_ref, wca1_ref, wca2_ref, wsa_ref,
                      o_ref, xsh_ref, patch_ref, *, N, H, W, C, PAD):
    HW = H * W
    NHW = N * HW
    f32 = jnp.float32

    # ---- static per-lane (y, x) coordinates -> tap-validity masks ----------
    yy = coord_ref[0:1, :]                                  # (1, NHW) f32
    xx = coord_ref[1:2, :]
    ymask = {d: (yy >= -d) & (yy < H - d) for d in range(-3, 4)}
    xmask = {d: (xx >= -d) & (xx < W - d) for d in range(-3, 4)}

    def tap(nrows, dy, dx, row0=0):
        # Shifted window of the slab parked in xsh_ref (flat lane shift by
        # dy*W + dx).  Out-of-image source pixels are masked to zero, which
        # reproduces the conv zero padding exactly.
        s = dy * W + dx
        v = xsh_ref[row0:row0 + nrows, PAD + s:PAD + s + NHW]
        if dy == 0 and dx == 0:
            return v
        return jnp.where(ymask[dy] & xmask[dx], v, 0.0)

    def conv3x3(w_ref, b_ref):
        # im2col patch built with 9 full-tile stores (rows 32*t, all 512
        # lanes), then a single K=9C MXU matmul.  Consumes whatever slab is
        # currently parked in xsh_ref's center region.
        for ky in range(3):
            for kx in range(3):
                t = ky * 3 + kx
                patch_ref[t * C:(t + 1) * C, :] = tap(C, ky - 1, kx - 1)
        return jnp.dot(w_ref[...], patch_ref[...],
                       preferred_element_type=f32) + b_ref[...]

    inv_m = 1.0 / NHW

    def bn(v, idx, relu=False):
        # training-mode BatchNorm over N*H*W per channel, one-pass stats.
        mean = jnp.sum(v, axis=1, keepdims=True) * inv_m
        var = jnp.sum(v * v, axis=1, keepdims=True) * inv_m - mean * mean
        scale = jax.lax.rsqrt(var + EPS) * bng_ref[:, idx:idx + 1]
        y = (v - mean) * scale + bnb_ref[:, idx:idx + 1]
        return jnp.maximum(y, 0.0) if relu else y

    # ---- load x channel-major: (C, N*HW), fully lane-dense -----------------
    xcm = jnp.concatenate([x_ref[n] for n in range(N)], axis=1)

    # zero only the shift borders of the window scratch (never re-zeroed)
    zpad = jnp.zeros((C, PAD), f32)
    xsh_ref[:, 0:PAD] = zpad
    xsh_ref[:, PAD + NHW:2 * PAD + NHW] = zpad

    # conv1 (3x3, pad 1, bias) -> bn1 -> relu
    xsh_ref[:, PAD:PAD + NHW] = xcm
    y = bn(conv3x3(w1_ref, b1_ref), 0, relu=True)           # (C, NHW)

    # conv2 (3x3, pad 1, bias) -> bn2
    xsh_ref[:, PAD:PAD + NHW] = y
    y = bn(conv3x3(w2_ref, b2_ref), 1)

    # residual add (conv3 is None) -> bn3
    y = bn(y + xcm, 2)                                      # Y1 (C, NHW)

    # ---- channel attention: avg/max pools -> shared MLP (batched) ----------
    pools = ([jnp.mean(y[:, n * HW:(n + 1) * HW], axis=1, keepdims=True)
              for n in range(N)] +
             [jnp.max(y[:, n * HW:(n + 1) * HW], axis=1, keepdims=True)
              for n in range(N)])
    p = jnp.concatenate(pools, axis=1)                      # (C, 2N)
    h = jnp.maximum(
        jnp.dot(wca1_ref[...], p, preferred_element_type=f32), 0.0)
    mlp = jnp.dot(wca2_ref[...], h, preferred_element_type=f32)   # (C, 2N)
    att_c = jax.nn.sigmoid(mlp[:, 0:N] + mlp[:, N:2 * N])          # (C, N)
    y2 = jnp.concatenate(
        [y[:, n * HW:(n + 1) * HW] * att_c[:, n:n + 1] for n in range(N)],
        axis=1)
    y2 = bn(y2, 3)                                          # bn4

    # ---- spatial attention: channel mean/max -> 7x7 conv as 49 shifted FMAs
    xsh_ref[0:1, PAD:PAD + NHW] = jnp.mean(y, axis=0, keepdims=True)
    xsh_ref[1:2, PAD:PAD + NHW] = jnp.max(y, axis=0, keepdims=True)
    acc = jnp.zeros((1, NHW), f32)
    for ky in range(7):
        for kx in range(7):
            t = ky * 7 + kx
            acc = acc + (wsa_ref[0, t] * tap(1, ky - 3, kx - 3, row0=0) +
                         wsa_ref[1, t] * tap(1, ky - 3, kx - 3, row0=1))
    att_s = jax.nn.sigmoid(acc)                             # (1, NHW)
    y3 = bn(y * att_s, 4)                                   # bn5

    # ---- combine, relu, lane-dense store ------------------------------------
    out = jnp.maximum(y2 + y3, 0.0)                         # relu(Y2 + Y3)
    for n in range(N):
        o_ref[n] = out[:, n * HW:(n + 1) * HW]


def prepare_params(params):
    """One-time relayout of PyTorch-layout parameters into the kernel layout.

    Kept out of the jitted forward so the relayout XLA ops are not re-run
    around every kernel call (perf-review item G)."""
    C = params["w1"].shape[0]

    def conv_w(w):    # OIHW -> (C_out, kH*kW*C_in), tap-major / cin-minor
        return jnp.transpose(w, (0, 2, 3, 1)).reshape(C, -1)

    return {
        "w1": conv_w(params["w1"]), "b1": params["b1"].reshape(C, 1),
        "w2": conv_w(params["w2"]), "b2": params["b2"].reshape(C, 1),
        "bn_g": params["bn_g"].T, "bn_b": params["bn_b"].T,       # (C, 5)
        "wca1": params["wca1"],                                   # (C//16, C)
        "wca2": params["wca2"],                                   # (C, C//16)
        "wsa": params["wsa"].reshape(2, 49),                      # (2, kH*kW)
    }


@jax.jit
def residual3_forward(x_nchw, prep):
    N, C, H, W = x_nchw.shape
    HW, NHW = H * W, N * H * W
    PAD = ((3 * W + 3 + 127) // 128) * 128    # aligned shift border (>= 3W+3)

    x3 = x_nchw.reshape(N, C, HW)             # free reshape, lane-dense input

    # static (y, x) lane-coordinate planes; constants folded at trace time
    q = np.arange(NHW)
    coords = jnp.asarray(
        np.stack([(q % HW) // W, q % W]).astype(np.float32))      # (2, NHW)

    vmem = pl.BlockSpec(memory_space=pltpu.MemorySpace.VMEM)
    smem = pl.BlockSpec(memory_space=pltpu.MemorySpace.SMEM)

    out = pl.pallas_call(
        functools.partial(_residual3_kernel, N=N, H=H, W=W, C=C, PAD=PAD),
        out_shape=jax.ShapeDtypeStruct((N, C, HW), jnp.float32),
        in_specs=[vmem] * 10 + [smem],        # 7x7 SA weights as SMEM scalars
        out_specs=vmem,
        scratch_shapes=[
            pltpu.VMEM((C, NHW + 2 * PAD), jnp.float32),   # shift-window buf
            pltpu.VMEM((9 * C, NHW), jnp.float32),         # im2col patch
        ],
        compiler_params=pltpu.CompilerParams(
            vmem_limit_bytes=32 * 1024 * 1024),
    )(x3, coords, prep["w1"], prep["b1"], prep["w2"], prep["b2"],
      prep["bn_g"], prep["bn_b"], prep["wca1"], prep["wca2"], prep["wsa"])

    return out.reshape(N, C, H, W)            # free reshape back to NCHW


def init_params(key, C):
    CH = max(C // 16, 1)        # ChannelAttention hardcodes in_planes // 16
    ks = jax.random.split(key, 9)

    def nrm(k, shape, s=0.1):
        return s * jax.random.normal(k, shape, jnp.float32)

    return {
        # conv1 / conv2: PyTorch layout (C_out, C_in, 3, 3), bias=True
        "w1": nrm(ks[0], (C, C, 3, 3)), "b1": nrm(ks[1], (C,)),
        "w2": nrm(ks[2], (C, C, 3, 3)), "b2": nrm(ks[3], (C,)),
        # bn1..bn5 affine params, stacked row-wise
        "bn_g": 1.0 + nrm(ks[4], (5, C)), "bn_b": nrm(ks[5], (5, C)),
        # channel attention 1x1 convs (bias=False): fc1 (C->C//16), fc2 back
        "wca1": nrm(ks[6], (CH, C)),
        "wca2": nrm(ks[7], (C, CH)),
        # spatial attention 7x7 conv weight (1, 2, 7, 7) squeezed, bias=False
        "wsa": nrm(ks[8], (2, 7, 7)),
    }


if __name__ == "__main__":
    # num_channels must be a multiple of 16 (ChannelAttention uses C // 16).
    N, C, H, W = 2, 32, 16, 16
    key = jax.random.PRNGKey(0)
    k_x, k_p = jax.random.split(key)
    x = jax.random.normal(k_x, (N, C, H, W), jnp.float32)    # NCHW like PyTorch
    params = init_params(k_p, C)
    prep = prepare_params(params)           # one-time weight relayout

    out = jax.block_until_ready(residual3_forward(x, prep))

    assert out.shape == (N, C, H, W), out.shape
    assert bool(jnp.all(out >= 0.0))        # final ReLU
    assert bool(jnp.all(jnp.isfinite(out)))
    print("KERNEL_OK")
</pallas_src>

<mosaic_0001>
module attributes {stable_mosaic.version = 11 : i64} {
  func.func @_residual3_kernel(%arg0: memref<2x32x256xf32, #tpu.memory_space<vmem>>, %arg1: memref<2x512xf32, #tpu.memory_space<vmem>>, %arg2: memref<32x288xf32, #tpu.memory_space<vmem>>, %arg3: memref<32x1xf32, #tpu.memory_space<vmem>>, %arg4: memref<32x288xf32, #tpu.memory_space<vmem>>, %arg5: memref<32x1xf32, #tpu.memory_space<vmem>>, %arg6: memref<32x5xf32, #tpu.memory_space<vmem>>, %arg7: memref<32x5xf32, #tpu.memory_space<vmem>>, %arg8: memref<2x32xf32, #tpu.memory_space<vmem>>, %arg9: memref<32x2xf32, #tpu.memory_space<vmem>>, %arg10: memref<2x49xf32, #tpu.memory_space<smem>>, %arg11: memref<2x32x256xf32, #tpu.memory_space<vmem>>, %arg12: memref<32x768xf32, #tpu.memory_space<vmem>>, %arg13: memref<288x512xf32, #tpu.memory_space<vmem>>) attributes {dimension_semantics = [], scalar_prefetch = 0 : i64, scratch_operands = 2 : i64, tpu.core_type = #tpu.core_type<tc>} {
    %c0 = arith.constant 0 : index
    %c0_0 = arith.constant 0 : index
    %0 = vector.load %arg1[%c0, %c0_0] : memref<2x512xf32, #tpu.memory_space<vmem>>, vector<1x512xf32>
    %c1 = arith.constant 1 : index
    %c0_1 = arith.constant 0 : index
    %1 = vector.load %arg1[%c1, %c0_1] : memref<2x512xf32, #tpu.memory_space<vmem>>, vector<1x512xf32>
    %cst = arith.constant 3.000000e+00 : f32
    %2 = vector.broadcast %cst : f32 to vector<1x512xf32>
    %3 = arith.cmpf oge, %0, %2 : vector<1x512xf32>
    %cst_2 = arith.constant 1.900000e+01 : f32
    %4 = vector.broadcast %cst_2 : f32 to vector<1x512xf32>
    %5 = arith.cmpf olt, %0, %4 : vector<1x512xf32>
    %6 = arith.andi %3, %5 : vector<1x512xi1>
    %cst_3 = arith.constant 2.000000e+00 : f32
    %7 = vector.broadcast %cst_3 : f32 to vector<1x512xf32>
    %8 = arith.cmpf oge, %0, %7 : vector<1x512xf32>
    %cst_4 = arith.constant 1.800000e+01 : f32
    %9 = vector.broadcast %cst_4 : f32 to vector<1x512xf32>
    %10 = arith.cmpf olt, %0, %9 : vector<1x512xf32>
    %11 = arith.andi %8, %10 : vector<1x512xi1>
    %cst_5 = arith.constant 1.000000e+00 : f32
    %12 = vector.broadcast %cst_5 : f32 to vector<1x512xf32>
    %13 = arith.cmpf oge, %0, %12 : vector<1x512xf32>
    %cst_6 = arith.constant 1.700000e+01 : f32
    %14 = vector.broadcast %cst_6 : f32 to vector<1x512xf32>
    %15 = arith.cmpf olt, %0, %14 : vector<1x512xf32>
    %16 = arith.andi %13, %15 : vector<1x512xi1>
    %cst_7 = arith.constant 0.000000e+00 : f32
    %17 = vector.broadcast %cst_7 : f32 to vector<1x512xf32>
    %18 = arith.cmpf oge, %0, %17 : vector<1x512xf32>
    %cst_8 = arith.constant 1.600000e+01 : f32
    %19 = vector.broadcast %cst_8 : f32 to vector<1x512xf32>
    %20 = arith.cmpf olt, %0, %19 : vector<1x512xf32>
    %21 = arith.andi %18, %20 : vector<1x512xi1>
    %cst_9 = arith.constant -1.000000e+00 : f32
    %22 = vector.broadcast %cst_9 : f32 to vector<1x512xf32>
    %23 = arith.cmpf oge, %0, %22 : vector<1x512xf32>
    %cst_10 = arith.constant 1.500000e+01 : f32
    %24 = vector.broadcast %cst_10 : f32 to vector<1x512xf32>
    %25 = arith.cmpf olt, %0, %24 : vector<1x512xf32>
    %26 = arith.andi %23, %25 : vector<1x512xi1>
    %cst_11 = arith.constant -2.000000e+00 : f32
    %27 = vector.broadcast %cst_11 : f32 to vector<1x512xf32>
    %28 = arith.cmpf oge, %0, %27 : vector<1x512xf32>
    %cst_12 = arith.constant 1.400000e+01 : f32
    %29 = vector.broadcast %cst_12 : f32 to vector<1x512xf32>
    %30 = arith.cmpf olt, %0, %29 : vector<1x512xf32>
    %31 = arith.andi %28, %30 : vector<1x512xi1>
    %cst_13 = arith.constant -3.000000e+00 : f32
    %32 = vector.broadcast %cst_13 : f32 to vector<1x512xf32>
    %33 = arith.cmpf oge, %0, %32 : vector<1x512xf32>
    %cst_14 = arith.constant 1.300000e+01 : f32
    %34 = vector.broadcast %cst_14 : f32 to vector<1x512xf32>
    %35 = arith.cmpf olt, %0, %34 : vector<1x512xf32>
    %36 = arith.andi %33, %35 : vector<1x512xi1>
    %cst_15 = arith.constant 3.000000e+00 : f32
    %37 = vector.broadcast %cst_15 : f32 to vector<1x512xf32>
    %38 = arith.cmpf oge, %1, %37 : vector<1x512xf32>
    %cst_16 = arith.constant 1.900000e+01 : f32
    %39 = vector.broadcast %cst_16 : f32 to vector<1x512xf32>
    %40 = arith.cmpf olt, %1, %39 : vector<1x512xf32>
    %41 = arith.andi %38, %40 : vector<1x512xi1>
    %cst_17 = arith.constant 2.000000e+00 : f32
    %42 = vector.broadcast %cst_17 : f32 to vector<1x512xf32>
    %43 = arith.cmpf oge, %1, %42 : vector<1x512xf32>
    %cst_18 = arith.constant 1.800000e+01 : f32
    %44 = vector.broadcast %cst_18 : f32 to vector<1x512xf32>
    %45 = arith.cmpf olt, %1, %44 : vector<1x512xf32>
    %46 = arith.andi %43, %45 : vector<1x512xi1>
    %cst_19 = arith.constant 1.000000e+00 : f32
    %47 = vector.broadcast %cst_19 : f32 to vector<1x512xf32>
    %48 = arith.cmpf oge, %1, %47 : vector<1x512xf32>
    %cst_20 = arith.constant 1.700000e+01 : f32
    %49 = vector.broadcast %cst_20 : f32 to vector<1x512xf32>
    %50 = arith.cmpf olt, %1, %49 : vector<1x512xf32>
    %51 = arith.andi %48, %50 : vector<1x512xi1>
    %cst_21 = arith.constant 0.000000e+00 : f32
    %52 = vector.broadcast %cst_21 : f32 to vector<1x512xf32>
    %53 = arith.cmpf oge, %1, %52 : vector<1x512xf32>
    %cst_22 = arith.constant 1.600000e+01 : f32
    %54 = vector.broadcast %cst_22 : f32 to vector<1x512xf32>
    %55 = arith.cmpf olt, %1, %54 : vector<1x512xf32>
    %56 = arith.andi %53, %55 : vector<1x512xi1>
    %cst_23 = arith.constant -1.000000e+00 : f32
    %57 = vector.broadcast %cst_23 : f32 to vector<1x512xf32>
    %58 = arith.cmpf oge, %1, %57 : vector<1x512xf32>
    %cst_24 = arith.constant 1.500000e+01 : f32
    %59 = vector.broadcast %cst_24 : f32 to vector<1x512xf32>
    %60 = arith.cmpf olt, %1, %59 : vector<1x512xf32>
    %61 = arith.andi %58, %60 : vector<1x512xi1>
    %cst_25 = arith.constant -2.000000e+00 : f32
    %62 = vector.broadcast %cst_25 : f32 to vector<1x512xf32>
    %63 = arith.cmpf oge, %1, %62 : vector<1x512xf32>
    %cst_26 = arith.constant 1.400000e+01 : f32
    %64 = vector.broadcast %cst_26 : f32 to vector<1x512xf32>
    %65 = arith.cmpf olt, %1, %64 : vector<1x512xf32>
    %66 = arith.andi %63, %65 : vector<1x512xi1>
    %cst_27 = arith.constant -3.000000e+00 : f32
    %67 = vector.broadcast %cst_27 : f32 to vector<1x512xf32>
    %68 = arith.cmpf oge, %1, %67 : vector<1x512xf32>
    %cst_28 = arith.constant 1.300000e+01 : f32
    %69 = vector.broadcast %cst_28 : f32 to vector<1x512xf32>
    %70 = arith.cmpf olt, %1, %69 : vector<1x512xf32>
    %71 = arith.andi %68, %70 : vector<1x512xi1>
    %c0_29 = arith.constant 0 : index
    %c0_30 = arith.constant 0 : index
    %c0_31 = arith.constant 0 : index
    %72 = vector.load %arg0[%c0_29, %c0_30, %c0_31] : memref<2x32x256xf32, #tpu.memory_space<vmem>>, vector<1x32x256xf32>
    %73 = vector.shape_cast %72 : vector<1x32x256xf32> to vector<32x256xf32>
    %c1_32 = arith.constant 1 : index
    %c0_33 = arith.constant 0 : index
    %c0_34 = arith.constant 0 : index
    %74 = vector.load %arg0[%c1_32, %c0_33, %c0_34] : memref<2x32x256xf32, #tpu.memory_space<vmem>>, vector<1x32x256xf32>
    %75 = vector.shape_cast %74 : vector<1x32x256xf32> to vector<32x256xf32>
    %76 = tpu.concatenate %73, %75 in 1 : vector<32x256xf32>, vector<32x256xf32> -> vector<32x512xf32>
    %cst_35 = arith.constant 0.000000e+00 : f32
    %77 = vector.broadcast %cst_35 : f32 to vector<32x128xf32>
    %c0_36 = arith.constant 0 : index
    %c0_37 = arith.constant 0 : index
    %78 = vector.load %arg12[%c0_36, %c0_37] : memref<32x768xf32, #tpu.memory_space<vmem>>, vector<32x128xf32>
    tpu.vector_store %arg12[%c0_36, %c0_37], %77 {strides = array<i32>} : memref<32x768xf32, #tpu.memory_space<vmem>>, vector<32x128xf32>,
    %c0_38 = arith.constant 0 : index
    %c640 = arith.constant 640 : index
    %79 = vector.load %arg12[%c0_38, %c640] : memref<32x768xf32, #tpu.memory_space<vmem>>, vector<32x128xf32>
    tpu.vector_store %arg12[%c0_38, %c640], %77 {strides = array<i32>} : memref<32x768xf32, #tpu.memory_space<vmem>>, vector<32x128xf32>,
    %c0_39 = arith.constant 0 : index
    %c128 = arith.constant 128 : index
    %80 = vector.load %arg12[%c0_39, %c128] : memref<32x768xf32, #tpu.memory_space<vmem>>, vector<32x512xf32>
    tpu.vector_store %arg12[%c0_39, %c128], %76 {strides = array<i32>} : memref<32x768xf32, #tpu.memory_space<vmem>>, vector<32x512xf32>,
    %c0_40 = arith.constant 0 : index
    %c111 = arith.constant 111 : index
    %81 = vector.load %arg12[%c0_40, %c111] : memref<32x768xf32, #tpu.memory_space<vmem>>, vector<32x512xf32>
    %82 = arith.andi %16, %51 : vector<1x512xi1>
    %cst_41 = arith.constant 0.000000e+00 : f32
    %83 = vector.shape_cast %82 : vector<1x512xi1> to vector<1x512xi1>
    %84 = vector.broadcast %83 : vector<1x512xi1> to vector<32x512xi1>
    %85 = vector.broadcast %cst_41 : f32 to vector<32x512xf32>
    %86 = arith.select %84, %81, %85 : vector<32x512xi1>, vector<32x512xf32>
    %c0_42 = arith.constant 0 : index
    %c0_43 = arith.constant 0 : index
    %87 = vector.load %arg13[%c0_42, %c0_43] : memref<288x512xf32, #tpu.memory_space<vmem>>, vector<32x512xf32>
    tpu.vector_store %arg13[%c0_42, %c0_43], %86 {strides = array<i32>} : memref<288x512xf32, #tpu.memory_space<vmem>>, vector<32x512xf32>,
    %c0_44 = arith.constant 0 : index
    %c112 = arith.constant 112 : index
    %88 = vector.load %arg12[%c0_44, %c112] : memref<32x768xf32, #tpu.memory_space<vmem>>, vector<32x512xf32>
    %89 = arith.andi %16, %56 : vector<1x512xi1>
    %cst_45 = arith.constant 0.000000e+00 : f32
    %90 = vector.shape_cast %89 : vector<1x512xi1> to vector<1x512xi1>
    %91 = vector.broadcast %90 : vector<1x512xi1> to vector<32x512xi1>
    %92 = vector.broadcast %cst_45 : f32 to vector<32x512xf32>
    %93 = arith.select %91, %88, %92 : vector<32x512xi1>, vector<32x512xf32>
    %c32 = arith.constant 32 : index
    %c0_46 = arith.constant 0 : index
    %94 = vector.load %arg13[%c32, %c0_46] : memref<288x512xf32, #tpu.memory_space<vmem>>, vector<32x512xf32>
    tpu.vector_store %arg13[%c32, %c0_46], %93 {strides = array<i32>} : memref<288x512xf32, #tpu.memory_space<vmem>>, vector<32x512xf32>,
    %c0_47 = arith.constant 0 : index
    %c113 = arith.constant 113 : index
    %95 = vector.load %arg12[%c0_47, %c113] : memref<32x768xf32, #tpu.memory_space<vmem>>, vector<32x512xf32>
    %96 = arith.andi %16, %61 : vector<1x512xi1>
    %cst_48 = arith.constant 0.000000e+00 : f32
    %97 = vector.shape_cast %96 : vector<1x512xi1> to vector<1x512xi1>
    %98 = vector.broadcast %97 : vector<1x512xi1> to vector<32x512xi1>
    %99 = vector.broadcast %cst_48 : f32 to vector<32x512xf32>
    %100 = arith.select %98, %95, %99 : vector<32x512xi1>, vector<32x512xf32>
    %c64 = arith.constant 64 : index
    %c0_49 = arith.constant 0 : index
    %101 = vector.load %arg13[%c64, %c0_49] : memref<288x512xf32, #tpu.memory_space<vmem>>, vector<32x512xf32>
    tpu.vector_store %arg13[%c64, %c0_49], %100 {strides = array<i32>} : memref<288x512xf32, #tpu.memory_space<vmem>>, vector<32x512xf32>,
    %c0_50 = arith.constant 0 : index
    %c127 = arith.constant 127 : index
    %102 = vector.load %arg12[%c0_50, %c127] : memref<32x768xf32, #tpu.memory_space<vmem>>, vector<32x512xf32>
    %103 = arith.andi %21, %51 : vector<1x512xi1>
    %cst_51 = arith.constant 0.000000e+00 : f32
    %104 = vector.shape_cast %103 : vector<1x512xi1> to vector<1x512xi1>
    %105 = vector.broadcast %104 : vector<1x512xi1> to vector<32x512xi1>
    %106 = vector.broadcast %cst_51 : f32 to vector<32x512xf32>
    %107 = arith.select %105, %102, %106 : vector<32x512xi1>, vector<32x512xf32>
    %c96 = arith.constant 96 : index
    %c0_52 = arith.constant 0 : index
    %108 = vector.load %arg13[%c96, %c0_52] : memref<288x512xf32, #tpu.memory_space<vmem>>, vector<32x512xf32>
    tpu.vector_store %arg13[%c96, %c0_52], %107 {strides = array<i32>} : memref<288x512xf32, #tpu.memory_space<vmem>>, vector<32x512xf32>,
    %c0_53 = arith.constant 0 : index
    %c128_54 = arith.constant 128 : index
    %109 = vector.load %arg12[%c0_53, %c128_54] : memref<32x768xf32, #tpu.memory_space<vmem>>, vector<32x512xf32>
    %c128_55 = arith.constant 128 : index
    %c0_56 = arith.constant 0 : index
    %110 = vector.load %arg13[%c128_55, %c0_56] : memref<288x512xf32, #tpu.memory_space<vmem>>, vector<32x512xf32>
    tpu.vector_store %arg13[%c128_55, %c0_56], %109 {strides = array<i32>} : memref<288x512xf32, #tpu.memory_space<vmem>>, vector<32x512xf32>,
    %c0_57 = arith.constant 0 : index
    %c129 = arith.constant 129 : index
    %111 = vector.load %arg12[%c0_57, %c129] : memref<32x768xf32, #tpu.memory_space<vmem>>, vector<32x512xf32>
    %112 = arith.andi %21, %61 : vector<1x512xi1>
    %cst_58 = arith.constant 0.000000e+00 : f32
    %113 = vector.shape_cast %112 : vector<1x512xi1> to vector<1x512xi1>
    %114 = vector.broadcast %113 : vector<1x512xi1> to vector<32x512xi1>
    %115 = vector.broadcast %cst_58 : f32 to vector<32x512xf32>
    %116 = arith.select %114, %111, %115 : vector<32x512xi1>, vector<32x512xf32>
    %c160 = arith.constant 160 : index
    %c0_59 = arith.constant 0 : index
    %117 = vector.load %arg13[%c160, %c0_59] : memref<288x512xf32, #tpu.memory_space<vmem>>, vector<32x512xf32>
    tpu.vector_store %arg13[%c160, %c0_59], %116 {strides = array<i32>} : memref<288x512xf32, #tpu.memory_space<vmem>>, vector<32x512xf32>,
    %c0_60 = arith.constant 0 : index
    %c143 = arith.constant 143 : index
    %118 = vector.load %arg12[%c0_60, %c143] : memref<32x768xf32, #tpu.memory_space<vmem>>, vector<32x512xf32>
    %119 = arith.andi %26, %51 : vector<1x512xi1>
    %cst_61 = arith.constant 0.000000e+00 : f32
    %120 = vector.shape_cast %119 : vector<1x512xi1> to vector<1x512xi1>
    %121 = vector.broadcast %120 : vector<1x512xi1> to vector<32x512xi1>
    %122 = vector.broadcast %cst_61 : f32 to vector<32x512xf32>
    %123 = arith.select %121, %118, %122 : vector<32x512xi1>, vector<32x512xf32>
    %c192 = arith.constant 192 : index
    %c0_62 = arith.constant 0 : index
    %124 = vector.load %arg13[%c192, %c0_62] : memref<288x512xf32, #tpu.memory_space<vmem>>, vector<32x512xf32>
    tpu.vector_store %arg13[%c192, %c0_62], %123 {strides = array<i32>} : memref<288x512xf32, #tpu.memory_space<vmem>>, vector<32x512xf32>,
    %c0_63 = arith.constant 0 : index
    %c144 = arith.constant 144 : index
    %125 = vector.load %arg12[%c0_63, %c144] : memref<32x768xf32, #tpu.memory_space<vmem>>, vector<32x512xf32>
    %126 = arith.andi %26, %56 : vector<1x512xi1>
    %cst_64 = arith.constant 0.000000e+00 : f32
    %127 = vector.shape_cast %126 : vector<1x512xi1> to vector<1x512xi1>
    %128 = vector.broadcast %127 : vector<1x512xi1> to vector<32x512xi1>
    %129 = vector.broadcast %cst_64 : f32 to vector<32x512xf32>
    %130 = arith.select %128, %125, %129 : vector<32x512xi1>, vector<32x512xf32>
    %c224 = arith.constant 224 : index
    %c0_65 = arith.constant 0 : index
    %131 = vector.load %arg13[%c224, %c0_65] : memref<288x512xf32, #tpu.memory_space<vmem>>, vector<32x512xf32>
    tpu.vector_store %arg13[%c224, %c0_65], %130 {strides = array<i32>} : memref<288x512xf32, #tpu.memory_space<vmem>>, vector<32x512xf32>,
    %c0_66 = arith.constant 0 : index
    %c145 = arith.constant 145 : index
    %132 = vector.load %arg12[%c0_66, %c145] : memref<32x768xf32, #tpu.memory_space<vmem>>, vector<32x512xf32>
    %133 = arith.andi %26, %61 : vector<1x512xi1>
    %cst_67 = arith.constant 0.000000e+00 : f32
    %134 = vector.shape_cast %133 : vector<1x512xi1> to vector<1x512xi1>
    %135 = vector.broadcast %134 : vector<1x512xi1> to vector<32x512xi1>
    %136 = vector.broadcast %cst_67 : f32 to vector<32x512xf32>
    %137 = arith.select %135, %132, %136 : vector<32x512xi1>, vector<32x512xf32>
    %c256 = arith.constant 256 : index
    %c0_68 = arith.constant 0 : index
    %138 = vector.load %arg13[%c256, %c0_68] : memref<288x512xf32, #tpu.memory_space<vmem>>, vector<32x512xf32>
    tpu.vector_store %arg13[%c256, %c0_68], %137 {strides = array<i32>} : memref<288x512xf32, #tpu.memory_space<vmem>>, vector<32x512xf32>,
    %c0_69 = arith.constant 0 : index
    %c0_70 = arith.constant 0 : index
    %139 = vector.load %arg2[%c0_69, %c0_70] : memref<32x288xf32, #tpu.memory_space<vmem>>, vector<32x288xf32>
    %c0_71 = arith.constant 0 : index
    %c0_72 = arith.constant 0 : index
    %140 = vector.load %arg13[%c0_71, %c0_72] : memref<288x512xf32, #tpu.memory_space<vmem>>, vector<288x512xf32>
    %cst_73 = arith.constant dense<0.000000e+00> : vector<32x512xf32>
    %141 = tpu.matmul %139, %140, %cst_73 {dimension_numbers = #tpu.dot_dimension_numbers<[1], [0], [0], [1], [0, 0, 1, 1], [], []>} : vector<32x288xf32>, vector<288x512xf32>, vector<32x512xf32> -> vector<32x512xf32>
    %c0_74 = arith.constant 0 : index
    %c0_75 = arith.constant 0 : index
    %142 = vector.load %arg3[%c0_74, %c0_75] : memref<32x1xf32, #tpu.memory_space<vmem>>, vector<32x1xf32>
    %143 = vector.broadcast %142 : vector<32x1xf32> to vector<32x512xf32>
    %144 = arith.addf %141, %143 : vector<32x512xf32>
    %cst_76 = arith.constant dense<0.000000e+00> : vector<32xf32>
    %145 = vector.multi_reduction <add>, %144, %cst_76 [1] : vector<32x512xf32> to vector<32xf32>
    %146 = vector.shape_cast %145 : vector<32xf32> to vector<32x1xf32>
    %cst_77 = arith.constant 0.001953125 : f32
    %147 = vector.broadcast %cst_77 : f32 to vector<32x1xf32>
    %148 = arith.mulf %146, %147 : vector<32x1xf32>
    %149 = arith.mulf %144, %144 : vector<32x512xf32>
    %cst_78 = arith.constant dense<0.000000e+00> : vector<32xf32>
    %150 = vector.multi_reduction <add>, %149, %cst_78 [1] : vector<32x512xf32> to vector<32xf32>
    %151 = vector.shape_cast %150 : vector<32xf32> to vector<32x1xf32>
    %cst_79 = arith.constant 0.001953125 : f32
    %152 = vector.broadcast %cst_79 : f32 to vector<32x1xf32>
    %153 = arith.mulf %151, %152 : vector<32x1xf32>
    %154 = arith.mulf %148, %148 : vector<32x1xf32>
    %155 = arith.subf %153, %154 : vector<32x1xf32>
    %cst_80 = arith.constant 9.99999974E-6 : f32
    %156 = vector.broadcast %cst_80 : f32 to vector<32x1xf32>
    %157 = arith.addf %155, %156 : vector<32x1xf32>
    %158 = math.rsqrt %157 : vector<32x1xf32>
    %c0_81 = arith.constant 0 : index
    %c0_82 = arith.constant 0 : index
    %159 = vector.load %arg6[%c0_81, %c0_82] : memref<32x5xf32, #tpu.memory_space<vmem>>, vector<32x1xf32>
    %160 = arith.mulf %158, %159 : vector<32x1xf32>
    %161 = vector.broadcast %148 : vector<32x1xf32> to vector<32x512xf32>
    %162 = arith.subf %144, %161 : vector<32x512xf32>
    %163 = vector.broadcast %160 : vector<32x1xf32> to vector<32x512xf32>
    %164 = arith.mulf %162, %163 : vector<32x512xf32>
    %c0_83 = arith.constant 0 : index
    %c0_84 = arith.constant 0 : index
    %165 = vector.load %arg7[%c0_83, %c0_84] : memref<32x5xf32, #tpu.memory_space<vmem>>, vector<32x1xf32>
    %166 = vector.broadcast %165 : vector<32x1xf32> to vector<32x512xf32>
    %167 = arith.addf %164, %166 : vector<32x512xf32>
    %cst_85 = arith.constant 0.000000e+00 : f32
    %168 = vector.broadcast %cst_85 : f32 to vector<32x512xf32>
    %169 = arith.maximumf %167, %168 : vector<32x512xf32>
    %c0_86 = arith.constant 0 : index
    %c128_87 = arith.constant 128 : index
    %170 = vector.load %arg12[%c0_86, %c128_87] : memref<32x768xf32, #tpu.memory_space<vmem>>, vector<32x512xf32>
    tpu.vector_store %arg12[%c0_86, %c128_87], %169 {strides = array<i32>} : memref<32x768xf32, #tpu.memory_space<vmem>>, vector<32x512xf32>,
    %c0_88 = arith.constant 0 : index
    %c111_89 = arith.constant 111 : index
    %171 = vector.load %arg12[%c0_88, %c111_89] : memref<32x768xf32, #tpu.memory_space<vmem>>, vector<32x512xf32>
    %172 = arith.andi %16, %51 : vector<1x512xi1>
    %cst_90 = arith.constant 0.000000e+00 : f32
    %173 = vector.shape_cast %172 : vector<1x512xi1> to vector<1x512xi1>
    %174 = vector.broadcast %173 : vector<1x512xi1> to vector<32x512xi1>
    %175 = vector.broadcast %cst_90 : f32 to vector<32x512xf32>
    %176 = arith.select %174, %171, %175 : vector<32x512xi1>, vector<32x512xf32>
    %c0_91 = arith.constant 0 : index
    %c0_92 = arith.constant 0 : index
    %177 = vector.load %arg13[%c0_91, %c0_92] : memref<288x512xf32, #tpu.memory_space<vmem>>, vector<32x512xf32>
    tpu.vector_store %arg13[%c0_91, %c0_92], %176 {strides = array<i32>} : memref<288x512xf32, #tpu.memory_space<vmem>>, vector<32x512xf32>,
    %c0_93 = arith.constant 0 : index
    %c112_94 = arith.constant 112 : index
    %178 = vector.load %arg12[%c0_93, %c112_94] : memref<32x768xf32, #tpu.memory_space<vmem>>, vector<32x512xf32>
    %179 = arith.andi %16, %56 : vector<1x512xi1>
    %cst_95 = arith.constant 0.000000e+00 : f32
    %180 = vector.shape_cast %179 : vector<1x512xi1> to vector<1x512xi1>
    %181 = vector.broadcast %180 : vector<1x512xi1> to vector<32x512xi1>
    %182 = vector.broadcast %cst_95 : f32 to vector<32x512xf32>
    %183 = arith.select %181, %178, %182 : vector<32x512xi1>, vector<32x512xf32>
    %c32_96 = arith.constant 32 : index
    %c0_97 = arith.constant 0 : index
    %184 = vector.load %arg13[%c32_96, %c0_97] : memref<288x512xf32, #tpu.memory_space<vmem>>, vector<32x512xf32>
    tpu.vector_store %arg13[%c32_96, %c0_97], %183 {strides = array<i32>} : memref<288x512xf32, #tpu.memory_space<vmem>>, vector<32x512xf32>,
    %c0_98 = arith.constant 0 : index
    %c113_99 = arith.constant 113 : index
    %185 = vector.load %arg12[%c0_98, %c113_99] : memref<32x768xf32, #tpu.memory_space<vmem>>, vector<32x512xf32>
    %186 = arith.andi %16, %61 : vector<1x512xi1>
    %cst_100 = arith.constant 0.000000e+00 : f32
    %187 = vector.shape_cast %186 : vector<1x512xi1> to vector<1x512xi1>
    %188 = vector.broadcast %187 : vector<1x512xi1> to vector<32x512xi1>
    %189 = vector.broadcast %cst_100 : f32 to vector<32x512xf32>
    %190 = arith.select %188, %185, %189 : vector<32x512xi1>, vector<32x512xf32>
    %c64_101 = arith.constant 64 : index
    %c0_102 = arith.constant 0 : index
    %191 = vector.load %arg13[%c64_101, %c0_102] : memref<288x512xf32, #tpu.memory_space<vmem>>, vector<32x512xf32>
    tpu.vector_store %arg13[%c64_101, %c0_102], %190 {strides = array<i32>} : memref<288x512xf32, #tpu.memory_space<vmem>>, vector<32x512xf32>,
    %c0_103 = arith.constant 0 : index
    %c127_104 = arith.constant 127 : index
    %192 = vector.load %arg12[%c0_103, %c127_104] : memref<32x768xf32, #tpu.memory_space<vmem>>, vector<32x512xf32>
    %193 = arith.andi %21, %51 : vector<1x512xi1>
    %cst_105 = arith.constant 0.000000e+00 : f32
    %194 = vector.shape_cast %193 : vector<1x512xi1> to vector<1x512xi1>
    %195 = vector.broadcast %194 : vector<1x512xi1> to vector<32x512xi1>
    %196 = vector.broadcast %cst_105 : f32 to vector<32x512xf32>
    %197 = arith.select %195, %192, %196 : vector<32x512xi1>, vector<32x512xf32>
    %c96_106 = arith.constant 96 : index
    %c0_107 = arith.constant 0 : index
    %198 = vector.load %arg13[%c96_106, %c0_107] : memref<288x512xf32, #tpu.memory_space<vmem>>, vector<32x512xf32>
    tpu.vector_store %arg13[%c96_106, %c0_107], %197 {strides = array<i32>} : memref<288x512xf32, #tpu.memory_space<vmem>>, vector<32x512xf32>,
    %c0_108 = arith.constant 0 : index
    %c128_109 = arith.constant 128 : index
    %199 = vector.load %arg12[%c0_108, %c128_109] : memref<32x768xf32, #tpu.memory_space<vmem>>, vector<32x512xf32>
    %c128_110 = arith.constant 128 : index
    %c0_111 = arith.constant 0 : index
    %200 = vector.load %arg13[%c128_110, %c0_111] : memref<288x512xf32, #tpu.memory_space<vmem>>, vector<32x512xf32>
    tpu.vector_store %arg13[%c128_110, %c0_111], %199 {strides = array<i32>} : memref<288x512xf32, #tpu.memory_space<vmem>>, vector<32x512xf32>,
    %c0_112 = arith.constant 0 : index
    %c129_113 = arith.constant 129 : index
    %201 = vector.load %arg12[%c0_112, %c129_113] : memref<32x768xf32, #tpu.memory_space<vmem>>, vector<32x512xf32>
    %202 = arith.andi %21, %61 : vector<1x512xi1>
    %cst_114 = arith.constant 0.000000e+00 : f32
    %203 = vector.shape_cast %202 : vector<1x512xi1> to vector<1x512xi1>
    %204 = vector.broadcast %203 : vector<1x512xi1> to vector<32x512xi1>
    %205 = vector.broadcast %cst_114 : f32 to vector<32x512xf32>
    %206 = arith.select %204, %201, %205 : vector<32x512xi1>, vector<32x512xf32>
    %c160_115 = arith.constant 160 : index
    %c0_116 = arith.constant 0 : index
    %207 = vector.load %arg13[%c160_115, %c0_116] : memref<288x512xf32, #tpu.memory_space<vmem>>, vector<32x512xf32>
    tpu.vector_store %arg13[%c160_115, %c0_116], %206 {strides = array<i32>} : memref<288x512xf32, #tpu.memory_space<vmem>>, vector<32x512xf32>,
    %c0_117 = arith.constant 0 : index
    %c143_118 = arith.constant 143 : index
    %208 = vector.load %arg12[%c0_117, %c143_118] : memref<32x768xf32, #tpu.memory_space<vmem>>, vector<32x512xf32>
    %209 = arith.andi %26, %51 : vector<1x512xi1>
    %cst_119 = arith.constant 0.000000e+00 : f32
    %210 = vector.shape_cast %209 : vector<1x512xi1> to vector<1x512xi1>
    %211 = vector.broadcast %210 : vector<1x512xi1> to vector<32x512xi1>
    %212 = vector.broadcast %cst_119 : f32 to vector<32x512xf32>
    %213 = arith.select %211, %208, %212 : vector<32x512xi1>, vector<32x512xf32>
    %c192_120 = arith.constant 192 : index
    %c0_121 = arith.constant 0 : index
    %214 = vector.load %arg13[%c192_120, %c0_121] : memref<288x512xf32, #tpu.memory_space<vmem>>, vector<32x512xf32>
    tpu.vector_store %arg13[%c192_120, %c0_121], %213 {strides = array<i32>} : memref<288x512xf32, #tpu.memory_space<vmem>>, vector<32x512xf32>,
    %c0_122 = arith.constant 0 : index
    %c144_123 = arith.constant 144 : index
    %215 = vector.load %arg12[%c0_122, %c144_123] : memref<32x768xf32, #tpu.memory_space<vmem>>, vector<32x512xf32>
    %216 = arith.andi %26, %56 : vector<1x512xi1>
    %cst_124 = arith.constant 0.000000e+00 : f32
    %217 = vector.shape_cast %216 : vector<1x512xi1> to vector<1x512xi1>
    %218 = vector.broadcast %217 : vector<1x512xi1> to vector<32x512xi1>
    %219 = vector.broadcast %cst_124 : f32 to vector<32x512xf32>
    %220 = arith.select %218, %215, %219 : vector<32x512xi1>, vector<32x512xf32>
    %c224_125 = arith.constant 224 : index
    %c0_126 = arith.constant 0 : index
    %221 = vector.load %arg13[%c224_125, %c0_126] : memref<288x512xf32, #tpu.memory_space<vmem>>, vector<32x512xf32>
    tpu.vector_store %arg13[%c224_125, %c0_126], %220 {strides = array<i32>} : memref<288x512xf32, #tpu.memory_space<vmem>>, vector<32x512xf32>,
    %c0_127 = arith.constant 0 : index
    %c145_128 = arith.constant 145 : index
    %222 = vector.load %arg12[%c0_127, %c145_128] : memref<32x768xf32, #tpu.memory_space<vmem>>, vector<32x512xf32>
    %223 = arith.andi %26, %61 : vector<1x512xi1>
    %cst_129 = arith.constant 0.000000e+00 : f32
    %224 = vector.shape_cast %223 : vector<1x512xi1> to vector<1x512xi1>
    %225 = vector.broadcast %224 : vector<1x512xi1> to vector<32x512xi1>
    %226 = vector.broadcast %cst_129 : f32 to vector<32x512xf32>
    %227 = arith.select %225, %222, %226 : vector<32x512xi1>, vector<32x512xf32>
    %c256_130 = arith.constant 256 : index
    %c0_131 = arith.constant 0 : index
    %228 = vector.load %arg13[%c256_130, %c0_131] : memref<288x512xf32, #tpu.memory_space<vmem>>, vector<32x512xf32>
    tpu.vector_store %arg13[%c256_130, %c0_131], %227 {strides = array<i32>} : memref<288x512xf32, #tpu.memory_space<vmem>>, vector<32x512xf32>,
    %c0_132 = arith.constant 0 : index
    %c0_133 = arith.constant 0 : index
    %229 = vector.load %arg4[%c0_132, %c0_133] : memref<32x288xf32, #tpu.memory_space<vmem>>, vector<32x288xf32>
    %c0_134 = arith.constant 0 : index
    %c0_135 = arith.constant 0 : index
    %230 = vector.load %arg13[%c0_134, %c0_135] : memref<288x512xf32, #tpu.memory_space<vmem>>, vector<288x512xf32>
    %cst_136 = arith.constant dense<0.000000e+00> : vector<32x512xf32>
    %231 = tpu.matmul %229, %230, %cst_136 {dimension_numbers = #tpu.dot_dimension_numbers<[1], [0], [0], [1], [0, 0, 1, 1], [], []>} : vector<32x288xf32>, vector<288x512xf32>, vector<32x512xf32> -> vector<32x512xf32>
    %c0_137 = arith.constant 0 : index
    %c0_138 = arith.constant 0 : index
    %232 = vector.load %arg5[%c0_137, %c0_138] : memref<32x1xf32, #tpu.memory_space<vmem>>, vector<32x1xf32>
    %233 = vector.broadcast %232 : vector<32x1xf32> to vector<32x512xf32>
    %234 = arith.addf %231, %233 : vector<32x512xf32>
    %cst_139 = arith.constant dense<0.000000e+00> : vector<32xf32>
    %235 = vector.multi_reduction <add>, %234, %cst_139 [1] : vector<32x512xf32> to vector<32xf32>
    %236 = vector.shape_cast %235 : vector<32xf32> to vector<32x1xf32>
    %cst_140 = arith.constant 0.001953125 : f32
    %237 = vector.broadcast %cst_140 : f32 to vector<32x1xf32>
    %238 = arith.mulf %236, %237 : vector<32x1xf32>
    %239 = arith.mulf %234, %234 : vector<32x512xf32>
    %cst_141 = arith.constant dense<0.000000e+00> : vector<32xf32>
    %240 = vector.multi_reduction <add>, %239, %cst_141 [1] : vector<32x512xf32> to vector<32xf32>
    %241 = vector.shape_cast %240 : vector<32xf32> to vector<32x1xf32>
    %cst_142 = arith.constant 0.001953125 : f32
    %242 = vector.broadcast %cst_142 : f32 to vector<32x1xf32>
    %243 = arith.mulf %241, %242 : vector<32x1xf32>
    %244 = arith.mulf %238, %238 : vector<32x1xf32>
    %245 = arith.subf %243, %244 : vector<32x1xf32>
    %cst_143 = arith.constant 9.99999974E-6 : f32
    %246 = vector.broadcast %cst_143 : f32 to vector<32x1xf32>
    %247 = arith.addf %245, %246 : vector<32x1xf32>
    %248 = math.rsqrt %247 : vector<32x1xf32>
    %c0_144 = arith.constant 0 : index
    %c1_145 = arith.constant 1 : index
    %249 = vector.load %arg6[%c0_144, %c1_145] : memref<32x5xf32, #tpu.memory_space<vmem>>, vector<32x1xf32>
    %250 = arith.mulf %248, %249 : vector<32x1xf32>
    %251 = vector.broadcast %238 : vector<32x1xf32> to vector<32x512xf32>
    %252 = arith.subf %234, %251 : vector<32x512xf32>
    %253 = vector.broadcast %250 : vector<32x1xf32> to vector<32x512xf32>
    %254 = arith.mulf %252, %253 : vector<32x512xf32>
    %c0_146 = arith.constant 0 : index
    %c1_147 = arith.constant 1 : index
    %255 = vector.load %arg7[%c0_146, %c1_147] : memref<32x5xf32, #tpu.memory_space<vmem>>, vector<32x1xf32>
    %256 = vector.broadcast %255 : vector<32x1xf32> to vector<32x512xf32>
    %257 = arith.addf %254, %256 : vector<32x512xf32>
    %258 = arith.addf %257, %76 : vector<32x512xf32>
    %cst_148 = arith.constant dense<0.000000e+00> : vector<32xf32>
    %259 = vector.multi_reduction <add>, %258, %cst_148 [1] : vector<32x512xf32> to vector<32xf32>
    %260 = vector.shape_cast %259 : vector<32xf32> to vector<32x1xf32>
    %cst_149 = arith.constant 0.001953125 : f32
    %261 = vector.broadcast %cst_149 : f32 to vector<32x1xf32>
    %262 = arith.mulf %260, %261 : vector<32x1xf32>
    %263 = arith.mulf %258, %258 : vector<32x512xf32>
    %cst_150 = arith.constant dense<0.000000e+00> : vector<32xf32>
    %264 = vector.multi_reduction <add>, %263, %cst_150 [1] : vector<32x512xf32> to vector<32xf32>
    %265 = vector.shape_cast %264 : vector<32xf32> to vector<32x1xf32>
    %cst_151 = arith.constant 0.001953125 : f32
    %266 = vector.broadcast %cst_151 : f32 to vector<32x1xf32>
    %267 = arith.mulf %265, %266 : vector<32x1xf32>
    %268 = arith.mulf %262, %262 : vector<32x1xf32>
    %269 = arith.subf %267, %268 : vector<32x1xf32>
    %cst_152 = arith.constant 9.99999974E-6 : f32
    %270 = vector.broadcast %cst_152 : f32 to vector<32x1xf32>
    %271 = arith.addf %269, %270 : vector<32x1xf32>
    %272 = math.rsqrt %271 : vector<32x1xf32>
    %c0_153 = arith.constant 0 : index
    %c2 = arith.constant 2 : index
    %273 = vector.load %arg6[%c0_153, %c2] : memref<32x5xf32, #tpu.memory_space<vmem>>, vector<32x1xf32>
    %274 = arith.mulf %272, %273 : vector<32x1xf32>
    %275 = vector.broadcast %262 : vector<32x1xf32> to vector<32x512xf32>
    %276 = arith.subf %258, %275 : vector<32x512xf32>
    %277 = vector.broadcast %274 : vector<32x1xf32> to vector<32x512xf32>
    %278 = arith.mulf %276, %277 : vector<32x512xf32>
    %c0_154 = arith.constant 0 : index
    %c2_155 = arith.constant 2 : index
    %279 = vector.load %arg7[%c0_154, %c2_155] : memref<32x5xf32, #tpu.memory_space<vmem>>, vector<32x1xf32>
    %280 = vector.broadcast %279 : vector<32x1xf32> to vector<32x512xf32>
    %281 = arith.addf %278, %280 : vector<32x512xf32>
    %282 = vector.extract_strided_slice %281 {offsets = [0, 0], sizes = [32, 256], strides = [1, 1]} : vector<32x512xf32> to vector<32x256xf32>
    %cst_156 = arith.constant dense<0.000000e+00> : vector<32xf32>
    %283 = vector.multi_reduction <add>, %282, %cst_156 [1] : vector<32x256xf32> to vector<32xf32>
    %284 = vector.shape_cast %283 : vector<32xf32> to vector<32x1xf32>
    %cst_157 = arith.constant 2.560000e+02 : f32
    %285 = vector.broadcast %cst_157 : f32 to vector<32x1xf32>
    %286 = arith.divf %284, %285 : vector<32x1xf32>
    %287 = vector.extract_strided_slice %281 {offsets = [0, 256], sizes = [32, 256], strides = [1, 1]} : vector<32x512xf32> to vector<32x256xf32>
    %cst_158 = arith.constant dense<0.000000e+00> : vector<32xf32>
    %288 = vector.multi_reduction <add>, %287, %cst_158 [1] : vector<32x256xf32> to vector<32xf32>
    %289 = vector.shape_cast %288 : vector<32xf32> to vector<32x1xf32>
    %cst_159 = arith.constant 2.560000e+02 : f32
    %290 = vector.broadcast %cst_159 : f32 to vector<32x1xf32>
    %291 = arith.divf %289, %290 : vector<32x1xf32>
    %292 = vector.extract_strided_slice %281 {offsets = [0, 0], sizes = [32, 256], strides = [1, 1]} : vector<32x512xf32> to vector<32x256xf32>
    %cst_160 = arith.constant dense<0xFF800000> : vector<32xf32>
    %293 = vector.multi_reduction <maximumf>, %292, %cst_160 [1] : vector<32x256xf32> to vector<32xf32>
    %294 = vector.shape_cast %293 : vector<32xf32> to vector<32x1xf32>
    %295 = vector.extract_strided_slice %281 {offsets = [0, 256], sizes = [32, 256], strides = [1, 1]} : vector<32x512xf32> to vector<32x256xf32>
    %cst_161 = arith.constant dense<0xFF800000> : vector<32xf32>
    %296 = vector.multi_reduction <maximumf>, %295, %cst_161 [1] : vector<32x256xf32> to vector<32xf32>
    %297 = vector.shape_cast %296 : vector<32xf32> to vector<32x1xf32>
    %298 = tpu.concatenate %286, %291, %294, %297 in 1 : vector<32x1xf32>, vector<32x1xf32>, vector<32x1xf32>, vector<32x1xf32> -> vector<32x4xf32>
    %c0_162 = arith.constant 0 : index
    %c0_163 = arith.constant 0 : index
    %299 = vector.load %arg8[%c0_162, %c0_163] : memref<2x32xf32, #tpu.memory_space<vmem>>, vector<2x32xf32>
    %cst_164 = arith.constant dense<0.000000e+00> : vector<2x4xf32>
    %300 = tpu.matmul %299, %298, %cst_164 {dimension_numbers = #tpu.dot_dimension_numbers<[1], [0], [0], [1], [0, 0, 1, 1], [], []>} : vector<2x32xf32>, vector<32x4xf32>, vector<2x4xf32> -> vector<2x4xf32>
    %cst_165 = arith.constant 0.000000e+00 : f32
    %301 = vector.broadcast %cst_165 : f32 to vector<2x4xf32>
    %302 = arith.maximumf %300, %301 : vector<2x4xf32>
    %c0_166 = arith.constant 0 : index
    %c0_167 = arith.constant 0 : index
    %303 = vector.load %arg9[%c0_166, %c0_167] : memref<32x2xf32, #tpu.memory_space<vmem>>, vector<32x2xf32>
    %cst_168 = arith.constant dense<0.000000e+00> : vector<32x4xf32>
    %304 = tpu.matmul %303, %302, %cst_168 {dimension_numbers = #tpu.dot_dimension_numbers<[1], [0], [0], [1], [0, 0, 1, 1], [], []>} : vector<32x2xf32>, vector<2x4xf32>, vector<32x4xf32> -> vector<32x4xf32>
    %305 = vector.extract_strided_slice %304 {offsets = [0, 0], sizes = [32, 2], strides = [1, 1]} : vector<32x4xf32> to vector<32x2xf32>
    %306 = vector.extract_strided_slice %304 {offsets = [0, 2], sizes = [32, 2], strides = [1, 1]} : vector<32x4xf32> to vector<32x2xf32>
    %307 = arith.addf %305, %306 : vector<32x2xf32>
    %308 = arith.negf %307 : vector<32x2xf32>
    %309 = math.exp %308 : vector<32x2xf32>
    %cst_169 = arith.constant 1.000000e+00 : f32
    %310 = vector.broadcast %cst_169 : f32 to vector<32x2xf32>
    %311 = arith.addf %310, %309 : vector<32x2xf32>
    %312 = arith.divf %310, %311 : vector<32x2xf32>
    %313 = vector.extract_strided_slice %281 {offsets = [0, 0], sizes = [32, 256], strides = [1, 1]} : vector<32x512xf32> to vector<32x256xf32>
    %314 = vector.extract_strided_slice %312 {offsets = [0, 0], sizes = [32, 1], strides = [1, 1]} : vector<32x2xf32> to vector<32x1xf32>
    %315 = vector.broadcast %314 : vector<32x1xf32> to vector<32x256xf32>
    %316 = arith.mulf %313, %315 : vector<32x256xf32>
    %317 = vector.extract_strided_slice %281 {offsets = [0, 256], sizes = [32, 256], strides = [1, 1]} : vector<32x512xf32> to vector<32x256xf32>
    %318 = vector.extract_strided_slice %312 {offsets = [0, 1], sizes = [32, 1], strides = [1, 1]} : vector<32x2xf32> to vector<32x1xf32>
    %319 = vector.broadcast %318 : vector<32x1xf32> to vector<32x256xf32>
    %320 = arith.mulf %317, %319 : vector<32x256xf32>
    %321 = tpu.concatenate %316, %320 in 1 : vector<32x256xf32>, vector<32x256xf32> -> vector<32x512xf32>
    %cst_170 = arith.constant dense<0.000000e+00> : vector<32xf32>
    %322 = vector.multi_reduction <add>, %321, %cst_170 [1] : vector<32x512xf32> to vector<32xf32>
    %323 = vector.shape_cast %322 : vector<32xf32> to vector<32x1xf32>
    %cst_171 = arith.constant 0.001953125 : f32
    %324 = vector.broadcast %cst_171 : f32 to vector<32x1xf32>
    %325 = arith.mulf %323, %324 : vector<32x1xf32>
    %326 = arith.mulf %321, %321 : vector<32x512xf32>
    %cst_172 = arith.constant dense<0.000000e+00> : vector<32xf32>
    %327 = vector.multi_reduction <add>, %326, %cst_172 [1] : vector<32x512xf32> to vector<32xf32>
    %328 = vector.shape_cast %327 : vector<32xf32> to vector<32x1xf32>
    %cst_173 = arith.constant 0.001953125 : f32
    %329 = vector.broadcast %cst_173 : f32 to vector<32x1xf32>
    %330 = arith.mulf %328, %329 : vector<32x1xf32>
    %331 = arith.mulf %325, %325 : vector<32x1xf32>
    %332 = arith.subf %330, %331 : vector<32x1xf32>
    %cst_174 = arith.constant 9.99999974E-6 : f32
    %333 = vector.broadcast %cst_174 : f32 to vector<32x1xf32>
    %334 = arith.addf %332, %333 : vector<32x1xf32>
    %335 = math.rsqrt %334 : vector<32x1xf32>
    %c0_175 = arith.constant 0 : index
    %c3 = arith.constant 3 : index
    %336 = vector.load %arg6[%c0_175, %c3] : memref<32x5xf32, #tpu.memory_space<vmem>>, vector<32x1xf32>
    %337 = arith.mulf %335, %336 : vector<32x1xf32>
    %338 = vector.broadcast %325 : vector<32x1xf32> to vector<32x512xf32>
    %339 = arith.subf %321, %338 : vector<32x512xf32>
    %340 = vector.broadcast %337 : vector<32x1xf32> to vector<32x512xf32>
    %341 = arith.mulf %339, %340 : vector<32x512xf32>
    %c0_176 = arith.constant 0 : index
    %c3_177 = arith.constant 3 : index
    %342 = vector.load %arg7[%c0_176, %c3_177] : memref<32x5xf32, #tpu.memory_space<vmem>>, vector<32x1xf32>
    %343 = vector.broadcast %342 : vector<32x1xf32> to vector<32x512xf32>
    %344 = arith.addf %341, %343 : vector<32x512xf32>
    %cst_178 = arith.constant dense<0.000000e+00> : vector<512xf32>
    %345 = vector.multi_reduction <add>, %281, %cst_178 [0] : vector<32x512xf32> to vector<512xf32>
    %346 = vector.shape_cast %345 : vector<512xf32> to vector<1x512xf32>
    %cst_179 = arith.constant 3.200000e+01 : f32
    %347 = vector.broadcast %cst_179 : f32 to vector<1x512xf32>
    %348 = arith.divf %346, %347 : vector<1x512xf32>
    %c0_180 = arith.constant 0 : index
    %c128_181 = arith.constant 128 : index
    %349 = vector.load %arg12[%c0_180, %c128_181] : memref<32x768xf32, #tpu.memory_space<vmem>>, vector<1x512xf32>
    tpu.vector_store %arg12[%c0_180, %c128_181], %348 {strides = array<i32>} : memref<32x768xf32, #tpu.memory_space<vmem>>, vector<1x512xf32>,
    %cst_182 = arith.constant dense<0xFF800000> : vector<512xf32>
    %350 = vector.multi_reduction <maximumf>, %281, %cst_182 [0] : vector<32x512xf32> to vector<512xf32>
    %351 = vector.shape_cast %350 : vector<512xf32> to vector<1x512xf32>
    %c1_183 = arith.constant 1 : index
    %c128_184 = arith.constant 128 : index
    %352 = vector.load %arg12[%c1_183, %c128_184] : memref<32x768xf32, #tpu.memory_space<vmem>>, vector<1x512xf32>
    tpu.vector_store %arg12[%c1_183, %c128_184], %351 {strides = array<i32>} : memref<32x768xf32, #tpu.memory_space<vmem>>, vector<1x512xf32>,
    %cst_185 = arith.constant 0.000000e+00 : f32
    %353 = vector.broadcast %cst_185 : f32 to vector<1x512xf32>
    %c0_186 = arith.constant 0 : index
    %c0_187 = arith.constant 0 : index
    %354 = memref.load %arg10[%c0_186, %c0_187] : memref<2x49xf32, #tpu.memory_space<smem>>
    %c0_188 = arith.constant 0 : index
    %c77 = arith.constant 77 : index
    %355 = vector.load %arg12[%c0_188, %c77] : memref<32x768xf32, #tpu.memory_space<vmem>>, vector<1x512xf32>
    %356 = arith.andi %6, %41 : vector<1x512xi1>
    %cst_189 = arith.constant 0.000000e+00 : f32
    %357 = vector.broadcast %cst_189 : f32 to vector<1x512xf32>
    %358 = arith.select %356, %355, %357 : vector<1x512xi1>, vector<1x512xf32>
    %359 = vector.broadcast %354 : f32 to vector<1x512xf32>
    %360 = arith.mulf %359, %358 : vector<1x512xf32>
    %c1_190 = arith.constant 1 : index
    %c0_191 = arith.constant 0 : index
    %361 = memref.load %arg10[%c1_190, %c0_191] : memref<2x49xf32, #tpu.memory_space<smem>>
    %c1_192 = arith.constant 1 : index
    %c77_193 = arith.constant 77 : index
    %362 = vector.load %arg12[%c1_192, %c77_193] : memref<32x768xf32, #tpu.memory_space<vmem>>, vector<1x512xf32>
    %363 = arith.andi %6, %41 : vector<1x512xi1>
    %cst_194 = arith.constant 0.000000e+00 : f32
    %364 = vector.broadcast %cst_194 : f32 to vector<1x512xf32>
    %365 = arith.select %363, %362, %364 : vector<1x512xi1>, vector<1x512xf32>
    %366 = vector.broadcast %361 : f32 to vector<1x512xf32>
    %367 = arith.mulf %366, %365 : vector<1x512xf32>
    %368 = arith.addf %360, %367 : vector<1x512xf32>
    %369 = arith.addf %353, %368 : vector<1x512xf32>
    %c0_195 = arith.constant 0 : index
    %c1_196 = arith.constant 1 : index
    %370 = memref.load %arg10[%c0_195, %c1_196] : memref<2x49xf32, #tpu.memory_space<smem>>
    %c0_197 = arith.constant 0 : index
    %c78 = arith.constant 78 : index
    %371 = vector.load %arg12[%c0_197, %c78] : memref<32x768xf32, #tpu.memory_space<vmem>>, vector<1x512xf32>
    %372 = arith.andi %6, %46 : vector<1x512xi1>
    %cst_198 = arith.constant 0.000000e+00 : f32
    %373 = vector.broadcast %cst_198 : f32 to vector<1x512xf32>
    %374 = arith.select %372, %371, %373 : vector<1x512xi1>, vector<1x512xf32>
    %375 = vector.broadcast %370 : f32 to vector<1x512xf32>
    %376 = arith.mulf %375, %374 : vector<1x512xf32>
    %c1_199 = arith.constant 1 : index
    %c1_200 = arith.constant 1 : index
    %377 = memref.load %arg10[%c1_199, %c1_200] : memref<2x49xf32, #tpu.memory_space<smem>>
    %c1_201 = arith.constant 1 : index
    %c78_202 = arith.constant 78 : index
    %378 = vector.load %arg12[%c1_201, %c78_202] : memref<32x768xf32, #tpu.memory_space<vmem>>, vector<1x512xf32>
    %379 = arith.andi %6, %46 : vector<1x512xi1>
    %cst_203 = arith.constant 0.000000e+00 : f32
    %380 = vector.broadcast %cst_203 : f32 to vector<1x512xf32>
    %381 = arith.select %379, %378, %380 : vector<1x512xi1>, vector<1x512xf32>
    %382 = vector.broadcast %377 : f32 to vector<1x512xf32>
    %383 = arith.mulf %382, %381 : vector<1x512xf32>
    %384 = arith.addf %376, %383 : vector<1x512xf32>
    %385 = arith.addf %369, %384 : vector<1x512xf32>
    %c0_204 = arith.constant 0 : index
    %c2_205 = arith.constant 2 : index
    %386 = memref.load %arg10[%c0_204, %c2_205] : memref<2x49xf32, #tpu.memory_space<smem>>
    %c0_206 = arith.constant 0 : index
    %c79 = arith.constant 79 : index
    %387 = vector.load %arg12[%c0_206, %c79] : memref<32x768xf32, #tpu.memory_space<vmem>>, vector<1x512xf32>
    %388 = arith.andi %6, %51 : vector<1x512xi1>
    %cst_207 = arith.constant 0.000000e+00 : f32
    %389 = vector.broadcast %cst_207 : f32 to vector<1x512xf32>
    %390 = arith.select %388, %387, %389 : vector<1x512xi1>, vector<1x512xf32>
    %391 = vector.broadcast %386 : f32 to vector<1x512xf32>
    %392 = arith.mulf %391, %390 : vector<1x512xf32>
    %c1_208 = arith.constant 1 : index
    %c2_209 = arith.constant 2 : index
    %393 = memref.load %arg10[%c1_208, %c2_209] : memref<2x49xf32, #tpu.memory_space<smem>>
    %c1_210 = arith.constant 1 : index
    %c79_211 = arith.constant 79 : index
    %394 = vector.load %arg12[%c1_210, %c79_211] : memref<32x768xf32, #tpu.memory_space<vmem>>, vector<1x512xf32>
    %395 = arith.andi %6, %51 : vector<1x512xi1>
    %cst_212 = arith.constant 0.000000e+00 : f32
    %396 = vector.broadcast %cst_212 : f32 to vector<1x512xf32>
    %397 = arith.select %395, %394, %396 : vector<1x512xi1>, vector<1x512xf32>
    %398 = vector.broadcast %393 : f32 to vector<1x512xf32>
    %399 = arith.mulf %398, %397 : vector<1x512xf32>
    %400 = arith.addf %392, %399 : vector<1x512xf32>
    %401 = arith.addf %385, %400 : vector<1x512xf32>
    %c0_213 = arith.constant 0 : index
    %c3_214 = arith.constant 3 : index
    %402 = memref.load %arg10[%c0_213, %c3_214] : memref<2x49xf32, #tpu.memory_space<smem>>
    %c0_215 = arith.constant 0 : index
    %c80 = arith.constant 80 : index
    %403 = vector.load %arg12[%c0_215, %c80] : memref<32x768xf32, #tpu.memory_space<vmem>>, vector<1x512xf32>
    %404 = arith.andi %6, %56 : vector<1x512xi1>
    %cst_216 = arith.constant 0.000000e+00 : f32
    %405 = vector.broadcast %cst_216 : f32 to vector<1x512xf32>
    %406 = arith.select %404, %403, %405 : vector<1x512xi1>, vector<1x512xf32>
    %407 = vector.broadcast %402 : f32 to vector<1x512xf32>
    %408 = arith.mulf %407, %406 : vector<1x512xf32>
    %c1_217 = arith.constant 1 : index
    %c3_218 = arith.constant 3 : index
    %409 = memref.load %arg10[%c1_217, %c3_218] : memref<2x49xf32, #tpu.memory_space<smem>>
    %c1_219 = arith.constant 1 : index
    %c80_220 = arith.constant 80 : index
    %410 = vector.load %arg12[%c1_219, %c80_220] : memref<32x768xf32, #tpu.memory_space<vmem>>, vector<1x512xf32>
    %411 = arith.andi %6, %56 : vector<1x512xi1>
    %cst_221 = arith.constant 0.000000e+00 : f32
    %412 = vector.broadcast %cst_221 : f32 to vector<1x512xf32>
    %413 = arith.select %411, %410, %412 : vector<1x512xi1>, vector<1x512xf32>
    %414 = vector.broadcast %409 : f32 to vector<1x512xf32>
    %415 = arith.mulf %414, %413 : vector<1x512xf32>
    %416 = arith.addf %408, %415 : vector<1x512xf32>
    %417 = arith.addf %401, %416 : vector<1x512xf32>
    %c0_222 = arith.constant 0 : index
    %c4 = arith.constant 4 : index
    %418 = memref.load %arg10[%c0_222, %c4] : memref<2x49xf32, #tpu.memory_space<smem>>
    %c0_223 = arith.constant 0 : index
    %c81 = arith.constant 81 : index
    %419 = vector.load %arg12[%c0_223, %c81] : memref<32x768xf32, #tpu.memory_space<vmem>>, vector<1x512xf32>
    %420 = arith.andi %6, %61 : vector<1x512xi1>
    %cst_224 = arith.constant 0.000000e+00 : f32
    %421 = vector.broadcast %cst_224 : f32 to vector<1x512xf32>
    %422 = arith.select %420, %419, %421 : vector<1x512xi1>, vector<1x512xf32>
    %423 = vector.broadcast %418 : f32 to vector<1x512xf32>
    %424 = arith.mulf %423, %422 : vector<1x512xf32>
    %c1_225 = arith.constant 1 : index
    %c4_226 = arith.constant 4 : index
    %425 = memref.load %arg10[%c1_225, %c4_226] : memref<2x49xf32, #tpu.memory_space<smem>>
    %c1_227 = arith.constant 1 : index
    %c81_228 = arith.constant 81 : index
    %426 = vector.load %arg12[%c1_227, %c81_228] : memref<32x768xf32, #tpu.memory_space<vmem>>, vector<1x512xf32>
    %427 = arith.andi %6, %61 : vector<1x512xi1>
    %cst_229 = arith.constant 0.000000e+00 : f32
    %428 = vector.broadcast %cst_229 : f32 to vector<1x512xf32>
    %429 = arith.select %427, %426, %428 : vector<1x512xi1>, vector<1x512xf32>
    %430 = vector.broadcast %425 : f32 to vector<1x512xf32>
    %431 = arith.mulf %430, %429 : vector<1x512xf32>
    %432 = arith.addf %424, %431 : vector<1x512xf32>
    %433 = arith.addf %417, %432 : vector<1x512xf32>
    %c0_230 = arith.constant 0 : index
    %c5 = arith.constant 5 : index
    %434 = memref.load %arg10[%c0_230, %c5] : memref<2x49xf32, #tpu.memory_space<smem>>
    %c0_231 = arith.constant 0 : index
    %c82 = arith.constant 82 : index
    %435 = vector.load %arg12[%c0_231, %c82] : memref<32x768xf32, #tpu.memory_space<vmem>>, vector<1x512xf32>
    %436 = arith.andi %6, %66 : vector<1x512xi1>
    %cst_232 = arith.constant 0.000000e+00 : f32
    %437 = vector.broadcast %cst_232 : f32 to vector<1x512xf32>
    %438 = arith.select %436, %435, %437 : vector<1x512xi1>, vector<1x512xf32>
    %439 = vector.broadcast %434 : f32 to vector<1x512xf32>
    %440 = arith.mulf %439, %438 : vector<1x512xf32>
    %c1_233 = arith.constant 1 : index
    %c5_234 = arith.constant 5 : index
    %441 = memref.load %arg10[%c1_233, %c5_234] : memref<2x49xf32, #tpu.memory_space<smem>>
    %c1_235 = arith.constant 1 : index
    %c82_236 = arith.constant 82 : index
    %442 = vector.load %arg12[%c1_235, %c82_236] : memref<32x768xf32, #tpu.memory_space<vmem>>, vector<1x512xf32>
    %443 = arith.andi %6, %66 : vector<1x512xi1>
    %cst_237 = arith.constant 0.000000e+00 : f32
    %444 = vector.broadcast %cst_237 : f32 to vector<1x512xf32>
    %445 = arith.select %443, %442, %444 : vector<1x512xi1>, vector<1x512xf32>
    %446 = vector.broadcast %441 : f32 to vector<1x512xf32>
    %447 = arith.mulf %446, %445 : vector<1x512xf32>
    %448 = arith.addf %440, %447 : vector<1x512xf32>
    %449 = arith.addf %433, %448 : vector<1x512xf32>
    %c0_238 = arith.constant 0 : index
    %c6 = arith.constant 6 : index
    %450 = memref.load %arg10[%c0_238, %c6] : memref<2x49xf32, #tpu.memory_space<smem>>
    %c0_239 = arith.constant 0 : index
    %c83 = arith.constant 83 : index
    %451 = vector.load %arg12[%c0_239, %c83] : memref<32x768xf32, #tpu.memory_space<vmem>>, vector<1x512xf32>
    %452 = arith.andi %6, %71 : vector<1x512xi1>
    %cst_240 = arith.constant 0.000000e+00 : f32
    %453 = vector.broadcast %cst_240 : f32 to vector<1x512xf32>
    %454 = arith.select %452, %451, %453 : vector<1x512xi1>, vector<1x512xf32>
    %455 = vector.broadcast %450 : f32 to vector<1x512xf32>
    %456 = arith.mulf %455, %454 : vector<1x512xf32>
    %c1_241 = arith.constant 1 : index
    %c6_242 = arith.constant 6 : index
    %457 = memref.load %arg10[%c1_241, %c6_242] : memref<2x49xf32, #tpu.memory_space<smem>>
    %c1_243 = arith.constant 1 : index
    %c83_244 = arith.constant 83 : index
    %458 = vector.load %arg12[%c1_243, %c83_244] : memref<32x768xf32, #tpu.memory_space<vmem>>, vector<1x512xf32>
    %459 = arith.andi %6, %71 : vector<1x512xi1>
    %cst_245 = arith.constant 0.000000e+00 : f32
    %460 = vector.broadcast %cst_245 : f32 to vector<1x512xf32>
    %461 = arith.select %459, %458, %460 : vector<1x512xi1>, vector<1x512xf32>
    %462 = vector.broadcast %457 : f32 to vector<1x512xf32>
    %463 = arith.mulf %462, %461 : vector<1x512xf32>
    %464 = arith.addf %456, %463 : vector<1x512xf32>
    %465 = arith.addf %449, %464 : vector<1x512xf32>
    %c0_246 = arith.constant 0 : index
    %c7 = arith.constant 7 : index
    %466 = memref.load %arg10[%c0_246, %c7] : memref<2x49xf32, #tpu.memory_space<smem>>
    %c0_247 = arith.constant 0 : index
    %c93 = arith.constant 93 : index
    %467 = vector.load %arg12[%c0_247, %c93] : memref<32x768xf32, #tpu.memory_space<vmem>>, vector<1x512xf32>
    %468 = arith.andi %11, %41 : vector<1x512xi1>
    %cst_248 = arith.constant 0.000000e+00 : f32
    %469 = vector.broadcast %cst_248 : f32 to vector<1x512xf32>
    %470 = arith.select %468, %467, %469 : vector<1x512xi1>, vector<1x512xf32>
    %471 = vector.broadcast %466 : f32 to vector<1x512xf32>
    %472 = arith.mulf %471, %470 : vector<1x512xf32>
    %c1_249 = arith.constant 1 : index
    %c7_250 = arith.constant 7 : index
    %473 = memref.load %arg10[%c1_249, %c7_250] : memref<2x49xf32, #tpu.memory_space<smem>>
    %c1_251 = arith.constant 1 : index
    %c93_252 = arith.constant 93 : index
    %474 = vector.load %arg12[%c1_251, %c93_252] : memref<32x768xf32, #tpu.memory_space<vmem>>, vector<1x512xf32>
    %475 = arith.andi %11, %41 : vector<1x512xi1>
    %cst_253 = arith.constant 0.000000e+00 : f32
    %476 = vector.broadcast %cst_253 : f32 to vector<1x512xf32>
    %477 = arith.select %475, %474, %476 : vector<1x512xi1>, vector<1x512xf32>
    %478 = vector.broadcast %473 : f32 to vector<1x512xf32>
    %479 = arith.mulf %478, %477 : vector<1x512xf32>
    %480 = arith.addf %472, %479 : vector<1x512xf32>
    %481 = arith.addf %465, %480 : vector<1x512xf32>
    %c0_254 = arith.constant 0 : index
    %c8 = arith.constant 8 : index
    %482 = memref.load %arg10[%c0_254, %c8] : memref<2x49xf32, #tpu.memory_space<smem>>
    %c0_255 = arith.constant 0 : index
    %c94 = arith.constant 94 : index
    %483 = vector.load %arg12[%c0_255, %c94] : memref<32x768xf32, #tpu.memory_space<vmem>>, vector<1x512xf32>
    %484 = arith.andi %11, %46 : vector<1x512xi1>
    %cst_256 = arith.constant 0.000000e+00 : f32
    %485 = vector.broadcast %cst_256 : f32 to vector<1x512xf32>
    %486 = arith.select %484, %483, %485 : vector<1x512xi1>, vector<1x512xf32>
    %487 = vector.broadcast %482 : f32 to vector<1x512xf32>
    %488 = arith.mulf %487, %486 : vector<1x512xf32>
    %c1_257 = arith.constant 1 : index
    %c8_258 = arith.constant 8 : index
    %489 = memref.load %arg10[%c1_257, %c8_258] : memref<2x49xf32, #tpu.memory_space<smem>>
    %c1_259 = arith.constant 1 : index
    %c94_260 = arith.constant 94 : index
    %490 = vector.load %arg12[%c1_259, %c94_260] : memref<32x768xf32, #tpu.memory_space<vmem>>, vector<1x512xf32>
    %491 = arith.andi %11, %46 : vector<1x512xi1>
    %cst_261 = arith.constant 0.000000e+00 : f32
    %492 = vector.broadcast %cst_261 : f32 to vector<1x512xf32>
    %493 = arith.select %491, %490, %492 : vector<1x512xi1>, vector<1x512xf32>
    %494 = vector.broadcast %489 : f32 to vector<1x512xf32>
    %495 = arith.mulf %494, %493 : vector<1x512xf32>
    %496 = arith.addf %488, %495 : vector<1x512xf32>
    %497 = arith.addf %481, %496 : vector<1x512xf32>
    %c0_262 = arith.constant 0 : index
    %c9 = arith.constant 9 : index
    %498 = memref.load %arg10[%c0_262, %c9] : memref<2x49xf32, #tpu.memory_space<smem>>
    %c0_263 = arith.constant 0 : index
    %c95 = arith.constant 95 : index
    %499 = vector.load %arg12[%c0_263, %c95] : memref<32x768xf32, #tpu.memory_space<vmem>>, vector<1x512xf32>
    %500 = arith.andi %11, %51 : vector<1x512xi1>
    %cst_264 = arith.constant 0.000000e+00 : f32
    %501 = vector.broadcast %cst_264 : f32 to vector<1x512xf32>
    %502 = arith.select %500, %499, %501 : vector<1x512xi1>, vector<1x512xf32>
    %503 = vector.broadcast %498 : f32 to vector<1x512xf32>
    %504 = arith.mulf %503, %502 : vector<1x512xf32>
    %c1_265 = arith.constant 1 : index
    %c9_266 = arith.constant 9 : index
    %505 = memref.load %arg10[%c1_265, %c9_266] : memref<2x49xf32, #tpu.memory_space<smem>>
    %c1_267 = arith.constant 1 : index
    %c95_268 = arith.constant 95 : index
    %506 = vector.load %arg12[%c1_267, %c95_268] : memref<32x768xf32, #tpu.memory_space<vmem>>, vector<1x512xf32>
    %507 = arith.andi %11, %51 : vector<1x512xi1>
    %cst_269 = arith.constant 0.000000e+00 : f32
    %508 = vector.broadcast %cst_269 : f32 to vector<1x512xf32>
    %509 = arith.select %507, %506, %508 : vector<1x512xi1>, vector<1x512xf32>
    %510 = vector.broadcast %505 : f32 to vector<1x512xf32>
    %511 = arith.mulf %510, %509 : vector<1x512xf32>
    %512 = arith.addf %504, %511 : vector<1x512xf32>
    %513 = arith.addf %497, %512 : vector<1x512xf32>
    %c0_270 = arith.constant 0 : index
    %c10 = arith.constant 10 : index
    %514 = memref.load %arg10[%c0_270, %c10] : memref<2x49xf32, #tpu.memory_space<smem>>
    %c0_271 = arith.constant 0 : index
    %c96_272 = arith.constant 96 : index
    %515 = vector.load %arg12[%c0_271, %c96_272] : memref<32x768xf32, #tpu.memory_space<vmem>>, vector<1x512xf32>
    %516 = arith.andi %11, %56 : vector<1x512xi1>
    %cst_273 = arith.constant 0.000000e+00 : f32
    %517 = vector.broadcast %cst_273 : f32 to vector<1x512xf32>
    %518 = arith.select %516, %515, %517 : vector<1x512xi1>, vector<1x512xf32>
    %519 = vector.broadcast %514 : f32 to vector<1x512xf32>
    %520 = arith.mulf %519, %518 : vector<1x512xf32>
    %c1_274 = arith.constant 1 : index
    %c10_275 = arith.constant 10 : index
    %521 = memref.load %arg10[%c1_274, %c10_275] : memref<2x49xf32, #tpu.memory_space<smem>>
    %c1_276 = arith.constant 1 : index
    %c96_277 = arith.constant 96 : index
    %522 = vector.load %arg12[%c1_276, %c96_277] : memref<32x768xf32, #tpu.memory_space<vmem>>, vector<1x512xf32>
    %523 = arith.andi %11, %56 : vector<1x512xi1>
    %cst_278 = arith.constant 0.000000e+00 : f32
    %524 = vector.broadcast %cst_278 : f32 to vector<1x512xf32>
    %525 = arith.select %523, %522, %524 : vector<1x512xi1>, vector<1x512xf32>
    %526 = vector.broadcast %521 : f32 to vector<1x512xf32>
    %527 = arith.mulf %526, %525 : vector<1x512xf32>
    %528 = arith.addf %520, %527 : vector<1x512xf32>
    %529 = arith.addf %513, %528 : vector<1x512xf32>
    %c0_279 = arith.constant 0 : index
    %c11 = arith.constant 11 : index
    %530 = memref.load %arg10[%c0_279, %c11] : memref<2x49xf32, #tpu.memory_space<smem>>
    %c0_280 = arith.constant 0 : index
    %c97 = arith.constant 97 : index
    %531 = vector.load %arg12[%c0_280, %c97] : memref<32x768xf32, #tpu.memory_space<vmem>>, vector<1x512xf32>
    %532 = arith.andi %11, %61 : vector<1x512xi1>
    %cst_281 = arith.constant 0.000000e+00 : f32
    %533 = vector.broadcast %cst_281 : f32 to vector<1x512xf32>
    %534 = arith.select %532, %531, %533 : vector<1x512xi1>, vector<1x512xf32>
    %535 = vector.broadcast %530 : f32 to vector<1x512xf32>
    %536 = arith.mulf %535, %534 : vector<1x512xf32>
    %c1_282 = arith.constant 1 : index
    %c11_283 = arith.constant 11 : index
    %537 = memref.load %arg10[%c1_282, %c11_283] : memref<2x49xf32, #tpu.memory_space<smem>>
    %c1_284 = arith.constant 1 : index
    %c97_285 = arith.constant 97 : index
    %538 = vector.load %arg12[%c1_284, %c97_285] : memref<32x768xf32, #tpu.memory_space<vmem>>, vector<1x512xf32>
    %539 = arith.andi %11, %61 : vector<1x512xi1>
    %cst_286 = arith.constant 0.000000e+00 : f32
    %540 = vector.broadcast %cst_286 : f32 to vector<1x512xf32>
    %541 = arith.select %539, %538, %540 : vector<1x512xi1>, vector<1x512xf32>
    %542 = vector.broadcast %537 : f32 to vector<1x512xf32>
    %543 = arith.mulf %542, %541 : vector<1x512xf32>
    %544 = arith.addf %536, %543 : vector<1x512xf32>
    %545 = arith.addf %529, %544 : vector<1x512xf32>
    %c0_287 = arith.constant 0 : index
    %c12 = arith.constant 12 : index
    %546 = memref.load %arg10[%c0_287, %c12] : memref<2x49xf32, #tpu.memory_space<smem>>
    %c0_288 = arith.constant 0 : index
    %c98 = arith.constant 98 : index
    %547 = vector.load %arg12[%c0_288, %c98] : memref<32x768xf32, #tpu.memory_space<vmem>>, vector<1x512xf32>
    %548 = arith.andi %11, %66 : vector<1x512xi1>
    %cst_289 = arith.constant 0.000000e+00 : f32
    %549 = vector.broadcast %cst_289 : f32 to vector<1x512xf32>
    %550 = arith.select %548, %547, %549 : vector<1x512xi1>, vector<1x512xf32>
    %551 = vector.broadcast %546 : f32 to vector<1x512xf32>
    %552 = arith.mulf %551, %550 : vector<1x512xf32>
    %c1_290 = arith.constant 1 : index
    %c12_291 = arith.constant 12 : index
    %553 = memref.load %arg10[%c1_290, %c12_291] : memref<2x49xf32, #tpu.memory_space<smem>>
    %c1_292 = arith.constant 1 : index
    %c98_293 = arith.constant 98 : index
    %554 = vector.load %arg12[%c1_292, %c98_293] : memref<32x768xf32, #tpu.memory_space<vmem>>, vector<1x512xf32>
    %555 = arith.andi %11, %66 : vector<1x512xi1>
    %cst_294 = arith.constant 0.000000e+00 : f32
    %556 = vector.broadcast %cst_294 : f32 to vector<1x512xf32>
    %557 = arith.select %555, %554, %556 : vector<1x512xi1>, vector<1x512xf32>
    %558 = vector.broadcast %553 : f32 to vector<1x512xf32>
    %559 = arith.mulf %558, %557 : vector<1x512xf32>
    %560 = arith.addf %552, %559 : vector<1x512xf32>
    %561 = arith.addf %545, %560 : vector<1x512xf32>
    %c0_295 = arith.constant 0 : index
    %c13 = arith.constant 13 : index
    %562 = memref.load %arg10[%c0_295, %c13] : memref<2x49xf32, #tpu.memory_space<smem>>
    %c0_296 = arith.constant 0 : index
    %c99 = arith.constant 99 : index
    %563 = vector.load %arg12[%c0_296, %c99] : memref<32x768xf32, #tpu.memory_space<vmem>>, vector<1x512xf32>
    %564 = arith.andi %11, %71 : vector<1x512xi1>
    %cst_297 = arith.constant 0.000000e+00 : f32
    %565 = vector.broadcast %cst_297 : f32 to vector<1x512xf32>
    %566 = arith.select %564, %563, %565 : vector<1x512xi1>, vector<1x512xf32>
    %567 = vector.broadcast %562 : f32 to vector<1x512xf32>
    %568 = arith.mulf %567, %566 : vector<1x512xf32>
    %c1_298 = arith.constant 1 : index
    %c13_299 = arith.constant 13 : index
    %569 = memref.load %arg10[%c1_298, %c13_299] : memref<2x49xf32, #tpu.memory_space<smem>>
    %c1_300 = arith.constant 1 : index
    %c99_301 = arith.constant 99 : index
    %570 = vector.load %arg12[%c1_300, %c99_301] : memref<32x768xf32, #tpu.memory_space<vmem>>, vector<1x512xf32>
    %571 = arith.andi %11, %71 : vector<1x512xi1>
    %cst_302 = arith.constant 0.000000e+00 : f32
    %572 = vector.broadcast %cst_302 : f32 to vector<1x512xf32>
    %573 = arith.select %571, %570, %572 : vector<1x512xi1>, vector<1x512xf32>
    %574 = vector.broadcast %569 : f32 to vector<1x512xf32>
    %575 = arith.mulf %574, %573 : vector<1x512xf32>
    %576 = arith.addf %568, %575 : vector<1x512xf32>
    %577 = arith.addf %561, %576 : vector<1x512xf32>
    %c0_303 = arith.constant 0 : index
    %c14 = arith.constant 14 : index
    %578 = memref.load %arg10[%c0_303, %c14] : memref<2x49xf32, #tpu.memory_space<smem>>
    %c0_304 = arith.constant 0 : index
    %c109 = arith.constant 109 : index
    %579 = vector.load %arg12[%c0_304, %c109] : memref<32x768xf32, #tpu.memory_space<vmem>>, vector<1x512xf32>
    %580 = arith.andi %16, %41 : vector<1x512xi1>
    %cst_305 = arith.constant 0.000000e+00 : f32
    %581 = vector.broadcast %cst_305 : f32 to vector<1x512xf32>
    %582 = arith.select %580, %579, %581 : vector<1x512xi1>, vector<1x512xf32>
    %583 = vector.broadcast %578 : f32 to vector<1x512xf32>
    %584 = arith.mulf %583, %582 : vector<1x512xf32>
    %c1_306 = arith.constant 1 : index
    %c14_307 = arith.constant 14 : index
    %585 = memref.load %arg10[%c1_306, %c14_307] : memref<2x49xf32, #tpu.memory_space<smem>>
    %c1_308 = arith.constant 1 : index
    %c109_309 = arith.constant 109 : index
    %586 = vector.load %arg12[%c1_308, %c109_309] : memref<32x768xf32, #tpu.memory_space<vmem>>, vector<1x512xf32>
    %587 = arith.andi %16, %41 : vector<1x512xi1>
    %cst_310 = arith.constant 0.000000e+00 : f32
    %588 = vector.broadcast %cst_310 : f32 to vector<1x512xf32>
    %589 = arith.select %587, %586, %588 : vector<1x512xi1>, vector<1x512xf32>
    %590 = vector.broadcast %585 : f32 to vector<1x512xf32>
    %591 = arith.mulf %590, %589 : vector<1x512xf32>
    %592 = arith.addf %584, %591 : vector<1x512xf32>
    %593 = arith.addf %577, %592 : vector<1x512xf32>
    %c0_311 = arith.constant 0 : index
    %c15 = arith.constant 15 : index
    %594 = memref.load %arg10[%c0_311, %c15] : memref<2x49xf32, #tpu.memory_space<smem>>
    %c0_312 = arith.constant 0 : index
    %c110 = arith.constant 110 : index
    %595 = vector.load %arg12[%c0_312, %c110] : memref<32x768xf32, #tpu.memory_space<vmem>>, vector<1x512xf32>
    %596 = arith.andi %16, %46 : vector<1x512xi1>
    %cst_313 = arith.constant 0.000000e+00 : f32
    %597 = vector.broadcast %cst_313 : f32 to vector<1x512xf32>
    %598 = arith.select %596, %595, %597 : vector<1x512xi1>, vector<1x512xf32>
    %599 = vector.broadcast %594 : f32 to vector<1x512xf32>
    %600 = arith.mulf %599, %598 : vector<1x512xf32>
    %c1_314 = arith.constant 1 : index
    %c15_315 = arith.constant 15 : index
    %601 = memref.load %arg10[%c1_314, %c15_315] : memref<2x49xf32, #tpu.memory_space<smem>>
    %c1_316 = arith.constant 1 : index
    %c110_317 = arith.constant 110 : index
    %602 = vector.load %arg12[%c1_316, %c110_317] : memref<32x768xf32, #tpu.memory_space<vmem>>, vector<1x512xf32>
    %603 = arith.andi %16, %46 : vector<1x512xi1>
    %cst_318 = arith.constant 0.000000e+00 : f32
    %604 = vector.broadcast %cst_318 : f32 to vector<1x512xf32>
    %605 = arith.select %603, %602, %604 : vector<1x512xi1>, vector<1x512xf32>
    %606 = vector.broadcast %601 : f32 to vector<1x512xf32>
    %607 = arith.mulf %606, %605 : vector<1x512xf32>
    %608 = arith.addf %600, %607 : vector<1x512xf32>
    %609 = arith.addf %593, %608 : vector<1x512xf32>
    %c0_319 = arith.constant 0 : index
    %c16 = arith.constant 16 : index
    %610 = memref.load %arg10[%c0_319, %c16] : memref<2x49xf32, #tpu.memory_space<smem>>
    %c0_320 = arith.constant 0 : index
    %c111_321 = arith.constant 111 : index
    %611 = vector.load %arg12[%c0_320, %c111_321] : memref<32x768xf32, #tpu.memory_space<vmem>>, vector<1x512xf32>
    %612 = arith.andi %16, %51 : vector<1x512xi1>
    %cst_322 = arith.constant 0.000000e+00 : f32
    %613 = vector.broadcast %cst_322 : f32 to vector<1x512xf32>
    %614 = arith.select %612, %611, %613 : vector<1x512xi1>, vector<1x512xf32>
    %615 = vector.broadcast %610 : f32 to vector<1x512xf32>
    %616 = arith.mulf %615, %614 : vector<1x512xf32>
    %c1_323 = arith.constant 1 : index
    %c16_324 = arith.constant 16 : index
    %617 = memref.load %arg10[%c1_323, %c16_324] : memref<2x49xf32, #tpu.memory_space<smem>>
    %c1_325 = arith.constant 1 : index
    %c111_326 = arith.constant 111 : index
    %618 = vector.load %arg12[%c1_325, %c111_326] : memref<32x768xf32, #tpu.memory_space<vmem>>, vector<1x512xf32>
    %619 = arith.andi %16, %51 : vector<1x512xi1>
    %cst_327 = arith.constant 0.000000e+00 : f32
    %620 = vector.broadcast %cst_327 : f32 to vector<1x512xf32>
    %621 = arith.select %619, %618, %620 : vector<1x512xi1>, vector<1x512xf32>
    %622 = vector.broadcast %617 : f32 to vector<1x512xf32>
    %623 = arith.mulf %622, %621 : vector<1x512xf32>
    %624 = arith.addf %616, %623 : vector<1x512xf32>
    %625 = arith.addf %609, %624 : vector<1x512xf32>
    %c0_328 = arith.constant 0 : index
    %c17 = arith.constant 17 : index
    %626 = memref.load %arg10[%c0_328, %c17] : memref<2x49xf32, #tpu.memory_space<smem>>
    %c0_329 = arith.constant 0 : index
    %c112_330 = arith.constant 112 : index
    %627 = vector.load %arg12[%c0_329, %c112_330] : memref<32x768xf32, #tpu.memory_space<vmem>>, vector<1x512xf32>
    %628 = arith.andi %16, %56 : vector<1x512xi1>
    %cst_331 = arith.constant 0.000000e+00 : f32
    %629 = vector.broadcast %cst_331 : f32 to vector<1x512xf32>
    %630 = arith.select %628, %627, %629 : vector<1x512xi1>, vector<1x512xf32>
    %631 = vector.broadcast %626 : f32 to vector<1x512xf32>
    %632 = arith.mulf %631, %630 : vector<1x512xf32>
    %c1_332 = arith.constant 1 : index
    %c17_333 = arith.constant 17 : index
    %633 = memref.load %arg10[%c1_332, %c17_333] : memref<2x49xf32, #tpu.memory_space<smem>>
    %c1_334 = arith.constant 1 : index
    %c112_335 = arith.constant 112 : index
    %634 = vector.load %arg12[%c1_334, %c112_335] : memref<32x768xf32, #tpu.memory_space<vmem>>, vector<1x512xf32>
    %635 = arith.andi %16, %56 : vector<1x512xi1>
    %cst_336 = arith.constant 0.000000e+00 : f32
    %636 = vector.broadcast %cst_336 : f32 to vector<1x512xf32>
    %637 = arith.select %635, %634, %636 : vector<1x512xi1>, vector<1x512xf32>
    %638 = vector.broadcast %633 : f32 to vector<1x512xf32>
    %639 = arith.mulf %638, %637 : vector<1x512xf32>
    %640 = arith.addf %632, %639 : vector<1x512xf32>
    %641 = arith.addf %625, %640 : vector<1x512xf32>
    %c0_337 = arith.constant 0 : index
    %c18 = arith.constant 18 : index
    %642 = memref.load %arg10[%c0_337, %c18] : memref<2x49xf32, #tpu.memory_space<smem>>
    %c0_338 = arith.constant 0 : index
    %c113_339 = arith.constant 113 : index
    %643 = vector.load %arg12[%c0_338, %c113_339] : memref<32x768xf32, #tpu.memory_space<vmem>>, vector<1x512xf32>
    %644 = arith.andi %16, %61 : vector<1x512xi1>
    %cst_340 = arith.constant 0.000000e+00 : f32
    %645 = vector.broadcast %cst_340 : f32 to vector<1x512xf32>
    %646 = arith.select %644, %643, %645 : vector<1x512xi1>, vector<1x512xf32>
    %647 = vector.broadcast %642 : f32 to vector<1x512xf32>
    %648 = arith.mulf %647, %646 : vector<1x512xf32>
    %c1_341 = arith.constant 1 : index
    %c18_342 = arith.constant 18 : index
    %649 = memref.load %arg10[%c1_341, %c18_342] : memref<2x49xf32, #tpu.memory_space<smem>>
    %c1_343 = arith.constant 1 : index
    %c113_344 = arith.constant 113 : index
    %650 = vector.load %arg12[%c1_343, %c113_344] : memref<32x768xf32, #tpu.memory_space<vmem>>, vector<1x512xf32>
    %651 = arith.andi %16, %61 : vector<1x512xi1>
    %cst_345 = arith.constant 0.000000e+00 : f32
    %652 = vector.broadcast %cst_345 : f32 to vector<1x512xf32>
    %653 = arith.select %651, %650, %652 : vector<1x512xi1>, vector<1x512xf32>
    %654 = vector.broadcast %649 : f32 to vector<1x512xf32>
    %655 = arith.mulf %654, %653 : vector<1x512xf32>
    %656 = arith.addf %648, %655 : vector<1x512xf32>
    %657 = arith.addf %641, %656 : vector<1x512xf32>
    %c0_346 = arith.constant 0 : index
    %c19 = arith.constant 19 : index
    %658 = memref.load %arg10[%c0_346, %c19] : memref<2x49xf32, #tpu.memory_space<smem>>
    %c0_347 = arith.constant 0 : index
    %c114 = arith.constant 114 : index
    %659 = vector.load %arg12[%c0_347, %c114] : memref<32x768xf32, #tpu.memory_space<vmem>>, vector<1x512xf32>
    %660 = arith.andi %16, %66 : vector<1x512xi1>
    %cst_348 = arith.constant 0.000000e+00 : f32
    %661 = vector.broadcast %cst_348 : f32 to vector<1x512xf32>
    %662 = arith.select %660, %659, %661 : vector<1x512xi1>, vector<1x512xf32>
    %663 = vector.broadcast %658 : f32 to vector<1x512xf32>
    %664 = arith.mulf %663, %662 : vector<1x512xf32>
    %c1_349 = arith.constant 1 : index
    %c19_350 = arith.constant 19 : index
    %665 = memref.load %arg10[%c1_349, %c19_350] : memref<2x49xf32, #tpu.memory_space<smem>>
    %c1_351 = arith.constant 1 : index
    %c114_352 = arith.constant 114 : index
    %666 = vector.load %arg12[%c1_351, %c114_352] : memref<32x768xf32, #tpu.memory_space<vmem>>, vector<1x512xf32>
    %667 = arith.andi %16, %66 : vector<1x512xi1>
    %cst_353 = arith.constant 0.000000e+00 : f32
    %668 = vector.broadcast %cst_353 : f32 to vector<1x512xf32>
    %669 = arith.select %667, %666, %668 : vector<1x512xi1>, vector<1x512xf32>
    %670 = vector.broadcast %665 : f32 to vector<1x512xf32>
    %671 = arith.mulf %670, %669 : vector<1x512xf32>
    %672 = arith.addf %664, %671 : vector<1x512xf32>
    %673 = arith.addf %657, %672 : vector<1x512xf32>
    %c0_354 = arith.constant 0 : index
    %c20 = arith.constant 20 : index
    %674 = memref.load %arg10[%c0_354, %c20] : memref<2x49xf32, #tpu.memory_space<smem>>
    %c0_355 = arith.constant 0 : index
    %c115 = arith.constant 115 : index
    %675 = vector.load %arg12[%c0_355, %c115] : memref<32x768xf32, #tpu.memory_space<vmem>>, vector<1x512xf32>
    %676 = arith.andi %16, %71 : vector<1x512xi1>
    %cst_356 = arith.constant 0.000000e+00 : f32
    %677 = vector.broadcast %cst_356 : f32 to vector<1x512xf32>
    %678 = arith.select %676, %675, %677 : vector<1x512xi1>, vector<1x512xf32>
    %679 = vector.broadcast %674 : f32 to vector<1x512xf32>
    %680 = arith.mulf %679, %678 : vector<1x512xf32>
    %c1_357 = arith.constant 1 : index
    %c20_358 = arith.constant 20 : index
    %681 = memref.load %arg10[%c1_357, %c20_358] : memref<2x49xf32, #tpu.memory_space<smem>>
    %c1_359 = arith.constant 1 : index
    %c115_360 = arith.constant 115 : index
    %682 = vector.load %arg12[%c1_359, %c115_360] : memref<32x768xf32, #tpu.memory_space<vmem>>, vector<1x512xf32>
    %683 = arith.andi %16, %71 : vector<1x512xi1>
    %cst_361 = arith.constant 0.000000e+00 : f32
    %684 = vector.broadcast %cst_361 : f32 to vector<1x512xf32>
    %685 = arith.select %683, %682, %684 : vector<1x512xi1>, vector<1x512xf32>
    %686 = vector.broadcast %681 : f32 to vector<1x512xf32>
    %687 = arith.mulf %686, %685 : vector<1x512xf32>
    %688 = arith.addf %680, %687 : vector<1x512xf32>
    %689 = arith.addf %673, %688 : vector<1x512xf32>
    %c0_362 = arith.constant 0 : index
    %c21 = arith.constant 21 : index
    %690 = memref.load %arg10[%c0_362, %c21] : memref<2x49xf32, #tpu.memory_space<smem>>
    %c0_363 = arith.constant 0 : index
    %c125 = arith.constant 125 : index
    %691 = vector.load %arg12[%c0_363, %c125] : memref<32x768xf32, #tpu.memory_space<vmem>>, vector<1x512xf32>
    %692 = arith.andi %21, %41 : vector<1x512xi1>
    %cst_364 = arith.constant 0.000000e+00 : f32
    %693 = vector.broadcast %cst_364 : f32 to vector<1x512xf32>
    %694 = arith.select %692, %691, %693 : vector<1x512xi1>, vector<1x512xf32>
    %695 = vector.broadcast %690 : f32 to vector<1x512xf32>
    %696 = arith.mulf %695, %694 : vector<1x512xf32>
    %c1_365 = arith.constant 1 : index
    %c21_366 = arith.constant 21 : index
    %697 = memref.load %arg10[%c1_365, %c21_366] : memref<2x49xf32, #tpu.memory_space<smem>>
    %c1_367 = arith.constant 1 : index
    %c125_368 = arith.constant 125 : index
    %698 = vector.load %arg12[%c1_367, %c125_368] : memref<32x768xf32, #tpu.memory_space<vmem>>, vector<1x512xf32>
    %699 = arith.andi %21, %41 : vector<1x512xi1>
    %cst_369 = arith.constant 0.000000e+00 : f32
    %700 = vector.broadcast %cst_369 : f32 to vector<1x512xf32>
    %701 = arith.select %699, %698, %700 : vector<1x512xi1>, vector<1x512xf32>
    %702 = vector.broadcast %697 : f32 to vector<1x512xf32>
    %703 = arith.mulf %702, %701 : vector<1x512xf32>
    %704 = arith.addf %696, %703 : vector<1x512xf32>
    %705 = arith.addf %689, %704 : vector<1x512xf32>
    %c0_370 = arith.constant 0 : index
    %c22 = arith.constant 22 : index
    %706 = memref.load %arg10[%c0_370, %c22] : memref<2x49xf32, #tpu.memory_space<smem>>
    %c0_371 = arith.constant 0 : index
    %c126 = arith.constant 126 : index
    %707 = vector.load %arg12[%c0_371, %c126] : memref<32x768xf32, #tpu.memory_space<vmem>>, vector<1x512xf32>
    %708 = arith.andi %21, %46 : vector<1x512xi1>
    %cst_372 = arith.constant 0.000000e+00 : f32
    %709 = vector.broadcast %cst_372 : f32 to vector<1x512xf32>
    %710 = arith.select %708, %707, %709 : vector<1x512xi1>, vector<1x512xf32>
    %711 = vector.broadcast %706 : f32 to vector<1x512xf32>
    %712 = arith.mulf %711, %710 : vector<1x512xf32>
    %c1_373 = arith.constant 1 : index
    %c22_374 = arith.constant 22 : index
    %713 = memref.load %arg10[%c1_373, %c22_374] : memref<2x49xf32, #tpu.memory_space<smem>>
    %c1_375 = arith.constant 1 : index
    %c126_376 = arith.constant 126 : index
    %714 = vector.load %arg12[%c1_375, %c126_376] : memref<32x768xf32, #tpu.memory_space<vmem>>, vector<1x512xf32>
    %715 = arith.andi %21, %46 : vector<1x512xi1>
    %cst_377 = arith.constant 0.000000e+00 : f32
    %716 = vector.broadcast %cst_377 : f32 to vector<1x512xf32>
    %717 = arith.select %715, %714, %716 : vector<1x512xi1>, vector<1x512xf32>
    %718 = vector.broadcast %713 : f32 to vector<1x512xf32>
    %719 = arith.mulf %718, %717 : vector<1x512xf32>
    %720 = arith.addf %712, %719 : vector<1x512xf32>
    %721 = arith.addf %705, %720 : vector<1x512xf32>
    %c0_378 = arith.constant 0 : index
    %c23 = arith.constant 23 : index
    %722 = memref.load %arg10[%c0_378, %c23] : memref<2x49xf32, #tpu.memory_space<smem>>
    %c0_379 = arith.constant 0 : index
    %c127_380 = arith.constant 127 : index
    %723 = vector.load %arg12[%c0_379, %c127_380] : memref<32x768xf32, #tpu.memory_space<vmem>>, vector<1x512xf32>
    %724 = arith.andi %21, %51 : vector<1x512xi1>
    %cst_381 = arith.constant 0.000000e+00 : f32
    %725 = vector.broadcast %cst_381 : f32 to vector<1x512xf32>
    %726 = arith.select %724, %723, %725 : vector<1x512xi1>, vector<1x512xf32>
    %727 = vector.broadcast %722 : f32 to vector<1x512xf32>
    %728 = arith.mulf %727, %726 : vector<1x512xf32>
    %c1_382 = arith.constant 1 : index
    %c23_383 = arith.constant 23 : index
    %729 = memref.load %arg10[%c1_382, %c23_383] : memref<2x49xf32, #tpu.memory_space<smem>>
    %c1_384 = arith.constant 1 : index
    %c127_385 = arith.constant 127 : index
    %730 = vector.load %arg12[%c1_384, %c127_385] : memref<32x768xf32, #tpu.memory_space<vmem>>, vector<1x512xf32>
    %731 = arith.andi %21, %51 : vector<1x512xi1>
    %cst_386 = arith.constant 0.000000e+00 : f32
    %732 = vector.broadcast %cst_386 : f32 to vector<1x512xf32>
    %733 = arith.select %731, %730, %732 : vector<1x512xi1>, vector<1x512xf32>
    %734 = vector.broadcast %729 : f32 to vector<1x512xf32>
    %735 = arith.mulf %734, %733 : vector<1x512xf32>
    %736 = arith.addf %728, %735 : vector<1x512xf32>
    %737 = arith.addf %721, %736 : vector<1x512xf32>
    %c0_387 = arith.constant 0 : index
    %c24 = arith.constant 24 : index
    %738 = memref.load %arg10[%c0_387, %c24] : memref<2x49xf32, #tpu.memory_space<smem>>
    %c0_388 = arith.constant 0 : index
    %c128_389 = arith.constant 128 : index
    %739 = vector.load %arg12[%c0_388, %c128_389] : memref<32x768xf32, #tpu.memory_space<vmem>>, vector<1x512xf32>
    %740 = vector.broadcast %738 : f32 to vector<1x512xf32>
    %741 = arith.mulf %740, %739 : vector<1x512xf32>
    %c1_390 = arith.constant 1 : index
    %c24_391 = arith.constant 24 : index
    %742 = memref.load %arg10[%c1_390, %c24_391] : memref<2x49xf32, #tpu.memory_space<smem>>
    %c1_392 = arith.constant 1 : index
    %c128_393 = arith.constant 128 : index
    %743 = vector.load %arg12[%c1_392, %c128_393] : memref<32x768xf32, #tpu.memory_space<vmem>>, vector<1x512xf32>
    %744 = vector.broadcast %742 : f32 to vector<1x512xf32>
    %745 = arith.mulf %744, %743 : vector<1x512xf32>
    %746 = arith.addf %741, %745 : vector<1x512xf32>
    %747 = arith.addf %737, %746 : vector<1x512xf32>
    %c0_394 = arith.constant 0 : index
    %c25 = arith.constant 25 : index
    %748 = memref.load %arg10[%c0_394, %c25] : memref<2x49xf32, #tpu.memory_space<smem>>
    %c0_395 = arith.constant 0 : index
    %c129_396 = arith.constant 129 : index
    %749 = vector.load %arg12[%c0_395, %c129_396] : memref<32x768xf32, #tpu.memory_space<vmem>>, vector<1x512xf32>
    %750 = arith.andi %21, %61 : vector<1x512xi1>
    %cst_397 = arith.constant 0.000000e+00 : f32
    %751 = vector.broadcast %cst_397 : f32 to vector<1x512xf32>
    %752 = arith.select %750, %749, %751 : vector<1x512xi1>, vector<1x512xf32>
    %753 = vector.broadcast %748 : f32 to vector<1x512xf32>
    %754 = arith.mulf %753, %752 : vector<1x512xf32>
    %c1_398 = arith.constant 1 : index
    %c25_399 = arith.constant 25 : index
    %755 = memref.load %arg10[%c1_398, %c25_399] : memref<2x49xf32, #tpu.memory_space<smem>>
    %c1_400 = arith.constant 1 : index
    %c129_401 = arith.constant 129 : index
    %756 = vector.load %arg12[%c1_400, %c129_401] : memref<32x768xf32, #tpu.memory_space<vmem>>, vector<1x512xf32>
    %757 = arith.andi %21, %61 : vector<1x512xi1>
    %cst_402 = arith.constant 0.000000e+00 : f32
    %758 = vector.broadcast %cst_402 : f32 to vector<1x512xf32>
    %759 = arith.select %757, %756, %758 : vector<1x512xi1>, vector<1x512xf32>
    %760 = vector.broadcast %755 : f32 to vector<1x512xf32>
    %761 = arith.mulf %760, %759 : vector<1x512xf32>
    %762 = arith.addf %754, %761 : vector<1x512xf32>
    %763 = arith.addf %747, %762 : vector<1x512xf32>
    %c0_403 = arith.constant 0 : index
    %c26 = arith.constant 26 : index
    %764 = memref.load %arg10[%c0_403, %c26] : memref<2x49xf32, #tpu.memory_space<smem>>
    %c0_404 = arith.constant 0 : index
    %c130 = arith.constant 130 : index
    %765 = vector.load %arg12[%c0_404, %c130] : memref<32x768xf32, #tpu.memory_space<vmem>>, vector<1x512xf32>
    %766 = arith.andi %21, %66 : vector<1x512xi1>
    %cst_405 = arith.constant 0.000000e+00 : f32
    %767 = vector.broadcast %cst_405 : f32 to vector<1x512xf32>
    %768 = arith.select %766, %765, %767 : vector<1x512xi1>, vector<1x512xf32>
    %769 = vector.broadcast %764 : f32 to vector<1x512xf32>
    %770 = arith.mulf %769, %768 : vector<1x512xf32>
    %c1_406 = arith.constant 1 : index
    %c26_407 = arith.constant 26 : index
    %771 = memref.load %arg10[%c1_406, %c26_407] : memref<2x49xf32, #tpu.memory_space<smem>>
    %c1_408 = arith.constant 1 : index
    %c130_409 = arith.constant 130 : index
    %772 = vector.load %arg12[%c1_408, %c130_409] : memref<32x768xf32, #tpu.memory_space<vmem>>, vector<1x512xf32>
    %773 = arith.andi %21, %66 : vector<1x512xi1>
    %cst_410 = arith.constant 0.000000e+00 : f32
    %774 = vector.broadcast %cst_410 : f32 to vector<1x512xf32>
    %775 = arith.select %773, %772, %774 : vector<1x512xi1>, vector<1x512xf32>
    %776 = vector.broadcast %771 : f32 to vector<1x512xf32>
    %777 = arith.mulf %776, %775 : vector<1x512xf32>
    %778 = arith.addf %770, %777 : vector<1x512xf32>
    %779 = arith.addf %763, %778 : vector<1x512xf32>
    %c0_411 = arith.constant 0 : index
    %c27 = arith.constant 27 : index
    %780 = memref.load %arg10[%c0_411, %c27] : memref<2x49xf32, #tpu.memory_space<smem>>
    %c0_412 = arith.constant 0 : index
    %c131 = arith.constant 131 : index
    %781 = vector.load %arg12[%c0_412, %c131] : memref<32x768xf32, #tpu.memory_space<vmem>>, vector<1x512xf32>
    %782 = arith.andi %21, %71 : vector<1x512xi1>
    %cst_413 = arith.constant 0.000000e+00 : f32
    %783 = vector.broadcast %cst_413 : f32 to vector<1x512xf32>
    %784 = arith.select %782, %781, %783 : vector<1x512xi1>, vector<1x512xf32>
    %785 = vector.broadcast %780 : f32 to vector<1x512xf32>
    %786 = arith.mulf %785, %784 : vector<1x512xf32>
    %c1_414 = arith.constant 1 : index
    %c27_415 = arith.constant 27 : index
    %787 = memref.load %arg10[%c1_414, %c27_415] : memref<2x49xf32, #tpu.memory_space<smem>>
    %c1_416 = arith.constant 1 : index
    %c131_417 = arith.constant 131 : index
    %788 = vector.load %arg12[%c1_416, %c131_417] : memref<32x768xf32, #tpu.memory_space<vmem>>, vector<1x512xf32>
    %789 = arith.andi %21, %71 : vector<1x512xi1>
    %cst_418 = arith.constant 0.000000e+00 : f32
    %790 = vector.broadcast %cst_418 : f32 to vector<1x512xf32>
    %791 = arith.select %789, %788, %790 : vector<1x512xi1>, vector<1x512xf32>
    %792 = vector.broadcast %787 : f32 to vector<1x512xf32>
    %793 = arith.mulf %792, %791 : vector<1x512xf32>
    %794 = arith.addf %786, %793 : vector<1x512xf32>
    %795 = arith.addf %779, %794 : vector<1x512xf32>
    %c0_419 = arith.constant 0 : index
    %c28 = arith.constant 28 : index
    %796 = memref.load %arg10[%c0_419, %c28] : memref<2x49xf32, #tpu.memory_space<smem>>
    %c0_420 = arith.constant 0 : index
    %c141 = arith.constant 141 : index
    %797 = vector.load %arg12[%c0_420, %c141] : memref<32x768xf32, #tpu.memory_space<vmem>>, vector<1x512xf32>
    %798 = arith.andi %26, %41 : vector<1x512xi1>
    %cst_421 = arith.constant 0.000000e+00 : f32
    %799 = vector.broadcast %cst_421 : f32 to vector<1x512xf32>
    %800 = arith.select %798, %797, %799 : vector<1x512xi1>, vector<1x512xf32>
    %801 = vector.broadcast %796 : f32 to vector<1x512xf32>
    %802 = arith.mulf %801, %800 : vector<1x512xf32>
    %c1_422 = arith.constant 1 : index
    %c28_423 = arith.constant 28 : index
    %803 = memref.load %arg10[%c1_422, %c28_423] : memref<2x49xf32, #tpu.memory_space<smem>>
    %c1_424 = arith.constant 1 : index
    %c141_425 = arith.constant 141 : index
    %804 = vector.load %arg12[%c1_424, %c141_425] : memref<32x768xf32, #tpu.memory_space<vmem>>, vector<1x512xf32>
    %805 = arith.andi %26, %41 : vector<1x512xi1>
    %cst_426 = arith.constant 0.000000e+00 : f32
    %806 = vector.broadcast %cst_426 : f32 to vector<1x512xf32>
    %807 = arith.select %805, %804, %806 : vector<1x512xi1>, vector<1x512xf32>
    %808 = vector.broadcast %803 : f32 to vector<1x512xf32>
    %809 = arith.mulf %808, %807 : vector<1x512xf32>
    %810 = arith.addf %802, %809 : vector<1x512xf32>
    %811 = arith.addf %795, %810 : vector<1x512xf32>
    %c0_427 = arith.constant 0 : index
    %c29 = arith.constant 29 : index
    %812 = memref.load %arg10[%c0_427, %c29] : memref<2x49xf32, #tpu.memory_space<smem>>
    %c0_428 = arith.constant 0 : index
    %c142 = arith.constant 142 : index
    %813 = vector.load %arg12[%c0_428, %c142] : memref<32x768xf32, #tpu.memory_space<vmem>>, vector<1x512xf32>
    %814 = arith.andi %26, %46 : vector<1x512xi1>
    %cst_429 = arith.constant 0.000000e+00 : f32
    %815 = vector.broadcast %cst_429 : f32 to vector<1x512xf32>
    %816 = arith.select %814, %813, %815 : vector<1x512xi1>, vector<1x512xf32>
    %817 = vector.broadcast %812 : f32 to vector<1x512xf32>
    %818 = arith.mulf %817, %816 : vector<1x512xf32>
    %c1_430 = arith.constant 1 : index
    %c29_431 = arith.constant 29 : index
    %819 = memref.load %arg10[%c1_430, %c29_431] : memref<2x49xf32, #tpu.memory_space<smem>>
    %c1_432 = arith.constant 1 : index
    %c142_433 = arith.constant 142 : index
    %820 = vector.load %arg12[%c1_432, %c142_433] : memref<32x768xf32, #tpu.memory_space<vmem>>, vector<1x512xf32>
    %821 = arith.andi %26, %46 : vector<1x512xi1>
    %cst_434 = arith.constant 0.000000e+00 : f32
    %822 = vector.broadcast %cst_434 : f32 to vector<1x512xf32>
    %823 = arith.select %821, %820, %822 : vector<1x512xi1>, vector<1x512xf32>
    %824 = vector.broadcast %819 : f32 to vector<1x512xf32>
    %825 = arith.mulf %824, %823 : vector<1x512xf32>
    %826 = arith.addf %818, %825 : vector<1x512xf32>
    %827 = arith.addf %811, %826 : vector<1x512xf32>
    %c0_435 = arith.constant 0 : index
    %c30 = arith.constant 30 : index
    %828 = memref.load %arg10[%c0_435, %c30] : memref<2x49xf32, #tpu.memory_space<smem>>
    %c0_436 = arith.constant 0 : index
    %c143_437 = arith.constant 143 : index
    %829 = vector.load %arg12[%c0_436, %c143_437] : memref<32x768xf32, #tpu.memory_space<vmem>>, vector<1x512xf32>
    %830 = arith.andi %26, %51 : vector<1x512xi1>
    %cst_438 = arith.constant 0.000000e+00 : f32
    %831 = vector.broadcast %cst_438 : f32 to vector<1x512xf32>
    %832 = arith.select %830, %829, %831 : vector<1x512xi1>, vector<1x512xf32>
    %833 = vector.broadcast %828 : f32 to vector<1x512xf32>
    %834 = arith.mulf %833, %832 : vector<1x512xf32>
    %c1_439 = arith.constant 1 : index
    %c30_440 = arith.constant 30 : index
    %835 = memref.load %arg10[%c1_439, %c30_440] : memref<2x49xf32, #tpu.memory_space<smem>>
    %c1_441 = arith.constant 1 : index
    %c143_442 = arith.constant 143 : index
    %836 = vector.load %arg12[%c1_441, %c143_442] : memref<32x768xf32, #tpu.memory_space<vmem>>, vector<1x512xf32>
    %837 = arith.andi %26, %51 : vector<1x512xi1>
    %cst_443 = arith.constant 0.000000e+00 : f32
    %838 = vector.broadcast %cst_443 : f32 to vector<1x512xf32>
    %839 = arith.select %837, %836, %838 : vector<1x512xi1>, vector<1x512xf32>
    %840 = vector.broadcast %835 : f32 to vector<1x512xf32>
    %841 = arith.mulf %840, %839 : vector<1x512xf32>
    %842 = arith.addf %834, %841 : vector<1x512xf32>
    %843 = arith.addf %827, %842 : vector<1x512xf32>
    %c0_444 = arith.constant 0 : index
    %c31 = arith.constant 31 : index
    %844 = memref.load %arg10[%c0_444, %c31] : memref<2x49xf32, #tpu.memory_space<smem>>
    %c0_445 = arith.constant 0 : index
    %c144_446 = arith.constant 144 : index
    %845 = vector.load %arg12[%c0_445, %c144_446] : memref<32x768xf32, #tpu.memory_space<vmem>>, vector<1x512xf32>
    %846 = arith.andi %26, %56 : vector<1x512xi1>
    %cst_447 = arith.constant 0.000000e+00 : f32
    %847 = vector.broadcast %cst_447 : f32 to vector<1x512xf32>
    %848 = arith.select %846, %845, %847 : vector<1x512xi1>, vector<1x512xf32>
    %849 = vector.broadcast %844 : f32 to vector<1x512xf32>
    %850 = arith.mulf %849, %848 : vector<1x512xf32>
    %c1_448 = arith.constant 1 : index
    %c31_449 = arith.constant 31 : index
    %851 = memref.load %arg10[%c1_448, %c31_449] : memref<2x49xf32, #tpu.memory_space<smem>>
    %c1_450 = arith.constant 1 : index
    %c144_451 = arith.constant 144 : index
    %852 = vector.load %arg12[%c1_450, %c144_451] : memref<32x768xf32, #tpu.memory_space<vmem>>, vector<1x512xf32>
    %853 = arith.andi %26, %56 : vector<1x512xi1>
    %cst_452 = arith.constant 0.000000e+00 : f32
    %854 = vector.broadcast %cst_452 : f32 to vector<1x512xf32>
    %855 = arith.select %853, %852, %854 : vector<1x512xi1>, vector<1x512xf32>
    %856 = vector.broadcast %851 : f32 to vector<1x512xf32>
    %857 = arith.mulf %856, %855 : vector<1x512xf32>
    %858 = arith.addf %850, %857 : vector<1x512xf32>
    %859 = arith.addf %843, %858 : vector<1x512xf32>
    %c0_453 = arith.constant 0 : index
    %c32_454 = arith.constant 32 : index
    %860 = memref.load %arg10[%c0_453, %c32_454] : memref<2x49xf32, #tpu.memory_space<smem>>
    %c0_455 = arith.constant 0 : index
    %c145_456 = arith.constant 145 : index
    %861 = vector.load %arg12[%c0_455, %c145_456] : memref<32x768xf32, #tpu.memory_space<vmem>>, vector<1x512xf32>
    %862 = arith.andi %26, %61 : vector<1x512xi1>
    %cst_457 = arith.constant 0.000000e+00 : f32
    %863 = vector.broadcast %cst_457 : f32 to vector<1x512xf32>
    %864 = arith.select %862, %861, %863 : vector<1x512xi1>, vector<1x512xf32>
    %865 = vector.broadcast %860 : f32 to vector<1x512xf32>
    %866 = arith.mulf %865, %864 : vector<1x512xf32>
    %c1_458 = arith.constant 1 : index
    %c32_459 = arith.constant 32 : index
    %867 = memref.load %arg10[%c1_458, %c32_459] : memref<2x49xf32, #tpu.memory_space<smem>>
    %c1_460 = arith.constant 1 : index
    %c145_461 = arith.constant 145 : index
    %868 = vector.load %arg12[%c1_460, %c145_461] : memref<32x768xf32, #tpu.memory_space<vmem>>, vector<1x512xf32>
    %869 = arith.andi %26, %61 : vector<1x512xi1>
    %cst_462 = arith.constant 0.000000e+00 : f32
    %870 = vector.broadcast %cst_462 : f32 to vector<1x512xf32>
    %871 = arith.select %869, %868, %870 : vector<1x512xi1>, vector<1x512xf32>
    %872 = vector.broadcast %867 : f32 to vector<1x512xf32>
    %873 = arith.mulf %872, %871 : vector<1x512xf32>
    %874 = arith.addf %866, %873 : vector<1x512xf32>
    %875 = arith.addf %859, %874 : vector<1x512xf32>
    %c0_463 = arith.constant 0 : index
    %c33 = arith.constant 33 : index
    %876 = memref.load %arg10[%c0_463, %c33] : memref<2x49xf32, #tpu.memory_space<smem>>
    %c0_464 = arith.constant 0 : index
    %c146 = arith.constant 146 : index
    %877 = vector.load %arg12[%c0_464, %c146] : memref<32x768xf32, #tpu.memory_space<vmem>>, vector<1x512xf32>
    %878 = arith.andi %26, %66 : vector<1x512xi1>
    %cst_465 = arith.constant 0.000000e+00 : f32
    %879 = vector.broadcast %cst_465 : f32 to vector<1x512xf32>
    %880 = arith.select %878, %877, %879 : vector<1x512xi1>, vector<1x512xf32>
    %881 = vector.broadcast %876 : f32 to vector<1x512xf32>
    %882 = arith.mulf %881, %880 : vector<1x512xf32>
    %c1_466 = arith.constant 1 : index
    %c33_467 = arith.constant 33 : index
    %883 = memref.load %arg10[%c1_466, %c33_467] : memref<2x49xf32, #tpu.memory_space<smem>>
    %c1_468 = arith.constant 1 : index
    %c146_469 = arith.constant 146 : index
    %884 = vector.load %arg12[%c1_468, %c146_469] : memref<32x768xf32, #tpu.memory_space<vmem>>, vector<1x512xf32>
    %885 = arith.andi %26, %66 : vector<1x512xi1>
    %cst_470 = arith.constant 0.000000e+00 : f32
    %886 = vector.broadcast %cst_470 : f32 to vector<1x512xf32>
    %887 = arith.select %885, %884, %886 : vector<1x512xi1>, vector<1x512xf32>
    %888 = vector.broadcast %883 : f32 to vector<1x512xf32>
    %889 = arith.mulf %888, %887 : vector<1x512xf32>
    %890 = arith.addf %882, %889 : vector<1x512xf32>
    %891 = arith.addf %875, %890 : vector<1x512xf32>
    %c0_471 = arith.constant 0 : index
    %c34 = arith.constant 34 : index
    %892 = memref.load %arg10[%c0_471, %c34] : memref<2x49xf32, #tpu.memory_space<smem>>
    %c0_472 = arith.constant 0 : index
    %c147 = arith.constant 147 : index
    %893 = vector.load %arg12[%c0_472, %c147] : memref<32x768xf32, #tpu.memory_space<vmem>>, vector<1x512xf32>
    %894 = arith.andi %26, %71 : vector<1x512xi1>
    %cst_473 = arith.constant 0.000000e+00 : f32
    %895 = vector.broadcast %cst_473 : f32 to vector<1x512xf32>
    %896 = arith.select %894, %893, %895 : vector<1x512xi1>, vector<1x512xf32>
    %897 = vector.broadcast %892 : f32 to vector<1x512xf32>
    %898 = arith.mulf %897, %896 : vector<1x512xf32>
    %c1_474 = arith.constant 1 : index
    %c34_475 = arith.constant 34 : index
    %899 = memref.load %arg10[%c1_474, %c34_475] : memref<2x49xf32, #tpu.memory_space<smem>>
    %c1_476 = arith.constant 1 : index
    %c147_477 = arith.constant 147 : index
    %900 = vector.load %arg12[%c1_476, %c147_477] : memref<32x768xf32, #tpu.memory_space<vmem>>, vector<1x512xf32>
    %901 = arith.andi %26, %71 : vector<1x512xi1>
    %cst_478 = arith.constant 0.000000e+00 : f32
    %902 = vector.broadcast %cst_478 : f32 to vector<1x512xf32>
    %903 = arith.select %901, %900, %902 : vector<1x512xi1>, vector<1x512xf32>
    %904 = vector.broadcast %899 : f32 to vector<1x512xf32>
    %905 = arith.mulf %904, %903 : vector<1x512xf32>
    %906 = arith.addf %898, %905 : vector<1x512xf32>
    %907 = arith.addf %891, %906 : vector<1x512xf32>
    %c0_479 = arith.constant 0 : index
    %c35 = arith.constant 35 : index
    %908 = memref.load %arg10[%c0_479, %c35] : memref<2x49xf32, #tpu.memory_space<smem>>
    %c0_480 = arith.constant 0 : index
    %c157 = arith.constant 157 : index
    %909 = vector.load %arg12[%c0_480, %c157] : memref<32x768xf32, #tpu.memory_space<vmem>>, vector<1x512xf32>
    %910 = arith.andi %31, %41 : vector<1x512xi1>
    %cst_481 = arith.constant 0.000000e+00 : f32
    %911 = vector.broadcast %cst_481 : f32 to vector<1x512xf32>
    %912 = arith.select %910, %909, %911 : vector<1x512xi1>, vector<1x512xf32>
    %913 = vector.broadcast %908 : f32 to vector<1x512xf32>
    %914 = arith.mulf %913, %912 : vector<1x512xf32>
    %c1_482 = arith.constant 1 : index
    %c35_483 = arith.constant 35 : index
    %915 = memref.load %arg10[%c1_482, %c35_483] : memref<2x49xf32, #tpu.memory_space<smem>>
    %c1_484 = arith.constant 1 : index
    %c157_485 = arith.constant 157 : index
    %916 = vector.load %arg12[%c1_484, %c157_485] : memref<32x768xf32, #tpu.memory_space<vmem>>, vector<1x512xf32>
    %917 = arith.andi %31, %41 : vector<1x512xi1>
    %cst_486 = arith.constant 0.000000e+00 : f32
    %918 = vector.broadcast %cst_486 : f32 to vector<1x512xf32>
    %919 = arith.select %917, %916, %918 : vector<1x512xi1>, vector<1x512xf32>
    %920 = vector.broadcast %915 : f32 to vector<1x512xf32>
    %921 = arith.mulf %920, %919 : vector<1x512xf32>
    %922 = arith.addf %914, %921 : vector<1x512xf32>
    %923 = arith.addf %907, %922 : vector<1x512xf32>
    %c0_487 = arith.constant 0 : index
    %c36 = arith.constant 36 : index
    %924 = memref.load %arg10[%c0_487, %c36] : memref<2x49xf32, #tpu.memory_space<smem>>
    %c0_488 = arith.constant 0 : index
    %c158 = arith.constant 158 : index
    %925 = vector.load %arg12[%c0_488, %c158] : memref<32x768xf32, #tpu.memory_space<vmem>>, vector<1x512xf32>
    %926 = arith.andi %31, %46 : vector<1x512xi1>
    %cst_489 = arith.constant 0.000000e+00 : f32
    %927 = vector.broadcast %cst_489 : f32 to vector<1x512xf32>
    %928 = arith.select %926, %925, %927 : vector<1x512xi1>, vector<1x512xf32>
    %929 = vector.broadcast %924 : f32 to vector<1x512xf32>
    %930 = arith.mulf %929, %928 : vector<1x512xf32>
    %c1_490 = arith.constant 1 : index
    %c36_491 = arith.constant 36 : index
    %931 = memref.load %arg10[%c1_490, %c36_491] : memref<2x49xf32, #tpu.memory_space<smem>>
    %c1_492 = arith.constant 1 : index
    %c158_493 = arith.constant 158 : index
    %932 = vector.load %arg12[%c1_492, %c158_493] : memref<32x768xf32, #tpu.memory_space<vmem>>, vector<1x512xf32>
    %933 = arith.andi %31, %46 : vector<1x512xi1>
    %cst_494 = arith.constant 0.000000e+00 : f32
    %934 = vector.broadcast %cst_494 : f32 to vector<1x512xf32>
    %935 = arith.select %933, %932, %934 : vector<1x512xi1>, vector<1x512xf32>
    %936 = vector.broadcast %931 : f32 to vector<1x512xf32>
    %937 = arith.mulf %936, %935 : vector<1x512xf32>
    %938 = arith.addf %930, %937 : vector<1x512xf32>
    %939 = arith.addf %923, %938 : vector<1x512xf32>
    %c0_495 = arith.constant 0 : index
    %c37 = arith.constant 37 : index
    %940 = memref.load %arg10[%c0_495, %c37] : memref<2x49xf32, #tpu.memory_space<smem>>
    %c0_496 = arith.constant 0 : index
    %c159 = arith.constant 159 : index
    %941 = vector.load %arg12[%c0_496, %c159] : memref<32x768xf32, #tpu.memory_space<vmem>>, vector<1x512xf32>
    %942 = arith.andi %31, %51 : vector<1x512xi1>
    %cst_497 = arith.constant 0.000000e+00 : f32
    %943 = vector.broadcast %cst_497 : f32 to vector<1x512xf32>
    %944 = arith.select %942, %941, %943 : vector<1x512xi1>, vector<1x512xf32>
    %945 = vector.broadcast %940 : f32 to vector<1x512xf32>
    %946 = arith.mulf %945, %944 : vector<1x512xf32>
    %c1_498 = arith.constant 1 : index
    %c37_499 = arith.constant 37 : index
    %947 = memref.load %arg10[%c1_498, %c37_499] : memref<2x49xf32, #tpu.memory_space<smem>>
    %c1_500 = arith.constant 1 : index
    %c159_501 = arith.constant 159 : index
    %948 = vector.load %arg12[%c1_500, %c159_501] : memref<32x768xf32, #tpu.memory_space<vmem>>, vector<1x512xf32>
    %949 = arith.andi %31, %51 : vector<1x512xi1>
    %cst_502 = arith.constant 0.000000e+00 : f32
    %950 = vector.broadcast %cst_502 : f32 to vector<1x512xf32>
    %951 = arith.select %949, %948, %950 : vector<1x512xi1>, vector<1x512xf32>
    %952 = vector.broadcast %947 : f32 to vector<1x512xf32>
    %953 = arith.mulf %952, %951 : vector<1x512xf32>
    %954 = arith.addf %946, %953 : vector<1x512xf32>
    %955 = arith.addf %939, %954 : vector<1x512xf32>
    %c0_503 = arith.constant 0 : index
    %c38 = arith.constant 38 : index
    %956 = memref.load %arg10[%c0_503, %c38] : memref<2x49xf32, #tpu.memory_space<smem>>
    %c0_504 = arith.constant 0 : index
    %c160_505 = arith.constant 160 : index
    %957 = vector.load %arg12[%c0_504, %c160_505] : memref<32x768xf32, #tpu.memory_space<vmem>>, vector<1x512xf32>
    %958 = arith.andi %31, %56 : vector<1x512xi1>
    %cst_506 = arith.constant 0.000000e+00 : f32
    %959 = vector.broadcast %cst_506 : f32 to vector<1x512xf32>
    %960 = arith.select %958, %957, %959 : vector<1x512xi1>, vector<1x512xf32>
    %961 = vector.broadcast %956 : f32 to vector<1x512xf32>
    %962 = arith.mulf %961, %960 : vector<1x512xf32>
    %c1_507 = arith.constant 1 : index
    %c38_508 = arith.constant 38 : index
    %963 = memref.load %arg10[%c1_507, %c38_508] : memref<2x49xf32, #tpu.memory_space<smem>>
    %c1_509 = arith.constant 1 : index
    %c160_510 = arith.constant 160 : index
    %964 = vector.load %arg12[%c1_509, %c160_510] : memref<32x768xf32, #tpu.memory_space<vmem>>, vector<1x512xf32>
    %965 = arith.andi %31, %56 : vector<1x512xi1>
    %cst_511 = arith.constant 0.000000e+00 : f32
    %966 = vector.broadcast %cst_511 : f32 to vector<1x512xf32>
    %967 = arith.select %965, %964, %966 : vector<1x512xi1>, vector<1x512xf32>
    %968 = vector.broadcast %963 : f32 to vector<1x512xf32>
    %969 = arith.mulf %968, %967 : vector<1x512xf32>
    %970 = arith.addf %962, %969 : vector<1x512xf32>
    %971 = arith.addf %955, %970 : vector<1x512xf32>
    %c0_512 = arith.constant 0 : index
    %c39 = arith.constant 39 : index
    %972 = memref.load %arg10[%c0_512, %c39] : memref<2x49xf32, #tpu.memory_space<smem>>
    %c0_513 = arith.constant 0 : index
    %c161 = arith.constant 161 : index
    %973 = vector.load %arg12[%c0_513, %c161] : memref<32x768xf32, #tpu.memory_space<vmem>>, vector<1x512xf32>
    %974 = arith.andi %31, %61 : vector<1x512xi1>
    %cst_514 = arith.constant 0.000000e+00 : f32
    %975 = vector.broadcast %cst_514 : f32 to vector<1x512xf32>
    %976 = arith.select %974, %973, %975 : vector<1x512xi1>, vector<1x512xf32>
    %977 = vector.broadcast %972 : f32 to vector<1x512xf32>
    %978 = arith.mulf %977, %976 : vector<1x512xf32>
    %c1_515 = arith.constant 1 : index
    %c39_516 = arith.constant 39 : index
    %979 = memref.load %arg10[%c1_515, %c39_516] : memref<2x49xf32, #tpu.memory_space<smem>>
    %c1_517 = arith.constant 1 : index
    %c161_518 = arith.constant 161 : index
    %980 = vector.load %arg12[%c1_517, %c161_518] : memref<32x768xf32, #tpu.memory_space<vmem>>, vector<1x512xf32>
    %981 = arith.andi %31, %61 : vector<1x512xi1>
    %cst_519 = arith.constant 0.000000e+00 : f32
    %982 = vector.broadcast %cst_519 : f32 to vector<1x512xf32>
    %983 = arith.select %981, %980, %982 : vector<1x512xi1>, vector<1x512xf32>
    %984 = vector.broadcast %979 : f32 to vector<1x512xf32>
    %985 = arith.mulf %984, %983 : vector<1x512xf32>
    %986 = arith.addf %978, %985 : vector<1x512xf32>
    %987 = arith.addf %971, %986 : vector<1x512xf32>
    %c0_520 = arith.constant 0 : index
    %c40 = arith.constant 40 : index
    %988 = memref.load %arg10[%c0_520, %c40] : memref<2x49xf32, #tpu.memory_space<smem>>
    %c0_521 = arith.constant 0 : index
    %c162 = arith.constant 162 : index
    %989 = vector.load %arg12[%c0_521, %c162] : memref<32x768xf32, #tpu.memory_space<vmem>>, vector<1x512xf32>
    %990 = arith.andi %31, %66 : vector<1x512xi1>
    %cst_522 = arith.constant 0.000000e+00 : f32
    %991 = vector.broadcast %cst_522 : f32 to vector<1x512xf32>
    %992 = arith.select %990, %989, %991 : vector<1x512xi1>, vector<1x512xf32>
    %993 = vector.broadcast %988 : f32 to vector<1x512xf32>
    %994 = arith.mulf %993, %992 : vector<1x512xf32>
    %c1_523 = arith.constant 1 : index
    %c40_524 = arith.constant 40 : index
    %995 = memref.load %arg10[%c1_523, %c40_524] : memref<2x49xf32, #tpu.memory_space<smem>>
    %c1_525 = arith.constant 1 : index
    %c162_526 = arith.constant 162 : index
    %996 = vector.load %arg12[%c1_525, %c162_526] : memref<32x768xf32, #tpu.memory_space<vmem>>, vector<1x512xf32>
    %997 = arith.andi %31, %66 : vector<1x512xi1>
    %cst_527 = arith.constant 0.000000e+00 : f32
    %998 = vector.broadcast %cst_527 : f32 to vector<1x512xf32>
    %999 = arith.select %997, %996, %998 : vector<1x512xi1>, vector<1x512xf32>
    %1000 = vector.broadcast %995 : f32 to vector<1x512xf32>
    %1001 = arith.mulf %1000, %999 : vector<1x512xf32>
    %1002 = arith.addf %994, %1001 : vector<1x512xf32>
    %1003 = arith.addf %987, %1002 : vector<1x512xf32>
    %c0_528 = arith.constant 0 : index
    %c41 = arith.constant 41 : index
    %1004 = memref.load %arg10[%c0_528, %c41] : memref<2x49xf32, #tpu.memory_space<smem>>
    %c0_529 = arith.constant 0 : index
    %c163 = arith.constant 163 : index
    %1005 = vector.load %arg12[%c0_529, %c163] : memref<32x768xf32, #tpu.memory_space<vmem>>, vector<1x512xf32>
    %1006 = arith.andi %31, %71 : vector<1x512xi1>
    %cst_530 = arith.constant 0.000000e+00 : f32
    %1007 = vector.broadcast %cst_530 : f32 to vector<1x512xf32>
    %1008 = arith.select %1006, %1005, %1007 : vector<1x512xi1>, vector<1x512xf32>
    %1009 = vector.broadcast %1004 : f32 to vector<1x512xf32>
    %1010 = arith.mulf %1009, %1008 : vector<1x512xf32>
    %c1_531 = arith.constant 1 : index
    %c41_532 = arith.constant 41 : index
    %1011 = memref.load %arg10[%c1_531, %c41_532] : memref<2x49xf32, #tpu.memory_space<smem>>
    %c1_533 = arith.constant 1 : index
    %c163_534 = arith.constant 163 : index
    %1012 = vector.load %arg12[%c1_533, %c163_534] : memref<32x768xf32, #tpu.memory_space<vmem>>, vector<1x512xf32>
    %1013 = arith.andi %31, %71 : vector<1x512xi1>
    %cst_535 = arith.constant 0.000000e+00 : f32
    %1014 = vector.broadcast %cst_535 : f32 to vector<1x512xf32>
    %1015 = arith.select %1013, %1012, %1014 : vector<1x512xi1>, vector<1x512xf32>
    %1016 = vector.broadcast %1011 : f32 to vector<1x512xf32>
    %1017 = arith.mulf %1016, %1015 : vector<1x512xf32>
    %1018 = arith.addf %1010, %1017 : vector<1x512xf32>
    %1019 = arith.addf %1003, %1018 : vector<1x512xf32>
    %c0_536 = arith.constant 0 : index
    %c42 = arith.constant 42 : index
    %1020 = memref.load %arg10[%c0_536, %c42] : memref<2x49xf32, #tpu.memory_space<smem>>
    %c0_537 = arith.constant 0 : index
    %c173 = arith.constant 173 : index
    %1021 = vector.load %arg12[%c0_537, %c173] : memref<32x768xf32, #tpu.memory_space<vmem>>, vector<1x512xf32>
    %1022 = arith.andi %36, %41 : vector<1x512xi1>
    %cst_538 = arith.constant 0.000000e+00 : f32
    %1023 = vector.broadcast %cst_538 : f32 to vector<1x512xf32>
    %1024 = arith.select %1022, %1021, %1023 : vector<1x512xi1>, vector<1x512xf32>
    %1025 = vector.broadcast %1020 : f32 to vector<1x512xf32>
    %1026 = arith.mulf %1025, %1024 : vector<1x512xf32>
    %c1_539 = arith.constant 1 : index
    %c42_540 = arith.constant 42 : index
    %1027 = memref.load %arg10[%c1_539, %c42_540] : memref<2x49xf32, #tpu.memory_space<smem>>
    %c1_541 = arith.constant 1 : index
    %c173_542 = arith.constant 173 : index
    %1028 = vector.load %arg12[%c1_541, %c173_542] : memref<32x768xf32, #tpu.memory_space<vmem>>, vector<1x512xf32>
    %1029 = arith.andi %36, %41 : vector<1x512xi1>
    %cst_543 = arith.constant 0.000000e+00 : f32
    %1030 = vector.broadcast %cst_543 : f32 to vector<1x512xf32>
    %1031 = arith.select %1029, %1028, %1030 : vector<1x512xi1>, vector<1x512xf32>
    %1032 = vector.broadcast %1027 : f32 to vector<1x512xf32>
    %1033 = arith.mulf %1032, %1031 : vector<1x512xf32>
    %1034 = arith.addf %1026, %1033 : vector<1x512xf32>
    %1035 = arith.addf %1019, %1034 : vector<1x512xf32>
    %c0_544 = arith.constant 0 : index
    %c43 = arith.constant 43 : index
    %1036 = memref.load %arg10[%c0_544, %c43] : memref<2x49xf32, #tpu.memory_space<smem>>
    %c0_545 = arith.constant 0 : index
    %c174 = arith.constant 174 : index
    %1037 = vector.load %arg12[%c0_545, %c174] : memref<32x768xf32, #tpu.memory_space<vmem>>, vector<1x512xf32>
    %1038 = arith.andi %36, %46 : vector<1x512xi1>
    %cst_546 = arith.constant 0.000000e+00 : f32
    %1039 = vector.broadcast %cst_546 : f32 to vector<1x512xf32>
    %1040 = arith.select %1038, %1037, %1039 : vector<1x512xi1>, vector<1x512xf32>
    %1041 = vector.broadcast %1036 : f32 to vector<1x512xf32>
    %1042 = arith.mulf %1041, %1040 : vector<1x512xf32>
    %c1_547 = arith.constant 1 : index
    %c43_548 = arith.constant 43 : index
    %1043 = memref.load %arg10[%c1_547, %c43_548] : memref<2x49xf32, #tpu.memory_space<smem>>
    %c1_549 = arith.constant 1 : index
    %c174_550 = arith.constant 174 : index
    %1044 = vector.load %arg12[%c1_549, %c174_550] : memref<32x768xf32, #tpu.memory_space<vmem>>, vector<1x512xf32>
    %1045 = arith.andi %36, %46 : vector<1x512xi1>
    %cst_551 = arith.constant 0.000000e+00 : f32
    %1046 = vector.broadcast %cst_551 : f32 to vector<1x512xf32>
    %1047 = arith.select %1045, %1044, %1046 : vector<1x512xi1>, vector<1x512xf32>
    %1048 = vector.broadcast %1043 : f32 to vector<1x512xf32>
    %1049 = arith.mulf %1048, %1047 : vector<1x512xf32>
    %1050 = arith.addf %1042, %1049 : vector<1x512xf32>
    %1051 = arith.addf %1035, %1050 : vector<1x512xf32>
    %c0_552 = arith.constant 0 : index
    %c44 = arith.constant 44 : index
    %1052 = memref.load %arg10[%c0_552, %c44] : memref<2x49xf32, #tpu.memory_space<smem>>
    %c0_553 = arith.constant 0 : index
    %c175 = arith.constant 175 : index
    %1053 = vector.load %arg12[%c0_553, %c175] : memref<32x768xf32, #tpu.memory_space<vmem>>, vector<1x512xf32>
    %1054 = arith.andi %36, %51 : vector<1x512xi1>
    %cst_554 = arith.constant 0.000000e+00 : f32
    %1055 = vector.broadcast %cst_554 : f32 to vector<1x512xf32>
    %1056 = arith.select %1054, %1053, %1055 : vector<1x512xi1>, vector<1x512xf32>
    %1057 = vector.broadcast %1052 : f32 to vector<1x512xf32>
    %1058 = arith.mulf %1057, %1056 : vector<1x512xf32>
    %c1_555 = arith.constant 1 : index
    %c44_556 = arith.constant 44 : index
    %1059 = memref.load %arg10[%c1_555, %c44_556] : memref<2x49xf32, #tpu.memory_space<smem>>
    %c1_557 = arith.constant 1 : index
    %c175_558 = arith.constant 175 : index
    %1060 = vector.load %arg12[%c1_557, %c175_558] : memref<32x768xf32, #tpu.memory_space<vmem>>, vector<1x512xf32>
    %1061 = arith.andi %36, %51 : vector<1x512xi1>
    %cst_559 = arith.constant 0.000000e+00 : f32
    %1062 = vector.broadcast %cst_559 : f32 to vector<1x512xf32>
    %1063 = arith.select %1061, %1060, %1062 : vector<1x512xi1>, vector<1x512xf32>
    %1064 = vector.broadcast %1059 : f32 to vector<1x512xf32>
    %1065 = arith.mulf %1064, %1063 : vector<1x512xf32>
    %1066 = arith.addf %1058, %1065 : vector<1x512xf32>
    %1067 = arith.addf %1051, %1066 : vector<1x512xf32>
    %c0_560 = arith.constant 0 : index
    %c45 = arith.constant 45 : index
    %1068 = memref.load %arg10[%c0_560, %c45] : memref<2x49xf32, #tpu.memory_space<smem>>
    %c0_561 = arith.constant 0 : index
    %c176 = arith.constant 176 : index
    %1069 = vector.load %arg12[%c0_561, %c176] : memref<32x768xf32, #tpu.memory_space<vmem>>, vector<1x512xf32>
    %1070 = arith.andi %36, %56 : vector<1x512xi1>
    %cst_562 = arith.constant 0.000000e+00 : f32
    %1071 = vector.broadcast %cst_562 : f32 to vector<1x512xf32>
    %1072 = arith.select %1070, %1069, %1071 : vector<1x512xi1>, vector<1x512xf32>
    %1073 = vector.broadcast %1068 : f32 to vector<1x512xf32>
    %1074 = arith.mulf %1073, %1072 : vector<1x512xf32>
    %c1_563 = arith.constant 1 : index
    %c45_564 = arith.constant 45 : index
    %1075 = memref.load %arg10[%c1_563, %c45_564] : memref<2x49xf32, #tpu.memory_space<smem>>
    %c1_565 = arith.constant 1 : index
    %c176_566 = arith.constant 176 : index
    %1076 = vector.load %arg12[%c1_565, %c176_566] : memref<32x768xf32, #tpu.memory_space<vmem>>, vector<1x512xf32>
    %1077 = arith.andi %36, %56 : vector<1x512xi1>
    %cst_567 = arith.constant 0.000000e+00 : f32
    %1078 = vector.broadcast %cst_567 : f32 to vector<1x512xf32>
    %1079 = arith.select %1077, %1076, %1078 : vector<1x512xi1>, vector<1x512xf32>
    %1080 = vector.broadcast %1075 : f32 to vector<1x512xf32>
    %1081 = arith.mulf %1080, %1079 : vector<1x512xf32>
    %1082 = arith.addf %1074, %1081 : vector<1x512xf32>
    %1083 = arith.addf %1067, %1082 : vector<1x512xf32>
    %c0_568 = arith.constant 0 : index
    %c46 = arith.constant 46 : index
    %1084 = memref.load %arg10[%c0_568, %c46] : memref<2x49xf32, #tpu.memory_space<smem>>
    %c0_569 = arith.constant 0 : index
    %c177 = arith.constant 177 : index
    %1085 = vector.load %arg12[%c0_569, %c177] : memref<32x768xf32, #tpu.memory_space<vmem>>, vector<1x512xf32>
    %1086 = arith.andi %36, %61 : vector<1x512xi1>
    %cst_570 = arith.constant 0.000000e+00 : f32
    %1087 = vector.broadcast %cst_570 : f32 to vector<1x512xf32>
    %1088 = arith.select %1086, %1085, %1087 : vector<1x512xi1>, vector<1x512xf32>
    %1089 = vector.broadcast %1084 : f32 to vector<1x512xf32>
    %1090 = arith.mulf %1089, %1088 : vector<1x512xf32>
    %c1_571 = arith.constant 1 : index
    %c46_572 = arith.constant 46 : index
    %1091 = memref.load %arg10[%c1_571, %c46_572] : memref<2x49xf32, #tpu.memory_space<smem>>
    %c1_573 = arith.constant 1 : index
    %c177_574 = arith.constant 177 : index
    %1092 = vector.load %arg12[%c1_573, %c177_574] : memref<32x768xf32, #tpu.memory_space<vmem>>, vector<1x512xf32>
    %1093 = arith.andi %36, %61 : vector<1x512xi1>
    %cst_575 = arith.constant 0.000000e+00 : f32
    %1094 = vector.broadcast %cst_575 : f32 to vector<1x512xf32>
    %1095 = arith.select %1093, %1092, %1094 : vector<1x512xi1>, vector<1x512xf32>
    %1096 = vector.broadcast %1091 : f32 to vector<1x512xf32>
    %1097 = arith.mulf %1096, %1095 : vector<1x512xf32>
    %1098 = arith.addf %1090, %1097 : vector<1x512xf32>
    %1099 = arith.addf %1083, %1098 : vector<1x512xf32>
    %c0_576 = arith.constant 0 : index
    %c47 = arith.constant 47 : index
    %1100 = memref.load %arg10[%c0_576, %c47] : memref<2x49xf32, #tpu.memory_space<smem>>
    %c0_577 = arith.constant 0 : index
    %c178 = arith.constant 178 : index
    %1101 = vector.load %arg12[%c0_577, %c178] : memref<32x768xf32, #tpu.memory_space<vmem>>, vector<1x512xf32>
    %1102 = arith.andi %36, %66 : vector<1x512xi1>
    %cst_578 = arith.constant 0.000000e+00 : f32
    %1103 = vector.broadcast %cst_578 : f32 to vector<1x512xf32>
    %1104 = arith.select %1102, %1101, %1103 : vector<1x512xi1>, vector<1x512xf32>
    %1105 = vector.broadcast %1100 : f32 to vector<1x512xf32>
    %1106 = arith.mulf %1105, %1104 : vector<1x512xf32>
    %c1_579 = arith.constant 1 : index
    %c47_580 = arith.constant 47 : index
    %1107 = memref.load %arg10[%c1_579, %c47_580] : memref<2x49xf32, #tpu.memory_space<smem>>
    %c1_581 = arith.constant 1 : index
    %c178_582 = arith.constant 178 : index
    %1108 = vector.load %arg12[%c1_581, %c178_582] : memref<32x768xf32, #tpu.memory_space<vmem>>, vector<1x512xf32>
    %1109 = arith.andi %36, %66 : vector<1x512xi1>
    %cst_583 = arith.constant 0.000000e+00 : f32
    %1110 = vector.broadcast %cst_583 : f32 to vector<1x512xf32>
    %1111 = arith.select %1109, %1108, %1110 : vector<1x512xi1>, vector<1x512xf32>
    %1112 = vector.broadcast %1107 : f32 to vector<1x512xf32>
    %1113 = arith.mulf %1112, %1111 : vector<1x512xf32>
    %1114 = arith.addf %1106, %1113 : vector<1x512xf32>
    %1115 = arith.addf %1099, %1114 : vector<1x512xf32>
    %c0_584 = arith.constant 0 : index
    %c48 = arith.constant 48 : index
    %1116 = memref.load %arg10[%c0_584, %c48] : memref<2x49xf32, #tpu.memory_space<smem>>
    %c0_585 = arith.constant 0 : index
    %c179 = arith.constant 179 : index
    %1117 = vector.load %arg12[%c0_585, %c179] : memref<32x768xf32, #tpu.memory_space<vmem>>, vector<1x512xf32>
    %1118 = arith.andi %36, %71 : vector<1x512xi1>
    %cst_586 = arith.constant 0.000000e+00 : f32
    %1119 = vector.broadcast %cst_586 : f32 to vector<1x512xf32>
    %1120 = arith.select %1118, %1117, %1119 : vector<1x512xi1>, vector<1x512xf32>
    %1121 = vector.broadcast %1116 : f32 to vector<1x512xf32>
    %1122 = arith.mulf %1121, %1120 : vector<1x512xf32>
    %c1_587 = arith.constant 1 : index
    %c48_588 = arith.constant 48 : index
    %1123 = memref.load %arg10[%c1_587, %c48_588] : memref<2x49xf32, #tpu.memory_space<smem>>
    %c1_589 = arith.constant 1 : index
    %c179_590 = arith.constant 179 : index
    %1124 = vector.load %arg12[%c1_589, %c179_590] : memref<32x768xf32, #tpu.memory_space<vmem>>, vector<1x512xf32>
    %1125 = arith.andi %36, %71 : vector<1x512xi1>
    %cst_591 = arith.constant 0.000000e+00 : f32
    %1126 = vector.broadcast %cst_591 : f32 to vector<1x512xf32>
    %1127 = arith.select %1125, %1124, %1126 : vector<1x512xi1>, vector<1x512xf32>
    %1128 = vector.broadcast %1123 : f32 to vector<1x512xf32>
    %1129 = arith.mulf %1128, %1127 : vector<1x512xf32>
    %1130 = arith.addf %1122, %1129 : vector<1x512xf32>
    %1131 = arith.addf %1115, %1130 : vector<1x512xf32>
    %1132 = arith.negf %1131 : vector<1x512xf32>
    %1133 = math.exp %1132 : vector<1x512xf32>
    %cst_592 = arith.constant 1.000000e+00 : f32
    %1134 = vector.broadcast %cst_592 : f32 to vector<1x512xf32>
    %1135 = arith.addf %1134, %1133 : vector<1x512xf32>
    %1136 = arith.divf %1134, %1135 : vector<1x512xf32>
    %1137 = vector.broadcast %1136 : vector<1x512xf32> to vector<32x512xf32>
    %1138 = arith.mulf %281, %1137 : vector<32x512xf32>
    %cst_593 = arith.constant dense<0.000000e+00> : vector<32xf32>
    %1139 = vector.multi_reduction <add>, %1138, %cst_593 [1] : vector<32x512xf32> to vector<32xf32>
    %1140 = vector.shape_cast %1139 : vector<32xf32> to vector<32x1xf32>
    %cst_594 = arith.constant 0.001953125 : f32
    %1141 = vector.broadcast %cst_594 : f32 to vector<32x1xf32>
    %1142 = arith.mulf %1140, %1141 : vector<32x1xf32>
    %1143 = arith.mulf %1138, %1138 : vector<32x512xf32>
    %cst_595 = arith.constant dense<0.000000e+00> : vector<32xf32>
    %1144 = vector.multi_reduction <add>, %1143, %cst_595 [1] : vector<32x512xf32> to vector<32xf32>
    %1145 = vector.shape_cast %1144 : vector<32xf32> to vector<32x1xf32>
    %cst_596 = arith.constant 0.001953125 : f32
    %1146 = vector.broadcast %cst_596 : f32 to vector<32x1xf32>
    %1147 = arith.mulf %1145, %1146 : vector<32x1xf32>
    %1148 = arith.mulf %1142, %1142 : vector<32x1xf32>
    %1149 = arith.subf %1147, %1148 : vector<32x1xf32>
    %cst_597 = arith.constant 9.99999974E-6 : f32
    %1150 = vector.broadcast %cst_597 : f32 to vector<32x1xf32>
    %1151 = arith.addf %1149, %1150 : vector<32x1xf32>
    %1152 = math.rsqrt %1151 : vector<32x1xf32>
    %c0_598 = arith.constant 0 : index
    %c4_599 = arith.constant 4 : index
    %1153 = vector.load %arg6[%c0_598, %c4_599] : memref<32x5xf32, #tpu.memory_space<vmem>>, vector<32x1xf32>
    %1154 = arith.mulf %1152, %1153 : vector<32x1xf32>
    %1155 = vector.broadcast %1142 : vector<32x1xf32> to vector<32x512xf32>
    %1156 = arith.subf %1138, %1155 : vector<32x512xf32>
    %1157 = vector.broadcast %1154 : vector<32x1xf32> to vector<32x512xf32>
    %1158 = arith.mulf %1156, %1157 : vector<32x512xf32>
    %c0_600 = arith.constant 0 : index
    %c4_601 = arith.constant 4 : index
    %1159 = vector.load %arg7[%c0_600, %c4_601] : memref<32x5xf32, #tpu.memory_space<vmem>>, vector<32x1xf32>
    %1160 = vector.broadcast %1159 : vector<32x1xf32> to vector<32x512xf32>
    %1161 = arith.addf %1158, %1160 : vector<32x512xf32>
    %1162 = arith.addf %344, %1161 : vector<32x512xf32>
    %cst_602 = arith.constant 0.000000e+00 : f32
    %1163 = vector.broadcast %cst_602 : f32 to vector<32x512xf32>
    %1164 = arith.maximumf %1162, %1163 : vector<32x512xf32>
    %1165 = vector.extract_strided_slice %1164 {offsets = [0, 0], sizes = [32, 256], strides = [1, 1]} : vector<32x512xf32> to vector<32x256xf32>
    %c0_603 = arith.constant 0 : index
    %c0_604 = arith.constant 0 : index
    %c0_605 = arith.constant 0 : index
    %1166 = vector.load %arg11[%c0_603, %c0_604, %c0_605] : memref<2x32x256xf32, #tpu.memory_space<vmem>>, vector<1x32x256xf32>
    %1167 = vector.shape_cast %1166 : vector<1x32x256xf32> to vector<32x256xf32>
    %1168 = vector.shape_cast %1165 : vector<32x256xf32> to vector<1x32x256xf32>
    tpu.vector_store %arg11[%c0_603, %c0_604, %c0_605], %1168 {strides = array<i32>} : memref<2x32x256xf32, #tpu.memory_space<vmem>>, vector<1x32x256xf32>,
    %1169 = vector.extract_strided_slice %1164 {offsets = [0, 256], sizes = [32, 256], strides = [1, 1]} : vector<32x512xf32> to vector<32x256xf32>
    %c1_606 = arith.constant 1 : index
    %c0_607 = arith.constant 0 : index
    %c0_608 = arith.constant 0 : index
    %1170 = vector.load %arg11[%c1_606, %c0_607, %c0_608] : memref<2x32x256xf32, #tpu.memory_space<vmem>>, vector<1x32x256xf32>
    %1171 = vector.shape_cast %1170 : vector<1x32x256xf32> to vector<32x256xf32>
    %1172 = vector.shape_cast %1169 : vector<32x256xf32> to vector<1x32x256xf32>
    tpu.vector_store %arg11[%c1_606, %c0_607, %c0_608], %1172 {strides = array<i32>} : memref<2x32x256xf32, #tpu.memory_space<vmem>>, vector<1x32x256xf32>,
    return
  }
}

</mosaic_0001>

<bundles_post_ra>
// kernel: residual3_forward.1
= control target key start
LH: loop header
LB: loop body
LE: loop exit
PB: predicated region body
PF: predicated region fallthrough
CT: control target
= control target key end

     0   :  { %s12945_s0 = inlined_call_operand.vmem [shape: f32[2,32,256], index: 0, kind: input, shape index: {}]   ;;  %s12946_s1 = inlined_call_operand.vmem [shape: f32[2,512], index: 1, kind: input, shape index: {}]   ;;  %s12947_s2 = inlined_call_operand.vmem [shape: f32[32,288], index: 2, kind: input, shape index: {}]   ;;  %s12948_s3 = inlined_call_operand.vmem [shape: f32[32,1], index: 3, kind: input, shape index: {}]   ;;  %s12949_s4 = inlined_call_operand.vmem [shape: f32[32,288], index: 4, kind: input, shape index: {}]   ;;  %s12950_s5 = inlined_call_operand.vmem [shape: f32[32,1], index: 5, kind: input, shape index: {}]   ;;  %s12951_s6 = inlined_call_operand.vmem [shape: f32[32,5], index: 6, kind: input, shape index: {}]   ;;  %s12952_s7 = inlined_call_operand.vmem [shape: f32[32,5], index: 7, kind: input, shape index: {}]   ;;  %s12953_s8 = inlined_call_operand.vmem [shape: f32[2,32], index: 8, kind: input, shape index: {}]   ;;  %s12954_s9 = inlined_call_operand.vmem [shape: f32[32,2], index: 9, kind: input, shape index: {}]   ;;  %s12955_s10 = inlined_call_operand.vmem [shape: f32[2,49], index: 10, kind: input, shape index: {}]   ;;  %s12956_s11 = inlined_call_operand.vmem [shape: f32[2,32,256], index: 11, kind: output, shape index: {}]  }
   0x1   :  { %13188 = sst [smem:[#allocation84_spill]] %s12946_s1 }
   0x2   :  { %13189 = sst [smem:[#allocation85_spill]] %s12951_s6 }
   0x3   :  { %13190 = sst [smem:[#allocation86_spill]] %s12952_s7 }
   0x4   :  { %13191 = sst [smem:[#allocation87_spill]] %s12954_s9 }
   0x5   :  { %13192 = sst [smem:[#allocation88_spill]] %s12956_s11 }
   0x6   :  { %16 = vsyncpa [#allocation5], 0  ;;  %s43_s19 = sshll.u32 %s12955_s10, 4  ;;  %s44_s19 = int_to_ptr.vmem [resolvable:$true] %s43_s19 }
   0x7   :  { %s8228_s20 = scalar_lea.vmem %s44_s19, 32  ;;  %p8233_p1 = scmp.lt.s32.totalorder %s44_s19, %s44_s19 }
   0x8   :  { %p8229_p0 = scmp.ne.s32.totalorder %s44_s19, %s8228_s20  ;;  %p8234_p2 = scmp.lt.s32.totalorder %s8228_s20, %s8228_s20 }
   0xa   :  { %p8235_p3 = por %p8234_p2, %p8233_p1 }
   0xc   :  { %p8236_p4 = pnand %p8235_p3, %p8229_p0 }
   0xe   :  { %8239 = shalt.err (!%p8236_p4)
}
   0xf   :  { %s8242_s21 = smov [#allocation4]  }
  0x10   :  { %46 = dma.vmem_to_smem %s44_s19, 32, %s8242_s21, [#allocation5]  }
  0x11   :  { %8240 = dma.done.wait [#allocation5], 32  }
  0x12   :  { %8241 = vsyncadd [#allocation5], 4294967264 }
  0x13   :  { %50 = sfence }
  0x14   :  { %v8366_v0 = vld [vmem:[%s12945_s0] sm:$0xff]  ;;  %v8371_v1 = vld [vmem:[%s12945_s0 + $0x8] sm:$0xff]  ;;  %v8243_v3 = vmov 0.0   ;;  %v8395_v6 = vld [vmem:[%s12945_s0 + $0x10] sm:$0xff]  ;;  %s8244_s20 = smov 17   ;;  %v12976_v18 = vmov 0   ;;  %v12975_v38 = vlaneseq }
  0x15   :  { %13193 = vst [vmem:[#allocation7_spill] sm:$0xff] %v8366_v0  ;;  %13194 = vst [vmem:[#allocation8_spill] sm:$0xff] %v8371_v1  ;;  %v8376_v2 = vld [vmem:[%s12945_s0 + $0x40] sm:$0xff]  ;;  %v8384_v4 = vpack.i.bf16 %v8371_v1, %v8366_v0  ;;  %v8389_v5 = vld [vmem:[%s12945_s0 + $0x48] sm:$0xff]  ;;  %7344 = vrot.lane.b32.xlu1 %v8243_v3, %s8244_s20  ;;  %7733 = vset.pattern.permute.xlu0 %v12976_v18  ;;  %s8247_s15 = smov 15   ;;  %s8248_s16 = smov 1   ;;  %v8551_v29 = vpack.i.bf16 %v8395_v6, %v8366_v0 }
  0x16   :  { %13195 = vst [vmem:[#allocation9_spill] sm:$0xff] %v8376_v2  ;;  %113 = vst [vmem:[#allocation2] sm:$0xff] %v8243_v3  ;;  %v8400_v7 = vld [vmem:[%s12945_s0 + $0x18] sm:$0xff]  ;;  %v8408_v8 = vld [vmem:[%s12945_s0 + $0x20] sm:$0xff]  ;;  %v7348_v11 = vpack.i.bf16 %v8389_v5, %v8376_v2  ;;  %7734 = vset.pattern.permute.xlu1 %v12976_v18  ;;  %v8539_v27 = vpack.i.bf16 %v8376_v2, %v8371_v1  ;;  %s8249_s17 = smov 127   ;;  %v8547_v28 = vpack.i.bf16 %v8243_v3, %v8389_v5  ;;  %s8250_s21 = smov 113  }
  0x17   :  { %117 = vst [vmem:[#allocation2 + $0x28] sm:$0xff] %v8243_v3  ;;  %121 = vst [vmem:[#allocation2 + $0x8] sm:$0xff] %v8366_v0  ;;  %v8413_v9 = vld [vmem:[%s12945_s0 + $0x28] sm:$0xff]  ;;  %v8418_v10 = vld [vmem:[%s12945_s0 + $0x50] sm:$0xff]  ;;  %7334 = vrot.lane.b32.xlu0 %v8384_v4, %s8244_s20  ;;  %v7338_v12 = vpack.i.bf16 %v8400_v7, %v8395_v6  ;;  %v13209_v39 = vmov 0  ;;  %v13212_v40 = vmov 0 }
  0x18   :  { %122 = vst [vmem:[#allocation2 + $0x10] sm:$0xff] %v8371_v1  ;;  %13196 = vst [vmem:[#allocation10_spill] sm:$0xff] %v8389_v5  ;;  %v8433_v13 = vld [vmem:[%s12945_s0 + $0x58] sm:$0xff]  ;;  %v8439_v14 = vld [vmem:[%s12945_s0 + $0x30] sm:$0xff]  ;;  %v7358_v21 = vpack.i.bf16 %v8413_v9, %v8408_v8  ;;  %v8535_v26 = vpack.i.bf16 %v8418_v10, %v8400_v7  ;;  %v8624_v41 = vshrl.u32 %v12975_v38, 7  ;;  %v13216_v42 = vmov 0 }
  0x19   :  { %123 = vst [vmem:[#allocation2 + $0x18] sm:$0xff] %v8376_v2  ;;  %13197 = vst [vmem:[#allocation11_spill] sm:$0xff] %v8395_v6  ;;  %v8445_v15 = vld [vmem:[%s12945_s0 + $0x38] sm:$0xff]  ;;  %v8451_v16 = vld [vmem:[%s12945_s0 + $0x70] sm:$0xff]  ;;  %7349 = vrot.lane.b32.xlu1 %v7348_v11, %s8244_s20  ;;  %v7353_v22 = vpack.i.bf16 %v8433_v13, %v8418_v10  ;;  %v8563_v31 = vpack.i.bf16 %v8243_v3, %v8433_v13  ;;  %v8571_v32 = vpack.i.bf16 %v8439_v14, %v8408_v8  ;;  %vm12957_vm9 = vcmask 138240   ;;  %s8251_s24 = smov 112  }
  0x1a   :  { %13198 = vst [vmem:[#allocation12_spill] sm:$0xff] %v8400_v7  ;;  %124 = vst [vmem:[#allocation2 + $0x20] sm:$0xff] %v8389_v5  ;;  %v8456_v17 = vld [vmem:[%s12945_s0 + $0x78] sm:$0xff]  ;;  %v8466_v19 = vld [vmem:[%s12945_s0 + $0x60] sm:$0xff]  ;;  %v7363_v23 = vpack.i.bf16 %v8445_v15, %v8439_v14  ;;  %v8575_v33 = vpack.i.bf16 %v8451_v16, %v8445_v15  ;;  %v8639_v43 = vsub.s32 1, %v8624_v41  ;;  %v8649_v45 = vsub.s32 0, %v8624_v41 }
  0x1b   :  { %125 = vst [vmem:[#allocation2 + $0x38] sm:$0xff] %v8395_v6  ;;  %126 = vst [vmem:[#allocation2 + $0x40] sm:$0xff] %v8400_v7  ;;  %v8471_v20 = vld [vmem:[%s12945_s0 + $0x68] sm:$0xff]  ;;  %7339 = vrot.lane.b32.xlu0 %v7338_v12, %s8244_s20  ;;  %v7378_v24 = vpack.i.bf16 %v8456_v17, %v8451_v16  ;;  %s8246_s0 = smov 16   ;;  %v8559_v30 = vpack.i.bf16 %v8466_v19, %v8413_v9  ;;  %v8583_v34 = vpack.i.bf16 %v8243_v3, %v8456_v17  ;;  %v13223_v58 = vmov 0  ;;  %s8252_s26 = smov 111  }
  0x1c   :  { %13199 = vst [vmem:[#allocation13_spill] sm:$0xff] %v8408_v8  ;;  %13200 = vst [vmem:[#allocation14_spill] sm:$0xff] %v8413_v9  ;;  %v7373_v25 = vpack.i.bf16 %v8471_v20, %v8466_v19  ;;  %v8587_v35 = vpack.i.bf16 %v8243_v3, %v8471_v20  ;;  %v8596_v36 = vld [vmem:[%s12946_s1] ss:$2 sm:$0xf]  ;;  %v8652_v48 = vsub.s32 3, %v8624_v41 }
  0x1d   :  { %13201 = vst [vmem:[#allocation15_spill] sm:$0xff] %v8418_v10  ;;  %129 = vst [vmem:[#allocation2 + $0x68] sm:$0xff] %v8408_v8  ;;  %7359 = vrot.lane.b32.xlu1 %v7358_v21, %s8244_s20  ;;  %v8605_v37 = vld [vmem:[%s12946_s1 + $0x1] ss:$2 sm:$0xf]  ;;  %vm60_vm0 = vcmp.ge.f32.partialorder %v8596_v36, 1.0 }
  0x1e   :  { %130 = vst [vmem:[#allocation2 + $0x70] sm:$0xff] %v8413_v9  ;;  %13202 = vst [vmem:[#allocation16_spill] sm:$0xff] %v8433_v13  ;;  %vm61_vm1 = vcmp.lt.f32.partialorder %v8596_v36, 17.0  ;;  %vm81_vm2 = vcmp.ge.f32.partialorder %v8605_v37, 1.0  ;;  %vm82_vm3 = vcmp.lt.f32.partialorder %v8605_v37, 17.0  ;;  %vm84_vm7 = vcmp.ge.f32.partialorder %v8605_v37, 0.0 }
  0x1f   :  { %127 = vst [vmem:[#allocation2 + $0x48] sm:$0xff] %v8418_v10  ;;  %13203 = vst [vmem:[#allocation17_spill] sm:$0xff] %v8439_v14  ;;  %7354 = vrot.lane.b32.xlu0 %v7353_v22, %s8244_s20  ;;  %vm85_vm8 = vcmp.lt.f32.partialorder %v8605_v37, 16.0  ;;  %v8663_v51 = vsub.s32 2, %v8624_v41  ;;  %s8259_s29 = smov 49   ;;  %s8260_s30 = smov 48  }
  0x20   :  { %128 = vst [vmem:[#allocation2 + $0x50] sm:$0xff] %v8433_v13  ;;  %13204 = vst [vmem:[#allocation18_spill] sm:$0xff] %v8445_v15  ;;  %s8261_s12 = smov 47   ;;  %s8263_s13 = smov 46  }
  0x21   :  { %133 = vst [vmem:[#allocation2 + $0x98] sm:$0xff] %v8439_v14  ;;  %13205 = vst [vmem:[#allocation19_spill] sm:$0xff] %v8451_v16  ;;  %7369 = vrot.lane.b32.xlu1 %v8243_v3, %s8244_s20  ;;  %s8264_s14 = smov 45   ;;  %s8265_s18 = smov 35  }
  0x22   :  { %13206 = vst [vmem:[#allocation20_spill] sm:$0xff] %v8456_v17  ;;  %134 = vst [vmem:[#allocation2 + $0xa0] sm:$0xff] %v8445_v15  ;;  %s8267_s19 = smov 33   ;;  %s8268_s22 = smov 32  }
  0x23   :  { %135 = vst [vmem:[#allocation2 + $0xa8] sm:$0xff] %v8451_v16  ;;  %136 = vst [vmem:[#allocation2 + $0xb0] sm:$0xff] %v8456_v17  ;;  %7364 = vrot.lane.b32.xlu0 %v7363_v23, %s8244_s20  ;;  %s8269_s23 = smov 31   ;;  %s8271_s10 = smov 29  }
  0x24   :  { %13207 = vst [vmem:[#allocation21_spill] sm:$0xff] %v8466_v19  ;;  %13208 = vst [vmem:[#allocation22_spill] sm:$0xff] %v8471_v20  ;;  %s8272_s25 = smov 19   ;;  %s8273_s27 = smov 18  }
  0x25   :  { %131 = vst [vmem:[#allocation2 + $0x78] sm:$0xff] %v8466_v19  ;;  %132 = vst [vmem:[#allocation2 + $0x80] sm:$0xff] %v8471_v20  ;;  %7379 = vrot.lane.b32.xlu1 %v7378_v24, %s8244_s20  ;;  %s8274_s28 = smov 14   ;;  %s11087_s11 = sld [smem:[#allocation4 + $0xc]] }
  0x26   :  { %vm8615_vm4 = vmand %vm60_vm0, %vm61_vm1  ;;  %13215 = vst [vmem:[#allocation25_spill] sm:$0xff] %v8624_v41  ;;  %s11122_s9 = sld [smem:[#allocation4 + $0xe]] }
  0x27   :  { %7374 = vrot.lane.b32.xlu0 %v7373_v25, %s8244_s20  ;;  %v13210_v39 = vsel %vm8615_vm4, 4294967295, %v13209_v39  ;;  %vm8619_vm5 = vmand %vm81_vm2, %vm82_vm3  ;;  %13219 = vst [vmem:[#allocation27_spill] sm:$0xff] %v8639_v43 }
  0x28   :  { %13211 = vst [vmem:[#allocation23_spill] sm:$0xff] %v13210_v39  ;;  %v13213_v40 = vsel %vm8619_vm5, 4294967295, %v13212_v40  ;;  %vm8634_vm6 = vmand %vm8615_vm4, %vm8619_vm5 }
  0x29   :  { %7389 = vrot.lane.b32.xlu1 %v7338_v12, %s8246_s0  ;;  %13214 = vst [vmem:[#allocation24_spill] sm:$0xff] %v13213_v40  ;;  %v13217_v42 = vsel %vm8634_vm6, 4294967295, %v13216_v42  ;;  %v158_v44 = vsel %vm8634_vm6, 1, %v12976_v18  ;;  %13220 = vst [vmem:[#allocation28_spill] sm:$0xff] %v8649_v45 }
  0x2a   :  { %13218 = vst [vmem:[#allocation26_spill] sm:$0xff] %v13217_v42  ;;  %13221 = vst [vmem:[#allocation29_spill] sm:$0xff] %v8652_v48  ;;  %v166_v49 = vrot.slane %v158_v44, %v8639_v43  ;;  %v162_v50 = vrot.slane %v158_v44, %v8649_v45  ;;  %v174_v57 = vrot.slane %v158_v44, %v8652_v48 }
  0x2b   :  { %7384 = vrot.lane.b32.xlu0 %v8384_v4, %s8246_s0  ;;  %13222 = vst [vmem:[#allocation30_spill] sm:$0xff] %v8663_v51  ;;  %vm8666_vm10 = vmand %vm84_vm7, %vm85_vm8  ;;  %vm12960_vm7 = vcmask 130048  }
  0x2c   :  { %v13224_v58 = vsel %vm8666_vm10, 4294967295, %v13223_v58  ;;  %vm8670_vm11 = vcmp.eq.s32.totalorder %v166_v49, 1  ;;  %vm175_vm12 = vcmp.eq.s32.totalorder %v162_v50, 1  ;;  %vm8687_vm13 = vmand %vm8615_vm4, %vm8666_vm10  ;;  %vm178_vm0 = vcmp.eq.s32.totalorder %v174_v57, 1 }
  0x2d   :  { %7399 = vrot.lane.b32.xlu1 %v7348_v11, %s8246_s0  ;;  %13225 = vst [vmem:[#allocation31_spill] sm:$0xff] %v13224_v58  ;;  %vm8694_vm14 = vmpackc.low %vm8670_vm11, %vm8670_vm11  ;;  %vm87_vm11 = vcmp.ge.f32.partialorder %v8605_v37, -1.0 }
  0x2e   :  { %vm8698_vm15 = vmpackc.low %vm175_vm12, %vm175_vm12  ;;  %vm88_vm12 = vcmp.lt.f32.partialorder %v8605_v37, 15.0 }
  0x2f   :  { %7394 = vrot.lane.b32.xlu0 %v8243_v3, %s8246_s0  ;;  %vm8718_vm2 = vmpackc.low %vm178_vm0, %vm178_vm0 }
  0x31   :  { %7409 = vrot.lane.b32.xlu1 %v7358_v21, %s8246_s0 }
  0x33   :  { %7404 = vrot.lane.b32.xlu0 %v7353_v22, %s8246_s0 }
  0x35   :  { %7419 = vrot.lane.b32.xlu1 %v8243_v3, %s8246_s0 }
  0x37   :  { %7414 = vrot.lane.b32.xlu0 %v7363_v23, %s8246_s0 }
  0x39   :  { %7429 = vrot.lane.b32.xlu1 %v7378_v24, %s8246_s0 }
  0x3b   :  { %7424 = vrot.lane.b32.xlu0 %v7373_v25, %s8246_s0 }
  0x3d   :  { %7439 = vrot.lane.b32.xlu1 %v7338_v12, %s8247_s15 }
  0x3f   :  { %7434 = vrot.lane.b32.xlu0 %v8384_v4, %s8247_s15 }
  0x41   :  { %7449 = vrot.lane.b32.xlu1 %v7348_v11, %s8247_s15 }
  0x43   :  { %7444 = vrot.lane.b32.xlu0 %v8243_v3, %s8247_s15 }
  0x45   :  { %7459 = vrot.lane.b32.xlu1 %v7358_v21, %s8247_s15 }
  0x47   :  { %7454 = vrot.lane.b32.xlu0 %v7353_v22, %s8247_s15 }
  0x49   :  { %7469 = vrot.lane.b32.xlu1 %v8243_v3, %s8247_s15 }
  0x4b   :  { %7464 = vrot.lane.b32.xlu0 %v7363_v23, %s8247_s15 }
  0x4d   :  { %7479 = vrot.lane.b32.xlu1 %v7378_v24, %s8247_s15 }
  0x4f   :  { %7474 = vrot.lane.b32.xlu0 %v7373_v25, %s8247_s15 }
  0x51   :  { %7489 = vrot.lane.b32.xlu1 %v7338_v12, %s8248_s16 }
  0x53   :  { %7484 = vrot.lane.b32.xlu0 %v8384_v4, %s8248_s16  ;;  %v170_v4 = vrot.slane %v158_v44, %v8663_v51 }
  0x55   :  { %7499 = vrot.lane.b32.xlu1 %v7348_v11, %s8248_s16  ;;  %vm8707_vm1 = vcmp.eq.s32.totalorder %v170_v4, 1 }
  0x56   :  { %vm8730_vm3 = vmpackc.low %vm8707_vm1, %vm8707_vm1 }
  0x57   :  { %7494 = vrot.lane.b32.xlu0 %v8243_v3, %s8248_s16 }
  0x59   :  { %7509 = vrot.lane.b32.xlu1 %v7358_v21, %s8248_s16 }
  0x5b   :  { %7504 = vrot.lane.b32.xlu0 %v7353_v22, %s8248_s16 }
  0x5d   :  { %7519 = vrot.lane.b32.xlu1 %v8243_v3, %s8248_s16 }
  0x5f   :  { %7514 = vrot.lane.b32.xlu0 %v7363_v23, %s8248_s16  ;;  %v13228_v23 = vmov 0 }
  0x60   :  { %v13229_v23 = vsel %vm8687_vm13, 4294967295, %v13228_v23 }
  0x61   :  { %7529 = vrot.lane.b32.xlu1 %v7378_v24, %s8248_s16  ;;  %13230 = vst [vmem:[#allocation32_spill] sm:$0xff] %v13229_v23 }
  0x63   :  { %7524 = vrot.lane.b32.xlu0 %v7373_v25, %s8248_s16 }
  0x65   :  { %7539 = vrot.lane.b32.xlu1 %v8535_v26, %s8249_s17 }
  0x67   :  { %7534 = vrot.lane.b32.xlu0 %v8539_v27, %s8249_s17 }
  0x69   :  { %7549 = vrot.lane.b32.xlu1 %v8547_v28, %s8249_s17 }
  0x6b   :  { %7544 = vrot.lane.b32.xlu0 %v8551_v29, %s8249_s17 }
  0x6d   :  { %7559 = vrot.lane.b32.xlu1 %v8559_v30, %s8249_s17 }
  0x6f   :  { %7554 = vrot.lane.b32.xlu0 %v8563_v31, %s8249_s17 }
  0x71   :  { %7569 = vrot.lane.b32.xlu1 %v8571_v32, %s8249_s17 }
  0x73   :  { %7564 = vrot.lane.b32.xlu0 %v8575_v33, %s8249_s17 }
  0x75   :  { %7579 = vrot.lane.b32.xlu1 %v8583_v34, %s8249_s17 }
  0x77   :  { %7574 = vrot.lane.b32.xlu0 %v8587_v35, %s8249_s17 }
  0x79   :  { %7589 = vrot.lane.b32.xlu1 %v8535_v26, %s8250_s21 }
  0x7b   :  { %7584 = vrot.lane.b32.xlu0 %v8539_v27, %s8250_s21 }
  0x7d   :  { %7599 = vrot.lane.b32.xlu1 %v8547_v28, %s8250_s21 }
  0x7f   :  { %7594 = vrot.lane.b32.xlu0 %v8551_v29, %s8250_s21 }
  0x81   :  { %7609 = vrot.lane.b32.xlu1 %v8559_v30, %s8250_s21 }
  0x83   :  { %7604 = vrot.lane.b32.xlu0 %v8563_v31, %s8250_s21 }
  0x85   :  { %7619 = vrot.lane.b32.xlu1 %v8571_v32, %s8250_s21 }
  0x87   :  { %7614 = vrot.lane.b32.xlu0 %v8575_v33, %s8250_s21  ;;  %v7345_v46 = vpop.permute.xlu1 %7344 }
  0x88   :  { %v7346_v52 = vunpack.i.l.bf16 %v7345_v46  ;;  %v7347_v59 = vunpack.i.h.bf16 %v7345_v46 }
  0x89   :  { %v7335_v47 = vpop.permute.xlu0 %7334  ;;  %7629 = vrot.lane.b32.xlu1 %v8583_v34, %s8250_s21 }
  0x8a   :  { %v7337_v53 = vunpack.i.h.bf16 %v7335_v47  ;;  %v7336_v54 = vunpack.i.l.bf16 %v7335_v47 }
  0x8b   :  { %7624 = vrot.lane.b32.xlu0 %v8587_v35, %s8250_s21  ;;  %v7350_v55 = vpop.permute.xlu1 %7349 }
  0x8c   :  { %v7352_v63 = vunpack.i.h.bf16 %v7350_v55  ;;  %v7351_v3 = vunpack.i.l.bf16 %v7350_v55  ;;  %v241_v11 = vsel %vm12957_vm9, %v7336_v54, %v7337_v53  ;;  %v240_v21 = vsel %vm12957_vm9, %v7346_v52, %v7336_v54 }
  0x8d   :  { %v7340_v56 = vpop.permute.xlu0 %7339  ;;  %7639 = vrot.lane.b32.xlu1 %v8535_v26, %s8251_s24 }
  0x8e   :  { %v7342_v60 = vunpack.i.h.bf16 %v7340_v56  ;;  %v7341_v61 = vunpack.i.l.bf16 %v7340_v56  ;;  %v243_v54 = vsel %vm12957_vm9, %v7351_v3, %v7352_v63  ;;  %v242_v56 = vsel %vm12957_vm9, %v7337_v53, %v7351_v3 }
  0x8f   :  { %7634 = vrot.lane.b32.xlu0 %v8539_v27, %s8251_s24  ;;  %v7360_v24 = vpop.permute.xlu1 %7359  ;;  %v8725_v3 = vsel %vm8687_vm13, 1, %v12976_v18 }
  0x90   :  { %v245_v12 = vsel %vm12957_vm9, %v7341_v61, %v7342_v60  ;;  %v244_v22 = vsel %vm12957_vm9, %v7347_v59, %v7341_v61  ;;  %v7362_v59 = vunpack.i.h.bf16 %v7360_v24  ;;  %v7361_v61 = vunpack.i.l.bf16 %v7360_v24 }
  0x91   :  { %v7355_v25 = vpop.permute.xlu0 %7354  ;;  %v6789_v46 = vpack.c.bf16 %v245_v12, %v241_v11  ;;  %v6792_v47 = vpack.c.bf16 %v244_v22, %v240_v21  ;;  %7649 = vrot.lane.b32.xlu1 %v8547_v28, %s8251_s24 }
  0x92   :  { %v7357_v49 = vunpack.i.h.bf16 %v7355_v25  ;;  %v7356_v50 = vunpack.i.l.bf16 %v7355_v25  ;;  %v13239_v25 = vmov 0 }
  0x93   :  { %7644 = vrot.lane.b32.xlu0 %v8551_v29, %s8251_s24  ;;  %6791 = vmatprep.subr.msk.bf16.mxu0 %vm8694_vm14, %v6789_v46  ;;  %v7370_v11 = vpop.permute.xlu1 %7369  ;;  %v13240_v25 = vsel %vm8730_vm3, 4294967295, %v13239_v25  ;;  %v249_v46 = vsel %vm12957_vm9, %v7361_v61, %v7362_v59 }
  0x94   :  { %v247_v57 = vsel %vm12957_vm9, %v7356_v50, %v7357_v49  ;;  %v246_v62 = vsel %vm12957_vm9, %v7342_v60, %v7356_v50  ;;  %6794 = vmatpush1.bf16.msk.msra.mxu0 %vm8698_vm15, %v6792_v47  ;;  %v7372_v21 = vunpack.i.h.bf16 %v7370_v11  ;;  %v7371_v22 = vunpack.i.l.bf16 %v7370_v11 }
  0x95   :  { %v7365_v63 = vpop.permute.xlu0 %7364  ;;  %v6893_v4 = vpack.c.bf16 %v247_v57, %v243_v54  ;;  %v6896_v53 = vpack.c.bf16 %v246_v62, %v242_v56  ;;  %7659 = vrot.lane.b32.xlu1 %v8559_v30, %s8251_s24  ;;  %v333_v62 = vrot.slane %v8725_v3, %v8639_v43 }
  0x96   :  { %v7367_v24 = vunpack.i.h.bf16 %v7365_v63  ;;  %v7366_v60 = vunpack.i.l.bf16 %v7365_v63  ;;  %v248_v47 = vsel %vm12957_vm9, %v7371_v22, %v7361_v61 }
  0x97   :  { %7654 = vrot.lane.b32.xlu0 %v8563_v31, %s8251_s24  ;;  %6895 = vmatprep.subr.msk.bf16.mxu1 %vm8718_vm2, %v6893_v4  ;;  %v7380_v54 = vpop.permute.xlu1 %7379  ;;  %vm8763_vm8 = vcmp.eq.s32.totalorder %v333_v62, 1 }
  0x98   :  { %v252_v49 = vsel %vm12957_vm9, %v7372_v21, %v7366_v60  ;;  %v253_v50 = vsel %vm12957_vm9, %v7366_v60, %v7367_v24  ;;  %6898 = vmatpush1.bf16.msk.msra.mxu1 %vm8730_vm3, %v6896_v53  ;;  %v7382_v11 = vunpack.i.h.bf16 %v7380_v54  ;;  %v7381_v63 = vunpack.i.l.bf16 %v7380_v54  ;;  %v1506_v21 = vld [vmem:[%s12947_s2 + $0x8] sm:$0xff]  ;;  %vm8784_vm0 = vmpackc.low %vm8763_vm8, %vm8763_vm8 }
  0x99   :  { %v7375_v55 = vpop.permute.xlu0 %7374  ;;  %v6795_v56 = vpack.c.bf16 %v253_v50, %v249_v46  ;;  %v6798_v57 = vpack.c.bf16 %v252_v49, %v248_v47  ;;  %7669 = vrot.lane.b32.xlu1 %v8571_v32, %s8251_s24  ;;  %1762 = vmatprep.mubr.f32.mxu0 %v1506_v21  ;;  %vm8800_vm8 = vmand %vm87_vm11, %vm88_vm12 }
  0x9a   :  { %v7377_v61 = vunpack.i.h.bf16 %v7375_v55  ;;  %v7376_v22 = vunpack.i.l.bf16 %v7375_v55  ;;  %v254_v4 = vsel %vm12957_vm9, %v7367_v24, %v7381_v63  ;;  %v255_v53 = vsel %vm12957_vm9, %v7381_v63, %v7382_v11  ;;  %1940 = vmatprep.mubr.f32.mxu1 %v1506_v21  ;;  %vm8816_vm12 = vmand %vm8615_vm4, %vm8800_vm8 }
  0x9b   :  { %7664 = vrot.lane.b32.xlu0 %v8575_v33, %s8251_s24  ;;  %6797 = vmatprep.subr.msk.bf16.mxu0 %vm8694_vm14, %v6795_v56  ;;  %v7390_v47 = vpop.permute.xlu1 %7389  ;;  %v329_v24 = vrot.slane %v8725_v3, %v8649_v45 }
  0x9c   :  { %v250_v60 = vsel %vm12957_vm9, %v7362_v59, %v7376_v22  ;;  %v251_v46 = vsel %vm12957_vm9, %v7376_v22, %v7377_v61  ;;  %6800 = vmatpush1.bf16.msk.msra.mxu0 %vm8698_vm15, %v6798_v57  ;;  %v7392_v59 = vunpack.i.h.bf16 %v7390_v47  ;;  %v7391_v11 = vunpack.i.l.bf16 %v7390_v47 }
  0x9d   :  { %v7385_v49 = vpop.permute.xlu0 %7384  ;;  %v6899_v50 = vpack.c.bf16 %v255_v53, %v251_v46  ;;  %v6902_v54 = vpack.c.bf16 %v254_v4, %v250_v60  ;;  %7679 = vrot.lane.b32.xlu1 %v8583_v34, %s8251_s24  ;;  %v13243_v4 = vmov 0  ;;  %vm342_vm1 = vcmp.eq.s32.totalorder %v329_v24, 1 }
  0x9e   :  { %v7387_v63 = vunpack.i.h.bf16 %v7385_v49  ;;  %v7386_v61 = vunpack.i.l.bf16 %v7385_v49  ;;  %v412_v56 = vsel %vm12960_vm7, %v7391_v11, %v7392_v59  ;;  %v13244_v4 = vsel %vm8784_vm0, 4294967295, %v13243_v4  ;;  %vm8808_vm9 = vmpackc.low %vm342_vm1, %vm342_vm1 }
  0x9f   :  { %7674 = vrot.lane.b32.xlu0 %v8587_v35, %s8251_s24  ;;  %6901 = vmatprep.subr.msk.bf16.mxu1 %vm8718_vm2, %v6899_v50  ;;  %v7400_v62 = vpop.permute.xlu1 %7399  ;;  %v341_v46 = vrot.slane %v8725_v3, %v8652_v48  ;;  %v337_v50 = vrot.slane %v8725_v3, %v8663_v51  ;;  %v13248_v3 = vmov 0 }
  0xa0   :  { %v408_v57 = vsel %vm12960_vm7, %v7386_v61, %v7387_v63  ;;  %6904 = vmatpush1.bf16.msk.msra.mxu1 %vm8730_vm3, %v6902_v54  ;;  %v7402_v47 = vunpack.i.h.bf16 %v7400_v62  ;;  %v7401_v49 = vunpack.i.l.bf16 %v7400_v62  ;;  %v13245_v54 = vmov 0 }
  0xa1   :  { %v7395_v22 = vpop.permute.xlu0 %7394  ;;  %v6801_v21 = vpack.c.bf16 %v412_v56, %v408_v57  ;;  %7689 = vrot.lane.b32.xlu1 %v8535_v26, %s8252_s26  ;;  %v13246_v54 = vsel %vm8800_vm8, 4294967295, %v13245_v54  ;;  %v13249_v3 = vsel %vm8808_vm9, 4294967295, %v13248_v3  ;;  %vm345_vm11 = vcmp.eq.s32.totalorder %v341_v46, 1 }
  0xa2   :  { %v7397_v53 = vunpack.i.h.bf16 %v7395_v22  ;;  %v7396_v60 = vunpack.i.l.bf16 %v7395_v22  ;;  %13247 = vst [vmem:[#allocation33_spill] sm:$0xff] %v13246_v54  ;;  %v410_v62 = vsel %vm12960_vm7, %v7401_v49, %v7402_v47  ;;  %vm8826_vm1 = vcmp.eq.s32.totalorder %v337_v50, 1  ;;  %vm8834_vm13 = vmpackc.low %vm345_vm11, %vm345_vm11 }
  0xa3   :  { %7684 = vrot.lane.b32.xlu0 %v8539_v27, %s8252_s26  ;;  %6803 = vmatprep.subr.msk.bf16.mxu0 %vm8784_vm0, %v6801_v21  ;;  %v7410_v26 = vpop.permute.xlu1 %7409  ;;  %v8841_v50 = vsel %vm8816_vm12, 1, %v12976_v18  ;;  %vm13259_vm11 = vcmask 130048  }
  0xa4   :  { %v411_v55 = vsel %vm12960_vm7, %v7397_v53, %v7391_v11  ;;  %v407_v24 = vsel %vm12960_vm7, %v7396_v60, %v7386_v61  ;;  %v13250_v11 = vmov 0  ;;  %v409_v61 = vsel %vm12960_vm7, %v7387_v63, %v7401_v49  ;;  %vm13261_vm6 = vmmov %vm13259_vm11 }
  0xa5   :  { %v7405_v27 = vpop.permute.xlu0 %7404  ;;  %v6804_v56 = vpack.c.bf16 %v411_v55, %v407_v24  ;;  %v13251_v11 = vsel %vm8816_vm12, 4294967295, %v13250_v11  ;;  %7699 = vrot.lane.b32.xlu1 %v8547_v28, %s8252_s26  ;;  %v7412_v21 = vunpack.i.h.bf16 %v7410_v26  ;;  %v7411_v53 = vunpack.i.l.bf16 %v7410_v26  ;;  %vm13260_vm12 = vmmov %vm13259_vm11 }
  0xa6   :  { %v7407_v57 = vunpack.i.h.bf16 %v7405_v27  ;;  %v7406_v37 = vunpack.i.l.bf16 %v7405_v27  ;;  %13252 = vst [vmem:[#allocation34_spill] sm:$0xff] %v13251_v11  ;;  %v13255_v28 = vmov 0  ;;  %v13257_v27 = vmov 0  ;;  %vm13262_vm4 = vmmov %vm13261_vm6 }
  0xa7   :  { %7694 = vrot.lane.b32.xlu0 %v8551_v29, %s8252_s26  ;;  %6806 = vmatpush1.bf16.msk.msra.mxu0 %vm8808_vm9, %v6804_v56  ;;  %v7420_v63 = vpop.permute.xlu1 %7419  ;;  %v13256_v28 = vsel %vm8834_vm13, 4294967295, %v13255_v28  ;;  %v416_v56 = vsel %vm13259_vm11, %v7411_v53, %v7412_v21 }
  0xa8   :  { %v413_v60 = vsel %vm12960_vm7, %v7392_v59, %v7406_v37  ;;  %v414_v46 = vsel %vm12960_vm7, %v7406_v37, %v7407_v57  ;;  %v7422_v55 = vunpack.i.h.bf16 %v7420_v63  ;;  %v7421_v59 = vunpack.i.l.bf16 %v7420_v63  ;;  %vm8846_vm7 = vmpackc.low %vm8826_vm1, %vm8826_vm1 }
  0xa9   :  { %v7415_v47 = vpop.permute.xlu0 %7414  ;;  %v6905_v49 = vpack.c.bf16 %v414_v46, %v410_v62  ;;  %v6908_v29 = vpack.c.bf16 %v413_v60, %v409_v61  ;;  %v13258_v27 = vsel %vm8846_vm7, 4294967295, %v13257_v27  ;;  %7709 = vrot.lane.b32.xlu1 %v8559_v30, %s8252_s26  ;;  %vm13264_vm1 = vmmov %vm13261_vm6 }
  0xaa   :  { %v7417_v24 = vunpack.i.h.bf16 %v7415_v47  ;;  %v7416_v26 = vunpack.i.l.bf16 %v7415_v47  ;;  %v415_v57 = vsel %vm13260_vm12, %v7421_v59, %v7411_v53  ;;  %vm13263_vm12 = vmmov %vm13261_vm6 }
  0xab   :  { %7704 = vrot.lane.b32.xlu0 %v8563_v31, %s8252_s26  ;;  %6907 = vmatprep.subr.msk.bf16.mxu1 %vm8834_vm13, %v6905_v49  ;;  %v7430_v62 = vpop.permute.xlu1 %7429  ;;  %v500_v31 = vrot.slane %v8841_v50, %v8639_v43  ;;  %vm13265_vm11 = vmmov %vm13264_vm1 }
  0xac   :  { %v419_v37 = vsel %vm13261_vm6, %v7422_v55, %v7416_v26  ;;  %v420_v61 = vsel %vm13262_vm4, %v7416_v26, %v7417_v24  ;;  %6910 = vmatpush1.bf16.msk.msra.mxu1 %vm8846_vm7, %v6908_v29  ;;  %v7432_v46 = vunpack.i.h.bf16 %v7430_v62  ;;  %v7431_v63 = vunpack.i.l.bf16 %v7430_v62 }
  0xad   :  { %v7425_v22 = vpop.permute.xlu0 %7424  ;;  %v6807_v30 = vpack.c.bf16 %v420_v61, %v416_v56  ;;  %v6810_v60 = vpack.c.bf16 %v419_v37, %v415_v57  ;;  %7719 = vrot.lane.b32.xlu1 %v8571_v32, %s8252_s26  ;;  %vm12980_vm4 = vcmask 121856   ;;  %vm510_vm3 = vcmp.eq.s32.totalorder %v500_v31, 1 }
  0xae   :  { %v7427_v53 = vunpack.i.h.bf16 %v7425_v22  ;;  %v7426_v47 = vunpack.i.l.bf16 %v7425_v22  ;;  %v421_v49 = vsel %vm13261_vm6, %v7417_v24, %v7431_v63  ;;  %v422_v29 = vsel %vm13263_vm12, %v7431_v63, %v7432_v46  ;;  %vm8886_vm6 = vmpackc.low %vm510_vm3, %vm510_vm3 }
  0xaf   :  { %7714 = vrot.lane.b32.xlu0 %v8575_v33, %s8252_s26  ;;  %6809 = vmatprep.subr.msk.bf16.mxu0 %vm8784_vm0, %v6807_v30  ;;  %v7440_v26 = vpop.permute.xlu1 %7439  ;;  %v496_v33 = vrot.slane %v8841_v50, %v8649_v45  ;;  %v13266_v30 = vmov 0  ;;  %vm63_vm12 = vcmp.ge.f32.partialorder %v8596_v36, 0.0  ;;  %v508_v31 = vrot.slane %v8841_v50, %v8652_v48 }
  0xb0   :  { %v417_v55 = vsel %vm13264_vm1, %v7412_v21, %v7426_v47  ;;  %v418_v59 = vsel %vm13265_vm11, %v7426_v47, %v7427_v53  ;;  %6812 = vmatpush1.bf16.msk.msra.mxu0 %vm8808_vm9, %v6810_v60  ;;  %v7442_v24 = vunpack.i.h.bf16 %v7440_v26  ;;  %v7441_v37 = vunpack.i.l.bf16 %v7440_v26 }
  0xb1   :  { %v7435_v32 = vpop.permute.xlu0 %7434  ;;  %v6911_v56 = vpack.c.bf16 %v422_v29, %v418_v59  ;;  %v6914_v57 = vpack.c.bf16 %v421_v49, %v417_v55  ;;  %7729 = vrot.lane.b32.xlu1 %v8583_v34, %s8252_s26  ;;  %v13267_v30 = vsel %vm8886_vm6, 4294967295, %v13266_v30  ;;  %vm64_vm1 = vcmp.lt.f32.partialorder %v8596_v36, 16.0 }
  0xb2   :  { %v7437_v61 = vunpack.i.h.bf16 %v7435_v32  ;;  %v7436_v21 = vunpack.i.l.bf16 %v7435_v32  ;;  %v579_v62 = vsel %vm12980_vm4, %v7441_v37, %v7442_v24  ;;  %vm509_vm11 = vcmp.eq.s32.totalorder %v496_v33, 1  ;;  %vm8900_vm3 = vmand %vm63_vm12, %vm64_vm1 }
  0xb3   :  { %7724 = vrot.lane.b32.xlu0 %v8587_v35, %s8252_s26  ;;  %6913 = vmatprep.subr.msk.bf16.mxu1 %vm8834_vm13, %v6911_v56  ;;  %v7450_v34 = vpop.permute.xlu1 %7449  ;;  %v504_v53 = vrot.slane %v8841_v50, %v8663_v51  ;;  %v13268_v49 = vmov 0  ;;  %vm8906_vm9 = vmpackc.low %vm509_vm11, %vm509_vm11  ;;  %v13271_v26 = vmov 0 }
  0xb4   :  { %v575_v22 = vsel %vm12980_vm4, %v7436_v21, %v7437_v61  ;;  %6916 = vmatpush1.bf16.msk.msra.mxu1 %vm8846_vm7, %v6914_v57  ;;  %v7451_v47 = vunpack.i.l.bf16 %v7450_v34  ;;  %v13269_v49 = vsel %vm8900_vm3, 4294967295, %v13268_v49  ;;  %v7452_v29 = vunpack.i.h.bf16 %v7450_v34  ;;  %vm8918_vm12 = vmand %vm8900_vm3, %vm8619_vm5 }
  0xb5   :  { %v7445_v35 = vpop.permute.xlu0 %7444  ;;  %v6813_v60 = vpack.c.bf16 %v579_v62, %v575_v22  ;;  %13270 = vst [vmem:[#allocation35_spill] sm:$0xff] %v13269_v49  ;;  %v13272_v26 = vsel %vm8906_vm9, 4294967295, %v13271_v26  ;;  %vm512_vm7 = vcmp.eq.s32.totalorder %v508_v31, 1  ;;  %vm8910_vm0 = vcmp.eq.s32.totalorder %v504_v53, 1  ;;  %v1663_v62 = vld [vmem:[%s12948_s3 + $0x10] sm:$0xff] }
  0xb6   :  { %v7447_v46 = vunpack.i.h.bf16 %v7445_v35  ;;  %v7446_v63 = vunpack.i.l.bf16 %v7445_v35  ;;  %v1661_v35 = vld [vmem:[%s12948_s3] sm:$0xff]  ;;  %v577_v31 = vsel %vm12980_vm4, %v7451_v47, %v7452_v29  ;;  %vm8934_vm1 = vmpackc.low %vm512_vm7, %vm512_vm7  ;;  %vm13007_vm7 = vcmask 7168  }
  0xb7   :  { %6815 = vmatprep.subr.msk.bf16.mxu0 %vm8886_vm6, %v6813_v60  ;;  %v7460_v32 = vpop.permute.xlu1 %7459  ;;  %v1662_v60 = vld [vmem:[%s12948_s3 + $0x8] sm:$0xff]  ;;  %1667 = vperm.xlu0 %7733, %v1661_v35   ;;  %vm8941_vm11 = vmpackc.low %vm8910_vm0, %vm8910_vm0  ;;  %v13297_v49 = vmov 0  }
  0xb8   :  { %v578_v55 = vsel %vm12980_vm4, %v7447_v46, %v7441_v37  ;;  %v574_v59 = vsel %vm12980_vm4, %v7446_v63, %v7436_v21  ;;  %v13275_v37 = vmov 0  ;;  %v576_v21 = vsel %vm12980_vm4, %v7437_v61, %v7451_v47  ;;  %1672 = vperm.xlu1 %7734, %v1662_v60   ;;  %v1664_v47 = vld [vmem:[%s12948_s3 + $0x18] sm:$0xff]  ;;  %s8266_s3 = smov 34  }
  0xb9   :  { %v7455_v56 = vpop.permute.xlu0 %7454  ;;  %v6816_v50 = vpack.c.bf16 %v578_v55, %v574_v59  ;;  %v13276_v37 = vsel %vm8918_vm12, 4294967295, %v13275_v37  ;;  %v7462_v22 = vunpack.i.h.bf16 %v7460_v32  ;;  %v7461_v34 = vunpack.i.l.bf16 %v7460_v32 }
  0xba   :  { %v7457_v57 = vunpack.i.h.bf16 %v7455_v56  ;;  %v7456_v33 = vunpack.i.l.bf16 %v7455_v56  ;;  %13277 = vst [vmem:[#allocation36_spill] sm:$0xff] %v13276_v37  ;;  %v13278_v61 = vmov 0  ;;  %v13280_v56 = vmov 0 }
  0xbb   :  { %6818 = vmatpush1.bf16.msk.msra.mxu0 %vm8906_vm9, %v6816_v50  ;;  %v13279_v61 = vsel %vm8934_vm1, 4294967295, %v13278_v61  ;;  %v7470_v53 = vpop.permute.xlu1 %7469  ;;  %v13281_v56 = vsel %vm8941_vm11, 4294967295, %v13280_v56  ;;  %1682 = vperm.xlu0 %7733, %v1664_v47  }
  0xbc   :  { %v580_v46 = vsel %vm12980_vm4, %v7442_v24, %v7456_v33  ;;  %v581_v63 = vsel %vm12980_vm4, %v7456_v33, %v7457_v57  ;;  %v8948_v24 = vsel %vm8918_vm12, 1, %v12976_v18  ;;  %v7472_v29 = vunpack.i.h.bf16 %v7470_v53  ;;  %1677 = vperm.xlu1 %7734, %v1663_v62  }
  0xbd   :  { %v7465_v55 = vpop.permute.xlu0 %7464  ;;  %v6917_v59 = vpack.c.bf16 %v581_v63, %v577_v31  ;;  %v6920_v32 = vpack.c.bf16 %v580_v46, %v576_v21  ;;  %v7471_v50 = vunpack.i.l.bf16 %v7470_v53  ;;  %v583_v21 = vsel %vm12980_vm4, %v7461_v34, %v7462_v22 }
  0xbe   :  { %v7467_v57 = vunpack.i.h.bf16 %v7465_v55  ;;  %v7466_v33 = vunpack.i.l.bf16 %v7465_v55  ;;  %v667_v38 = vrot.slane %v8948_v24, %v8639_v43 }
  0xbf   :  { %6919 = vmatprep.subr.msk.bf16.mxu1 %vm8934_vm1, %v6917_v59  ;;  %v582_v35 = vsel %vm12980_vm4, %v7471_v50, %v7461_v34  ;;  %v7480_v46 = vpop.permute.xlu1 %7479 }
  0xc0   :  { %v586_v60 = vsel %vm12980_vm4, %v7472_v29, %v7466_v33  ;;  %v587_v31 = vsel %vm12980_vm4, %v7466_v33, %v7467_v57  ;;  %6922 = vmatpush1.bf16.msk.msra.mxu1 %vm8941_vm11, %v6920_v32  ;;  %v7482_v18 = vunpack.i.h.bf16 %v7480_v46  ;;  %v7481_v59 = vunpack.i.l.bf16 %v7480_v46 }
  0xc1   :  { %v7475_v63 = vpop.permute.xlu0 %7474  ;;  %v6819_v53 = vpack.c.bf16 %v587_v31, %v583_v21  ;;  %v6822_v55 = vpack.c.bf16 %v586_v60, %v582_v35  ;;  %vm677_vm0 = vcmp.eq.s32.totalorder %v667_v38, 1  ;;  %v663_v60 = vrot.slane %v8948_v24, %v8649_v45 }
  0xc2   :  { %v7477_v37 = vunpack.i.h.bf16 %v7475_v63  ;;  %v7476_v34 = vunpack.i.l.bf16 %v7475_v63  ;;  %v588_v29 = vsel %vm12980_vm4, %v7467_v57, %v7481_v59  ;;  %v589_v32 = vsel %vm12980_vm4, %v7481_v59, %v7482_v18 }
  0xc3   :  { %6821 = vmatprep.subr.msk.bf16.mxu0 %vm8886_vm6, %v6819_v53  ;;  %v7490_v33 = vpop.permute.xlu1 %7489  ;;  %v675_v38 = vrot.slane %v8948_v24, %v8652_v48  ;;  %vm676_vm12 = vcmp.eq.s32.totalorder %v663_v60, 1 }
  0xc4   :  { %v584_v47 = vsel %vm12980_vm4, %v7462_v22, %v7476_v34  ;;  %v585_v50 = vsel %vm12980_vm4, %v7476_v34, %v7477_v37  ;;  %6824 = vmatpush1.bf16.msk.msra.mxu0 %vm8906_vm9, %v6822_v55  ;;  %v7492_v31 = vunpack.i.h.bf16 %v7490_v33  ;;  %v7491_v46 = vunpack.i.l.bf16 %v7490_v33  ;;  %vm8982_vm4 = vmpackc.low %vm677_vm0, %vm677_vm0 }
  0xc5   :  { %v7485_v62 = vpop.permute.xlu0 %7484  ;;  %v6923_v21 = vpack.c.bf16 %v589_v32, %v585_v50  ;;  %v6926_v35 = vpack.c.bf16 %v588_v29, %v584_v47  ;;  %v13282_v22 = vmov 0  ;;  %v671_v32 = vrot.slane %v8948_v24, %v8663_v51  ;;  %vm8994_vm0 = vmpackc.low %vm676_vm12, %vm676_vm12 }
  0xc6   :  { %v7487_v57 = vunpack.i.h.bf16 %v7485_v62  ;;  %v7486_v63 = vunpack.i.l.bf16 %v7485_v62  ;;  %v746_v18 = vsel %vm13007_vm7, %v7491_v46, %v7492_v31  ;;  %v13283_v22 = vsel %vm8982_vm4, 4294967295, %v13282_v22  ;;  %vm9012_vm12 = vmand %vm8900_vm3, %vm8800_vm8 }
  0xc7   :  { %6925 = vmatprep.subr.msk.bf16.mxu1 %vm8934_vm1, %v6923_v21  ;;  %13284 = vst [vmem:[#allocation37_spill] sm:$0xff] %v13283_v22  ;;  %v7500_v53 = vpop.permute.xlu1 %7499  ;;  %v13285_v21 = vmov 0  ;;  %vm679_vm9 = vcmp.eq.s32.totalorder %v675_v38, 1  ;;  %v9025_v11 = vsel %vm9012_vm12, 1, %v13297_v49  ;;  %vm67_vm3 = vcmp.lt.f32.partialorder %v8596_v36, 15.0 }
  0xc8   :  { %v742_v37 = vsel %vm13007_vm7, %v7486_v63, %v7487_v57  ;;  %6928 = vmatpush1.bf16.msk.msra.mxu1 %vm8941_vm11, %v6926_v35  ;;  %v7502_v47 = vunpack.i.h.bf16 %v7500_v53  ;;  %v7501_v50 = vunpack.i.l.bf16 %v7500_v53  ;;  %v13286_v21 = vsel %vm8994_vm0, 4294967295, %v13285_v21  ;;  %vm9002_vm6 = vmpackc.low %vm679_vm9, %vm679_vm9 }
  0xc9   :  { %v7495_v55 = vpop.permute.xlu0 %7494  ;;  %v6825_v59 = vpack.c.bf16 %v746_v18, %v742_v37  ;;  %13287 = vst [vmem:[#allocation38_spill] sm:$0xff] %v13286_v21  ;;  %vm678_vm11 = vcmp.eq.s32.totalorder %v671_v32, 1 }
  0xca   :  { %v7497_v34 = vunpack.i.h.bf16 %v7495_v55  ;;  %v7496_v29 = vunpack.i.l.bf16 %v7495_v55  ;;  %v743_v24 = vsel %vm13007_vm7, %v7487_v57, %v7501_v50  ;;  %v744_v53 = vsel %vm13007_vm7, %v7501_v50, %v7502_v47  ;;  %vm9016_vm9 = vmpackc.low %vm678_vm11, %vm678_vm11 }
  0xcb   :  { %6827 = vmatprep.subr.msk.bf16.mxu0 %vm8982_vm4, %v6825_v59  ;;  %v7510_v35 = vpop.permute.xlu1 %7509  ;;  %v13291_v57 = vmov 0  ;;  %vm13012_vm11 = vcmask 1039360  }
  0xcc   :  { %v745_v33 = vsel %vm13007_vm7, %v7497_v34, %v7491_v46  ;;  %v741_v62 = vsel %vm13007_vm7, %v7496_v29, %v7486_v63  ;;  %v13288_v46 = vmov 0  ;;  %v7512_v63 = vunpack.i.h.bf16 %v7510_v35 }
  0xcd   :  { %v7505_v60 = vpop.permute.xlu0 %7504  ;;  %v6828_v18 = vpack.c.bf16 %v745_v33, %v741_v62  ;;  %v13289_v46 = vsel %vm9002_vm6, 4294967295, %v13288_v46  ;;  %v7511_v59 = vunpack.i.l.bf16 %v7510_v35  ;;  %v13292_v57 = vsel %vm9012_vm12, 4294967295, %v13291_v57 }
  0xce   :  { %v7507_v37 = vunpack.i.h.bf16 %v7505_v60  ;;  %v7506_v55 = vunpack.i.l.bf16 %v7505_v60  ;;  %13290 = vst [vmem:[#allocation39_spill] sm:$0xff] %v13289_v46  ;;  %13293 = vst [vmem:[#allocation40_spill] sm:$0xff] %v13292_v57  ;;  %v13294_v33 = vmov 0 }
  0xcf   :  { %6830 = vmatpush1.bf16.msk.msra.mxu0 %vm8994_vm0, %v6828_v18  ;;  %v7520_v29 = vpop.permute.xlu1 %7519  ;;  %v13295_v33 = vsel %vm9016_vm9, 4294967295, %v13294_v33  ;;  %v806_v18 = vld [vmem:[#allocation2 + $0x10] sm:$0xff] }
  0xd0   :  { %v747_v38 = vsel %vm13007_vm7, %v7492_v31, %v7506_v55  ;;  %v748_v34 = vsel %vm13007_vm7, %v7506_v55, %v7507_v37  ;;  %13296 = vst [vmem:[#allocation41_spill] sm:$0xff] %v13295_v33  ;;  %v7522_v62 = vunpack.i.h.bf16 %v7520_v29  ;;  %v7521_v31 = vunpack.i.l.bf16 %v7520_v29  ;;  %v810_v37 = vld [vmem:[#allocation2 + $0x40] sm:$0xff]  ;;  %v805_v55 = vld [vmem:[#allocation2 + $0x8] sm:$0xff]  ;;  %v809_v29 = vld [vmem:[#allocation2 + $0x38] sm:$0xff] }
  0xd1   :  { %v7515_v32 = vpop.permute.xlu0 %7514  ;;  %v6929_v47 = vpack.c.bf16 %v748_v34, %v744_v53  ;;  %v6932_v50 = vpack.c.bf16 %v747_v38, %v743_v24  ;;  %v750_v24 = vsel %vm13007_vm7, %v7511_v59, %v7512_v63  ;;  %v6837_v41 = vpack.c.bf16 %v810_v37, %v806_v18  ;;  %v817_v37 = vld [vmem:[#allocation2 + $0x98] sm:$0xff] }
  0xd2   :  { %v7517_v35 = vunpack.i.h.bf16 %v7515_v32  ;;  %v7516_v60 = vunpack.i.l.bf16 %v7515_v32  ;;  %v749_v53 = vsel %vm13007_vm7, %v7521_v31, %v7511_v59  ;;  %v814_v32 = vld [vmem:[#allocation2 + $0x70] sm:$0xff]  ;;  %v808_v59 = vld [vmem:[#allocation2 + $0x20] sm:$0xff] }
  0xd3   :  { %6931 = vmatprep.subr.msk.bf16.mxu1 %vm9002_vm6, %v6929_v47  ;;  %v818_v47 = vld [vmem:[#allocation2 + $0xa0] sm:$0xff]  ;;  %v7530_v23 = vpop.permute.xlu1 %7529  ;;  %v812_v31 = vld [vmem:[#allocation2 + $0x50] sm:$0xff] }
  0xd4   :  { %v753_v38 = vsel %vm13007_vm7, %v7522_v62, %v7516_v60  ;;  %v754_v34 = vsel %vm13007_vm7, %v7516_v60, %v7517_v35  ;;  %6934 = vmatpush1.bf16.msk.msra.mxu1 %vm9016_vm9, %v6932_v50  ;;  %v7532_v17 = vunpack.i.h.bf16 %v7530_v23  ;;  %v7531_v16 = vunpack.i.l.bf16 %v7530_v23 }
  0xd5   :  { %v7525_v42 = vpop.permute.xlu0 %7524  ;;  %v6831_v39 = vpack.c.bf16 %v754_v34, %v750_v24  ;;  %v6834_v57 = vpack.c.bf16 %v753_v38, %v749_v53  ;;  %v6839_v62 = vpack.c.bf16 %v809_v29, %v805_v55  ;;  %v6841_v50 = vpack.c.bf16 %v818_v47, %v814_v32  ;;  %v820_v32 = vld [vmem:[#allocation2 + $0xb0] sm:$0xff] }
  0xd6   :  { %v7527_v15 = vunpack.i.h.bf16 %v7525_v42  ;;  %v7526_v14 = vunpack.i.l.bf16 %v7525_v42  ;;  %v866_v60 = vrot.slane %v9025_v11, %v8639_v43  ;;  %v755_v20 = vsel %vm13007_vm7, %v7517_v35, %v7531_v16  ;;  %v813_v42 = vld [vmem:[#allocation2 + $0x68] sm:$0xff] }
  0xd7   :  { %6833 = vmatprep.subr.msk.bf16.mxu0 %vm8982_vm4, %v6831_v39  ;;  %v756_v24 = vsel %vm13007_vm7, %v7531_v16, %v7532_v17  ;;  %v9043_v39 = vpop.permute.xlu1 %7539  ;;  %v6941_v34 = vpack.c.bf16 %v812_v31, %v808_v59  ;;  %v862_v35 = vrot.slane %v9025_v11, %v8649_v45  ;;  %v6843_v29 = vpack.c.bf16 %v817_v37, %v813_v42 }
  0xd8   :  { %v751_v18 = vsel %vm13007_vm7, %v7512_v63, %v7526_v14  ;;  %v752_v23 = vsel %vm13007_vm7, %v7526_v14, %v7527_v15  ;;  %6836 = vmatpush1.bf16.msk.msra.mxu0 %vm8994_vm0, %v6834_v57  ;;  %v7542_v16 = vunpack.i.h.bf16 %v9043_v39  ;;  %v7541_v17 = vunpack.i.l.bf16 %v9043_v39  ;;  %v807_v63 = vld [vmem:[#allocation2 + $0x18] sm:$0xff]  ;;  %v811_v57 = vld [vmem:[#allocation2 + $0x48] sm:$0xff] }
  0xd9   :  { %v7535_v55 = vpop.permute.xlu0 %7534  ;;  %6838 = vmatprep.subr.bf16.mxu0 %v6837_v41  ;;  %v6935_v53 = vpack.c.bf16 %v756_v24, %v752_v23  ;;  %v6938_v38 = vpack.c.bf16 %v755_v20, %v751_v18  ;;  %vm9051_vm7 = vcmp.eq.s32.totalorder %v866_v60, 1  ;;  %v816_v20 = vld [vmem:[#allocation2 + $0x80] sm:$0xff]  ;;  %v6943_v60 = vpack.c.bf16 %v811_v57, %v807_v63 }
  0xda   :  { %v7537_v14 = vunpack.i.h.bf16 %v7535_v55  ;;  %v7536_v15 = vunpack.i.l.bf16 %v7535_v55  ;;  %v945_v47 = vsel %vm13012_vm11, %v7541_v17, %v7542_v16  ;;  %v874_v18 = vrot.slane %v9025_v11, %v8652_v48  ;;  %v819_v55 = vld [vmem:[#allocation2 + $0xa8] sm:$0xff] }
  0xdb   :  { %6937 = vmatprep.subr.msk.bf16.mxu1 %vm9002_vm6, %v6935_v53  ;;  %v7550_v31 = vpop.permute.xlu1 %7549  ;;  %v6945_v37 = vpack.c.bf16 %v820_v32, %v816_v20  ;;  %vm9070_vm12 = vcmp.eq.s32.totalorder %v862_v35, 1  ;;  %v870_v63 = vrot.slane %v9025_v11, %v8663_v51  ;;  %v13306_v57 = vmov 0 }
  0xdc   :  { %v941_v59 = vsel %vm13012_vm11, %v7536_v15, %v7537_v14  ;;  %6840 = vmatpush1.bf16.msra.mxu0 %v6839_v62  ;;  %6940 = vmatpush1.bf16.msk.msra.mxu1 %vm9016_vm9, %v6938_v38  ;;  %vm9066_vm11 = vmpackc.low %vm9051_vm7, %vm9051_vm7  ;;  %v13300_v62 = vmov 0  ;;  %v7552_v53 = vunpack.i.h.bf16 %v7550_v31  ;;  %v7551_v38 = vunpack.i.l.bf16 %v7550_v31 }
  0xdd   :  { %v7545_v24 = vpop.permute.xlu0 %7544  ;;  %6842 = vmatprep.subr.bf16.mxu0 %v6841_v50  ;;  %6942 = vmatprep.subr.bf16.mxu1 %v6941_v34  ;;  %v13301_v62 = vsel %vm9066_vm11, 4294967295, %v13300_v62  ;;  %v815_v50 = vld [vmem:[#allocation2 + $0x78] sm:$0xff]  ;;  %v6845_v34 = vpack.c.bf16 %v945_v47, %v941_v59  ;;  %vm13305_vm7 = vcmp.ge.f32.partialorder %v8596_v36, -1.0  ;;  %vm13309_vm9 = vcmask 1039360   ;;  %vm9091_vm6 = vmpackc.low %vm9070_vm12, %vm9070_vm12 }
  0xde   :  { %v7547_v23 = vunpack.i.h.bf16 %v7545_v24  ;;  %v7546_v42 = vunpack.i.l.bf16 %v7545_v24  ;;  %13302 = vst [vmem:[#allocation42_spill] sm:$0xff] %v13301_v62  ;;  %vm9080_vm0 = vmand %vm13305_vm7, %vm67_vm3  ;;  %v13311_v36 = vmov 0  ;;  %v6947_v47 = vpack.c.bf16 %v819_v55, %v815_v50 }
  0xdf   :  { %v13307_v57 = vsel %vm9080_vm0, 4294967295, %v13306_v57  ;;  %vm13310_vm4 = vmmov %vm13309_vm9  ;;  %v7560_v20 = vpop.permute.xlu1 %7559  ;;  %v13312_v36 = vsel %vm9091_vm6, 4294967295, %v13311_v36  ;;  %vm878_vm3 = vcmp.eq.s32.totalorder %v874_v18, 1  ;;  %vm9105_vm12 = vcmp.eq.s32.totalorder %v870_v63, 1 }
  0xe0   :  { %13308 = vst [vmem:[#allocation43_spill] sm:$0xff] %v13307_v57  ;;  %v944_v35 = vsel %vm13309_vm9, %v7547_v23, %v7541_v17  ;;  %v940_v41 = vsel %vm13310_vm4, %v7546_v42, %v7536_v15  ;;  %6844 = vmatpush1.bf16.msra.mxu0 %v6843_v29  ;;  %6944 = vmatpush1.bf16.msra.mxu1 %v6943_v60  ;;  %13313 = vst [vmem:[#allocation44_spill] sm:$0xff] %v13312_v36  ;;  %v13314_v15 = vmov 0  ;;  %v7562_v60 = vunpack.i.h.bf16 %v7560_v20 }
  0xe1   :  { %v7555_v32 = vpop.permute.xlu0 %7554  ;;  %6847 = vmatprep.subr.msk.bf16.mxu0 %vm9066_vm11, %v6845_v34  ;;  %v6848_v11 = vpack.c.bf16 %v944_v35, %v940_v41  ;;  %6946 = vmatprep.subr.bf16.mxu1 %v6945_v37  ;;  %vm9099_vm4 = vmand %vm9080_vm0, %vm8619_vm5  ;;  %v942_v29 = vsel %vm13309_vm9, %v7537_v14, %v7551_v38  ;;  %v7561_v18 = vunpack.i.l.bf16 %v7560_v20  ;;  %v13322_v37 = vmov 0 }
  0xe2   :  { %v7557_v17 = vunpack.i.h.bf16 %v7555_v32  ;;  %v7556_v59 = vunpack.i.l.bf16 %v7555_v32  ;;  %v13315_v15 = vsel %vm9099_vm4, 4294967295, %v13314_v15  ;;  %vm13317_vm7 = vmmov %vm13309_vm9  ;;  %v13325_v35 = vmov 0 }
  0xe3   :  { %13316 = vst [vmem:[#allocation45_spill] sm:$0xff] %v13315_v15  ;;  %v943_v31 = vsel %vm13317_vm7, %v7551_v38, %v7552_v53  ;;  %vm13320_vm1 = vmmov %vm13317_vm7  ;;  %v7570_v14 = vpop.permute.xlu1 %7569  ;;  %v9120_v53 = vsel %vm9099_vm4, 1, %v13297_v49 }
  0xe4   :  { %v946_v23 = vsel %vm13320_vm1, %v7542_v16, %v7556_v59  ;;  %vm13321_vm13 = vmmov %vm13320_vm1  ;;  %6850 = vmatpush1.bf16.msk.msra.mxu0 %vm9091_vm6, %v6848_v11  ;;  %6948 = vmatpush1.bf16.msra.mxu1 %v6947_v47  ;;  %v7572_v16 = vunpack.i.h.bf16 %v7570_v14  ;;  %v7571_v38 = vunpack.i.l.bf16 %v7570_v14  ;;  %v949_v41 = vsel %vm13320_vm1, %v7561_v18, %v7562_v60 }
  0xe5   :  { %v947_v42 = vsel %vm13321_vm13, %v7556_v59, %v7557_v17  ;;  %vm9113_vm5 = vmpackc.low %vm878_vm3, %vm878_vm3  ;;  %v7565_v39 = vpop.permute.xlu0 %7564  ;;  %v6952_v55 = vpack.c.bf16 %v946_v23, %v942_v29 }
  0xe6   :  { %v13323_v37 = vsel %vm9113_vm5, 4294967295, %v13322_v37  ;;  %v6949_v50 = vpack.c.bf16 %v947_v42, %v943_v31  ;;  %v7567_v34 = vunpack.i.h.bf16 %v7565_v39  ;;  %v7566_v63 = vunpack.i.l.bf16 %v7565_v39  ;;  %vm9125_vm13 = vmpackc.low %vm9105_vm12, %vm9105_vm12 }
  0xe7   :  { %13324 = vst [vmem:[#allocation46_spill] sm:$0xff] %v13323_v37  ;;  %v13326_v35 = vsel %vm9125_vm13, 4294967295, %v13325_v35  ;;  %vm13328_vm3 = vmmov %vm13320_vm1  ;;  %v7580_v47 = vpop.permute.xlu1 %7579  ;;  %v1033_v31 = vrot.slane %v9120_v53, %v8639_v43  ;;  %vm13039_vm12 = vcmask 924672  }
  0xe8   :  { %13327 = vst [vmem:[#allocation47_spill] sm:$0xff] %v13326_v35  ;;  %6951 = vmatprep.subr.msk.bf16.mxu1 %vm9113_vm5, %v6949_v50  ;;  %v948_v20 = vsel %vm13328_vm3, %v7571_v38, %v7561_v18  ;;  %vm13329_vm9 = vmmov %vm13320_vm1  ;;  %v7582_v24 = vunpack.i.h.bf16 %v7580_v47  ;;  %v7581_v23 = vunpack.i.l.bf16 %v7580_v47 }
  0xe9   :  { %v952_v32 = vsel %vm13329_vm9, %v7572_v16, %v7566_v63  ;;  %vm13330_vm7 = vmmov %vm13320_vm1  ;;  %6954 = vmatpush1.bf16.msk.msra.mxu1 %vm9125_vm13, %v6952_v55  ;;  %v7575_v17 = vpop.permute.xlu0 %7574  ;;  %vm1043_vm4 = vcmp.eq.s32.totalorder %v1033_v31, 1 }
  0xea   :  { %v953_v11 = vsel %vm13330_vm7, %v7566_v63, %v7567_v34  ;;  %v6854_v29 = vpack.c.bf16 %v952_v32, %v948_v20  ;;  %v7577_v42 = vunpack.i.h.bf16 %v7575_v17  ;;  %v7576_v14 = vunpack.i.l.bf16 %v7575_v17  ;;  %vm13331_vm3 = vmmov %vm13320_vm1 }
  0xeb   :  { %v6851_v59 = vpack.c.bf16 %v953_v11, %v949_v41  ;;  %v954_v18 = vsel %vm13320_vm1, %v7567_v34, %v7581_v23  ;;  %v955_v39 = vsel %vm13331_vm3, %v7581_v23, %v7582_v24  ;;  %vm13332_vm9 = vmmov %vm13320_vm1  ;;  %v7590_v16 = vpop.permute.xlu1 %7589  ;;  %v1029_v20 = vrot.slane %v9120_v53, %v8649_v45 }
  0xec   :  { %v950_v50 = vsel %vm13332_vm9, %v7562_v60, %v7576_v14  ;;  %vm13333_vm7 = vmmov %vm13320_vm1  ;;  %v7592_v32 = vunpack.i.h.bf16 %v7590_v16  ;;  %v7591_v11 = vunpack.i.l.bf16 %v7590_v16  ;;  %v1041_v23 = vrot.slane %v9120_v53, %v8652_v48 }
  0xed   :  { %6853 = vmatprep.subr.msk.bf16.mxu0 %vm9066_vm11, %v6851_v59  ;;  %v951_v55 = vsel %vm13333_vm7, %v7576_v14, %v7577_v42  ;;  %v7585_v38 = vpop.permute.xlu0 %7584  ;;  %v6958_v41 = vpack.c.bf16 %v954_v18, %v950_v50  ;;  %vm9155_vm1 = vmpackc.low %vm1043_vm4, %vm1043_vm4  ;;  %v13334_v59 = vmov 0  ;;  %vm1042_vm3 = vcmp.eq.s32.totalorder %v1029_v20, 1 }
  0xee   :  { %6856 = vmatpush1.bf16.msk.msra.mxu0 %vm9091_vm6, %v6854_v29  ;;  %v6955_v63 = vpack.c.bf16 %v955_v39, %v951_v55  ;;  %v7587_v34 = vunpack.i.h.bf16 %v7585_v38  ;;  %v7586_v47 = vunpack.i.l.bf16 %v7585_v38  ;;  %v1112_v60 = vsel %vm13039_vm12, %v7591_v11, %v7592_v32  ;;  %vm9167_vm4 = vmpackc.low %vm1042_vm3, %vm1042_vm3 }
  0xef   :  { %v13335_v59 = vsel %vm9155_vm1, 4294967295, %v13334_v59  ;;  %v7600_v29 = vpop.permute.xlu1 %7599  ;;  %v1037_v18 = vrot.slane %v9120_v53, %v8663_v51  ;;  %v13337_v38 = vmov 0  ;;  %vm1045_vm9 = vcmp.eq.s32.totalorder %v1041_v23, 1 }
  0xf0   :  { %6957 = vmatprep.subr.msk.bf16.mxu1 %vm9113_vm5, %v6955_v63  ;;  %v1108_v17 = vsel %vm13039_vm12, %v7586_v47, %v7587_v34  ;;  %13336 = vst [vmem:[#allocation48_spill] sm:$0xff] %v13335_v59  ;;  %v7602_v39 = vunpack.i.h.bf16 %v7600_v29  ;;  %v7601_v50 = vunpack.i.l.bf16 %v7600_v29  ;;  %v13338_v38 = vsel %vm9167_vm4, 4294967295, %v13337_v38  ;;  %vm9185_vm3 = vmpackc.low %vm1045_vm9, %vm1045_vm9 }
  0xf1   :  { %6960 = vmatpush1.bf16.msk.msra.mxu1 %vm9125_vm13, %v6958_v41  ;;  %v7595_v31 = vpop.permute.xlu0 %7594  ;;  %v6857_v24 = vpack.c.bf16 %v1112_v60, %v1108_v17  ;;  %13339 = vst [vmem:[#allocation49_spill] sm:$0xff] %v13338_v38  ;;  %vm1044_vm7 = vcmp.eq.s32.totalorder %v1037_v18, 1  ;;  %vm9175_vm13 = vmand %vm9080_vm0, %vm8666_vm10  ;;  %v13340_v53 = vmov 0  ;;  %vm13059_vm9 = vcmask 916480  }
  0xf2   :  { %v7597_v42 = vunpack.i.h.bf16 %v7595_v31  ;;  %v7596_v14 = vunpack.i.l.bf16 %v7595_v31  ;;  %v13341_v53 = vsel %vm9175_vm13, 4294967295, %v13340_v53  ;;  %vm9189_vm10 = vmpackc.low %vm1044_vm7, %vm1044_vm7 }
  0xf3   :  { %6859 = vmatprep.subr.msk.bf16.mxu0 %vm9155_vm1, %v6857_v24  ;;  %v7610_v63 = vpop.permute.xlu1 %7609  ;;  %13342 = vst [vmem:[#allocation50_spill] sm:$0xff] %v13341_v53 }
  0xf4   :  { %v1111_v55 = vsel %vm13039_vm12, %v7597_v42, %v7591_v11  ;;  %v1107_v16 = vsel %vm13039_vm12, %v7596_v14, %v7586_v47  ;;  %v1109_v11 = vsel %vm13039_vm12, %v7587_v34, %v7601_v50  ;;  %v1110_v47 = vsel %vm13039_vm12, %v7601_v50, %v7602_v39 }
  0xf5   :  { %v7605_v41 = vpop.permute.xlu0 %7604  ;;  %v6860_v20 = vpack.c.bf16 %v1111_v55, %v1107_v16  ;;  %v7612_v29 = vunpack.i.h.bf16 %v7610_v63  ;;  %v7611_v31 = vunpack.i.l.bf16 %v7610_v63  ;;  %v13343_v42 = vmov 0 }
  0xf6   :  { %v7607_v60 = vunpack.i.h.bf16 %v7605_v41  ;;  %v7606_v17 = vunpack.i.l.bf16 %v7605_v41  ;;  %v13344_v42 = vsel %vm9185_vm3, 4294967295, %v13343_v42  ;;  %v13346_v34 = vmov 0 }
  0xf7   :  { %6862 = vmatpush1.bf16.msk.msra.mxu0 %vm9167_vm4, %v6860_v20  ;;  %13345 = vst [vmem:[#allocation51_spill] sm:$0xff] %v13344_v42  ;;  %v7620_v14 = vpop.permute.xlu1 %7619  ;;  %v13347_v34 = vsel %vm9189_vm10, 4294967295, %v13346_v34  ;;  %v1192_v39 = vsel %vm9175_vm13, 1, %v13297_v49  ;;  %v1116_v20 = vsel %vm13039_vm12, %v7611_v31, %v7612_v29 }
  0xf8   :  { %v1113_v24 = vsel %vm13039_vm12, %v7592_v32, %v7606_v17  ;;  %v1114_v23 = vsel %vm13039_vm12, %v7606_v17, %v7607_v60  ;;  %13348 = vst [vmem:[#allocation52_spill] sm:$0xff] %v13347_v34  ;;  %v7622_v50 = vunpack.i.h.bf16 %v7620_v14  ;;  %v7621_v32 = vunpack.i.l.bf16 %v7620_v14 }
  0xf9   :  { %v7615_v18 = vpop.permute.xlu0 %7614  ;;  %v6961_v55 = vpack.c.bf16 %v1114_v23, %v1110_v47  ;;  %v6964_v16 = vpack.c.bf16 %v1113_v24, %v1109_v11 }
  0xfa   :  { %v7617_v63 = vunpack.i.h.bf16 %v7615_v18  ;;  %v7616_v41 = vunpack.i.l.bf16 %v7615_v18  ;;  %v1115_v60 = vsel %vm13039_vm12, %v7621_v32, %v7611_v31  ;;  %v1200_v18 = vrot.slane %v1192_v39, %v8639_v43 }
  0xfb   :  { %6963 = vmatprep.subr.msk.bf16.mxu1 %vm9185_vm3, %v6961_v55  ;;  %v7630_v47 = vpop.permute.xlu1 %7629 }
  0xfc   :  { %v1119_v17 = vsel %vm13039_vm12, %v7622_v50, %v7616_v41  ;;  %v1120_v11 = vsel %vm13039_vm12, %v7616_v41, %v7617_v63  ;;  %6966 = vmatpush1.bf16.msk.msra.mxu1 %vm9189_vm10, %v6964_v16  ;;  %v7632_v53 = vunpack.i.h.bf16 %v7630_v47  ;;  %v7631_v15 = vunpack.i.l.bf16 %v7630_v47 }
  0xfd   :  { %v7625_v24 = vpop.permute.xlu0 %7624  ;;  %v6863_v23 = vpack.c.bf16 %v1120_v11, %v1116_v20  ;;  %v6866_v14 = vpack.c.bf16 %v1119_v17, %v1115_v60  ;;  %vm1210_vm7 = vcmp.eq.s32.totalorder %v1200_v18, 1  ;;  %v1196_v11 = vrot.slane %v1192_v39, %v8649_v45 }
  0xfe   :  { %v7627_v55 = vunpack.i.h.bf16 %v7625_v24  ;;  %v7626_v58 = vunpack.i.l.bf16 %v7625_v24  ;;  %v1121_v31 = vsel %vm13039_vm12, %v7617_v63, %v7631_v15  ;;  %v1122_v50 = vsel %vm13039_vm12, %v7631_v15, %v7632_v53 }
  0xff   :  { %6865 = vmatprep.subr.msk.bf16.mxu0 %vm9155_vm1, %v6863_v23  ;;  %v7640_v41 = vpop.permute.xlu1 %7639  ;;  %v13349_v53 = vmov 0  ;;  %vm1209_vm13 = vcmp.eq.s32.totalorder %v1196_v11, 1 }
 0x100   :  { %v1117_v16 = vsel %vm13039_vm12, %v7612_v29, %v7626_v58  ;;  %v1118_v32 = vsel %vm13039_vm12, %v7626_v58, %v7627_v55  ;;  %6868 = vmatpush1.bf16.msk.msra.mxu0 %vm9167_vm4, %v6866_v14  ;;  %v7642_v47 = vunpack.i.h.bf16 %v7640_v41  ;;  %v7641_v24 = vunpack.i.l.bf16 %v7640_v41  ;;  %vm9220_vm12 = vmpackc.low %vm1210_vm7, %vm1210_vm7 }
 0x101   :  { %v7635_v20 = vpop.permute.xlu0 %7634  ;;  %v6967_v60 = vpack.c.bf16 %v1122_v50, %v1118_v32  ;;  %v6970_v17 = vpack.c.bf16 %v1121_v31, %v1117_v16  ;;  %v13350_v53 = vsel %vm9220_vm12, 4294967295, %v13349_v53  ;;  %v1208_v55 = vrot.slane %v1192_v39, %v8652_v48  ;;  %vm9230_vm7 = vmpackc.low %vm1209_vm13, %vm1209_vm13 }
 0x102   :  { %v7637_v23 = vunpack.i.h.bf16 %v7635_v20  ;;  %v7636_v63 = vunpack.i.l.bf16 %v7635_v20  ;;  %v1279_v15 = vsel %vm13059_vm9, %v7641_v24, %v7642_v47  ;;  %13351 = vst [vmem:[#allocation53_spill] sm:$0xff] %v13350_v53  ;;  %v1204_v16 = vrot.slane %v1192_v39, %v8663_v51 }
 0x103   :  { %6969 = vmatprep.subr.msk.bf16.mxu1 %vm9185_vm3, %v6967_v60  ;;  %v7650_v29 = vpop.permute.xlu1 %7649  ;;  %vm9238_vm3 = vmand %vm9080_vm0, %vm8800_vm8  ;;  %v13355_v39 = vmov 0 }
 0x104   :  { %v1275_v58 = vsel %vm13059_vm9, %v7636_v63, %v7637_v23  ;;  %6972 = vmatpush1.bf16.msk.msra.mxu1 %vm9189_vm10, %v6970_v17  ;;  %v7652_v32 = vunpack.i.h.bf16 %v7650_v29  ;;  %v7651_v41 = vunpack.i.l.bf16 %v7650_v29  ;;  %v13352_v17 = vmov 0 }
 0x105   :  { %v7645_v14 = vpop.permute.xlu0 %7644  ;;  %v6869_v18 = vpack.c.bf16 %v1279_v15, %v1275_v58  ;;  %v13353_v17 = vsel %vm9230_vm7, 4294967295, %v13352_v17  ;;  %vm1212_vm10 = vcmp.eq.s32.totalorder %v1208_v55, 1  ;;  %vm1211_vm4 = vcmp.eq.s32.totalorder %v1204_v16, 1 }
 0x106   :  { %v7647_v31 = vunpack.i.h.bf16 %v7645_v14  ;;  %v7646_v50 = vunpack.i.l.bf16 %v7645_v14  ;;  %13354 = vst [vmem:[#allocation54_spill] sm:$0xff] %v13353_v17  ;;  %v13356_v39 = vsel %vm9238_vm3, 4294967295, %v13355_v39  ;;  %vm9248_vm13 = vmpackc.low %vm1212_vm10, %vm1212_vm10  ;;  %vm13098_vm10 = vcmask 908288  }
 0x107   :  { %6871 = vmatprep.subr.msk.bf16.mxu0 %vm9220_vm12, %v6869_v18  ;;  %v7660_v11 = vpop.permute.xlu1 %7659  ;;  %13357 = vst [vmem:[#allocation55_spill] sm:$0xff] %v13356_v39  ;;  %vm9252_vm0 = vmpackc.low %vm1211_vm4, %vm1211_vm4 }
 0x108   :  { %v1278_v20 = vsel %vm13059_vm9, %v7647_v31, %v7641_v24  ;;  %v1274_v60 = vsel %vm13059_vm9, %v7646_v50, %v7636_v63  ;;  %v1276_v24 = vsel %vm13059_vm9, %v7637_v23, %v7651_v41  ;;  %v1277_v63 = vsel %vm13059_vm9, %v7651_v41, %v7652_v32 }
 0x109   :  { %v7655_v15 = vpop.permute.xlu0 %7654  ;;  %v6872_v58 = vpack.c.bf16 %v1278_v20, %v1274_v60  ;;  %v7662_v29 = vunpack.i.h.bf16 %v7660_v11  ;;  %v7661_v18 = vunpack.i.l.bf16 %v7660_v11  ;;  %v13358_v50 = vmov 0 }
 0x10a   :  { %v7657_v14 = vunpack.i.h.bf16 %v7655_v15  ;;  %v7656_v40 = vunpack.i.l.bf16 %v7655_v15  ;;  %v13359_v50 = vsel %vm9248_vm13, 4294967295, %v13358_v50  ;;  %v13361_v23 = vmov 0 }
 0x10b   :  { %6874 = vmatpush1.bf16.msk.msra.mxu0 %vm9230_vm7, %v6872_v58  ;;  %13360 = vst [vmem:[#allocation56_spill] sm:$0xff] %v13359_v50  ;;  %v7670_v16 = vpop.permute.xlu1 %7669  ;;  %v13362_v23 = vsel %vm9252_vm0, 4294967295, %v13361_v23  ;;  %v9259_v32 = vsel %vm9238_vm3, 1, %v13297_v49  ;;  %v1283_v58 = vsel %vm13059_vm9, %v7661_v18, %v7662_v29 }
 0x10c   :  { %v1280_v55 = vsel %vm13059_vm9, %v7642_v47, %v7656_v40  ;;  %v1281_v31 = vsel %vm13059_vm9, %v7656_v40, %v7657_v14  ;;  %13363 = vst [vmem:[#allocation57_spill] sm:$0xff] %v13362_v23  ;;  %v7672_v47 = vunpack.i.h.bf16 %v7670_v16  ;;  %v7671_v41 = vunpack.i.l.bf16 %v7670_v16 }
 0x10d   :  { %v7665_v20 = vpop.permute.xlu0 %7664  ;;  %v6973_v60 = vpack.c.bf16 %v1281_v31, %v1277_v63  ;;  %v6976_v15 = vpack.c.bf16 %v1280_v55, %v1276_v24 }
 0x10e   :  { %v7667_v40 = vunpack.i.h.bf16 %v7665_v20  ;;  %v7666_v11 = vunpack.i.l.bf16 %v7665_v20  ;;  %v1282_v14 = vsel %vm13059_vm9, %v7671_v41, %v7661_v18  ;;  %v1367_v20 = vrot.slane %v9259_v32, %v8639_v43 }
 0x10f   :  { %6975 = vmatprep.subr.msk.bf16.mxu1 %vm9248_vm13, %v6973_v60  ;;  %v7680_v55 = vpop.permute.xlu1 %7679 }
 0x110   :  { %v1286_v24 = vsel %vm13059_vm9, %v7672_v47, %v7666_v11  ;;  %v1287_v63 = vsel %vm13059_vm9, %v7666_v11, %v7667_v40  ;;  %6978 = vmatpush1.bf16.msk.msra.mxu1 %vm9252_vm0, %v6976_v15  ;;  %v7682_v57 = vunpack.i.h.bf16 %v7680_v55  ;;  %v7681_v60 = vunpack.i.l.bf16 %v7680_v55  ;;  %v1505_v11 = vld [vmem:[%s12947_s2] sm:$0xff] }
 0x111   :  { %v7675_v31 = vpop.permute.xlu0 %7674  ;;  %v6875_v39 = vpack.c.bf16 %v1287_v63, %v1283_v58  ;;  %v6878_v16 = vpack.c.bf16 %v1286_v24, %v1282_v14  ;;  %vm1377_vm4 = vcmp.eq.s32.totalorder %v1367_v20, 1  ;;  %v1508_v20 = vld [vmem:[%s12947_s2 + $0x18] sm:$0xff] }
 0x112   :  { %v7677_v54 = vunpack.i.h.bf16 %v7675_v31  ;;  %v7676_v49 = vunpack.i.l.bf16 %v7675_v31  ;;  %v1288_v18 = vsel %vm13059_vm9, %v7667_v40, %v7681_v60  ;;  %v1289_v47 = vsel %vm13059_vm9, %v7681_v60, %v7682_v57  ;;  %v1509_v57 = vld [vmem:[%s12947_s2 + $0x20] sm:$0xff] }
 0x113   :  { %6877 = vmatprep.subr.msk.bf16.mxu0 %vm9220_vm12, %v6875_v39  ;;  %v7690_v58 = vpop.permute.xlu1 %7689 }
 0x114   :  { %v1284_v15 = vsel %vm13059_vm9, %v7662_v29, %v7676_v49  ;;  %v1285_v41 = vsel %vm13059_vm9, %v7676_v49, %v7677_v54  ;;  %6880 = vmatpush1.bf16.msk.msra.mxu0 %vm9230_vm7, %v6878_v16  ;;  %v1363_v29 = vrot.slane %v9259_v32, %v8649_v45  ;;  %v7692_v54 = vunpack.i.h.bf16 %v7690_v58  ;;  %vm9293_vm9 = vmpackc.low %vm1377_vm4, %vm1377_vm4 }
 0x115   :  { %v7685_v14 = vpop.permute.xlu0 %7684  ;;  %v6979_v24 = vpack.c.bf16 %v1289_v47, %v1285_v41  ;;  %v6982_v39 = vpack.c.bf16 %v1288_v18, %v1284_v15  ;;  %v7691_v49 = vunpack.i.l.bf16 %v7690_v58  ;;  %v13364_v16 = vmov 0 }
 0x116   :  { %v7687_v40 = vunpack.i.h.bf16 %v7685_v14  ;;  %v7686_v63 = vunpack.i.l.bf16 %v7685_v14  ;;  %v13365_v16 = vsel %vm9293_vm9, 4294967295, %v13364_v16  ;;  %vm1376_vm3 = vcmp.eq.s32.totalorder %v1363_v29, 1  ;;  %v1512_v14 = vld [vmem:[%s12947_s2 + $0x38] sm:$0xff] }
 0x117   :  { %6981 = vmatprep.subr.msk.bf16.mxu1 %vm9248_vm13, %v6979_v24  ;;  %1763 = vmatmul.mubr.f32.vlgmr.msra.gmra.mrb[0].mxu0 %v1505_v11  ;;  %v1446_v55 = vsel %vm13098_vm10, %v7691_v49, %v7692_v54  ;;  %13366 = vst [vmem:[#allocation58_spill] sm:$0xff] %v13365_v16  ;;  %v7700_v60 = vpop.permute.xlu1 %7699  ;;  %v1375_v15 = vrot.slane %v9259_v32, %v8652_v48  ;;  %vm9311_vm4 = vmpackc.low %vm1376_vm3, %vm1376_vm3 }
 0x118   :  { %v1442_v31 = vsel %vm13098_vm10, %v7686_v63, %v7687_v40  ;;  %6984 = vmatpush1.bf16.msk.msra.mxu1 %vm9252_vm0, %v6982_v39  ;;  %1768 = vmatprep.mubr.f32.mxu0 %v1509_v57  ;;  %v1371_v24 = vrot.slane %v9259_v32, %v8663_v51  ;;  %v7701_v39 = vunpack.i.l.bf16 %v7700_v60  ;;  %v7702_v43 = vunpack.i.h.bf16 %v7700_v60  ;;  %v1511_v32 = vld [vmem:[%s12947_s2 + $0x30] sm:$0xff] }
 0x119   :  { %v7695_v18 = vpop.permute.xlu0 %7694  ;;  %v6881_v47 = vpack.c.bf16 %v1446_v55, %v1442_v31  ;;  %v13367_v31 = vmov 0  ;;  %vm1379_vm8 = vcmp.eq.s32.totalorder %v1375_v15, 1 }
 0x11a   :  { %v7697_v41 = vunpack.i.h.bf16 %v7695_v18  ;;  %v7696_v58 = vunpack.i.l.bf16 %v7695_v18  ;;  %v13368_v31 = vsel %vm9311_vm4, 4294967295, %v13367_v31  ;;  %vm9318_vm0 = vcmp.eq.s32.totalorder %v1371_v24, 1  ;;  %vm9331_vm3 = vmpackc.low %vm1379_vm8, %vm1379_vm8 }
 0x11b   :  { %6883 = vmatprep.subr.msk.bf16.mxu0 %vm9293_vm9, %v6881_v47  ;;  %1769 = vmatmul.mubr.f32.gmra.mrb[2].mxu0 %v1508_v20  ;;  %13369 = vst [vmem:[#allocation59_spill] sm:$0xff] %v13368_v31  ;;  %v7710_v48 = vpop.permute.xlu1 %7709  ;;  %v13372_v24 = vmov 0  ;;  %vm9338_vm7 = vmpackc.low %vm9318_vm0, %vm9318_vm0  ;;  %vm13097_vm8 = vcmask 261120   ;;  %vm13380_vm0 = vcmask 138240  }
 0x11c   :  { %v1445_v29 = vsel %vm13098_vm10, %v7697_v41, %v7691_v49  ;;  %v1441_v55 = vsel %vm13098_vm10, %v7696_v58, %v7686_v63  ;;  %1941 = vmatmul.mubr.f32.vlgmr.msra.gmra.mrb[0].mxu1 %v1505_v11  ;;  %1774 = vmatprep.mubr.f32.mxu0 %v1512_v14  ;;  %v1515_v11 = vld [vmem:[%s12947_s2 + $0x50] sm:$0xff]  ;;  %v1443_v63 = vsel %vm13098_vm10, %v7687_v40, %v7701_v39  ;;  %v7712_v41 = vunpack.i.h.bf16 %v7710_v48 }
 0x11d   :  { %v6884_v18 = vpack.c.bf16 %v1445_v29, %v1441_v55  ;;  %v7705_v45 = vpop.permute.xlu0 %7704  ;;  %1946 = vmatprep.mubr.f32.mxu1 %v1509_v57  ;;  %v7711_v58 = vunpack.i.l.bf16 %v7710_v48  ;;  %v1444_v57 = vsel %vm13098_vm10, %v7701_v39, %v7702_v43  ;;  %v13373_v24 = vsel %vm9331_vm3, 4294967295, %v13372_v24  ;;  %v1514_v43 = vld [vmem:[%s12947_s2 + $0x48] sm:$0xff] }
 0x11e   :  { %v7707_v60 = vunpack.i.h.bf16 %v7705_v45  ;;  %v7706_v47 = vunpack.i.l.bf16 %v7705_v45  ;;  %13374 = vst [vmem:[#allocation60_spill] sm:$0xff] %v13373_v24  ;;  %v13375_v48 = vmov 0 }
 0x11f   :  { %6886 = vmatpush1.bf16.msk.msra.mxu0 %vm9311_vm4, %v6884_v18  ;;  %v7720_v55 = vpop.permute.xlu1 %7719  ;;  %v13376_v48 = vsel %vm9338_vm7, 4294967295, %v13375_v48 }
 0x120   :  { %v1447_v15 = vsel %vm13098_vm10, %v7692_v54, %v7706_v47  ;;  %v1448_v45 = vsel %vm13098_vm10, %v7706_v47, %v7707_v60  ;;  %1775 = vmatmul.mubr.f32.gmra.mrb[4].mxu0 %v1511_v32  ;;  %1947 = vmatmul.mubr.f32.gmra.mrb[2].mxu1 %v1508_v20  ;;  %13377 = vst [vmem:[#allocation61_spill] sm:$0xff] %v13376_v48  ;;  %v7722_v54 = vunpack.i.h.bf16 %v7720_v55  ;;  %v7721_v20 = vunpack.i.l.bf16 %v7720_v55  ;;  %v9353_v55 = vld [vmem:[#allocation2] sm:$0xff] }
 0x121   :  { %v6988_v29 = vpack.c.bf16 %v1447_v15, %v1443_v63  ;;  %v7715_v40 = vpop.permute.xlu0 %7714  ;;  %v6985_v51 = vpack.c.bf16 %v1448_v45, %v1444_v57  ;;  %1780 = vmatprep.mubr.f32.mxu0 %v1515_v11  ;;  %1952 = vmatprep.mubr.f32.mxu1 %v1512_v14  ;;  %v1450_v60 = vsel %vm13098_vm10, %v7711_v58, %v7712_v41 }
 0x122   :  { %v7717_v39 = vunpack.i.h.bf16 %v7715_v40  ;;  %v7716_v18 = vunpack.i.l.bf16 %v7715_v40  ;;  %v1449_v47 = vsel %vm13098_vm10, %v7721_v20, %v7711_v58 }
 0x123   :  { %6987 = vmatprep.subr.msk.bf16.mxu1 %vm9331_vm3, %v6985_v51  ;;  %v7730_v57 = vpop.permute.xlu1 %7729 }
 0x124   :  { %v1453_v49 = vsel %vm13098_vm10, %v7722_v54, %v7716_v18  ;;  %v1454_v63 = vsel %vm13098_vm10, %v7716_v18, %v7717_v39  ;;  %6990 = vmatpush1.bf16.msk.msra.mxu1 %vm9338_vm7, %v6988_v29  ;;  %1781 = vmatmul.mubr.f32.gmra.mrb[6].mxu0 %v1514_v43  ;;  %v7732_v51 = vunpack.i.h.bf16 %v7730_v57  ;;  %v7731_v40 = vunpack.i.l.bf16 %v7730_v57 }
 0x125   :  { %v6890_v14 = vpack.c.bf16 %v1453_v49, %v1449_v47  ;;  %v7725_v15 = vpop.permute.xlu0 %7724  ;;  %v6887_v45 = vpack.c.bf16 %v1454_v63, %v1450_v60  ;;  %1953 = vmatmul.mubr.f32.gmra.mrb[4].mxu1 %v1511_v32  ;;  %1851 = vmatprep.mubr.f32.mxu0 %v9353_v55  ;;  %v1507_v60 = vld [vmem:[%s12947_s2 + $0x10] sm:$0xff] }
 0x126   :  { %v7727_v58 = vunpack.i.h.bf16 %v7725_v15  ;;  %v7726_v20 = vunpack.i.l.bf16 %v7725_v15  ;;  %1958 = vmatprep.mubr.f32.mxu1 %v1515_v11  ;;  %v1455_v29 = vsel %vm13098_vm10, %v7717_v39, %v7731_v40  ;;  %v1456_v54 = vsel %vm13098_vm10, %v7731_v40, %v7732_v51  ;;  %v1516_v39 = vld [vmem:[%s12947_s2 + $0x58] sm:$0xff] }
 0x127   :  { %6889 = vmatprep.subr.msk.bf16.mxu0 %vm9293_vm9, %v6887_v45 }
 0x128   :  { %v1451_v18 = vsel %vm13098_vm10, %v7712_v41, %v7726_v20  ;;  %v1452_v32 = vsel %vm13098_vm10, %v7726_v20, %v7727_v58  ;;  %6892 = vmatpush1.bf16.msk.msra.mxu0 %vm9311_vm4, %v6890_v14  ;;  %v1510_v41 = vld [vmem:[%s12947_s2 + $0x28] sm:$0xff]  ;;  %vm13382_vm10 = vmmov %vm13380_vm0 }
 0x129   :  { %v6994_v11 = vpack.c.bf16 %v1455_v29, %v1451_v18  ;;  %1959 = vmatmul.mubr.f32.gmra.mrb[6].mxu1 %v1514_v43  ;;  %v6991_v47 = vpack.c.bf16 %v1456_v54, %v1452_v32  ;;  %v1513_v43 = vld [vmem:[%s12947_s2 + $0x40] sm:$0xff]  ;;  %vm13385_vm4 = vmmov %vm13380_vm0  ;;  %s8257_s2 = smov 51  }
 0x12a   :  { %2029 = vmatprep.mubr.f32.mxu1 %v9353_v55 }
 0x12b   :  { %6372 = vmatmul.mubr.msk.f32.vlgmr.msra.gmra.mrb[0].mxu0 %vm13097_vm8, %v1507_v60  ;;  %6993 = vmatprep.subr.msk.bf16.mxu1 %vm9331_vm3, %v6991_v47  ;;  %vm13384_vm3 = vmmov %vm13380_vm0 }
 0x12c   :  { %6996 = vmatpush1.bf16.msk.msra.mxu1 %vm9338_vm7, %v6994_v11  ;;  %1857 = vmatprep.mubr.f32.mxu0 %v9353_v55  ;;  %vm13383_vm7 = vmmov %vm13380_vm0 }
 0x12f   :  { %6373 = vmatmul.mubr.msk.f32.gmra.mrb[2].mxu0 %vm13097_vm8, %v1510_v41  ;;  %6376 = vmatmul.mubr.msk.f32.vlgmr.msra.gmra.mrb[0].mxu1 %vm13097_vm8, %v1507_v60 }
 0x130   :  { %1863 = vmatprep.mubr.f32.mxu0 %v9353_v55  ;;  %2035 = vmatprep.mubr.f32.mxu1 %v9353_v55 }
 0x133   :  { %6374 = vmatmul.mubr.msk.f32.gmra.mrb[4].mxu0 %vm13097_vm8, %v1513_v43  ;;  %6377 = vmatmul.mubr.msk.f32.gmra.mrb[2].mxu1 %vm13097_vm8, %v1510_v41 }
 0x134   :  { %1869 = vmatprep.mubr.f32.mxu0 %v9353_v55  ;;  %2041 = vmatprep.mubr.f32.mxu1 %v9353_v55 }
 0x136   :  { %v1668_v49 = vpop.permute.xlu0 %1667 }
 0x137   :  { %6375 = vmatmul.mubr.msk.f32.gmra.mrb[6].mxu0 %vm13097_vm8, %v1516_v39  ;;  %6378 = vmatmul.mubr.msk.f32.gmra.mrb[4].mxu1 %vm13097_vm8, %v1513_v43  ;;  %v1673_v14 = vpop.permute.xlu1 %1672 }
 0x138   :  { %2047 = vmatprep.mubr.f32.mxu1 %v9353_v55 }
 0x13a   :  { %v1683_v6 = vpop.permute.xlu0 %1682 }
 0x13b   :  { %6379 = vmatmul.mubr.msk.f32.gmra.mrb[6].mxu1 %vm13097_vm8, %v1516_v39  ;;  %v1678_v41 = vpop.permute.xlu1 %1677  ;;  %vm13381_vm8 = vmmov %vm13380_vm0 }
 0x1fe   :  { %v1853_v63 = vpop.f32.mrb[0].mxu0 }
 0x1ff   :  { %v9395_v57 = vadd.f32 %v1853_v63, %v1668_v49  ;;  %v1855_v15 = vpop.f32.mrb[1].mxu0 }
 0x200   :  { %v9397_v45 = vadd.f32 %v1855_v15, %v1668_v49 }
 0x201   :  { %v2078_v51 = vmul.f32 %v9395_v57, %v9395_v57 }
 0x202   :  { %v2054_v40 = vadd.f32 %v9397_v45, %v9395_v57  ;;  %v2079_v58 = vmul.f32 %v9397_v45, %v9397_v45  ;;  %v1859_v20 = vpop.f32.mrb[2].mxu0  ;;  %v2031_v29 = vpop.f32.mrb[0].mxu1 }
 0x203   :  { %v9405_v54 = vadd.f32 %v1859_v20, %v1673_v14  ;;  %v9407_v18 = vadd.f32 %v2031_v29, %v1668_v49  ;;  %v1861_v32 = vpop.f32.mrb[3].mxu0  ;;  %v2033_v60 = vpop.f32.mrb[1].mxu1 }
 0x204   :  { %v9409_v11 = vadd.f32 %v1861_v32, %v1673_v14  ;;  %v9411_v47 = vadd.f32 %v2033_v60, %v1668_v49  ;;  %v2094_v43 = vadd.f32 %v2079_v58, %v2078_v51 }
 0x205   :  { %v2082_v39 = vmul.f32 %v9405_v54, %v9405_v54  ;;  %v2080_v63 = vmul.f32 %v9407_v18, %v9407_v18  ;;  %v2055_v15 = vadd.f32 %v9407_v18, %v2054_v40 }
 0x206   :  { %v2059_v20 = vadd.f32 %v9409_v11, %v9405_v54  ;;  %v2083_v29 = vmul.f32 %v9409_v11, %v9409_v11  ;;  %v1865_v32 = vpop.f32.mrb[4].mxu0  ;;  %v2037_v19 = vpop.f32.mrb[2].mxu1  ;;  %v2081_v49 = vmul.f32 %v9411_v47, %v9411_v47 }
 0x207   :  { %v9424_v51 = vadd.f32 %v1865_v32, %v1678_v41  ;;  %v9426_v58 = vadd.f32 %v2037_v19, %v1673_v14  ;;  %v1867_v60 = vpop.f32.mrb[5].mxu0  ;;  %v2039_v9 = vpop.f32.mrb[3].mxu1  ;;  %v2056_v8 = vadd.f32 %v9411_v47, %v2055_v15  ;;  %v2095_v40 = vadd.f32 %v2094_v43, %v2080_v63 }
 0x208   :  { %v9429_v13 = vadd.f32 %v1867_v60, %v1678_v41  ;;  %v9431_v10 = vadd.f32 %v2039_v9, %v1673_v14  ;;  %v2099_v7 = vadd.f32 %v2083_v29, %v2082_v39 }
 0x209   :  { %v2086_v5 = vmul.f32 %v9424_v51, %v9424_v51  ;;  %v2084_v32 = vmul.f32 %v9426_v58, %v9426_v58  ;;  %2057 = vadd.xlane.f32.xlu1 %v2056_v8  ;;  %v2096_v19 = vadd.f32 %v2095_v40, %v2081_v49  ;;  %v2060_v2 = vadd.f32 %v9426_v58, %v2059_v20 }
 0x20a   :  { %v2064_v15 = vadd.f32 %v9429_v13, %v9424_v51  ;;  %v2087_v43 = vmul.f32 %v9429_v13, %v9429_v13  ;;  %v1871_v9 = vpop.f32.mrb[6].mxu0  ;;  %v2043_v14 = vpop.f32.mrb[4].mxu1  ;;  %v2085_v39 = vmul.f32 %v9431_v10, %v9431_v10 }
 0x20b   :  { %v9444_v63 = vadd.f32 %v1871_v9, %v1683_v6  ;;  %v9446_v29 = vadd.f32 %v2043_v14, %v1678_v41  ;;  %v1873_v60 = vpop.f32.mrb[7].mxu0  ;;  %v2045_v8 = vpop.f32.mrb[5].mxu1  ;;  %2097 = vadd.xlane.f32.xlu0 %v2096_v19  ;;  %v2100_v49 = vadd.f32 %v2099_v7, %v2084_v32  ;;  %v2061_v1 = vadd.f32 %v9431_v10, %v2060_v2 }
 0x20c   :  { %v9448_v20 = vadd.f32 %v1873_v60, %v1683_v6  ;;  %v9450_v40 = vadd.f32 %v2045_v8, %v1678_v41  ;;  %v2104_v0 = vadd.f32 %v2087_v43, %v2086_v5 }
 0x20d   :  { %v2090_v48 = vmul.f32 %v9444_v63, %v9444_v63  ;;  %v2088_v9 = vmul.f32 %v9446_v29, %v9446_v29  ;;  %v2101_v24 = vadd.f32 %v2100_v49, %v2085_v39  ;;  %v2065_v14 = vadd.f32 %v9446_v29, %v2064_v15 }
 0x20e   :  { %v2069_v19 = vadd.f32 %v9448_v20, %v9444_v63  ;;  %v2091_v7 = vmul.f32 %v9448_v20, %v9448_v20  ;;  %v2049_v41 = vpop.f32.mrb[6].mxu1  ;;  %v2089_v43 = vmul.f32 %v9450_v40, %v9450_v40 }
 0x20f   :  { %v9462_v32 = vadd.f32 %v2049_v41, %v1683_v6  ;;  %v2051_v2 = vpop.f32.mrb[7].mxu1  ;;  %2062 = vadd.xlane.f32.xlu0 %v2061_v1  ;;  %2102 = vadd.xlane.f32.xlu1 %v2101_v24  ;;  %v2066_v60 = vadd.f32 %v9450_v40, %v2065_v14  ;;  %v2105_v49 = vadd.f32 %v2104_v0, %v2088_v9  ;;  %v2195_v0 = vld [vmem:[%s12952_s7 + $0x8] sm:$0xff]  ;;  %v2196_v9 = vld [vmem:[%s12952_s7 + $0x10] sm:$0xff]  ;;  %v2197_v14 = vld [vmem:[%s12952_s7 + $0x18] sm:$0xff] }
 0x210   :  { %v9464_v5 = vadd.f32 %v2051_v2, %v1683_v6  ;;  %v2109_v39 = vadd.f32 %v2091_v7, %v2090_v48  ;;  %v2194_v48 = vld [vmem:[%s12952_s7] sm:$0xff] }
 0x211   :  { %v2092_v15 = vmul.f32 %v9462_v32, %v9462_v32  ;;  %v2070_v8 = vadd.f32 %v9462_v32, %v2069_v19  ;;  %v2106_v24 = vadd.f32 %v2105_v49, %v2089_v43  ;;  %v7740_v19 = vpack.i.bf16 %v9353_v55, %v9353_v55 }
 0x212   :  { %v2093_v1 = vmul.f32 %v9464_v5, %v9464_v5 }
 0x213   :  { %2067 = vadd.xlane.f32.xlu0 %v2066_v60  ;;  %v2071_v41 = vadd.f32 %v9464_v5, %v2070_v8  ;;  %v2110_v6 = vadd.f32 %v2109_v39, %v2092_v15 }
 0x215   :  { %2072 = vadd.xlane.f32.xlu1 %v2071_v41  ;;  %v2111_v2 = vadd.f32 %v2110_v6, %v2093_v1 }
 0x217   :  { %2107 = vadd.xlane.f32.xlu0 %v2106_v24 }
 0x219   :  { %2112 = vadd.xlane.f32.xlu1 %v2111_v2 }
 0x22a   :  { %2200 = vperm.xlu1 %7734, %v2194_v48  }
 0x22d   :  { %2205 = vperm.xlu0 %7733, %v2195_v0  }
 0x22e   :  { %2210 = vperm.xlu1 %7734, %v2196_v9  }
 0x231   :  { %2215 = vperm.xlu0 %7733, %v2197_v14  }
 0x232   :  { %7736 = vrot.lane.b32.xlu1 %v7740_v19, %s8244_s20 }
 0x235   :  { %7741 = vrot.lane.b32.xlu0 %v7740_v19, %s8244_s20 }
 0x296   :  { %v2058_v7 = vpop.xlane.xlu1 %2057 }
 0x297   :  { %v9491_v43 = vmul.f32 0.001953125, %v2058_v7 }
 0x298   :  { %v2098_v39 = vpop.xlane.xlu0 %2097 }
 0x299   :  { %v2114_v15 = vmul.f32 0.001953125, %v2098_v39  ;;  %v2118_v60 = vmul.f32 %v9491_v43, %v9491_v43 }
 0x29b   :  { %v2122_v8 = vsub.f32 %v2114_v15, %v2118_v60 }
 0x29c   :  { %v2063_v49 = vpop.xlane.xlu0 %2062  ;;  %v2103_v41 = vpop.xlane.xlu1 %2102 }
 0x29d   :  { %v2126_v1 = vadd.f32 1e-05, %v2122_v8  ;;  %v9495_v6 = vmul.f32 0.001953125, %v2063_v49  ;;  %v2115_v2 = vmul.f32 0.001953125, %v2103_v41 }
 0x29f   :  { %8154 = vrsqrt.f32 %v2126_v1  ;;  %v2119_v24 = vmul.f32 %v9495_v6, %v9495_v6 }
 0x2a0   :  { %v2068_v48 = vpop.xlane.xlu0 %2067 }
 0x2a1   :  { %v2123_v0 = vsub.f32 %v2115_v2, %v2119_v24  ;;  %v9499_v9 = vmul.f32 0.001953125, %v2068_v48  ;;  %v2134_v24 = vld [vmem:[%s12951_s6] sm:$0xff] }
 0x2a2   :  { %v2073_v14 = vpop.xlane.xlu1 %2072 }
 0x2a3   :  { %v2127_v7 = vadd.f32 1e-05, %v2123_v0  ;;  %v9501_v39 = vmul.f32 0.001953125, %v2073_v14  ;;  %v2120_v15 = vmul.f32 %v9499_v9, %v9499_v9 }
 0x2a4   :  { %v2108_v31 = vpop.xlane.xlu0 %2107 }
 0x2a5   :  { %8156 = vrsqrt.f32 %v2127_v7  ;;  %v2116_v60 = vmul.f32 0.001953125, %v2108_v31  ;;  %v2121_v1 = vmul.f32 %v9501_v39, %v9501_v39  ;;  %v2135_v31 = vld [vmem:[%s12951_s6 + $0x8] sm:$0xff] }
 0x2a6   :  { %v2113_v8 = vpop.xlane.xlu1 %2112 }
 0x2a7   :  { %v2124_v49 = vsub.f32 %v2116_v60, %v2120_v15  ;;  %v2117_v41 = vmul.f32 0.001953125, %v2113_v8  ;;  %v2136_v8 = vld [vmem:[%s12951_s6 + $0x10] sm:$0xff] }
 0x2a9   :  { %v8155_v2 = vpop.eup %8154  ;;  %v2128_v48 = vadd.f32 1e-05, %v2124_v49  ;;  %v2125_v0 = vsub.f32 %v2117_v41, %v2121_v1  ;;  %v2137_v49 = vld [vmem:[%s12951_s6 + $0x18] sm:$0xff] }
 0x2aa   :  { %v2138_v14 = vmul.f32 %v8155_v2, %v2134_v24 }
 0x2ab   :  { %8158 = vrsqrt.f32 %v2128_v48  ;;  %v2129_v7 = vadd.f32 1e-05, %v2125_v0  ;;  %v2201_v48 = vpop.permute.xlu1 %2200 }
 0x2ac   :  { %2160 = vperm.xlu0 %7733, %v2138_v14   ;;  %v2206_v2 = vpop.permute.xlu0 %2205 }
 0x2ad   :  { %8160 = vrsqrt.f32 %v2129_v7  ;;  %v2142_v7 = vsub.f32 %v9395_v57, %v9491_v43 }
 0x2af   :  { %v8157_v15 = vpop.eup %8156 }
 0x2b0   :  { %v2139_v60 = vmul.f32 %v8157_v15, %v2135_v31  ;;  %v9525_v0 = vpop.permute.xlu0 %2215  ;;  %v2143_v31 = vsub.f32 %v9397_v45, %v9491_v43  ;;  %v2144_v15 = vsub.f32 %v9407_v18, %v9491_v43  ;;  %v2146_v45 = vsub.f32 %v9405_v54, %v9495_v6 }
 0x2b1   :  { %v2147_v18 = vsub.f32 %v9409_v11, %v9495_v6 }
 0x2b2   :  { %2165 = vperm.xlu1 %7734, %v2139_v60  }
 0x2b4   :  { %v9529_v14 = vpop.permute.xlu0 %7741 }
 0x2b5   :  { %v8159_v16 = vpop.eup %8158 }
 0x2b6   :  { %v2140_v1 = vmul.f32 %v8159_v16, %v2136_v8  ;;  %v9527_v16 = vpop.permute.xlu1 %2210 }
 0x2b7   :  { %v8161_v41 = vpop.eup %8160 }
 0x2b8   :  { %2170 = vperm.xlu1 %7734, %v2140_v1   ;;  %v2141_v24 = vmul.f32 %v8161_v41, %v2137_v49 }
 0x2ba   :  { %2175 = vperm.xlu0 %7733, %v2141_v24   ;;  %v9539_v8 = vpop.permute.xlu1 %7736 }
 0x2bc   :  { %7746 = vrot.lane.b32.xlu1 %v7740_v19, %s8246_s0 }
 0x2be   :  { %7751 = vrot.lane.b32.xlu0 %v7740_v19, %s8246_s0 }
 0x2c0   :  { %7756 = vrot.lane.b32.xlu1 %v7740_v19, %s8247_s15 }
 0x2c2   :  { %7761 = vrot.lane.b32.xlu0 %v7740_v19, %s8247_s15 }
 0x2c4   :  { %7766 = vrot.lane.b32.xlu1 %v7740_v19, %s8248_s16 }
 0x2c6   :  { %7771 = vrot.lane.b32.xlu0 %v7740_v19, %s8248_s16  ;;  %v2145_v19 = vsub.f32 %v9411_v47, %v9491_v43  ;;  %v2148_v47 = vsub.f32 %v9426_v58, %v9495_v6  ;;  %v2149_v43 = vsub.f32 %v9431_v10, %v9495_v6  ;;  %v2150_v10 = vsub.f32 %v9424_v51, %v9499_v9 }
 0x32b   :  { %v2161_v60 = vpop.permute.xlu0 %2160 }
 0x32c   :  { %v2178_v49 = vmul.f32 %v2161_v60, %v2142_v7  ;;  %v2179_v1 = vmul.f32 %v2161_v60, %v2143_v31  ;;  %v2180_v41 = vmul.f32 %v2161_v60, %v2144_v15  ;;  %v2181_v24 = vmul.f32 %v2161_v60, %v2145_v19 }
 0x32e   :  { %v2218_v23 = vadd.f32 %v2201_v48, %v2178_v49  ;;  %v2219_v17 = vadd.f32 %v2201_v48, %v2179_v1  ;;  %v2220_v50 = vadd.f32 %v2201_v48, %v2180_v41  ;;  %v2221_v57 = vadd.f32 %v2201_v48, %v2181_v24 }
 0x32f   :  { %v2151_v41 = vsub.f32 %v9429_v13, %v9499_v9  ;;  %v2152_v24 = vsub.f32 %v9446_v29, %v9499_v9  ;;  %v2154_v13 = vsub.f32 %v9444_v63, %v9501_v39  ;;  %v2155_v29 = vsub.f32 %v9448_v20, %v9501_v39 }
 0x330   :  { %v2234_v7 = vmax.f32 %v2218_v23, 0.0  ;;  %v9549_v31 = vmax.f32 %v2219_v17, 0.0  ;;  %v9551_v15 = vmax.f32 %v2220_v50, 0.0  ;;  %v9553_v19 = vmax.f32 %v2221_v57, 0.0 }
 0x331   :  { %v2166_v48 = vpop.permute.xlu1 %2165  ;;  %v2153_v57 = vsub.f32 %v9450_v40, %v9499_v9  ;;  %v2157_v63 = vsub.f32 %v9464_v5, %v9501_v39 }
 0x332   :  { %2250 = vst [vmem:[#allocation2 + $0x8] sm:$0xff] %v2234_v7  ;;  %2251 = vst [vmem:[#allocation2 + $0x10] sm:$0xff] %v9549_v31  ;;  %v2182_v54 = vmul.f32 %v2166_v48, %v2146_v45  ;;  %v2183_v11 = vmul.f32 %v2166_v48, %v2147_v18  ;;  %v2184_v58 = vmul.f32 %v2166_v48, %v2148_v47 }
 0x333   :  { %2252 = vst [vmem:[#allocation2 + $0x18] sm:$0xff] %v9551_v15  ;;  %2253 = vst [vmem:[#allocation2 + $0x20] sm:$0xff] %v9553_v19  ;;  %v2185_v60 = vmul.f32 %v2166_v48, %v2149_v43  ;;  %v7780_v17 = vpack.i.bf16 %v9553_v19, %v9551_v15  ;;  %v9563_v50 = vpack.i.bf16 %v9549_v31, %v2234_v7 }
 0x334   :  { %v2222_v23 = vadd.f32 %v2206_v2, %v2182_v54  ;;  %v2223_v6 = vadd.f32 %v2206_v2, %v2183_v11  ;;  %v2224_v49 = vadd.f32 %v2206_v2, %v2184_v58  ;;  %v2156_v54 = vsub.f32 %v9462_v32, %v9501_v39 }
 0x335   :  { %v2225_v1 = vadd.f32 %v2206_v2, %v2185_v60  ;;  %7781 = vrot.lane.b32.xlu0 %v7780_v17, %s8244_s20  ;;  %7776 = vrot.lane.b32.xlu1 %v9563_v50, %s8244_s20 }
 0x336   :  { %v2238_v51 = vmax.f32 %v2222_v23, 0.0  ;;  %v9574_v45 = vmax.f32 %v2223_v6, 0.0  ;;  %v9576_v18 = vmax.f32 %v2224_v49, 0.0 }
 0x337   :  { %v9578_v2 = vmax.f32 %v2225_v1, 0.0  ;;  %v2171_v47 = vpop.permute.xlu1 %2170 }
 0x338   :  { %2254 = vst [vmem:[#allocation2 + $0x38] sm:$0xff] %v2238_v51  ;;  %2255 = vst [vmem:[#allocation2 + $0x40] sm:$0xff] %v9574_v45  ;;  %v2186_v40 = vmul.f32 %v2171_v47, %v2150_v10  ;;  %v2187_v9 = vmul.f32 %v2171_v47, %v2151_v41  ;;  %v2188_v43 = vmul.f32 %v2171_v47, %v2152_v24 }
 0x339   :  { %2256 = vst [vmem:[#allocation2 + $0x48] sm:$0xff] %v9576_v18  ;;  %2257 = vst [vmem:[#allocation2 + $0x50] sm:$0xff] %v9578_v2  ;;  %v2189_v48 = vmul.f32 %v2171_v47, %v2153_v57  ;;  %v2176_v11 = vpop.permute.xlu0 %2175  ;;  %7791 = vrot.lane.b32.xlu0 %v7780_v17, %s8246_s0  ;;  %7786 = vrot.lane.b32.xlu1 %v9563_v50, %s8246_s0  ;;  %v9594_v20 = vpack.i.bf16 %v2238_v51, %v2234_v7  ;;  %v9840_v53 = vld [vmem:[#allocation2 + $0x10] sm:$0xff]  ;;  %v9851_v42 = vld [vmem:[#allocation2 + $0x8] sm:$0xff] }
 0x33a   :  { %v2226_v58 = vadd.f32 %v9527_v16, %v2186_v40  ;;  %v2227_v60 = vadd.f32 %v9527_v16, %v2187_v9  ;;  %v2228_v10 = vadd.f32 %v9527_v16, %v2188_v43  ;;  %v2190_v32 = vmul.f32 %v2176_v11, %v2154_v13  ;;  %13393 = vst [vmem:[#allocation69_spill] sm:$0xff] %v9840_v53 }
 0x33b   :  { %v2229_v23 = vadd.f32 %v9527_v16, %v2189_v48  ;;  %v2191_v6 = vmul.f32 %v2176_v11, %v2155_v29  ;;  %v2192_v49 = vmul.f32 %v2176_v11, %v2156_v54  ;;  %v2193_v5 = vmul.f32 %v2176_v11, %v2157_v63  ;;  %13396 = vst [vmem:[#allocation72_spill] sm:$0xff] %v9851_v42 }
 0x33c   :  { %v2242_v39 = vmax.f32 %v2226_v58, 0.0  ;;  %v2243_v1 = vmax.f32 %v2227_v60, 0.0  ;;  %v2244_v41 = vmax.f32 %v2228_v10, 0.0  ;;  %v2230_v57 = vadd.f32 %v9525_v0, %v2190_v32  ;;  %v9697_v58 = vpop.permute.xlu1 %7746 }
 0x33d   :  { %v2245_v24 = vmax.f32 %v2229_v23, 0.0  ;;  %v2231_v7 = vadd.f32 %v9525_v0, %v2191_v6  ;;  %v2232_v47 = vadd.f32 %v9525_v0, %v2192_v49  ;;  %v2233_v40 = vadd.f32 %v9525_v0, %v2193_v5  ;;  %7801 = vrot.lane.b32.xlu0 %v7780_v17, %s8247_s15  ;;  %7796 = vrot.lane.b32.xlu1 %v9563_v50, %s8247_s15  ;;  %v9695_v11 = vpop.permute.xlu0 %7751 }
 0x33e   :  { %2258 = vst [vmem:[#allocation2 + $0x68] sm:$0xff] %v2242_v39  ;;  %2259 = vst [vmem:[#allocation2 + $0x70] sm:$0xff] %v2243_v1  ;;  %v2246_v16 = vmax.f32 %v2230_v57, 0.0  ;;  %v9619_v48 = vpack.i.bf16 %v9353_v55, %v9553_v19  ;;  %v9623_v54 = vpack.i.bf16 %v9551_v15, %v9549_v31  ;;  %v7865_v31 = vpack.i.bf16 %v9576_v18, %v9574_v45 }
 0x33f   :  { %2260 = vst [vmem:[#allocation2 + $0x78] sm:$0xff] %v2244_v41  ;;  %2261 = vst [vmem:[#allocation2 + $0x80] sm:$0xff] %v2245_v24  ;;  %v2247_v13 = vmax.f32 %v2231_v7, 0.0  ;;  %v2248_v29 = vmax.f32 %v2232_v47, 0.0  ;;  %v9607_v9 = vmax.f32 %v2233_v40, 0.0  ;;  %v7880_v15 = vpack.i.bf16 %v2243_v1, %v2242_v39  ;;  %v9842_v34 = vld [vmem:[#allocation2 + $0x38] sm:$0xff] }
 0x340   :  { %2262 = vst [vmem:[#allocation2 + $0x98] sm:$0xff] %v2246_v16  ;;  %v9611_v0 = vpack.i.bf16 %v2246_v16, %v2242_v39  ;;  %v9647_v19 = vpack.i.bf16 %v9353_v55, %v9578_v2  ;;  %v9709_v23 = vpop.permute.xlu1 %7756  ;;  %13394 = vst [vmem:[#allocation70_spill] sm:$0xff] %v9842_v34  ;;  %v9844_v38 = vld [vmem:[#allocation2 + $0x50] sm:$0xff]  ;;  %v9863_v37 = vld [vmem:[#allocation2 + $0x48] sm:$0xff] }
 0x341   :  { %2263 = vst [vmem:[#allocation2 + $0xa0] sm:$0xff] %v2247_v13  ;;  %2264 = vst [vmem:[#allocation2 + $0xa8] sm:$0xff] %v2248_v29  ;;  %7811 = vrot.lane.b32.xlu0 %v7780_v17, %s8248_s16  ;;  %7806 = vrot.lane.b32.xlu1 %v9563_v50, %s8248_s16  ;;  %v9615_v43 = vpack.i.bf16 %v2248_v29, %v2247_v13  ;;  %v7825_v17 = vpack.i.bf16 %v9574_v45, %v2238_v51  ;;  %v9707_v10 = vpop.permute.xlu0 %7761 }
 0x342   :  { %2265 = vst [vmem:[#allocation2 + $0xb0] sm:$0xff] %v9607_v9  ;;  %v7830_v50 = vpack.i.bf16 %v9578_v2, %v9576_v18  ;;  %v7885_v51 = vpack.i.bf16 %v2245_v24, %v2244_v41  ;;  %v9658_v45 = vpack.i.bf16 %v2244_v41, %v2243_v1  ;;  %v9664_v18 = vpack.i.bf16 %v9353_v55, %v2245_v24  ;;  %v3451_v1 = vld [vmem:[%s12949_s4 + $0x8] sm:$0xff] }
 0x343   :  { %v7945_v2 = vpack.i.bf16 %v9607_v9, %v2248_v29  ;;  %v7930_v63 = vpack.i.bf16 %v2247_v13, %v2246_v16  ;;  %v8045_v60 = vpack.i.bf16 %v9353_v55, %v9607_v9  ;;  %3706 = vmatprep.mubr.f32.mxu0 %v3451_v1  ;;  %3884 = vmatprep.mubr.f32.mxu1 %v3451_v1 }
 0x344   :  { %v9718_v6 = vpop.permute.xlu1 %7766  ;;  %13395 = vst [vmem:[#allocation71_spill] sm:$0xff] %v9844_v38  ;;  %13400 = vst [vmem:[#allocation76_spill] sm:$0xff] %v9863_v37 }
 0x345   :  { %7821 = vrot.lane.b32.xlu0 %v9619_v48, %s8249_s17  ;;  %7816 = vrot.lane.b32.xlu1 %v9623_v54, %s8249_s17  ;;  %v9716_v32 = vpop.permute.xlu0 %7771  ;;  %v9887_v42 = vld [vmem:[#allocation2 + $0x68] sm:$0xff] }
 0x346   :  { %13378 = vst [vmem:[#allocation62_spill] sm:$0xff] %v9716_v32  ;;  %13405 = vst [vmem:[#allocation81_spill] sm:$0xff] %v9887_v42 }
 0x349   :  { %7826 = vrot.lane.b32.xlu0 %v7825_v17, %s8244_s20  ;;  %7831 = vrot.lane.b32.xlu1 %v7830_v50, %s8244_s20 }
 0x34d   :  { %7836 = vrot.lane.b32.xlu0 %v7825_v17, %s8246_s0  ;;  %7841 = vrot.lane.b32.xlu1 %v7830_v50, %s8246_s0 }
 0x351   :  { %7846 = vrot.lane.b32.xlu0 %v7825_v17, %s8247_s15  ;;  %7851 = vrot.lane.b32.xlu1 %v7830_v50, %s8247_s15 }
 0x355   :  { %7856 = vrot.lane.b32.xlu0 %v7825_v17, %s8248_s16  ;;  %7861 = vrot.lane.b32.xlu1 %v7830_v50, %s8248_s16  ;;  %v7738_v17 = vunpack.i.l.bf16 %v9539_v8 }
 0x359   :  { %7866 = vrot.lane.b32.xlu0 %v7865_v31, %s8249_s17  ;;  %7871 = vrot.lane.b32.xlu1 %v9594_v20, %s8249_s17 }
 0x35d   :  { %7881 = vrot.lane.b32.xlu0 %v7880_v15, %s8244_s20  ;;  %7876 = vrot.lane.b32.xlu1 %v9647_v19, %s8249_s17 }
 0x361   :  { %7891 = vrot.lane.b32.xlu0 %v7880_v15, %s8246_s0  ;;  %7886 = vrot.lane.b32.xlu1 %v7885_v51, %s8244_s20 }
 0x365   :  { %7901 = vrot.lane.b32.xlu0 %v7880_v15, %s8247_s15  ;;  %7896 = vrot.lane.b32.xlu1 %v7885_v51, %s8246_s0 }
 0x369   :  { %7911 = vrot.lane.b32.xlu0 %v7880_v15, %s8248_s16  ;;  %7906 = vrot.lane.b32.xlu1 %v7885_v51, %s8247_s15 }
 0x36d   :  { %7921 = vrot.lane.b32.xlu0 %v9658_v45, %s8249_s17  ;;  %7916 = vrot.lane.b32.xlu1 %v7885_v51, %s8248_s16 }
 0x371   :  { %7941 = vrot.lane.b32.xlu0 %v7865_v31, %s8250_s21  ;;  %7926 = vrot.lane.b32.xlu1 %v9664_v18, %s8249_s17 }
 0x375   :  { %7946 = vrot.lane.b32.xlu0 %v7945_v2, %s8244_s20  ;;  %7931 = vrot.lane.b32.xlu1 %v7930_v63, %s8244_s20 }
 0x379   :  { %7961 = vrot.lane.b32.xlu0 %v9619_v48, %s8250_s21  ;;  %7936 = vrot.lane.b32.xlu1 %v9623_v54, %s8250_s21 }
 0x37d   :  { %7966 = vrot.lane.b32.xlu0 %v7945_v2, %s8246_s0  ;;  %7951 = vrot.lane.b32.xlu1 %v7930_v63, %s8246_s0 }
 0x381   :  { %7981 = vrot.lane.b32.xlu0 %v9658_v45, %s8250_s21  ;;  %7956 = vrot.lane.b32.xlu1 %v9594_v20, %s8250_s21 }
 0x385   :  { %7986 = vrot.lane.b32.xlu0 %v7945_v2, %s8247_s15  ;;  %7971 = vrot.lane.b32.xlu1 %v7930_v63, %s8247_s15 }
 0x389   :  { %8006 = vrot.lane.b32.xlu0 %v7865_v31, %s8251_s24  ;;  %7976 = vrot.lane.b32.xlu1 %v9647_v19, %s8250_s21 }
 0x38d   :  { %8016 = vrot.lane.b32.xlu0 %v9619_v48, %s8251_s24  ;;  %7991 = vrot.lane.b32.xlu1 %v7930_v63, %s8248_s16 }
 0x391   :  { %8021 = vrot.lane.b32.xlu0 %v7945_v2, %s8248_s16  ;;  %7996 = vrot.lane.b32.xlu1 %v9664_v18, %s8250_s21 }
 0x395   :  { %8036 = vrot.lane.b32.xlu0 %v9658_v45, %s8251_s24  ;;  %8001 = vrot.lane.b32.xlu1 %v9623_v54, %s8251_s24 }
 0x399   :  { %8041 = vrot.lane.b32.xlu0 %v9611_v0, %s8249_s17  ;;  %8011 = vrot.lane.b32.xlu1 %v9594_v20, %s8251_s24 }
 0x39d   :  { %8046 = vrot.lane.b32.xlu0 %v8045_v60, %s8249_s17  ;;  %8026 = vrot.lane.b32.xlu1 %v9615_v43, %s8249_s17 }
 0x3a1   :  { %8061 = vrot.lane.b32.xlu0 %v9611_v0, %s8250_s21  ;;  %8031 = vrot.lane.b32.xlu1 %v9647_v19, %s8251_s24 }
 0x3a5   :  { %8066 = vrot.lane.b32.xlu0 %v8045_v60, %s8250_s21  ;;  %8051 = vrot.lane.b32.xlu1 %v9615_v43, %s8250_s21 }
 0x3a7   :  { %v7782_v55 = vpop.permute.xlu0 %7781  ;;  %v7777_v49 = vpop.permute.xlu1 %7776 }
 0x3a8   :  { %v7784_v16 = vunpack.i.h.bf16 %v7782_v55  ;;  %v7783_v13 = vunpack.i.l.bf16 %v7782_v55  ;;  %v7779_v29 = vunpack.i.h.bf16 %v7777_v49  ;;  %v7778_v9 = vunpack.i.l.bf16 %v7777_v49 }
 0x3a9   :  { %8081 = vrot.lane.b32.xlu0 %v7865_v31, %s8252_s26  ;;  %8056 = vrot.lane.b32.xlu1 %v9664_v18, %s8251_s24 }
 0x3aa   :  { %v2349_v15 = vsel %vm13380_vm0, %v7783_v13, %v7784_v16  ;;  %v2348_v51 = vsel %vm13381_vm8, %v7779_v29, %v7783_v13  ;;  %vm13386_vm8 = vmmov %vm13380_vm0 }
 0x3ab   :  { %v9728_v5 = vpop.permute.xlu0 %7791  ;;  %v9730_v39 = vpop.permute.xlu1 %7786 }
 0x3ac   :  { %v7794_v59 = vunpack.i.h.bf16 %v9728_v5  ;;  %v7793_v35 = vunpack.i.l.bf16 %v9728_v5  ;;  %v7788_v62 = vunpack.i.l.bf16 %v9730_v39 }
 0x3ad   :  { %8091 = vrot.lane.b32.xlu0 %v9611_v0, %s8251_s24  ;;  %8071 = vrot.lane.b32.xlu1 %v9615_v43, %s8251_s24 }
 0x3af   :  { %v9739_v41 = vpop.permute.xlu0 %7801  ;;  %v9741_v24 = vpop.permute.xlu1 %7796 }
 0x3b0   :  { %v7799_v21 = vunpack.i.h.bf16 %v9741_v24  ;;  %v7798_v33 = vunpack.i.l.bf16 %v9741_v24 }
 0x3b1   :  { %8096 = vrot.lane.b32.xlu0 %v8045_v60, %s8251_s24  ;;  %8076 = vrot.lane.b32.xlu1 %v9623_v54, %s8252_s26 }
 0x3b3   :  { %v9746_v57 = vpop.permute.xlu0 %7811  ;;  %v9748_v7 = vpop.permute.xlu1 %7806 }
 0x3b4   :  { %v7808_v12 = vunpack.i.l.bf16 %v9748_v7 }
 0x3b5   :  { %8101 = vrot.lane.b32.xlu0 %v9619_v48, %s8252_s26  ;;  %8086 = vrot.lane.b32.xlu1 %v9594_v20, %s8252_s26  ;;  %v7739_v48 = vunpack.i.h.bf16 %v9539_v8 }
 0x3b7   :  { %v9754_v47 = vpop.permute.xlu0 %7821  ;;  %v9756_v40 = vpop.permute.xlu1 %7816 }
 0x3b8   :  { %13379 = vst [vmem:[#allocation63_spill] sm:$0xff] %v9756_v40 }
 0x3b9   :  { %8111 = vrot.lane.b32.xlu0 %v9658_v45, %s8252_s26  ;;  %8106 = vrot.lane.b32.xlu1 %v9647_v19, %s8252_s26  ;;  %v2346_v45 = vsel %vm13382_vm10, %v7738_v17, %v7778_v9  ;;  %v2347_v19 = vsel %vm13383_vm7, %v7778_v9, %v7779_v29  ;;  %vm13387_vm7 = vnez %v13240_v25  ;;  %v3606_v29 = vld [vmem:[%s12950_s5] sm:$0xff]  ;;  %v3609_v9 = vld [vmem:[%s12950_s5 + $0x18] sm:$0xff]  ;;  %vm13406_vm10 = vcmask 130048  }
 0x3ba   :  { %v9892_v34 = vsel %vm13406_vm10, %v7793_v35, %v7794_v59 }
 0x3bb   :  { %v7827_v54 = vpop.permute.xlu0 %7826  ;;  %v7832_v31 = vpop.permute.xlu1 %7831 }
 0x3bc   :  { %v7829_v20 = vunpack.i.h.bf16 %v7827_v54  ;;  %v7828_v50 = vunpack.i.l.bf16 %v7827_v54  ;;  %v7834_v2 = vunpack.i.h.bf16 %v7832_v31  ;;  %v7833_v63 = vunpack.i.l.bf16 %v7832_v31 }
 0x3bd   :  { %8126 = vrot.lane.b32.xlu0 %v9611_v0, %s8252_s26  ;;  %8116 = vrot.lane.b32.xlu1 %v9615_v43, %s8252_s26  ;;  %v3607_v43 = vld [vmem:[%s12950_s5 + $0x8] sm:$0xff] }
 0x3be   :  { %v2350_v55 = vsel %vm13384_vm3, %v7739_v48, %v7828_v50  ;;  %v2351_v8 = vsel %vm13385_vm4, %v7828_v50, %v7829_v20  ;;  %v2352_v1 = vsel %vm13380_vm0, %v7829_v20, %v7833_v63  ;;  %v2353_v16 = vsel %vm13386_vm8, %v7833_v63, %v7834_v2  ;;  %v3608_v20 = vld [vmem:[%s12950_s5 + $0x10] sm:$0xff]  ;;  %vm13408_vm4 = vmmov %vm13406_vm10  ;;  %s8270_s5 = smov 30  }
 0x3bf   :  { %v7000_v49 = vpack.c.bf16 %v2350_v55, %v2346_v45  ;;  %v9776_v13 = vpop.permute.xlu0 %7836  ;;  %v6997_v54 = vpack.c.bf16 %v2351_v8, %v2347_v19  ;;  %v7104_v0 = vpack.c.bf16 %v2352_v1, %v2348_v51  ;;  %v9778_v31 = vpop.permute.xlu1 %7841  ;;  %v7101_v17 = vpack.c.bf16 %v2353_v16, %v2349_v15  ;;  %v9829_v1 = vld [vmem:[#allocation2 + $0x40] sm:$0xff]  ;;  %vm13409_vm3 = vmmov %vm13408_vm4 }
 0x3c0   :  { %13392 = vst [vmem:[#allocation68_spill] sm:$0xff] %v9829_v1  ;;  %v9859_v16 = vld [vmem:[#allocation2 + $0xa0] sm:$0xff]  ;;  %v7804_v1 = vunpack.i.h.bf16 %v9739_v41  ;;  %v7839_v24 = vunpack.i.h.bf16 %v9776_v13  ;;  %vm13410_vm0 = vmmov %vm13409_vm3  ;;  %v7843_v59 = vunpack.i.l.bf16 %v9778_v31  ;;  %vm13412_vm8 = vcmask 121856  }
 0x3c1   :  { %8131 = vrot.lane.b32.xlu0 %v8045_v60, %s8252_s26  ;;  %6999 = vmatprep.subr.msk.bf16.mxu0 %vm8694_vm14, %v6997_v54  ;;  %v7758_v54 = vunpack.i.l.bf16 %v9709_v23  ;;  %13398 = vst [vmem:[#allocation74_spill] sm:$0xff] %v9859_v16  ;;  %vm13413_vm10 = vmmov %vm13412_vm8 }
 0x3c2   :  { %8121 = vrot.lane.b32.xlu1 %v9664_v18, %s8252_s26  ;;  %7103 = vmatprep.subr.msk.bf16.mxu1 %vm8718_vm2, %v7101_v17  ;;  %vm13414_vm9 = vmmov %vm13412_vm8 }
 0x3c3   :  { %7002 = vmatpush1.bf16.msk.msra.mxu0 %vm8698_vm15, %v7000_v49  ;;  %7106 = vmatpush1.bf16.msk.msra.mxu1 %vm13387_vm7, %v7104_v0  ;;  %v9794_v60 = vpop.permute.xlu0 %7846  ;;  %v9799_v18 = vpop.permute.xlu1 %7851  ;;  %v9861_v0 = vld [vmem:[#allocation2 + $0x20] sm:$0xff] }
 0x3c4   :  { %13399 = vst [vmem:[#allocation75_spill] sm:$0xff] %v9861_v0  ;;  %v7838_v0 = vunpack.i.l.bf16 %v9776_v13  ;;  %v7848_v46 = vunpack.i.l.bf16 %v9794_v60 }
 0x3c5   :  { %3617 = vperm.xlu0 %7733, %v3607_v43   ;;  %v7789_v43 = vunpack.i.h.bf16 %v9730_v39  ;;  %v9881_v39 = vld [vmem:[#allocation2 + $0x18] sm:$0xff] }
 0x3c6   :  { %3612 = vperm.xlu1 %7734, %v3606_v29   ;;  %v7749_v29 = vunpack.i.h.bf16 %v9697_v58  ;;  %13404 = vst [vmem:[#allocation80_spill] sm:$0xff] %v9881_v39 }
 0x3c7   :  { %v9804_v48 = vpop.permute.xlu0 %7856  ;;  %v9809_v50 = vpop.permute.xlu1 %7861 }
 0x3c9   :  { %3627 = vperm.xlu0 %7733, %v3609_v9   ;;  %v7748_v9 = vunpack.i.l.bf16 %v9697_v58  ;;  %v9873_v58 = vld [vmem:[#allocation2 + $0x98] sm:$0xff] }
 0x3ca   :  { %3622 = vperm.xlu1 %7734, %v3608_v20   ;;  %13402 = vst [vmem:[#allocation78_spill] sm:$0xff] %v9873_v58  ;;  %v9901_v20 = vsel %vm13408_vm4, %v7789_v43, %v7793_v35  ;;  %v7844_v35 = vunpack.i.h.bf16 %v9778_v31  ;;  %vm13415_vm4 = vmmov %vm13412_vm8  ;;  %v2496_v31 = vsel %vm13410_vm0, %v7839_v24, %v7843_v59  ;;  %v13419_v58 = vunpack.i.l.bf16 %v9529_v14 }
 0x3cb   :  { %v9811_v15 = vpop.permute.xlu0 %7866  ;;  %v9813_v51 = vpop.permute.xlu1 %7871  ;;  %v9904_v5 = vsel %vm13409_vm3, %v7748_v9, %v7788_v62  ;;  %v9923_v9 = vsel %vm13415_vm4, %v7798_v33, %v7799_v21  ;;  %vm13416_vm3 = vmmov %vm13410_vm0  ;;  %v7116_v25 = vpack.c.bf16 %v2496_v31, %v9901_v20  ;;  %v13442_v31 = vunpack.i.h.bf16 %v9695_v11 }
 0x3cc   :  { %13388 = vst [vmem:[#allocation64_spill] sm:$0xff] %v9811_v15  ;;  %13389 = vst [vmem:[#allocation65_spill] sm:$0xff] %v9813_v51 }
 0x3cf   :  { %v9815_v2 = vpop.permute.xlu0 %7881  ;;  %v9817_v63 = vpop.permute.xlu1 %7876 }
 0x3d0   :  { %13390 = vst [vmem:[#allocation66_spill] sm:$0xff] %v9817_v63  ;;  %v9879_v63 = vld [vmem:[#allocation2 + $0x70] sm:$0xff] }
 0x3d1   :  { %13403 = vst [vmem:[#allocation79_spill] sm:$0xff] %v9879_v63 }
 0x3d3   :  { %v9819_v45 = vpop.permute.xlu0 %7891  ;;  %v9821_v19 = vpop.permute.xlu1 %7886 }
 0x3d4   :  { %v7888_v42 = vunpack.i.l.bf16 %v9821_v19 }
 0x3d7   :  { %v9823_v55 = vpop.permute.xlu0 %7901  ;;  %v9825_v8 = vpop.permute.xlu1 %7896 }
 0x3db   :  { %v9827_v49 = vpop.permute.xlu0 %7911  ;;  %v9834_v17 = vpop.permute.xlu1 %7906 }
 0x3dc   :  { %13391 = vst [vmem:[#allocation67_spill] sm:$0xff] %v9827_v49 }
 0x3df   :  { %v9857_v36 = vpop.permute.xlu0 %7921  ;;  %v9867_v53 = vpop.permute.xlu1 %7916 }
 0x3e0   :  { %13397 = vst [vmem:[#allocation73_spill] sm:$0xff] %v9857_v36  ;;  %13401 = vst [vmem:[#allocation77_spill] sm:$0xff] %v9867_v53  ;;  %v7803_v36 = vunpack.i.l.bf16 %v9739_v41  ;;  %v9907_v41 = vsel %vm13410_vm0, %v7788_v62, %v7789_v43  ;;  %v9919_v53 = vsel %vm13414_vm9, %v7758_v54, %v7798_v33  ;;  %v7883_v62 = vunpack.i.l.bf16 %v9815_v2 }
 0x3e1   :  { %v7889_v43 = vunpack.i.h.bf16 %v9821_v19  ;;  %vm13417_vm9 = vmmov %vm13410_vm0  ;;  %v7849_v19 = vunpack.i.h.bf16 %v9794_v60  ;;  %v7893_v60 = vunpack.i.l.bf16 %v9819_v45 }
 0x3e2   :  { %v9913_v13 = vsel %vm13412_vm8, %v7803_v36, %v7804_v1  ;;  %v9916_v37 = vsel %vm13413_vm10, %v7799_v21, %v7803_v36  ;;  %v7814_v1 = vunpack.i.h.bf16 %v9746_v57  ;;  %v9931_v36 = vsel %vm13416_vm3, %v7749_v29, %v7838_v0  ;;  %vm13418_vm8 = vmmov %vm13410_vm0 }
 0x3e3   :  { %v9896_v38 = vpop.permute.xlu0 %7941  ;;  %v9910_v39 = vpop.permute.xlu1 %7926  ;;  %v2495_v54 = vsel %vm13417_vm9, %v7838_v0, %v7839_v24  ;;  %v7884_v21 = vunpack.i.h.bf16 %v9815_v2  ;;  %vm13420_vm10 = vcmask 138240  }
 0x3e4   :  { %13407 = vst [vmem:[#allocation82_spill] sm:$0xff] %v9896_v38  ;;  %13411 = vst [vmem:[#allocation83_spill] sm:$0xff] %v9910_v39  ;;  %v2497_v38 = vsel %vm13418_vm8, %v7843_v59, %v7844_v35  ;;  %v2354_v29 = vsel %vm13420_vm10, %v13419_v58, %v7883_v62 }
 0x3e5   :  { %vm13421_vm4 = vmmov %vm13420_vm10 }
 0x3e6   :  { %v2356_v0 = vsel %vm13421_vm4, %v7884_v21, %v7888_v42  ;;  %vm13422_vm3 = vmmov %vm13421_vm4 }
 0x3e7   :  { %v7947_v63 = vpop.permute.xlu0 %7946  ;;  %v7932_v39 = vpop.permute.xlu1 %7931  ;;  %v2357_v51 = vsel %vm13422_vm3, %v7888_v42, %v7889_v43  ;;  %vm13423_vm9 = vmmov %vm13422_vm3  ;;  %v7854_v43 = vunpack.i.h.bf16 %v9799_v18 }
 0x3e8   :  { %v7949_v33 = vunpack.i.h.bf16 %v7947_v63  ;;  %v7948_v16 = vunpack.i.l.bf16 %v7947_v63  ;;  %v7934_v32 = vunpack.i.h.bf16 %v7932_v39  ;;  %v7933_v22 = vunpack.i.l.bf16 %v7932_v39  ;;  %vm13424_vm0 = vmmov %vm13422_vm3 }
 0x3e9   :  { %v13425_v63 = vunpack.i.h.bf16 %v9529_v14  ;;  %vm13426_vm13 = vmmov %vm13424_vm0  ;;  %vm13436_vm3 = vcmask 130048  }
 0x3ea   :  { %v2361_v24 = vsel %vm13423_vm9, %v7948_v16, %v7949_v33  ;;  %v2360_v2 = vsel %vm13424_vm0, %v7934_v32, %v7948_v16  ;;  %vm13427_vm8 = vmmov %vm13424_vm0  ;;  %v7853_v16 = vunpack.i.l.bf16 %v9799_v18  ;;  %v7009_v33 = vpack.c.bf16 %v2495_v54, %v9907_v41 }
 0x3eb   :  { %v2358_v59 = vsel %vm13426_vm13, %v13425_v63, %v7933_v22  ;;  %v2359_v35 = vsel %vm13427_vm8, %v7933_v22, %v7934_v32  ;;  %v9949_v15 = vpop.permute.xlu0 %7961  ;;  %v7107_v39 = vpack.c.bf16 %v2361_v24, %v2357_v51  ;;  %vm13428_vm10 = vmmov %vm13424_vm0  ;;  %v7110_v40 = vpack.c.bf16 %v2360_v2, %v2356_v0  ;;  %v9953_v42 = vpop.permute.xlu1 %7936 }
 0x3ec   :  { %v2355_v58 = vsel %vm13428_vm10, %v7883_v62, %v7884_v21  ;;  %v7006_v49 = vpack.c.bf16 %v2358_v59, %v2354_v29  ;;  %v7113_v22 = vpack.c.bf16 %v2497_v38, %v9892_v34  ;;  %v7809_v32 = vunpack.i.h.bf16 %v9748_v7  ;;  %vm13437_vm9 = vmmov %vm13436_vm3 }
 0x3ed   :  { %v7003_v14 = vpack.c.bf16 %v2359_v35, %v2355_v58  ;;  %7109 = vmatprep.subr.msk.bf16.mxu1 %vm8718_vm2, %v7107_v39  ;;  %v7899_v51 = vunpack.i.h.bf16 %v9825_v8  ;;  %v7898_v62 = vunpack.i.l.bf16 %v9825_v8  ;;  %v13429_v21 = vunpack.i.l.bf16 %v9746_v57  ;;  %vm13438_vm0 = vmmov %vm13436_vm3 }
 0x3ee   :  { %7112 = vmatpush1.bf16.msk.msra.mxu1 %vm13387_vm7, %v7110_v40  ;;  %vm13430_vm13 = vcmask 7168   ;;  %v7012_v38 = vpack.c.bf16 %v9931_v36, %v9904_v5  ;;  %vm13431_vm2 = vnez %v13256_v28  ;;  %v7894_v40 = vunpack.i.h.bf16 %v9819_v45  ;;  %vm13441_vm10 = vmmov %vm13438_vm0 }
 0x3ef   :  { %v9969_v18 = vsel %vm13430_vm13, %v13429_v21, %v7814_v1  ;;  %7005 = vmatprep.subr.msk.bf16.mxu0 %vm8694_vm14, %v7003_v14  ;;  %v7967_v34 = vpop.permute.xlu0 %7966  ;;  %7115 = vmatprep.subr.msk.bf16.mxu1 %vm13431_vm2, %v7113_v22  ;;  %v7952_v29 = vpop.permute.xlu1 %7951  ;;  %vm13432_vm7 = vcmask 121856   ;;  %vm13434_vm14 = vnez %v13244_v4  ;;  %v13435_v41 = vunpack.i.l.bf16 %v9695_v11  ;;  %vm13443_vm13 = vmmov %vm13438_vm0 }
 0x3f0   :  { %7008 = vmatpush1.bf16.msk.msra.mxu0 %vm8698_vm15, %v7006_v49  ;;  %v7969_v8 = vunpack.i.h.bf16 %v7967_v34  ;;  %v7968_v1 = vunpack.i.l.bf16 %v7967_v34  ;;  %v2639_v5 = vsel %vm13432_vm7, %v7848_v46, %v7849_v19  ;;  %vm13433_vm4 = vmmov %vm13432_vm7  ;;  %v7954_v36 = vunpack.i.h.bf16 %v7952_v29 }
 0x3f1   :  { %v2641_v44 = vsel %vm13433_vm4, %v7853_v16, %v7854_v43  ;;  %v7953_v0 = vunpack.i.l.bf16 %v7952_v29  ;;  %7011 = vmatprep.subr.msk.bf16.mxu0 %vm13434_vm14, %v7009_v33  ;;  %v2498_v20 = vsel %vm13436_vm3, %v13435_v41, %v7893_v60  ;;  %v2500_v45 = vsel %vm13437_vm9, %v7894_v40, %v7898_v62  ;;  %vm13439_vm15 = vmmov %vm13438_vm0 }
 0x3f2   :  { %v2501_v52 = vsel %vm13438_vm0, %v7898_v62, %v7899_v51  ;;  %v2505_v49 = vsel %vm13439_vm15, %v7968_v1, %v7969_v8  ;;  %vm13440_vm8 = vnez %v13258_v27  ;;  %v2504_v54 = vsel %vm13441_vm10, %v7954_v36, %v7968_v1  ;;  %vm13444_vm7 = vmmov %vm13438_vm0 }
 0x3f3   :  { %7118 = vmatpush1.bf16.msk.msra.mxu1 %vm13440_vm8, %v7116_v25  ;;  %v2502_v24 = vsel %vm13443_vm13, %v13442_v31, %v7953_v0  ;;  %v2503_v2 = vsel %vm13444_vm7, %v7953_v0, %v7954_v36  ;;  %v10000_v63 = vpop.permute.xlu0 %7981  ;;  %v7119_v59 = vpack.c.bf16 %v2505_v49, %v2501_v52  ;;  %v2640_v35 = vsel %vm13433_vm4, %v7849_v19, %v7853_v16  ;;  %vm13445_vm3 = vmmov %vm13438_vm0  ;;  %v10006_v14 = vpop.permute.xlu1 %7956 }
 0x3f4   :  { %v2499_v39 = vsel %vm13445_vm3, %v7893_v60, %v7894_v40  ;;  %v7018_v58 = vpack.c.bf16 %v2502_v24, %v2498_v20  ;;  %v7122_v43 = vpack.c.bf16 %v2504_v54, %v2500_v45  ;;  %vm13446_vm9 = vnez %v13249_v3  ;;  %vm13448_vm0 = vmmov %vm13433_vm4 }
 0x3f5   :  { %7014 = vmatpush1.bf16.msk.msra.mxu0 %vm13446_vm9, %v7012_v38  ;;  %v7864_v11 = vunpack.i.h.bf16 %v9809_v50  ;;  %v7863_v22 = vunpack.i.l.bf16 %v9809_v50  ;;  %v7015_v51 = vpack.c.bf16 %v2503_v2, %v2499_v39  ;;  %7121 = vmatprep.subr.msk.bf16.mxu1 %vm13431_vm2, %v7119_v59  ;;  %v7125_v62 = vpack.c.bf16 %v2641_v44, %v9913_v13  ;;  %vm13455_vm10 = vmmov %vm13448_vm0 }
 0x3f6   :  { %v13447_v19 = vunpack.i.h.bf16 %v9709_v23  ;;  %v7903_v60 = vunpack.i.l.bf16 %v9823_v55  ;;  %v7909_v21 = vunpack.i.h.bf16 %v9834_v17  ;;  %v7908_v38 = vunpack.i.l.bf16 %v9834_v17  ;;  %vm13456_vm13 = vmmov %vm13448_vm0 }
 0x3f7   :  { %7124 = vmatpush1.bf16.msk.msra.mxu1 %vm13440_vm8, %v7122_v43  ;;  %v13449_v50 = vunpack.i.l.bf16 %v9746_v57  ;;  %vm13450_vm2 = vcmask 7168   ;;  %v7128_v23 = vpack.c.bf16 %v2640_v35, %v9916_v37  ;;  %7017 = vmatprep.subr.msk.bf16.mxu0 %vm13434_vm14, %v7015_v51  ;;  %v7987_v13 = vpop.permute.xlu0 %7986  ;;  %v7021_v17 = vpack.c.bf16 %v2639_v5, %v9923_v9  ;;  %v7972_v33 = vpop.permute.xlu1 %7971  ;;  %vm13457_vm7 = vmmov %vm13448_vm0 }
 0x3f8   :  { %v2638_v16 = vsel %vm13448_vm0, %v13447_v19, %v7848_v46  ;;  %v7859_v46 = vunpack.i.h.bf16 %v9804_v48  ;;  %vm13451_vm15 = vnez %v13279_v61  ;;  %v7858_v27 = vunpack.i.l.bf16 %v9804_v48  ;;  %vm13452_vm8 = vmmov %vm13450_vm2  ;;  %v13471_v61 = vld [vmem:[#allocation63_spill] sm:$0xff]  ;;  %v13475_v19 = vld [vmem:[#allocation64_spill] sm:$0xff] }
 0x3f9   :  { %v10026_v28 = vsel %vm13450_vm2, %v7809_v32, %v13449_v50  ;;  %7127 = vmatprep.subr.msk.bf16.mxu1 %vm13451_vm15, %v7125_v62  ;;  %v7904_v57 = vunpack.i.h.bf16 %v9823_v55  ;;  %7020 = vmatpush1.bf16.msk.msra.mxu0 %vm13446_vm9, %v7018_v58  ;;  %v7989_v34 = vunpack.i.h.bf16 %v7987_v13  ;;  %v7988_v37 = vunpack.i.l.bf16 %v7987_v13  ;;  %vm13458_vm4 = vmmov %vm13448_vm0 }
 0x3fa   :  { %v7024_v25 = vpack.c.bf16 %v2638_v16, %v9919_v53  ;;  %v2785_v4 = vsel %vm13452_vm8, %v7863_v22, %v7864_v11  ;;  %v7974_v40 = vunpack.i.h.bf16 %v7972_v33  ;;  %v7973_v8 = vunpack.i.l.bf16 %v7972_v33  ;;  %vm13460_vm9 = vmmov %vm13448_vm0  ;;  %v13472_v11 = vld [vmem:[#allocation67_spill] sm:$0xff]  ;;  %v10111_v33 = vld [vmem:[#allocation2 + $0xa8] sm:$0xff] }
 0x3fb   :  { %vm13453_vm14 = vnez %v13267_v30  ;;  %v13454_v9 = vunpack.i.l.bf16 %v9707_v10  ;;  %v2644_v55 = vsel %vm13456_vm13, %v7904_v57, %v7908_v38  ;;  %v2645_v3 = vsel %vm13457_vm7, %v7908_v38, %v7909_v21  ;;  %vm13462_vm2 = vmmov %vm13448_vm0  ;;  %v10056_v36 = vpop.permute.xlu0 %8006  ;;  %v10062_v49 = vpop.permute.xlu1 %7976  ;;  %v13476_v21 = vld [vmem:[#allocation65_spill] sm:$0xff] }
 0x3fc   :  { %7023 = vmatprep.subr.msk.bf16.mxu0 %vm13453_vm14, %v7021_v17  ;;  %v2649_v1 = vsel %vm13458_vm4, %v7988_v37, %v7989_v34  ;;  %vm13459_vm3 = vnez %v13281_v56  ;;  %v2648_v53 = vsel %vm13460_vm9, %v7974_v40, %v7988_v37  ;;  %v13461_v29 = vunpack.i.h.bf16 %v9707_v10  ;;  %vm13466_vm7 = vmmov %vm13452_vm8  ;;  %v13479_v17 = vld [vmem:[#allocation66_spill] sm:$0xff]  ;;  %v10109_v37 = vld [vmem:[#allocation2 + $0xb0] sm:$0xff] }
 0x3fd   :  { %v2642_v48 = vsel %vm13455_vm10, %v13454_v9, %v7903_v60  ;;  %7130 = vmatpush1.bf16.msk.msra.mxu1 %vm13459_vm3, %v7128_v23  ;;  %v2647_v44 = vsel %vm13462_vm2, %v7973_v8, %v7974_v40  ;;  %v7131_v0 = vpack.c.bf16 %v2649_v1, %v2645_v3  ;;  %v2783_v41 = vsel %vm13452_vm8, %v7858_v27, %v7859_v46  ;;  %vm13463_vm10 = vmmov %vm13448_vm0 }
 0x3fe   :  { %v2646_v5 = vsel %vm13448_vm0, %v13461_v29, %v7973_v8  ;;  %v2643_v20 = vsel %vm13463_vm10, %v7903_v60, %v7904_v57  ;;  %v7134_v52 = vpack.c.bf16 %v2648_v53, %v2644_v55  ;;  %vm13464_vm13 = vnez %v13272_v26  ;;  %vm13467_vm4 = vmmov %vm13466_vm7  ;;  %v13481_v26 = vld [vmem:[#allocation41_spill] sm:$0xff]  ;;  %v13490_v53 = vld [vmem:[#allocation38_spill] sm:$0xff] }
 0x3ff   :  { %v7030_v45 = vpack.c.bf16 %v2646_v5, %v2642_v48  ;;  %7026 = vmatpush1.bf16.msk.msra.mxu0 %vm13464_vm13, %v7024_v25  ;;  %v13465_v10 = vunpack.i.h.bf16 %v9718_v6  ;;  %v2784_v31 = vsel %vm13467_vm4, %v7859_v46, %v7863_v22  ;;  %v7027_v24 = vpack.c.bf16 %v2647_v44, %v2643_v20  ;;  %7133 = vmatprep.subr.msk.bf16.mxu1 %vm13451_vm15, %v7131_v0  ;;  %vm13469_vm9 = vmmov %vm13467_vm4  ;;  %v10090_v51 = vpop.permute.xlu0 %8016  ;;  %v7992_v60 = vpop.permute.xlu1 %7991  ;;  %v13477_v46 = vld [vmem:[#allocation37_spill] sm:$0xff]  ;;  %v13483_v25 = vld [vmem:[#allocation62_spill] sm:$0xff] }
 0x400   :  { %v7137_v2 = vpack.c.bf16 %v2785_v4, %v9969_v18  ;;  %v13468_v59 = vunpack.i.l.bf16 %v9718_v6  ;;  %vm13470_vm0 = vmmov %vm13467_vm4  ;;  %v7824_v58 = vunpack.i.h.bf16 %v9754_v47  ;;  %v7823_v43 = vunpack.i.l.bf16 %v9754_v47  ;;  %v10125_v20 = vld [vmem:[#allocation2 + $0x78] sm:$0xff] }
 0x401   :  { %v2782_v54 = vsel %vm13466_vm7, %v13465_v10, %v7858_v27  ;;  %v2779_v39 = vsel %vm13470_vm0, %v7808_v12, %v7809_v32  ;;  %7136 = vmatpush1.bf16.msk.msra.mxu1 %vm13459_vm3, %v7134_v52  ;;  %v7819_v18 = vunpack.i.h.bf16 %v13471_v61  ;;  %v7914_v22 = vunpack.i.h.bf16 %v13472_v11  ;;  %7029 = vmatprep.subr.msk.bf16.mxu0 %vm13453_vm14, %v7027_v24  ;;  %v13473_v32 = vld [vmem:[#allocation39_spill] sm:$0xff]  ;;  %vm13485_vm2 = vmmov %vm13470_vm0 }
 0x402   :  { %v2778_v35 = vsel %vm13469_vm9, %v13468_v59, %v7808_v12  ;;  %v7913_v6 = vunpack.i.l.bf16 %v13472_v11  ;;  %v7033_v7 = vpack.c.bf16 %v2783_v41, %v2779_v39  ;;  %vm13474_vm15 = vnez %v13473_v32  ;;  %vm13486_vm8 = vmmov %vm13470_vm0  ;;  %v2853_v41 = vld [vmem:[#allocation2 + $0x80] sm:$0xff] }
 0x403   :  { %7139 = vmatprep.subr.msk.bf16.mxu1 %vm13474_vm15, %v7137_v2  ;;  %v7818_v12 = vunpack.i.l.bf16 %v13471_v61  ;;  %v7036_v62 = vpack.c.bf16 %v2782_v54, %v2778_v35  ;;  %v7140_v56 = vpack.c.bf16 %v2784_v31, %v10026_v28  ;;  %v7869_v16 = vunpack.i.h.bf16 %v13475_v19  ;;  %7032 = vmatpush1.bf16.msk.msra.mxu0 %vm13464_vm13, %v7030_v45  ;;  %v13480_v28 = vld [vmem:[#allocation77_spill] sm:$0xff]  ;;  %vm13488_vm10 = vmmov %vm13470_vm0  ;;  %v8022_v3 = vpop.permute.xlu0 %8021  ;;  %v10123_v44 = vpop.permute.xlu1 %7996 }
 0x404   :  { %v7868_v30 = vunpack.i.l.bf16 %v13475_v19  ;;  %v7874_v38 = vunpack.i.h.bf16 %v13476_v21  ;;  %v7994_v50 = vunpack.i.h.bf16 %v7992_v60  ;;  %v7993_v23 = vunpack.i.l.bf16 %v7992_v60  ;;  %vm13489_vm13 = vmmov %vm13470_vm0 }
 0x405   :  { %vm13478_vm14 = vnez %v13477_v46  ;;  %v7873_v13 = vunpack.i.l.bf16 %v13476_v21  ;;  %v7878_v27 = vunpack.i.l.bf16 %v13479_v17  ;;  %v7919_v57 = vunpack.i.h.bf16 %v13480_v28  ;;  %vm13493_vm9 = vmmov %vm13470_vm0 }
 0x406   :  { %7035 = vmatprep.subr.msk.bf16.mxu0 %vm13478_vm14, %v7033_v7  ;;  %v7918_v34 = vunpack.i.l.bf16 %v13480_v28  ;;  %vm13482_vm3 = vnez %v13481_v26  ;;  %v13484_v4 = vunpack.i.l.bf16 %v13483_v25  ;;  %v2787_v8 = vsel %vm13486_vm8, %v7913_v6, %v7914_v22  ;;  %vm13495_vm8 = vmmov %vm13470_vm0 }
 0x407   :  { %7142 = vmatpush1.bf16.msk.msra.mxu1 %vm13482_vm3, %v7140_v56  ;;  %v13487_v9 = vunpack.i.h.bf16 %v13483_v25  ;;  %v2791_v55 = vsel %vm13489_vm13, %v7993_v23, %v7994_v50  ;;  %vm13491_vm7 = vnez %v13490_v53  ;;  %v8024_v29 = vunpack.i.h.bf16 %v8022_v3  ;;  %v10146_v11 = vpop.permute.xlu0 %8036  ;;  %v13500_v56 = vld [vmem:[#allocation73_spill] sm:$0xff]  ;;  %v10160_v60 = vpop.permute.xlu1 %8001  ;;  %v13517_v53 = vld [vmem:[#allocation74_spill] sm:$0xff] }
 0x408   :  { %v2786_v40 = vsel %vm13485_vm2, %v13484_v4, %v7913_v6  ;;  %7038 = vmatpush1.bf16.msk.msra.mxu0 %vm13491_vm7, %v7036_v62  ;;  %v8023_v5 = vunpack.i.l.bf16 %v8022_v3  ;;  %v7039_v0 = vpack.c.bf16 %v2791_v55, %v2787_v8  ;;  %vm13492_vm4 = vcmask 1039360   ;;  %vm13494_vm2 = vmmov %vm13470_vm0  ;;  %v13508_v4 = vld [vmem:[#allocation71_spill] sm:$0xff] }
 0x409   :  { %v2790_v48 = vsel %vm13488_vm10, %v13487_v9, %v7993_v23  ;;  %v10130_v45 = vsel %vm13492_vm4, %v7823_v43, %v7824_v58  ;;  %v7879_v52 = vunpack.i.h.bf16 %v13479_v17  ;;  %v7153_v10 = vpack.c.bf16 %v10109_v37, %v2853_v41  ;;  %vm13496_vm10 = vmmov %vm13492_vm4  ;;  %v13512_v9 = vld [vmem:[#allocation72_spill] sm:$0xff] }
 0x40a   :  { %v7042_v1 = vpack.c.bf16 %v2790_v48, %v2786_v40  ;;  %v7155_v54 = vpack.c.bf16 %v10111_v33, %v10125_v20  ;;  %v2788_v31 = vsel %vm13493_vm9, %v7914_v22, %v7918_v34  ;;  %v2789_v24 = vsel %vm13470_vm0, %v7918_v34, %v7919_v57  ;;  %7041 = vmatprep.subr.msk.bf16.mxu0 %vm13478_vm14, %v7039_v0  ;;  %vm13497_vm13 = vmmov %vm13492_vm4 }
 0x40b   :  { %v2792_v2 = vsel %vm13494_vm2, %v7994_v50, %v8023_v5  ;;  %v2793_v59 = vsel %vm13495_vm8, %v8023_v5, %v8024_v29  ;;  %v2955_v35 = vsel %vm13496_vm10, %v7818_v12, %v7819_v18  ;;  %v2959_v39 = vsel %vm13497_vm13, %v7868_v30, %v7869_v16  ;;  %vm13498_vm9 = vmmov %vm13492_vm4  ;;  %v13501_v50 = vld [vmem:[#allocation82_spill] sm:$0xff]  ;;  %v8042_v25 = vpop.permute.xlu0 %8041  ;;  %v13518_v29 = vld [vmem:[#allocation79_spill] sm:$0xff] }
 0x40c   :  { %v7146_v58 = vpack.c.bf16 %v2792_v2, %v2788_v31  ;;  %v7143_v6 = vpack.c.bf16 %v2793_v59, %v2789_v24  ;;  %v10149_v22 = vsel %vm13492_vm4, %v7874_v38, %v7868_v30  ;;  %v10152_v7 = vsel %vm13498_vm9, %v7873_v13, %v7818_v12  ;;  %vm13499_vm0 = vmmov %vm13492_vm4  ;;  %7044 = vmatpush1.bf16.msk.msra.mxu0 %vm13491_vm7, %v7042_v1  ;;  %v13502_v38 = vld [vmem:[#allocation83_spill] sm:$0xff]  ;;  %v13503_v12 = vld [vmem:[#allocation68_spill] sm:$0xff] }
 0x40d   :  { %v10155_v62 = vsel %vm13499_vm0, %v7869_v16, %v7878_v27  ;;  %v7924_v19 = vunpack.i.h.bf16 %v13500_v56  ;;  %v7923_v21 = vunpack.i.l.bf16 %v13500_v56  ;;  %v7944_v23 = vunpack.i.h.bf16 %v13501_v50  ;;  %v13504_v13 = vld [vmem:[#allocation69_spill] sm:$0xff]  ;;  %vm13506_vm14 = vmmov %vm13499_vm0  ;;  %v13522_v24 = vld [vmem:[#allocation76_spill] sm:$0xff] }
 0x40e   :  { %v7943_v30 = vunpack.i.l.bf16 %v13501_v50  ;;  %v7928_v46 = vunpack.i.l.bf16 %v13502_v38  ;;  %v13505_v17 = vpack.c.bf16 %v13503_v12, %v13504_v13  ;;  %7145 = vmatprep.subr.msk.bf16.mxu1 %vm13474_vm15, %v7143_v6  ;;  %v2961_v16 = vsel %vm13506_vm14, %v7878_v27, %v7879_v52  ;;  %vm13507_vm7 = vmmov %vm13499_vm0  ;;  %v13523_v2 = vld [vmem:[#allocation80_spill] sm:$0xff]  ;;  %v13529_v56 = vld [vmem:[#allocation81_spill] sm:$0xff] }
 0x40f   :  { %v7939_v28 = vunpack.i.h.bf16 %v9953_v42  ;;  %v7938_v57 = vunpack.i.l.bf16 %v9953_v42  ;;  %v7959_v34 = vunpack.i.h.bf16 %v10006_v14  ;;  %7148 = vmatpush1.bf16.msk.msra.mxu1 %vm13482_vm3, %v7146_v58  ;;  %v10182_v37 = vsel %vm13507_vm7, %v7819_v18, %v7823_v43  ;;  %v13509_v42 = vld [vmem:[#allocation75_spill] sm:$0xff]  ;;  %v13511_v18 = vld [vmem:[#allocation70_spill] sm:$0xff]  ;;  %vm13514_vm15 = vmmov %vm13499_vm0  ;;  %v8047_v6 = vpop.permute.xlu0 %8046 }
 0x410   :  { %7046 = vmatprep.subr.bf16.mxu0 %v13505_v17  ;;  %v7056_v32 = vpack.c.bf16 %v10149_v22, %v10152_v7  ;;  %v7958_v27 = vunpack.i.l.bf16 %v10006_v14  ;;  %v13510_v40 = vpack.c.bf16 %v13508_v4, %v13509_v42  ;;  %v7053_v8 = vpack.c.bf16 %v2959_v39, %v2955_v35  ;;  %v10198_v14 = vpop.permute.xlu1 %8011  ;;  %vm13516_vm2 = vmmov %vm13499_vm0 }
 0x411   :  { %v7160_v26 = vpack.c.bf16 %v10155_v62, %v10182_v37  ;;  %v7929_v47 = vunpack.i.h.bf16 %v13502_v38  ;;  %v7964_v61 = vunpack.i.h.bf16 %v9949_v15  ;;  %v7963_v43 = vunpack.i.l.bf16 %v9949_v15  ;;  %vm13526_vm4 = vmmov %vm13499_vm0  ;;  %v13528_v62 = vld [vmem:[#allocation78_spill] sm:$0xff] }
 0x412   :  { %7150 = vmatprep.subr.bf16.mxu1 %v13510_v40  ;;  %v13513_v48 = vpack.c.bf16 %v13511_v18, %v13512_v9  ;;  %v2963_v55 = vsel %vm13514_vm15, %v7923_v21, %v7924_v19  ;;  %vm13515_vm3 = vcmask 924672   ;;  %v10207_v1 = vsel %vm13516_vm2, %v7924_v19, %v7928_v46  ;;  %vm13534_vm7 = vmmov %vm13516_vm2 }
 0x413   :  { %v10204_v3 = vsel %vm13515_vm3, %v7943_v30, %v7944_v23  ;;  %v13519_v5 = vpack.c.bf16 %v13517_v53, %v13518_v29  ;;  %v7157_v15 = vpack.c.bf16 %v2961_v16, %v10130_v45  ;;  %vm13520_vm8 = vmmov %vm13515_vm3  ;;  %v7984_v41 = vunpack.i.h.bf16 %v10000_v63  ;;  %v8062_v42 = vpop.permute.xlu0 %8061  ;;  %v13542_v53 = vld [vmem:[#allocation47_spill] sm:$0xff] }
 0x414   :  { %7048 = vmatpush1.bf16.msra.mxu0 %v13513_v48  ;;  %v10214_v0 = vsel %vm13520_vm8, %v7938_v57, %v7939_v28  ;;  %v7983_v52 = vunpack.i.l.bf16 %v10000_v63  ;;  %vm13521_vm10 = vmmov %vm13515_vm3  ;;  %v13524_v59 = vpack.c.bf16 %v13522_v24, %v13523_v2  ;;  %v7979_v39 = vunpack.i.h.bf16 %v10062_v49  ;;  %v8027_v12 = vpop.permute.xlu1 %8026 }
 0x415   :  { %7050 = vmatprep.subr.bf16.mxu0 %v13519_v5  ;;  %v10219_v31 = vsel %vm13521_vm10, %v7959_v34, %v7943_v30  ;;  %vm13525_vm13 = vmmov %vm13515_vm3  ;;  %v7978_v45 = vunpack.i.l.bf16 %v10062_v49  ;;  %v8043_v58 = vunpack.i.l.bf16 %v8042_v25  ;;  %v2965_v22 = vsel %vm13526_vm4, %v7928_v46, %v7929_v47 }
 0x416   :  { %7152 = vmatpush1.bf16.msra.mxu1 %v13524_v59  ;;  %v10225_v35 = vsel %vm13525_vm13, %v7958_v27, %v7938_v57  ;;  %vm13527_vm9 = vmmov %vm13515_vm3  ;;  %v13530_v19 = vpack.c.bf16 %v13528_v62, %v13529_v56  ;;  %v8049_v30 = vunpack.i.h.bf16 %v8047_v6  ;;  %v8048_v38 = vunpack.i.l.bf16 %v8047_v6 }
 0x417   :  { %7154 = vmatprep.subr.bf16.mxu1 %v7153_v10  ;;  %v10231_v7 = vsel %vm13527_vm9, %v7963_v43, %v7964_v61  ;;  %vm13531_vm0 = vmmov %vm13515_vm3  ;;  %v8044_v17 = vunpack.i.h.bf16 %v8042_v25  ;;  %v8029_v49 = vunpack.i.h.bf16 %v8027_v12  ;;  %v8028_v16 = vunpack.i.l.bf16 %v8027_v12  ;;  %v8067_v50 = vpop.permute.xlu0 %8066 }
 0x418   :  { %7052 = vmatpush1.bf16.msra.mxu0 %v13530_v19  ;;  %v10237_v13 = vsel %vm13531_vm0, %v7939_v28, %v7963_v43  ;;  %vm13533_vm14 = vmmov %vm13531_vm0  ;;  %v7068_v46 = vpack.c.bf16 %v10219_v31, %v10225_v35  ;;  %v2969_v34 = vsel %vm13534_vm7, %v8048_v38, %v8049_v30  ;;  %v7065_v28 = vpack.c.bf16 %v10204_v3, %v10214_v0  ;;  %v8032_v61 = vpop.permute.xlu1 %8031  ;;  %v13549_v19 = vld [vmem:[#allocation51_spill] sm:$0xff]  ;;  %v13578_v35 = vld [vmem:[#allocation57_spill] sm:$0xff] }
 0x419   :  { %7055 = vmatprep.subr.msk.bf16.mxu0 %vm9066_vm11, %v7053_v8  ;;  %v10246_v10 = vsel %vm13533_vm14, %v7983_v52, %v7984_v41  ;;  %vm13535_vm15 = vmmov %vm13531_vm0  ;;  %v2966_v25 = vsel %vm13516_vm2, %v8044_v17, %v8028_v16  ;;  %v8009_v8 = vunpack.i.h.bf16 %v10056_v36  ;;  %v8008_v33 = vunpack.i.l.bf16 %v10056_v36  ;;  %v13553_v17 = vld [vmem:[#allocation49_spill] sm:$0xff] }
 0x41a   :  { %7156 = vmatpush1.bf16.msra.mxu1 %v7155_v54  ;;  %v3105_v37 = vsel %vm13535_vm15, %v7978_v45, %v7979_v39  ;;  %vm13536_vm3 = vmmov %vm13516_vm2  ;;  %v8004_v20 = vunpack.i.h.bf16 %v10160_v60  ;;  %v7163_v9 = vpack.c.bf16 %v2969_v34, %v2965_v22  ;;  %v8019_v3 = vunpack.i.h.bf16 %v10090_v51 }
 0x41b   :  { %v2962_v27 = vsel %vm13536_vm3, %v8043_v58, %v7923_v21  ;;  %vm13537_vm8 = vmmov %vm13516_vm2  ;;  %7159 = vmatprep.subr.msk.bf16.mxu1 %vm9113_vm5, %v7157_v15  ;;  %v8003_v21 = vunpack.i.l.bf16 %v10160_v60  ;;  %v8018_v36 = vunpack.i.l.bf16 %v10090_v51  ;;  %vm13543_vm4 = vnez %v13542_v53  ;;  %v10303_v56 = vpop.permute.xlu0 %8081 }
 0x41c   :  { %v2967_v4 = vsel %vm13537_vm8, %v8028_v16, %v8029_v49  ;;  %v7062_v54 = vpack.c.bf16 %v2966_v25, %v2962_v27  ;;  %7058 = vmatpush1.bf16.msk.msra.mxu0 %vm9091_vm6, %v7056_v32  ;;  %vm13540_vm10 = vmmov %vm13516_vm2  ;;  %v7169_v32 = vpack.c.bf16 %v3105_v37, %v10231_v7  ;;  %v7999_v29 = vunpack.i.h.bf16 %v10123_v44  ;;  %v13560_v27 = vld [vmem:[#allocation52_spill] sm:$0xff] }
 0x41d   :  { %v2968_v43 = vsel %vm13540_vm10, %v8029_v49, %v8048_v38  ;;  %v7059_v18 = vpack.c.bf16 %v2967_v4, %v2963_v55  ;;  %vm13541_vm13 = vmmov %vm13531_vm0  ;;  %v7998_v5 = vunpack.i.l.bf16 %v10123_v44  ;;  %v8039_v55 = vunpack.i.h.bf16 %v10146_v11  ;;  %v8052_v44 = vpop.permute.xlu1 %8051 }
 0x41e   :  { %v3104_v48 = vsel %vm13541_vm13, %v7944_v23, %v7978_v45  ;;  %7162 = vmatpush1.bf16.msk.msra.mxu1 %vm13543_vm4, %v7160_v26  ;;  %v8063_v15 = vunpack.i.l.bf16 %v8062_v42  ;;  %v8038_v51 = vunpack.i.l.bf16 %v10146_v11  ;;  %v7166_v23 = vpack.c.bf16 %v2968_v43, %v10207_v1  ;;  %vm13552_vm15 = vmmov %vm13531_vm0 }
 0x41f   :  { %7061 = vmatprep.subr.msk.bf16.mxu0 %vm9066_vm11, %v7059_v18  ;;  %7165 = vmatprep.subr.msk.bf16.mxu1 %vm9113_vm5, %v7163_v9  ;;  %v8069_v26 = vunpack.i.h.bf16 %v8067_v50  ;;  %v8068_v0 = vunpack.i.l.bf16 %v8067_v50  ;;  %vm13544_vm9 = vcmask 916480   ;;  %v8064_v24 = vunpack.i.h.bf16 %v8062_v42  ;;  %vm13546_vm5 = vmmov %vm13531_vm0  ;;  %v8092_v63 = vpop.permute.xlu0 %8091 }
 0x420   :  { %7064 = vmatpush1.bf16.msk.msra.mxu0 %vm9091_vm6, %v7062_v54  ;;  %v3243_v31 = vsel %vm13544_vm9, %v8003_v21, %v8004_v20  ;;  %v8054_v2 = vunpack.i.h.bf16 %v8052_v44  ;;  %v8053_v59 = vunpack.i.l.bf16 %v8052_v44  ;;  %v8014_v39 = vunpack.i.h.bf16 %v10198_v14  ;;  %vm13547_vm6 = vmmov %vm13531_vm0 }
 0x421   :  { %7067 = vmatprep.subr.msk.bf16.mxu0 %vm9155_vm1, %v7065_v28  ;;  %v8034_v45 = vunpack.i.h.bf16 %v8032_v61  ;;  %v8033_v1 = vunpack.i.l.bf16 %v8032_v61  ;;  %v3113_v58 = vsel %vm13546_vm5, %v8068_v0, %v8069_v26  ;;  %v8013_v6 = vunpack.i.l.bf16 %v10198_v14  ;;  %vm13548_vm11 = vmmov %vm13531_vm0 }
 0x422   :  { %7168 = vmatpush1.bf16.msk.msra.mxu1 %vm13543_vm4, %v7166_v23  ;;  %v3106_v22 = vsel %vm13547_vm6, %v8063_v15, %v7983_v52  ;;  %v3110_v7 = vsel %vm13548_vm11, %v8064_v24, %v8053_v59  ;;  %v3111_v62 = vsel %vm13531_vm0, %v8053_v59, %v8054_v2  ;;  %vm13550_vm14 = vnez %v13549_v19  ;;  %vm13551_vm7 = vmmov %vm13544_vm9  ;;  %v8057_v52 = vpop.permute.xlu1 %8056  ;;  %v13572_v15 = vld [vmem:[#allocation54_spill] sm:$0xff] }
 0x423   :  { %7171 = vmatprep.subr.msk.bf16.mxu1 %vm13550_vm14, %v7169_v32  ;;  %v3247_v30 = vsel %vm13551_vm7, %v8008_v33, %v8009_v8  ;;  %v7172_v38 = vpack.c.bf16 %v3104_v48, %v10237_v13  ;;  %v3109_v12 = vsel %vm13552_vm15, %v7998_v5, %v7999_v29  ;;  %v7074_v14 = vpack.c.bf16 %v3110_v7, %v3106_v22  ;;  %vm13555_vm2 = vmmov %vm13551_vm7  ;;  %v8097_v32 = vpop.permute.xlu0 %8096  ;;  %v13570_v29 = vld [vmem:[#allocation56_spill] sm:$0xff] }
 0x424   :  { %vm13554_vm3 = vnez %v13553_v17  ;;  %v3245_v49 = vsel %vm13555_vm2, %v8018_v36, %v8019_v3  ;;  %vm13556_vm8 = vmmov %vm13531_vm0  ;;  %v7071_v57 = vpack.c.bf16 %v3111_v62, %v10246_v10  ;;  %v7175_v34 = vpack.c.bf16 %v3113_v58, %v3109_v12 }
 0x425   :  { %7070 = vmatpush1.bf16.msk.msra.mxu0 %vm13554_vm3, %v7068_v46  ;;  %v3112_v16 = vsel %vm13556_vm8, %v8054_v2, %v8068_v0  ;;  %vm13557_vm10 = vmmov %vm13531_vm0  ;;  %vm13561_vm9 = vnez %v13560_v27  ;;  %v7077_v46 = vpack.c.bf16 %v3247_v30, %v3243_v31  ;;  %v8094_v40 = vunpack.i.h.bf16 %v8092_v63  ;;  %v13588_v27 = vld [vmem:[#allocation59_spill] sm:$0xff] }
 0x426   :  { %v3108_v28 = vsel %vm13557_vm10, %v7984_v41, %v7998_v5  ;;  %vm13558_vm13 = vmmov %vm13555_vm2  ;;  %7174 = vmatpush1.bf16.msk.msra.mxu1 %vm13561_vm9, %v7172_v38  ;;  %7073 = vmatprep.subr.msk.bf16.mxu0 %vm9155_vm1, %v7071_v57  ;;  %v8072_v54 = vpop.permute.xlu1 %8071  ;;  %v8058_v47 = vunpack.i.l.bf16 %v8057_v52  ;;  %v8059_v48 = vunpack.i.h.bf16 %v8057_v52  ;;  %v8083_v3 = vunpack.i.l.bf16 %v10303_v56  ;;  %v13582_v38 = vld [vmem:[#allocation58_spill] sm:$0xff] }
 0x427   :  { %v3251_v13 = vsel %vm13558_vm13, %v8038_v51, %v8039_v55  ;;  %vm13559_vm4 = vmmov %vm13555_vm2  ;;  %7177 = vmatprep.subr.msk.bf16.mxu1 %vm13550_vm14, %v7175_v34  ;;  %v7178_v42 = vpack.c.bf16 %v3112_v16, %v3108_v28  ;;  %v8073_v61 = vunpack.i.l.bf16 %v8072_v54  ;;  %vm13571_vm15 = vnez %v13570_v29  ;;  %v3453_v16 = vld [vmem:[%s12949_s4 + $0x18] sm:$0xff] }
 0x428   :  { %v3249_v37 = vsel %vm13559_vm4, %v8033_v1, %v8034_v45  ;;  %vm13562_vm5 = vmmov %vm13555_vm2  ;;  %v8099_v50 = vunpack.i.h.bf16 %v8097_v32  ;;  %vm13579_vm4 = vnez %v13578_v35  ;;  %v3457_v28 = vld [vmem:[%s12949_s4 + $0x38] sm:$0xff]  ;;  %v3455_v35 = vld [vmem:[%s12949_s4 + $0x28] sm:$0xff] }
 0x429   :  { %v3246_v25 = vsel %vm13562_vm5, %v8014_v39, %v8008_v33  ;;  %vm13563_vm6 = vmmov %vm13555_vm2  ;;  %7076 = vmatpush1.bf16.msk.msra.mxu0 %vm13554_vm3, %v7074_v14  ;;  %v8093_v33 = vunpack.i.l.bf16 %v8092_v63  ;;  %v7181_v43 = vpack.c.bf16 %v3249_v37, %v3245_v49  ;;  %vm13573_vm3 = vnez %v13572_v15 }
 0x42a   :  { %v3242_v4 = vsel %vm13563_vm6, %v8013_v6, %v8003_v21  ;;  %vm13564_vm11 = vmmov %vm13555_vm2  ;;  %7079 = vmatprep.subr.msk.bf16.mxu0 %vm9220_vm12, %v7077_v46  ;;  %7180 = vmatpush1.bf16.msk.msra.mxu1 %vm13561_vm9, %v7178_v42  ;;  %v8077_v23 = vpop.permute.xlu1 %8076  ;;  %vm13580_vm9 = vcmask 908288   ;;  %v3450_v6 = vld [vmem:[%s12949_s4] sm:$0xff]  ;;  %v3460_v21 = vld [vmem:[%s12949_s4 + $0x50] sm:$0xff] }
 0x42b   :  { %v3248_v10 = vsel %vm13564_vm11, %v8009_v8, %v8033_v1  ;;  %vm13565_vm0 = vmmov %vm13555_vm2  ;;  %v8074_v8 = vunpack.i.h.bf16 %v8072_v54  ;;  %v7080_v18 = vpack.c.bf16 %v3246_v25, %v3242_v4  ;;  %7183 = vmatprep.subr.msk.bf16.mxu1 %vm13571_vm15, %v7181_v43  ;;  %v8079_v44 = vunpack.i.h.bf16 %v8077_v23  ;;  %v3456_v54 = vld [vmem:[%s12949_s4 + $0x30] sm:$0xff] }
 0x42c   :  { %v3244_v41 = vsel %vm13565_vm0, %v8004_v20, %v8018_v36  ;;  %vm13567_vm1 = vmmov %vm13565_vm0  ;;  %v8084_v20 = vunpack.i.h.bf16 %v10303_v56  ;;  %v8078_v31 = vunpack.i.l.bf16 %v8077_v23  ;;  %v3454_v56 = vld [vmem:[%s12949_s4 + $0x20] sm:$0xff] }
 0x42d   :  { %v7184_v9 = vpack.c.bf16 %v3248_v10, %v3244_v41  ;;  %v3250_v60 = vsel %vm13567_vm1, %v8093_v33, %v8038_v51  ;;  %vm13568_vm14 = vmmov %vm13565_vm0  ;;  %7082 = vmatpush1.bf16.msk.msra.mxu0 %vm13573_vm3, %v7080_v18  ;;  %v8098_v51 = vunpack.i.l.bf16 %v8097_v32  ;;  %v13593_v18 = vld [vmem:[#allocation60_spill] sm:$0xff] }
 0x42e   :  { %v3254_v36 = vsel %vm13568_vm14, %v8094_v40, %v8073_v61  ;;  %vm13569_vm7 = vmmov %vm13565_vm0  ;;  %v3391_v39 = vsel %vm13580_vm9, %v8083_v3, %v8084_v20  ;;  %v8087_v58 = vpop.permute.xlu1 %8086  ;;  %vm13589_vm14 = vnez %v13588_v27 }
 0x42f   :  { %v3255_v53 = vsel %vm13569_vm7, %v8073_v61, %v8074_v8  ;;  %v7086_v5 = vpack.c.bf16 %v3254_v36, %v3250_v60  ;;  %vm13574_vm2 = vmmov %vm13565_vm0  ;;  %7186 = vmatpush1.bf16.msk.msra.mxu1 %vm13579_vm4, %v7184_v9  ;;  %v8089_v7 = vunpack.i.h.bf16 %v8087_v58  ;;  %v8088_v62 = vunpack.i.l.bf16 %v8087_v58 }
 0x430   :  { %v7083_v26 = vpack.c.bf16 %v3255_v53, %v3251_v13  ;;  %v3252_v0 = vsel %vm13574_vm2, %v8039_v55, %v8058_v47  ;;  %vm13575_vm8 = vmmov %vm13565_vm0  ;;  %v8102_v55 = vpop.permute.xlu0 %8101  ;;  %vm13594_vm2 = vnez %v13593_v18 }
 0x431   :  { %v3253_v24 = vsel %vm13575_vm8, %v8058_v47, %v8059_v48  ;;  %vm13576_vm10 = vmmov %vm13565_vm0  ;;  %v8104_v19 = vunpack.i.h.bf16 %v8102_v55  ;;  %v8103_v30 = vunpack.i.l.bf16 %v8102_v55 }
 0x432   :  { %v3256_v2 = vsel %vm13576_vm10, %v8074_v8, %v8098_v51  ;;  %vm13577_vm13 = vmmov %vm13565_vm0  ;;  %7085 = vmatprep.subr.msk.bf16.mxu0 %vm9220_vm12, %v7083_v26  ;;  %vm13583_vm12 = vnez %v13582_v38  ;;  %v8107_v49 = vpop.permute.xlu1 %8106 }
 0x433   :  { %v3257_v59 = vsel %vm13577_vm13, %v8098_v51, %v8099_v50  ;;  %v7190_v45 = vpack.c.bf16 %v3256_v2, %v3252_v0  ;;  %vm13581_vm5 = vmmov %vm13580_vm9  ;;  %7088 = vmatpush1.bf16.msk.msra.mxu0 %vm13573_vm3, %v7086_v5  ;;  %v8109_v57 = vunpack.i.h.bf16 %v8107_v49  ;;  %v8108_v34 = vunpack.i.l.bf16 %v8107_v49  ;;  %v3459_v5 = vld [vmem:[%s12949_s4 + $0x48] sm:$0xff]  ;;  %v3452_v2 = vld [vmem:[%s12949_s4 + $0x10] sm:$0xff] }
 0x434   :  { %v3387_v11 = vsel %vm13581_vm5, %v8078_v31, %v8079_v44  ;;  %v7187_v1 = vpack.c.bf16 %v3257_v59, %v3253_v24  ;;  %vm13584_vm6 = vmmov %vm13581_vm5  ;;  %v8112_v17 = vpop.permute.xlu0 %8111  ;;  %v8215_v24 = vld [vmem:[#allocation2] sm:$0xff] }
 0x435   :  { %v7089_v22 = vpack.c.bf16 %v3391_v39, %v3387_v11  ;;  %v3390_v12 = vsel %vm13584_vm6, %v8089_v7, %v8083_v3  ;;  %vm13585_vm11 = vmmov %vm13581_vm5  ;;  %v8114_v46 = vunpack.i.h.bf16 %v8112_v17  ;;  %v8113_v25 = vunpack.i.l.bf16 %v8112_v17  ;;  %v3458_v39 = vld [vmem:[%s12949_s4 + $0x40] sm:$0xff] }
 0x436   :  { %7189 = vmatprep.subr.msk.bf16.mxu1 %vm13571_vm15, %v7187_v1  ;;  %v3386_v14 = vsel %vm13585_vm11, %v8088_v62, %v8078_v31  ;;  %3707 = vmatmul.mubr.f32.vlgmr.msra.gmra.mrb[8].mxu0 %v3450_v6  ;;  %vm13586_vm0 = vmmov %vm13581_vm5  ;;  %v8117_v33 = vpop.permute.xlu1 %8116 }
 0x437   :  { %7091 = vmatprep.subr.msk.bf16.mxu0 %vm13583_vm12, %v7089_v22  ;;  %7192 = vmatpush1.bf16.msk.msra.mxu1 %vm13579_vm4, %v7190_v45  ;;  %v7092_v52 = vpack.c.bf16 %v3390_v12, %v3386_v14  ;;  %v3388_v13 = vsel %vm13586_vm0, %v8079_v44, %v8103_v30  ;;  %vm13587_vm1 = vmmov %vm13586_vm0  ;;  %v8119_v8 = vunpack.i.h.bf16 %v8117_v33  ;;  %v8118_v61 = vunpack.i.l.bf16 %v8117_v33  ;;  %v3461_v45 = vld [vmem:[%s12949_s4 + $0x58] sm:$0xff]  ;;  %s8258_s4 = smov 50  }
 0x438   :  { %3712 = vmatprep.mubr.f32.mxu0 %v3454_v56  ;;  %v3389_v37 = vsel %vm13587_vm1, %v8103_v30, %v8104_v19  ;;  %vm13590_vm7 = vmmov %vm13586_vm0  ;;  %v8127_v63 = vpop.permute.xlu0 %8126 }
 0x439   :  { %7094 = vmatpush1.bf16.msk.msra.mxu0 %vm13589_vm14, %v7092_v52  ;;  %v3392_v4 = vsel %vm13590_vm7, %v8084_v20, %v8108_v34  ;;  %vm13591_vm15 = vmmov %vm13586_vm0  ;;  %v8129_v42 = vunpack.i.h.bf16 %v8127_v63  ;;  %v8128_v40 = vunpack.i.l.bf16 %v8127_v63  ;;  %v13598_v20 = vld [vmem:[#allocation61_spill] sm:$0xff] }
 0x43a   :  { %3885 = vmatmul.mubr.f32.vlgmr.msra.gmra.mrb[8].mxu1 %v3450_v6  ;;  %v3393_v10 = vsel %vm13591_vm15, %v8108_v34, %v8109_v57  ;;  %3713 = vmatmul.mubr.f32.gmra.mrb[10].mxu0 %v3453_v16  ;;  %v7196_v41 = vpack.c.bf16 %v3392_v4, %v3388_v13  ;;  %vm13592_vm3 = vmmov %vm13586_vm0  ;;  %vm13599_vm4 = vnez %v13598_v20  ;;  %v8122_v29 = vpop.permute.xlu1 %8121 }
 0x43b   :  { %3890 = vmatprep.mubr.f32.mxu1 %v3454_v56  ;;  %3718 = vmatprep.mubr.f32.mxu0 %v3457_v28  ;;  %v7193_v47 = vpack.c.bf16 %v3393_v10, %v3389_v37  ;;  %v3394_v43 = vsel %vm13592_vm3, %v8128_v40, %v8113_v25  ;;  %vm13595_vm8 = vmmov %vm13586_vm0  ;;  %v8124_v50 = vunpack.i.h.bf16 %v8122_v29  ;;  %v8123_v51 = vunpack.i.l.bf16 %v8122_v29 }
 0x43c   :  { %v3395_v9 = vsel %vm13595_vm8, %v8113_v25, %v8114_v46  ;;  %vm13596_vm10 = vmmov %vm13586_vm0  ;;  %v8132_v3 = vpop.permute.xlu0 %8131 }
 0x43d   :  { %7195 = vmatprep.subr.msk.bf16.mxu1 %vm13594_vm2, %v7193_v47  ;;  %v3398_v48 = vsel %vm13596_vm10, %v8129_v42, %v8118_v61  ;;  %vm13597_vm13 = vmmov %vm13586_vm0  ;;  %v8134_v53 = vunpack.i.h.bf16 %v8132_v3  ;;  %v8133_v32 = vunpack.i.l.bf16 %v8132_v3  ;;  %vm8262_vm10 = vmmov 0  }
 0x43e   :  { %3891 = vmatmul.mubr.f32.gmra.mrb[10].mxu1 %v3453_v16  ;;  %v3399_v60 = vsel %vm13597_vm13, %v8118_v61, %v8119_v8  ;;  %3719 = vmatmul.mubr.f32.gmra.mrb[12].mxu0 %v3456_v54  ;;  %v7098_v36 = vpack.c.bf16 %v3398_v48, %v3394_v43  ;;  %vm13600_vm9 = vmmov %vm13586_vm0  ;;  %vm13636_vm13 = vcmask 7168  }
 0x43f   :  { %3896 = vmatprep.mubr.f32.mxu1 %v3457_v28  ;;  %7198 = vmatpush1.bf16.msk.msra.mxu1 %vm13599_vm4, %v7196_v41  ;;  %v7095_v15 = vpack.c.bf16 %v3399_v60, %v3395_v9  ;;  %v3400_v23 = vsel %vm13600_vm9, %v8119_v8, %v8133_v32  ;;  %vm13601_vm5 = vmmov %vm13586_vm0 }
 0x440   :  { %3724 = vmatprep.mubr.f32.mxu0 %v3460_v21  ;;  %v3401_v26 = vsel %vm13601_vm5, %v8133_v32, %v8134_v53  ;;  %vm13602_vm6 = vmmov %vm13586_vm0  ;;  %vm13166_vm5 = vcmask 23552  }
 0x441   :  { %7097 = vmatprep.subr.msk.bf16.mxu0 %vm13583_vm12, %v7095_v15  ;;  %v3396_v0 = vsel %vm13602_vm6, %v8114_v46, %v8123_v51  ;;  %vm13603_vm11 = vmmov %vm13586_vm0  ;;  %vm13604_vm12 = vcmask 261120  }
 0x442   :  { %3897 = vmatmul.mubr.f32.gmra.mrb[12].mxu1 %v3456_v54  ;;  %v3397_v44 = vsel %vm13603_vm11, %v8123_v51, %v8124_v50  ;;  %3725 = vmatmul.mubr.f32.gmra.mrb[14].mxu0 %v3459_v5  ;;  %v7202_v31 = vpack.c.bf16 %v3400_v23, %v3396_v0  ;;  %vm13605_vm0 = vmmov %vm13604_vm12 }
 0x443   :  { %3902 = vmatprep.mubr.f32.mxu1 %v3460_v21  ;;  %7100 = vmatpush1.bf16.msk.msra.mxu0 %vm13589_vm14, %v7098_v36  ;;  %v7199_v59 = vpack.c.bf16 %v3401_v26, %v3397_v44  ;;  %vm13606_vm1 = vmmov %vm13605_vm0 }
 0x444   :  { %3795 = vmatprep.mubr.f32.mxu0 %v8215_v24  ;;  %vm13607_vm14 = vmmov %vm13605_vm0  ;;  %v3618_v22 = vpop.permute.xlu0 %3617 }
 0x445   :  { %7201 = vmatprep.subr.msk.bf16.mxu1 %vm13594_vm2, %v7199_v59  ;;  %vm13608_vm7 = vmmov %vm13605_vm0  ;;  %v3613_v11 = vpop.permute.xlu1 %3612 }
 0x446   :  { %3903 = vmatmul.mubr.f32.gmra.mrb[14].mxu1 %v3459_v5  ;;  %6380 = vmatmul.mubr.msk.f32.vlgmr.msra.gmra.mrb[8].mxu0 %vm13604_vm12, %v3452_v2  ;;  %vm13609_vm15 = vmmov %vm13605_vm0 }
 0x447   :  { %3973 = vmatprep.mubr.f32.mxu1 %v8215_v24  ;;  %7204 = vmatpush1.bf16.msk.msra.mxu1 %vm13599_vm4, %v7202_v31  ;;  %vm13610_vm3 = vmmov %vm13605_vm0  ;;  %vm13163_vm4 = vcmask 15360  }
 0x448   :  { %3801 = vmatprep.mubr.f32.mxu0 %v8215_v24  ;;  %vm13611_vm2 = vmmov %vm13605_vm0  ;;  %v3628_v43 = vpop.permute.xlu0 %3627 }
 0x449   :  { %v3623_v28 = vpop.permute.xlu1 %3622  ;;  %vm13637_vm9 = vmmov %vm13636_vm13 }
 0x44a   :  { %6384 = vmatmul.mubr.msk.f32.vlgmr.msra.gmra.mrb[8].mxu1 %vm13605_vm0, %v3452_v2  ;;  %6381 = vmatmul.mubr.msk.f32.gmra.mrb[10].mxu0 %vm13606_vm1, %v3455_v35  ;;  %vm13638_vm6 = vmmov %vm13637_vm9 }
 0x44b   :  { %3979 = vmatprep.mubr.f32.mxu1 %v8215_v24  ;;  %3807 = vmatprep.mubr.f32.mxu0 %v8215_v24  ;;  %vm13639_vm11 = vmmov %vm13638_vm6 }
 0x44c   :  { %vm13640_vm12 = vmmov %vm13605_vm0 }
 0x44e   :  { %6385 = vmatmul.mubr.msk.f32.gmra.mrb[10].mxu1 %vm13607_vm14, %v3455_v35  ;;  %6382 = vmatmul.mubr.msk.f32.gmra.mrb[12].mxu0 %vm13608_vm7, %v3458_v39  ;;  %vm13171_vm14 = vcmask 416768  }
 0x44f   :  { %3985 = vmatprep.mubr.f32.mxu1 %v8215_v24  ;;  %3813 = vmatprep.mubr.f32.mxu0 %v8215_v24 }
 0x452   :  { %6386 = vmatmul.mubr.msk.f32.gmra.mrb[12].mxu1 %vm13609_vm15, %v3458_v39  ;;  %6383 = vmatmul.mubr.msk.f32.gmra.mrb[14].mxu0 %vm13610_vm3, %v3461_v45 }
 0x453   :  { %3991 = vmatprep.mubr.f32.mxu1 %v8215_v24 }
 0x456   :  { %6387 = vmatmul.mubr.msk.f32.gmra.mrb[14].mxu1 %vm13611_vm2, %v3461_v45 }
 0x519   :  { %v3797_v55 = vpop.f32.mrb[8].mxu0 }
 0x51a   :  { %v10438_v1 = vadd.f32 %v3797_v55, %v3613_v11  ;;  %v3799_v58 = vpop.f32.mrb[9].mxu0 }
 0x51b   :  { %v10440_v6 = vadd.f32 %v3799_v58, %v3613_v11 }
 0x51c   :  { %v4022_v7 = vmul.f32 %v10438_v1, %v10438_v1 }
 0x51d   :  { %v3975_v62 = vpop.f32.mrb[8].mxu1  ;;  %v3998_v56 = vadd.f32 %v10440_v6, %v10438_v1  ;;  %v4023_v19 = vmul.f32 %v10440_v6, %v10440_v6  ;;  %v3803_v30 = vpop.f32.mrb[10].mxu0 }
 0x51e   :  { %v10448_v38 = vadd.f32 %v3975_v62, %v3613_v11  ;;  %v3977_v12 = vpop.f32.mrb[9].mxu1  ;;  %v10450_v14 = vadd.f32 %v3803_v30, %v3618_v22  ;;  %v3805_v17 = vpop.f32.mrb[11].mxu0 }
 0x51f   :  { %v10452_v52 = vadd.f32 %v3977_v12, %v3613_v11  ;;  %v4038_v49 = vadd.f32 %v4023_v19, %v4022_v7  ;;  %v10457_v34 = vadd.f32 %v3805_v17, %v3618_v22 }
 0x520   :  { %v3999_v16 = vadd.f32 %v10448_v38, %v3998_v56  ;;  %v4024_v57 = vmul.f32 %v10448_v38, %v10448_v38  ;;  %v4026_v13 = vmul.f32 %v10450_v14, %v10450_v14 }
 0x521   :  { %v4025_v37 = vmul.f32 %v10452_v52, %v10452_v52  ;;  %v3981_v27 = vpop.f32.mrb[10].mxu1  ;;  %v4003_v46 = vadd.f32 %v10457_v34, %v10450_v14  ;;  %v4027_v25 = vmul.f32 %v10457_v34, %v10457_v34  ;;  %v3809_v4 = vpop.f32.mrb[12].mxu0 }
 0x522   :  { %v10467_v10 = vadd.f32 %v3981_v27, %v3618_v22  ;;  %v3983_v63 = vpop.f32.mrb[11].mxu1  ;;  %v4000_v41 = vadd.f32 %v10452_v52, %v3999_v16  ;;  %v10470_v42 = vadd.f32 %v3809_v4, %v3623_v28  ;;  %v3811_v40 = vpop.f32.mrb[13].mxu0  ;;  %v4039_v54 = vadd.f32 %v4038_v49, %v4024_v57  ;;  %v10523_v57 = vld [vmem:[%s12952_s7] sm:$0xff] }
 0x523   :  { %v10472_v33 = vadd.f32 %v3983_v63, %v3618_v22  ;;  %v4043_v47 = vadd.f32 %v4027_v25, %v4026_v13  ;;  %v10477_v21 = vadd.f32 %v3811_v40, %v3623_v28  ;;  %v13169_v16 = vmov 1   ;;  %v10535_v13 = vld [vmem:[%s12952_s7 + $0x10] sm:$0xff] }
 0x524   :  { %v4004_v8 = vadd.f32 %v10467_v10, %v4003_v46  ;;  %v4028_v61 = vmul.f32 %v10467_v10, %v10467_v10  ;;  %4001 = vadd.xlane.f32.xlu1 %v4000_v41  ;;  %v4030_v18 = vmul.f32 %v10470_v42, %v10470_v42  ;;  %v4040_v60 = vadd.f32 %v4039_v54, %v4025_v37 }
 0x525   :  { %v4029_v9 = vmul.f32 %v10472_v33, %v10472_v33  ;;  %v3987_v48 = vpop.f32.mrb[12].mxu1  ;;  %v4008_v20 = vadd.f32 %v10477_v21, %v10470_v42  ;;  %v4031_v3 = vmul.f32 %v10477_v21, %v10477_v21  ;;  %v3815_v36 = vpop.f32.mrb[14].mxu0  ;;  %8136 = vset.pattern.permute.xlu1 %v13169_v16  ;;  %8135 = vset.pattern.permute.xlu0 %v13169_v16 }
 0x526   :  { %v10487_v53 = vadd.f32 %v3987_v48, %v3623_v28  ;;  %v3989_v32 = vpop.f32.mrb[13].mxu1  ;;  %v10489_v29 = vadd.f32 %v3815_v36, %v3628_v43  ;;  %v3817_v5 = vpop.f32.mrb[15].mxu0  ;;  %4041 = vadd.xlane.f32.xlu0 %v4040_v60  ;;  %v4044_v15 = vadd.f32 %v4043_v47, %v4028_v61  ;;  %v4005_v26 = vadd.f32 %v10472_v33, %v4004_v8 }
 0x527   :  { %v4048_v50 = vadd.f32 %v4031_v3, %v4030_v18  ;;  %v10491_v51 = vadd.f32 %v3817_v5, %v3628_v43  ;;  %v10493_v23 = vadd.f32 %v3989_v32, %v3623_v28  ;;  %v10529_v28 = vld [vmem:[%s12952_s7 + $0x8] sm:$0xff] }
 0x528   :  { %v4034_v0 = vmul.f32 %v10489_v29, %v10489_v29  ;;  %v4009_v44 = vadd.f32 %v10487_v53, %v4008_v20  ;;  %v4032_v31 = vmul.f32 %v10487_v53, %v10487_v53  ;;  %v4045_v2 = vadd.f32 %v4044_v15, %v4029_v9 }
 0x529   :  { %v3993_v24 = vpop.f32.mrb[14].mxu1  ;;  %v4013_v59 = vadd.f32 %v10491_v51, %v10489_v29  ;;  %v4035_v35 = vmul.f32 %v10491_v51, %v10491_v51  ;;  %v4033_v7 = vmul.f32 %v10493_v23, %v10493_v23 }
 0x52a   :  { %v10505_v39 = vadd.f32 %v3993_v24, %v3628_v43  ;;  %v3995_v45 = vpop.f32.mrb[15].mxu1  ;;  %4006 = vadd.xlane.f32.xlu0 %v4005_v26  ;;  %4046 = vadd.xlane.f32.xlu1 %v4045_v2  ;;  %v4010_v62 = vadd.f32 %v10493_v23, %v4009_v44  ;;  %v4049_v56 = vadd.f32 %v4048_v50, %v4032_v31 }
 0x52b   :  { %v10507_v11 = vadd.f32 %v3995_v45, %v3628_v43  ;;  %v4053_v55 = vadd.f32 %v4035_v35, %v4034_v0  ;;  %v10553_v0 = vld [vmem:[%s12951_s6] sm:$0xff]  ;;  %v10559_v35 = vld [vmem:[%s12951_s6 + $0x8] sm:$0xff] }
 0x52c   :  { %v4014_v58 = vadd.f32 %v10505_v39, %v4013_v59  ;;  %v4036_v22 = vmul.f32 %v10505_v39, %v10505_v39  ;;  %v4050_v17 = vadd.f32 %v4049_v56, %v4033_v7  ;;  %v10571_v56 = vld [vmem:[%s12951_s6 + $0x18] sm:$0xff] }
 0x52d   :  { %v4037_v19 = vmul.f32 %v10507_v11, %v10507_v11 }
 0x52e   :  { %v4015_v30 = vadd.f32 %v10507_v11, %v4014_v58  ;;  %v4054_v12 = vadd.f32 %v4053_v55, %v4036_v22  ;;  %4011 = vadd.xlane.f32.xlu0 %v4010_v62  ;;  %v10565_v58 = vld [vmem:[%s12951_s6 + $0x10] sm:$0xff]  ;;  %s11089_s6 = sld [smem:[#allocation4 + $0x8e]] }
 0x530   :  { %4016 = vadd.xlane.f32.xlu1 %v4015_v30  ;;  %v4055_v49 = vadd.f32 %v4054_v12, %v4037_v19  ;;  %v10577_v30 = vld [vmem:[%s12952_s7 + $0x18] sm:$0xff]  ;;  %s11104_s7 = sld [smem:[#allocation4 + $0xd]] }
 0x532   :  { %4051 = vadd.xlane.f32.xlu0 %v4050_v17 }
 0x534   :  { %4056 = vadd.xlane.f32.xlu1 %v4055_v49 }
 0x545   :  { %4144 = vperm.xlu1 %8136, %v10523_v57  }
 0x549   :  { %4149 = vperm.xlu1 %8136, %v10529_v28  }
 0x54d   :  { %4154 = vperm.xlu1 %8136, %v10535_v13  }
 0x5b1   :  { %v4002_v37 = vpop.xlane.xlu1 %4001 }
 0x5b2   :  { %v4018_v27 = vmul.f32 0.001953125, %v4002_v37 }
 0x5b3   :  { %v4042_v46 = vpop.xlane.xlu0 %4041 }
 0x5b4   :  { %v4062_v25 = vmul.f32 %v4018_v27, %v4018_v27  ;;  %v4058_v4 = vmul.f32 0.001953125, %v4042_v46  ;;  %v4086_v49 = vsub.f32 %v10438_v1, %v4018_v27  ;;  %v4087_v37 = vsub.f32 %v10440_v6, %v4018_v27 }
 0x5b5   :  { %v4088_v46 = vsub.f32 %v10448_v38, %v4018_v27 }
 0x5b6   :  { %v4066_v63 = vsub.f32 %v4058_v4, %v4062_v25  ;;  %v4089_v25 = vsub.f32 %v10452_v52, %v4018_v27  ;;  %v13612_v52 = vld [vmem:[#allocation7_spill] sm:$0xff] }
 0x5b7   :  { %v4007_v41 = vpop.xlane.xlu0 %4006  ;;  %v4047_v40 = vpop.xlane.xlu1 %4046 }
 0x5b8   :  { %v4070_v54 = vadd.f32 1e-05, %v4066_v63  ;;  %v10538_v47 = vmul.f32 0.001953125, %v4007_v41  ;;  %v4059_v61 = vmul.f32 0.001953125, %v4047_v40 }
 0x5ba   :  { %8162 = vrsqrt.f32 %v4070_v54  ;;  %v4063_v8 = vmul.f32 %v10538_v47, %v10538_v47  ;;  %v4091_v1 = vsub.f32 %v10457_v34, %v10538_v47  ;;  %v4092_v6 = vsub.f32 %v10467_v10, %v10538_v47  ;;  %v13615_v34 = vld [vmem:[#allocation10_spill] sm:$0xff] }
 0x5bb   :  { %v4012_v43 = vpop.xlane.xlu0 %4011  ;;  %v4093_v38 = vsub.f32 %v10472_v33, %v10538_v47 }
 0x5bc   :  { %v4067_v18 = vsub.f32 %v4059_v61, %v4063_v8  ;;  %v10542_v9 = vmul.f32 0.001953125, %v4012_v43 }
 0x5bd   :  { %v4017_v48 = vpop.xlane.xlu1 %4016 }
 0x5be   :  { %v10544_v60 = vmul.f32 0.001953125, %v4017_v48  ;;  %v4071_v20 = vadd.f32 1e-05, %v4067_v18  ;;  %v4064_v36 = vmul.f32 %v10542_v9, %v10542_v9 }
 0x5bf   :  { %v4052_v3 = vpop.xlane.xlu0 %4051 }
 0x5c0   :  { %8164 = vrsqrt.f32 %v4071_v20  ;;  %v4060_v32 = vmul.f32 0.001953125, %v4052_v3  ;;  %v4065_v15 = vmul.f32 %v10544_v60, %v10544_v60  ;;  %v4090_v20 = vsub.f32 %v10450_v14, %v10538_v47  ;;  %v13613_v3 = vld [vmem:[#allocation8_spill] sm:$0xff]  ;;  %v13614_v14 = vld [vmem:[#allocation9_spill] sm:$0xff] }
 0x5c1   :  { %v4057_v5 = vpop.xlane.xlu1 %4056  ;;  %v4095_v47 = vsub.f32 %v10477_v21, %v10542_v9 }
 0x5c2   :  { %v4061_v50 = vmul.f32 0.001953125, %v4057_v5  ;;  %v4068_v26 = vsub.f32 %v4060_v32, %v4064_v36  ;;  %v4094_v5 = vsub.f32 %v10470_v42, %v10542_v9 }
 0x5c4   :  { %v4069_v44 = vsub.f32 %v4061_v50, %v4065_v15  ;;  %v8163_v31 = vpop.eup %8162  ;;  %v4072_v24 = vadd.f32 1e-05, %v4068_v26 }
 0x5c5   :  { %v4082_v59 = vmul.f32 %v8163_v31, %v10553_v0  ;;  %v4145_v12 = vpop.permute.xlu1 %4144 }
 0x5c6   :  { %v4073_v2 = vadd.f32 1e-05, %v4069_v44  ;;  %8166 = vrsqrt.f32 %v4072_v24 }
 0x5c7   :  { %4104 = vperm.xlu0 %8135, %v4082_v59  }
 0x5c8   :  { %8168 = vrsqrt.f32 %v4073_v2 }
 0x5c9   :  { %v4150_v17 = vpop.permute.xlu1 %4149 }
 0x5ca   :  { %v8165_v45 = vpop.eup %8164 }
 0x5cb   :  { %v4083_v55 = vmul.f32 %v8165_v45, %v10559_v35 }
 0x5cd   :  { %4109 = vperm.xlu1 %8136, %v4083_v55   ;;  %v4155_v8 = vpop.permute.xlu1 %4154  ;;  %v4096_v55 = vsub.f32 %v10487_v53, %v10542_v9 }
 0x5d0   :  { %v8167_v22 = vpop.eup %8166 }
 0x5d1   :  { %v4084_v7 = vmul.f32 %v8167_v22, %v10565_v58 }
 0x5d2   :  { %v8169_v62 = vpop.eup %8168 }
 0x5d3   :  { %4114 = vperm.xlu1 %8136, %v4084_v7   ;;  %v4085_v19 = vmul.f32 %v8169_v62, %v10571_v56 }
 0x5d7   :  { %4119 = vperm.xlu1 %8136, %v4085_v19   ;;  %v4097_v19 = vsub.f32 %v10493_v23, %v10542_v9 }
 0x5db   :  { %4159 = vperm.xlu1 %8136, %v10577_v30  }
 0x646   :  { %v4105_v4 = vpop.permute.xlu0 %4104 }
 0x647   :  { %v4122_v63 = vmul.f32 %v4105_v4, %v4086_v49  ;;  %v4123_v41 = vmul.f32 %v4105_v4, %v4087_v37  ;;  %v4124_v40 = vmul.f32 %v4105_v4, %v4088_v46  ;;  %v4125_v54 = vmul.f32 %v4105_v4, %v4089_v25  ;;  %v13616_v49 = vld [vmem:[#allocation11_spill] sm:$0xff]  ;;  %v13617_v46 = vld [vmem:[#allocation12_spill] sm:$0xff] }
 0x649   :  { %v4162_v61 = vadd.f32 %v4145_v12, %v4122_v63  ;;  %v4163_v43 = vadd.f32 %v4145_v12, %v4123_v41  ;;  %v4164_v18 = vadd.f32 %v4145_v12, %v4124_v40  ;;  %v4165_v48 = vadd.f32 %v4145_v12, %v4125_v54  ;;  %v13618_v41 = vld [vmem:[#allocation15_spill] sm:$0xff] }
 0x64b   :  { %v10593_v27 = vadd.f32 %v4162_v61, %v13612_v52  ;;  %v10596_v36 = vadd.f32 %v4163_v43, %v13613_v3  ;;  %v10601_v15 = vadd.f32 %v13614_v14, %v4164_v18  ;;  %v10604_v50 = vadd.f32 %v13615_v34, %v4165_v48 }
 0x64c   :  { %v4110_v32 = vpop.permute.xlu1 %4109  ;;  %v4098_v3 = vsub.f32 %v10489_v29, %v10544_v60 }
 0x64d   :  { %v4126_v10 = vmul.f32 %v4110_v32, %v4090_v20  ;;  %v4127_v26 = vmul.f32 %v4110_v32, %v4091_v1  ;;  %v4128_v44 = vmul.f32 %v4110_v32, %v4092_v6  ;;  %v4129_v33 = vmul.f32 %v4110_v32, %v4093_v38 }
 0x64e   :  { %v4194_v31 = vadd.f32 %v10596_v36, %v10593_v27  ;;  %v4218_v24 = vmul.f32 %v10593_v27, %v10593_v27  ;;  %v4219_v42 = vmul.f32 %v10596_v36, %v10596_v36  ;;  %v4220_v21 = vmul.f32 %v10601_v15, %v10601_v15 }
 0x64f   :  { %v4166_v2 = vadd.f32 %v4150_v17, %v4126_v10  ;;  %v4167_v59 = vadd.f32 %v4150_v17, %v4127_v26  ;;  %v4168_v45 = vadd.f32 %v4150_v17, %v4128_v44  ;;  %v4169_v62 = vadd.f32 %v4150_v17, %v4129_v33  ;;  %v13619_v17 = vld [vmem:[#allocation16_spill] sm:$0xff] }
 0x650   :  { %v4195_v22 = vadd.f32 %v4194_v31, %v10601_v15  ;;  %v4234_v7 = vadd.f32 %v4219_v42, %v4218_v24  ;;  %v4221_v12 = vmul.f32 %v10604_v50, %v10604_v50  ;;  %v4099_v32 = vsub.f32 %v10491_v51, %v10544_v60  ;;  %v13620_v31 = vld [vmem:[#allocation13_spill] sm:$0xff]  ;;  %v13621_v42 = vld [vmem:[#allocation14_spill] sm:$0xff] }
 0x651   :  { %v10624_v37 = vadd.f32 %v4166_v2, %v13616_v49  ;;  %v10627_v25 = vadd.f32 %v4167_v59, %v13617_v46  ;;  %v10631_v40 = vadd.f32 %v13618_v41, %v4168_v45  ;;  %v10634_v54 = vadd.f32 %v13619_v17, %v4169_v62  ;;  %v13623_v46 = vld [vmem:[#allocation22_spill] sm:$0xff] }
 0x652   :  { %v4115_v53 = vpop.permute.xlu1 %4114  ;;  %v4196_v4 = vadd.f32 %v4195_v22, %v10604_v50  ;;  %v4235_v63 = vadd.f32 %v4234_v7, %v4220_v21  ;;  %v4100_v26 = vsub.f32 %v10505_v39, %v10544_v60  ;;  %v4101_v44 = vsub.f32 %v10507_v11, %v10544_v60  ;;  %v13622_v39 = vld [vmem:[#allocation21_spill] sm:$0xff] }
 0x653   :  { %v4130_v23 = vmul.f32 %v4115_v53, %v4094_v5  ;;  %v4131_v9 = vmul.f32 %v4115_v53, %v4095_v47  ;;  %v4132_v61 = vmul.f32 %v4115_v53, %v4096_v55  ;;  %v4133_v43 = vmul.f32 %v4115_v53, %v4097_v19 }
 0x654   :  { %4197 = vadd.xlane.f32.xlu1 %v4196_v4  ;;  %v4236_v18 = vadd.f32 %v4235_v63, %v4221_v12  ;;  %v4199_v48 = vadd.f32 %v10627_v25, %v10624_v37  ;;  %v4222_v20 = vmul.f32 %v10624_v37, %v10624_v37  ;;  %v4223_v1 = vmul.f32 %v10627_v25, %v10627_v25 }
 0x655   :  { %v4170_v6 = vadd.f32 %v4155_v8, %v4130_v23  ;;  %v4171_v38 = vadd.f32 %v4155_v8, %v4131_v9  ;;  %v4172_v52 = vadd.f32 %v4155_v8, %v4132_v61  ;;  %v4224_v34 = vmul.f32 %v10631_v40, %v10631_v40  ;;  %v13624_v23 = vld [vmem:[#allocation17_spill] sm:$0xff]  ;;  %v13625_v61 = vld [vmem:[#allocation18_spill] sm:$0xff] }
 0x656   :  { %4237 = vadd.xlane.f32.xlu0 %v4236_v18  ;;  %v4120_v5 = vpop.permute.xlu1 %4119  ;;  %v4200_v14 = vadd.f32 %v4199_v48, %v10631_v40  ;;  %v4239_v10 = vadd.f32 %v4223_v1, %v4222_v20  ;;  %v4225_v29 = vmul.f32 %v10634_v54, %v10634_v54  ;;  %v4173_v33 = vadd.f32 %v4155_v8, %v4133_v43  ;;  %v13626_v18 = vld [vmem:[#allocation19_spill] sm:$0xff] }
 0x657   :  { %v10657_v24 = vadd.f32 %v4170_v6, %v13620_v31  ;;  %v10660_v2 = vadd.f32 %v4171_v38, %v13621_v42  ;;  %v4134_v59 = vmul.f32 %v4120_v5, %v4098_v3  ;;  %v4135_v45 = vmul.f32 %v4120_v5, %v4099_v32  ;;  %v13627_v32 = vld [vmem:[#allocation20_spill] sm:$0xff] }
 0x658   :  { %v4201_v47 = vadd.f32 %v4200_v14, %v10634_v54  ;;  %v4240_v51 = vadd.f32 %v4239_v10, %v4224_v34  ;;  %v4136_v55 = vmul.f32 %v4120_v5, %v4100_v26  ;;  %v10663_v22 = vadd.f32 %v13622_v39, %v4172_v52 }
 0x659   :  { %v4204_v8 = vadd.f32 %v10660_v2, %v10657_v24  ;;  %v4226_v21 = vmul.f32 %v10657_v24, %v10657_v24  ;;  %v4227_v7 = vmul.f32 %v10660_v2, %v10660_v2  ;;  %v4137_v62 = vmul.f32 %v4120_v5, %v4101_v44 }
 0x65a   :  { %4202 = vadd.xlane.f32.xlu0 %v4201_v47  ;;  %v4160_v11 = vpop.permute.xlu1 %4159  ;;  %v4241_v60 = vadd.f32 %v4240_v51, %v4225_v29  ;;  %v10672_v53 = vadd.f32 %v13623_v46, %v4173_v33  ;;  %v4228_v63 = vmul.f32 %v10663_v22, %v10663_v22  ;;  %v8254_v51 = vmov 2  }
 0x65b   :  { %v4174_v19 = vadd.f32 %v4160_v11, %v4134_v59  ;;  %v4175_v12 = vadd.f32 %v4160_v11, %v4135_v45  ;;  %v4176_v49 = vadd.f32 %v4160_v11, %v4136_v55  ;;  %v4205_v4 = vadd.f32 %v4204_v8, %v10663_v22  ;;  %8138 = vset.pattern.permute.xlu1 %v8254_v51 }
 0x65c   :  { %4242 = vadd.xlane.f32.xlu1 %v4241_v60  ;;  %v4244_v41 = vadd.f32 %v4227_v7, %v4226_v21  ;;  %v4177_v17 = vadd.f32 %v4160_v11, %v4137_v62  ;;  %v4229_v3 = vmul.f32 %v10672_v53, %v10672_v53  ;;  %8137 = vset.pattern.permute.xlu0 %v8254_v51 }
 0x65d   :  { %v10678_v9 = vadd.f32 %v4174_v19, %v13624_v23  ;;  %v10681_v43 = vadd.f32 %v4175_v12, %v13625_v61  ;;  %v10684_v48 = vadd.f32 %v13626_v18, %v4176_v49  ;;  %v4206_v20 = vadd.f32 %v4205_v4, %v10672_v53 }
 0x65e   :  { %v4245_v1 = vadd.f32 %v4244_v41, %v4228_v63  ;;  %v10696_v5 = vadd.f32 %v13627_v32, %v4177_v17 }
 0x65f   :  { %v4209_v6 = vadd.f32 %v10681_v43, %v10678_v9  ;;  %v4230_v38 = vmul.f32 %v10678_v9, %v10678_v9  ;;  %v4231_v52 = vmul.f32 %v10681_v43, %v10681_v43  ;;  %4207 = vadd.xlane.f32.xlu0 %v4206_v20  ;;  %v4232_v34 = vmul.f32 %v10684_v48, %v10684_v48 }
 0x660   :  { %v4246_v26 = vadd.f32 %v4245_v1, %v4229_v3  ;;  %v4233_v33 = vmul.f32 %v10696_v5, %v10696_v5 }
 0x661   :  { %v4210_v14 = vadd.f32 %v4209_v6, %v10684_v48  ;;  %v4249_v10 = vadd.f32 %v4231_v52, %v4230_v38 }
 0x663   :  { %v4211_v44 = vadd.f32 %v4210_v14, %v10696_v5  ;;  %v4250_v29 = vadd.f32 %v4249_v10, %v4232_v34  ;;  %4247 = vadd.xlane.f32.xlu0 %v4246_v26  ;;  %v13628_v10 = vmov 0  }
 0x665   :  { %4212 = vadd.xlane.f32.xlu1 %v4211_v44  ;;  %v4251_v47 = vadd.f32 %v4250_v29, %v4233_v33 }
 0x669   :  { %4252 = vadd.xlane.f32.xlu1 %v4251_v47 }
 0x67a   :  { %4331 = vperm.xlu1 %8138, %v10523_v57  }
 0x67e   :  { %4335 = vperm.xlu1 %8138, %v10529_v28  }
 0x682   :  { %4339 = vperm.xlu1 %8138, %v10535_v13  }
 0x6e1   :  { %v4198_v31 = vpop.xlane.xlu1 %4197 }
 0x6e2   :  { %v4214_v42 = vmul.f32 0.001953125, %v4198_v31 }
 0x6e3   :  { %v4238_v59 = vpop.xlane.xlu0 %4237 }
 0x6e4   :  { %v4254_v45 = vmul.f32 0.001953125, %v4238_v59  ;;  %v4258_v55 = vmul.f32 %v4214_v42, %v4214_v42  ;;  %v4279_v29 = vsub.f32 %v10596_v36, %v4214_v42  ;;  %v4280_v33 = vsub.f32 %v10601_v15, %v4214_v42 }
 0x6e5   :  { %v4281_v47 = vsub.f32 %v10604_v50, %v4214_v42 }
 0x6e6   :  { %v4262_v39 = vsub.f32 %v4254_v45, %v4258_v55 }
 0x6e7   :  { %v4203_v11 = vpop.xlane.xlu0 %4202 }
 0x6e8   :  { %v4266_v60 = vadd.f32 1e-05, %v4262_v39  ;;  %v10707_v8 = vmul.f32 0.001953125, %v4203_v11 }
 0x6e9   :  { %v4243_v21 = vpop.xlane.xlu1 %4242 }
 0x6ea   :  { %8170 = vrsqrt.f32 %v4266_v60  ;;  %v4259_v7 = vmul.f32 %v10707_v8, %v10707_v8  ;;  %v4255_v57 = vmul.f32 0.001953125, %v4243_v21  ;;  %v4282_v39 = vsub.f32 %v10624_v37, %v10707_v8 }
 0x6eb   :  { %v4284_v36 = vsub.f32 %v10631_v40, %v10707_v8  ;;  %v4285_v15 = vsub.f32 %v10634_v54, %v10707_v8 }
 0x6ec   :  { %v4263_v62 = vsub.f32 %v4255_v57, %v4259_v7  ;;  %v4208_v28 = vpop.xlane.xlu0 %4207 }
 0x6ed   :  { %v10711_v13 = vmul.f32 0.001953125, %v4208_v28 }
 0x6ee   :  { %v4267_v19 = vadd.f32 1e-05, %v4263_v62 }
 0x6ef   :  { %v4260_v49 = vmul.f32 %v10711_v13, %v10711_v13 }
 0x6f0   :  { %8172 = vrsqrt.f32 %v4267_v19  ;;  %v4248_v12 = vpop.xlane.xlu0 %4247 }
 0x6f1   :  { %v4256_v46 = vmul.f32 0.001953125, %v4248_v12  ;;  %v8255_v12 = vmov 1966171168  }
 0x6f2   :  { %v4213_v4 = vpop.xlane.xlu1 %4212 }
 0x6f3   :  { %v10715_v63 = vmul.f32 0.001953125, %v4213_v4  ;;  %v4264_v17 = vsub.f32 %v4256_v46, %v4260_v49  ;;  %v4925_v49 = vunpack.c.l.s4 %v8255_v12  ;;  %v4286_v46 = vsub.f32 %v10657_v24, %v10711_v13 }
 0x6f4   :  { %v8171_v41 = vpop.eup %8170  ;;  %v4287_v4 = vsub.f32 %v10660_v2, %v10711_v13 }
 0x6f5   :  { %v4274_v23 = vmul.f32 %v8171_v41, %v10553_v0  ;;  %v4268_v61 = vadd.f32 1e-05, %v4264_v17  ;;  %v4261_v20 = vmul.f32 %v10715_v63, %v10715_v63  ;;  %v4288_v41 = vsub.f32 %v10663_v22, %v10711_v13 }
 0x6f6   :  { %v4253_v18 = vpop.xlane.xlu1 %4252  ;;  %v4289_v17 = vsub.f32 %v10672_v53, %v10711_v13  ;;  %v4290_v2 = vsub.f32 %v10678_v9, %v10715_v63  ;;  %v4291_v22 = vsub.f32 %v10681_v43, %v10715_v63  ;;  %v4292_v53 = vsub.f32 %v10684_v48, %v10715_v63 }
 0x6f7   :  { %4296 = vperm.xlu0 %8137, %v4274_v23   ;;  %v4257_v1 = vmul.f32 0.001953125, %v4253_v18  ;;  %8174 = vrsqrt.f32 %v4268_v61 }
 0x6f9   :  { %v4265_v6 = vsub.f32 %v4257_v1, %v4261_v20  ;;  %v4926_v20 = vunpack.c.0.s8 %v4925_v49 }
 0x6fa   :  { %v8173_v38 = vpop.eup %8172  ;;  %v4332_v26 = vpop.permute.xlu1 %4331 }
 0x6fb   :  { %v4269_v52 = vadd.f32 1e-05, %v4265_v6  ;;  %v4275_v3 = vmul.f32 %v8173_v38, %v10559_v35  ;;  %8140 = vset.pattern.permute.xlu0 %v13169_v16  ;;  %v4278_v35 = vsub.f32 %v10593_v27, %v4214_v42  ;;  %v4283_v27 = vsub.f32 %v10627_v25, %v10707_v8 }
 0x6fd   :  { %8176 = vrsqrt.f32 %v4269_v52  ;;  %4301 = vperm.xlu1 %8138, %v4275_v3  }
 0x6fe   :  { %v4336_v44 = vpop.permute.xlu1 %4335 }
 0x701   :  { %v8175_v32 = vpop.eup %8174 }
 0x702   :  { %v4276_v0 = vmul.f32 %v8175_v32, %v10565_v58  ;;  %v4340_v45 = vpop.permute.xlu1 %4339  ;;  %v4293_v32 = vsub.f32 %v10696_v5, %v10715_v63 }
 0x704   :  { %4306 = vperm.xlu1 %8138, %v4276_v0  }
 0x707   :  { %v8177_v14 = vpop.eup %8176 }
 0x708   :  { %v4277_v34 = vmul.f32 %v8177_v14, %v10571_v56  ;;  %v13631_v14 = vld [vmem:[#allocation25_spill] sm:$0xff] }
 0x709   :  { %v10795_v48 = vsub.s32 %v4926_v20, %v13631_v14 }
 0x70a   :  { %4311 = vperm.xlu1 %8138, %v4277_v34  }
 0x70e   :  { %4343 = vperm.xlu1 %8138, %v10577_v30  }
 0x712   :  { %8139 = vset.pattern.permute.xlu1 %v13628_v10 }
 0x776   :  { %v4297_v58 = vpop.permute.xlu0 %4296 }
 0x777   :  { %v4314_v51 = vmul.f32 %v4297_v58, %v4278_v35  ;;  %v4315_v31 = vmul.f32 %v4297_v58, %v4279_v29  ;;  %v4316_v59 = vmul.f32 %v4297_v58, %v4280_v33  ;;  %v4317_v56 = vmul.f32 %v4297_v58, %v4281_v47 }
 0x779   :  { %v10730_v55 = vadd.f32 %v4332_v26, %v4314_v51  ;;  %v10732_v30 = vadd.f32 %v4332_v26, %v4315_v31  ;;  %v10742_v50 = vadd.f32 %v4332_v26, %v4316_v59  ;;  %v10744_v42 = vadd.f32 %v4332_v26, %v4317_v56 }
 0x77b   :  { %v4395_v11 = vmax.f32 %v10730_v55, %v10732_v30  ;;  %v4362_v60 = vadd.f32 %v10732_v30, %v10730_v55  ;;  %v4407_v8 = vmax.f32 %v10742_v50, %v10744_v42  ;;  %v4379_v19 = vadd.f32 %v10744_v42, %v10742_v50 }
 0x77c   :  { %v4302_v37 = vpop.permute.xlu1 %4301 }
 0x77d   :  { %v4318_v21 = vmul.f32 %v4302_v37, %v4282_v39  ;;  %v4319_v7 = vmul.f32 %v4302_v37, %v4283_v27  ;;  %v4320_v25 = vmul.f32 %v4302_v37, %v4284_v36  ;;  %v4321_v57 = vmul.f32 %v4302_v37, %v4285_v15  ;;  %4396 = vmax.xlane.f32.xlu1 %v4395_v11 }
 0x77e   :  { %4363 = vadd.xlane.f32.xlu0 %v4362_v60 }
 0x77f   :  { %v10750_v40 = vadd.f32 %v4336_v44, %v4318_v21  ;;  %v10752_v54 = vadd.f32 %v4336_v44, %v4319_v7  ;;  %v10756_v62 = vadd.f32 %v4336_v44, %v4320_v25  ;;  %v10758_v28 = vadd.f32 %v4336_v44, %v4321_v57 }
 0x781   :  { %4408 = vmax.xlane.f32.xlu1 %v4407_v8  ;;  %v4365_v23 = vadd.f32 %v10752_v54, %v10750_v40  ;;  %v4382_v18 = vadd.f32 %v10758_v28, %v10756_v62  ;;  %v4877_v0 = vadd.f32 %v10750_v40, %v10730_v55  ;;  %v4886_v9 = vadd.f32 %v10752_v54, %v10732_v30 }
 0x782   :  { %4380 = vadd.xlane.f32.xlu0 %v4379_v19  ;;  %v4398_v43 = vmax.f32 %v10750_v40, %v10752_v54  ;;  %v4895_v34 = vadd.f32 %v10756_v62, %v10742_v50  ;;  %v4904_v26 = vadd.f32 %v10758_v28, %v10744_v42  ;;  %v4954_v35 = vmax.f32 %v10730_v55, %v10750_v40 }
 0x783   :  { %v4307_v61 = vpop.permute.xlu1 %4306  ;;  %v4963_v29 = vmax.f32 %v10732_v30, %v10752_v54  ;;  %v4972_v33 = vmax.f32 %v10742_v50, %v10756_v62  ;;  %v4981_v47 = vmax.f32 %v10744_v42, %v10758_v28  ;;  %v4410_v58 = vmax.f32 %v10756_v62, %v10758_v28 }
 0x784   :  { %v4322_v1 = vmul.f32 %v4307_v61, %v4286_v46  ;;  %v4323_v6 = vmul.f32 %v4307_v61, %v4287_v4  ;;  %v4324_v24 = vmul.f32 %v4307_v61, %v4288_v41  ;;  %v4325_v38 = vmul.f32 %v4307_v61, %v4289_v17 }
 0x785   :  { %4366 = vadd.xlane.f32.xlu1 %v4365_v23 }
 0x786   :  { %4383 = vadd.xlane.f32.xlu0 %v4382_v18  ;;  %v10780_v13 = vadd.f32 %v4340_v45, %v4322_v1  ;;  %v10782_v52 = vadd.f32 %v4340_v45, %v4323_v6  ;;  %v10784_v3 = vadd.f32 %v4340_v45, %v4324_v24  ;;  %v10801_v44 = vadd.f32 %v4340_v45, %v4325_v38 }
 0x788   :  { %13629 = vst [vmem:[#allocation63_spill] sm:$0xff] %v10782_v52  ;;  %13630 = vst [vmem:[#allocation67_spill] sm:$0xff] %v10784_v3  ;;  %v4368_v63 = vadd.f32 %v10782_v52, %v10780_v13  ;;  %v4878_v51 = vadd.f32 %v4877_v0, %v10780_v13  ;;  %v4887_v31 = vadd.f32 %v4886_v9, %v10782_v52 }
 0x789   :  { %13632 = vst [vmem:[#allocation39_spill] sm:$0xff] %v10801_v44  ;;  %v4312_v5 = vpop.permute.xlu1 %4311  ;;  %v4896_v59 = vadd.f32 %v4895_v34, %v10784_v3  ;;  %v4905_v36 = vadd.f32 %v4904_v26, %v10801_v44  ;;  %v4955_v15 = vmax.f32 %v4954_v35, %v10780_v13  ;;  %v4964_v11 = vmax.f32 %v4963_v29, %v10782_v52 }
 0x78a   :  { %4399 = vmax.xlane.f32.xlu0 %v4398_v43  ;;  %4369 = vadd.xlane.f32.xlu1 %v4368_v63  ;;  %v4326_v56 = vmul.f32 %v4312_v5, %v4290_v2  ;;  %v4327_v45 = vmul.f32 %v4312_v5, %v4291_v22  ;;  %v4328_v39 = vmul.f32 %v4312_v5, %v4292_v53 }
 0x78b   :  { %v4329_v27 = vmul.f32 %v4312_v5, %v4293_v32  ;;  %v4385_v37 = vadd.f32 %v10801_v44, %v10784_v3  ;;  %v4973_v8 = vmax.f32 %v4972_v33, %v10784_v3  ;;  %v4982_v19 = vmax.f32 %v4981_v47, %v10801_v44 }
 0x78c   :  { %v4401_v12 = vmax.f32 %v10780_v13, %v10782_v52  ;;  %v4413_v49 = vmax.f32 %v10784_v3, %v10801_v44 }
 0x78d   :  { %v4344_v60 = vpop.permute.xlu1 %4343 }
 0x78e   :  { %4411 = vmax.xlane.f32.xlu0 %v4410_v58  ;;  %v10823_v21 = vadd.f32 %v4344_v60, %v4326_v56  ;;  %v10825_v7 = vadd.f32 %v4344_v60, %v4327_v45  ;;  %v10827_v25 = vadd.f32 %v4344_v60, %v4328_v39  ;;  %v10829_v57 = vadd.f32 %v4344_v60, %v4329_v27 }
 0x78f   :  { %4386 = vadd.xlane.f32.xlu1 %v4385_v37 }
 0x790   :  { %13633 = vst [vmem:[#allocation64_spill] sm:$0xff] %v10827_v25  ;;  %13634 = vst [vmem:[#allocation65_spill] sm:$0xff] %v10829_v57  ;;  %v4879_v46 = vadd.f32 %v4878_v51, %v10823_v21  ;;  %v4888_v4 = vadd.f32 %v4887_v31, %v10825_v7  ;;  %v4897_v41 = vadd.f32 %v4896_v59, %v10827_v25 }
 0x791   :  { %v4906_v17 = vadd.f32 %v4905_v36, %v10829_v57  ;;  %v4956_v23 = vmax.f32 %v4955_v15, %v10823_v21  ;;  %v4965_v61 = vmax.f32 %v4964_v11, %v10825_v7  ;;  %v4974_v18 = vmax.f32 %v4973_v8, %v10827_v25 }
 0x792   :  { %v4983_v20 = vmax.f32 %v4982_v19, %v10829_v57  ;;  %v4880_v1 = vrot.slane %v4879_v46, 4  ;;  %v4889_v6 = vrot.slane %v4888_v4, 4  ;;  %v4898_v24 = vrot.slane %v4897_v41, 4 }
 0x793   :  { %v4907_v38 = vrot.slane %v4906_v17, 4  ;;  %v4957_v2 = vrot.slane %v4956_v23, 4  ;;  %v4966_v22 = vrot.slane %v4965_v61, 4  ;;  %v4975_v53 = vrot.slane %v4974_v18, 4  ;;  %4402 = vmax.xlane.f32.xlu1 %v4401_v12 }
 0x794   :  { %v4984_v32 = vrot.slane %v4983_v20, 4  ;;  %v4881_v0 = vadd.f32 %v4880_v1, %v4879_v46  ;;  %v4890_v9 = vadd.f32 %v4889_v6, %v4888_v4  ;;  %v4899_v43 = vadd.f32 %v4898_v24, %v4897_v41 }
 0x795   :  { %v4908_v14 = vadd.f32 %v4907_v38, %v4906_v17  ;;  %v4958_v34 = vmax.f32 %v4956_v23, %v4957_v2  ;;  %v4967_v26 = vmax.f32 %v4965_v61, %v4966_v22  ;;  %v4976_v5 = vmax.f32 %v4974_v18, %v4975_v53 }
 0x796   :  { %v4985_v63 = vmax.f32 %v4983_v20, %v4984_v32  ;;  %v4882_v35 = vrot.slane %v4881_v0, 2  ;;  %v4891_v29 = vrot.slane %v4890_v9, 2  ;;  %v4900_v33 = vrot.slane %v4899_v43, 2 }
 0x797   :  { %v4909_v47 = vrot.slane %v4908_v14, 2  ;;  %v4959_v58 = vrot.slane %v4958_v34, 2  ;;  %v4968_v51 = vrot.slane %v4967_v26, 2  ;;  %v4977_v31 = vrot.slane %v4976_v5, 2  ;;  %4414 = vmax.xlane.f32.xlu1 %v4413_v49 }
 0x798   :  { %v4986_v59 = vrot.slane %v4985_v63, 2  ;;  %v4883_v56 = vadd.f32 %v4882_v35, %v4881_v0  ;;  %v4892_v45 = vadd.f32 %v4891_v29, %v4890_v9  ;;  %v4901_v39 = vadd.f32 %v4900_v33, %v4899_v43 }
 0x799   :  { %v4910_v27 = vadd.f32 %v4909_v47, %v4908_v14  ;;  %v4960_v36 = vmax.f32 %v4958_v34, %v4959_v58  ;;  %v4969_v15 = vmax.f32 %v4967_v26, %v4968_v51  ;;  %v4978_v11 = vmax.f32 %v4976_v5, %v4977_v31 }
 0x79a   :  { %v4987_v60 = vmax.f32 %v4985_v63, %v4986_v59  ;;  %v4884_v37 = vrot.slane %v4883_v56, 1  ;;  %v4893_v8 = vrot.slane %v4892_v45, 1  ;;  %v4902_v19 = vrot.slane %v4901_v39, 1 }
 0x79b   :  { %v4911_v12 = vrot.slane %v4910_v27, 1  ;;  %v4961_v46 = vrot.slane %v4960_v36, 1  ;;  %v4970_v4 = vrot.slane %v4969_v15, 1  ;;  %v4979_v41 = vrot.slane %v4978_v11, 1 }
 0x79c   :  { %v4988_v17 = vrot.slane %v4987_v60, 1  ;;  %v4885_v23 = vadd.f32 %v4884_v37, %v4883_v56  ;;  %v4894_v61 = vadd.f32 %v4893_v8, %v4892_v45  ;;  %v4903_v18 = vadd.f32 %v4902_v19, %v4901_v39  ;;  %v5573_v8 = vld [vmem:[#allocation2 + $0x9] ss:$8 sm:$0x10] }
 0x79d   :  { %v4912_v49 = vadd.f32 %v4911_v12, %v4910_v27  ;;  %v4962_v20 = vmax.f32 %v4960_v36, %v4961_v46  ;;  %v4971_v1 = vmax.f32 %v4969_v15, %v4970_v4  ;;  %v4980_v6 = vmax.f32 %v4978_v11, %v4979_v41  ;;  %v8216_v11 = vld [vmem:[#allocation2] sm:$0xff] }
 0x79e   :  { %v4989_v24 = vmax.f32 %v4987_v60, %v4988_v17  ;;  %v4914_v38 = vmul.f32 0.03125, %v4885_v23  ;;  %v4915_v2 = vmul.f32 0.03125, %v4894_v61  ;;  %v4916_v22 = vmul.f32 0.03125, %v4903_v18  ;;  %6778 = vmatprep.mubr.msk.f32.mxu0 %vm8262_vm10, %v8216_v11 }
 0x79f   :  { %v4917_v53 = vmul.f32 0.03125, %v4912_v49  ;;  %v4994_v32 = vcombine.low %v4962_v20, %v4971_v1  ;;  %v4371_v9 = vadd.f32 %v10825_v7, %v10823_v21  ;;  %v4388_v29 = vadd.f32 %v10829_v57, %v10827_v25 }
 0x7a0   :  { %v4995_v0 = vcombine.low %v4980_v6, %v4989_v24  ;;  %v4922_v43 = vcombine.low %v4914_v38, %v4915_v2  ;;  %v13635_v33 = vlaneseq  ;;  %v4404_v31 = vmax.f32 %v10823_v21, %v10825_v7 }
 0x7a1   :  { %v4923_v14 = vcombine.low %v4916_v22, %v4917_v53  ;;  %v5002_v34 = vrot.slane %v4994_v32, %v10795_v48  ;;  %4372 = vadd.xlane.f32.xlu0 %v4371_v9  ;;  %v8256_v59 = vmov 0.0|0.0   ;;  %v4416_v56 = vmax.f32 %v10827_v25, %v10829_v57  ;;  %v5560_v9 = vld [vmem:[#allocation2 + $0x8] ss:$8 sm:$0x10] }
 0x7a2   :  { %v5009_v26 = vrot.slane %v4995_v0, %v10795_v48  ;;  %v4930_v5 = vrot.slane %v4922_v43, %v10795_v48  ;;  %vm4949_vm8 = vcmp.lt.s32.totalorder %v13635_v33, 512  ;;  %7205 = vmatprep.subr.bf16.mxu0 %v8256_v59  ;;  %vm5080_vm10 = vcmask 400384  }
 0x7a3   :  { %v4937_v63 = vrot.slane %v4923_v14, %v10795_v48 }
 0x7a4   :  { %v5010_v35 = vcombine.low %v5002_v34, %v5009_v26 }
 0x7a5   :  { %v4938_v47 = vcombine.low %v4930_v5, %v4937_v63  ;;  %4389 = vadd.xlane.f32.xlu0 %v4388_v29 }
 0x7a6   :  { %v5017_v58 = vrot.slane %v5010_v35, %v10795_v48 }
 0x7a7   :  { %v4945_v51 = vrot.slane %v4938_v47, %v10795_v48 }
 0x7a8   :  { %5020 = vst.msk [vmem:[#allocation2 + $0x9] ss:$8 sm:$0xf] %vm4949_vm8, %v5017_v58 }
 0x7a9   :  { %4952 = vst.msk [vmem:[#allocation2 + $0x8] ss:$8 sm:$0xf] %vm4949_vm8, %v4945_v51  ;;  %4405 = vmax.xlane.f32.xlu0 %v4404_v31  ;;  %vm5058_vm8 = vcmask 408576  }
 0x7ad   :  { %4417 = vmax.xlane.f32.xlu0 %v4416_v56 }
 0x7af   :  { %v5039_v45 = vld [vmem:[#allocation2 + $0x1] ss:$8 sm:$0xf] }
 0x7b0   :  { %v5040_v39 = vld [vmem:[#allocation2 + $0x1] ss:$8 sm:$0x10]  ;;  %v5023_v48 = vld [vmem:[#allocation2] ss:$8 sm:$0xf] }
 0x7b1   :  { %v10861_v27 = vor.u32 %v5040_v39, %v5039_v45  ;;  %v5024_v36 = vld [vmem:[#allocation2] ss:$8 sm:$0x10]  ;;  %v5572_v19 = vld [vmem:[#allocation2 + $0x9] ss:$8 sm:$0xf] }
 0x7b2   :  { %v10867_v15 = vor.u32 %v5024_v36, %v5023_v48  ;;  %v10917_v4 = vor.u32 %v5573_v8, %v5572_v19  ;;  %v5559_v14 = vld [vmem:[#allocation2 + $0x8] ss:$8 sm:$0xf] }
 0x7b3   :  { %5043 = vrot.lane.b32.xlu1 %v10861_v27, %s8257_s2  ;;  %v10938_v26 = vor.u32 %v5560_v9, %v5559_v14  ;;  %v13651_v14 = vld [vmem:[#allocation31_spill] sm:$0xff] }
 0x7b7   :  { %5065 = vrot.lane.b32.xlu1 %v10861_v27, %s8258_s4 }
 0x7bb   :  { %5087 = vrot.lane.b32.xlu1 %v10861_v27, %s8259_s29 }
 0x7bf   :  { %5109 = vrot.lane.b32.xlu1 %v10861_v27, %s8260_s30 }
 0x7c3   :  { %5131 = vrot.lane.b32.xlu1 %v10861_v27, %s8261_s12  ;;  %5028 = vrot.lane.b32.xlu0 %v10867_v15, %s8257_s2  ;;  %s8275_s2 = smov 13  }
 0x7c7   :  { %5153 = vrot.lane.b32.xlu1 %v10861_v27, %s8263_s13  ;;  %5055 = vrot.lane.b32.xlu0 %v10867_v15, %s8258_s4  ;;  %s8276_s4 = smov 3  }
 0x7cb   :  { %5175 = vrot.lane.b32.xlu1 %v10861_v27, %s8264_s14  ;;  %5077 = vrot.lane.b32.xlu0 %v10867_v15, %s8259_s29  ;;  %s8277_s29 = smov 2  }
 0x7cf   :  { %5197 = vrot.lane.b32.xlu1 %v10861_v27, %s8265_s18  ;;  %5099 = vrot.lane.b32.xlu0 %v10867_v15, %s8260_s30  ;;  %s8281_s30 = smov 114  }
 0x7d3   :  { %5219 = vrot.lane.b32.xlu1 %v10861_v27, %s8266_s3  ;;  %5121 = vrot.lane.b32.xlu0 %v10867_v15, %s8261_s12  ;;  %s11060_s12 = sld [smem:[#allocation4 + $0x9]] }
 0x7d7   :  { %5241 = vrot.lane.b32.xlu1 %v10861_v27, %s8267_s19  ;;  %5143 = vrot.lane.b32.xlu0 %v10867_v15, %s8263_s13  ;;  %s10996_s13 = sld [smem:[#allocation4 + $0x81]] }
 0x7db   :  { %5262 = vrot.lane.b32.xlu1 %v10861_v27, %s8268_s22  ;;  %5165 = vrot.lane.b32.xlu0 %v10867_v15, %s8264_s14  ;;  %s10998_s14 = sld [smem:[#allocation4]] }
 0x7df   :  { %5284 = vrot.lane.b32.xlu1 %v10861_v27, %s8269_s23  ;;  %5187 = vrot.lane.b32.xlu0 %v10867_v15, %s8265_s18  ;;  %s11006_s18 = sld [smem:[#allocation4 + $0x83]] }
 0x7e3   :  { %5306 = vrot.lane.b32.xlu1 %v10861_v27, %s8270_s5  ;;  %5209 = vrot.lane.b32.xlu0 %v10867_v15, %s8266_s3  ;;  %s11008_s3 = sld [smem:[#allocation4 + $0x2]] }
 0x7e5   :  { %v13667_v44 = vstv %s11006_s18  ;;  %s11622_s18 = sld [smem:[#allocation4 + $0x15]] }
 0x7e7   :  { %5328 = vrot.lane.b32.xlu1 %v10861_v27, %s8271_s10  ;;  %5231 = vrot.lane.b32.xlu0 %v10867_v15, %s8267_s19  ;;  %s11012_s19 = sld [smem:[#allocation4 + $0x84]] }
 0x7eb   :  { %5350 = vrot.lane.b32.xlu1 %v10861_v27, %s8272_s25  ;;  %5253 = vrot.lane.b32.xlu0 %v10867_v15, %s8268_s22  ;;  %s11016_s22 = sld [smem:[#allocation4 + $0x3]] }
 0x7ef   :  { %5372 = vrot.lane.b32.xlu1 %v10861_v27, %s8273_s27  ;;  %5274 = vrot.lane.b32.xlu0 %v10867_v15, %s8269_s23  ;;  %s11018_s23 = sld [smem:[#allocation4 + $0x85]] }
 0x7f3   :  { %5392 = vrot.lane.b32.xlu1 %v10861_v27, %s8244_s20  ;;  %5296 = vrot.lane.b32.xlu0 %v10867_v15, %s8270_s5  ;;  %s11020_s5 = sld [smem:[#allocation4 + $0x4]] }
 0x7f7   :  { %5412 = vrot.lane.b32.xlu1 %v10861_v27, %s8246_s0  ;;  %5318 = vrot.lane.b32.xlu0 %v10867_v15, %s8271_s10  ;;  %s11024_s10 = sld [smem:[#allocation4 + $0x86]] }
 0x7fb   :  { %5432 = vrot.lane.b32.xlu1 %v10861_v27, %s8247_s15  ;;  %5340 = vrot.lane.b32.xlu0 %v10867_v15, %s8272_s25  ;;  %s11026_s25 = sld [smem:[#allocation4 + $0x5]] }
 0x7ff   :  { %5454 = vrot.lane.b32.xlu1 %v10861_v27, %s8274_s28  ;;  %5362 = vrot.lane.b32.xlu0 %v10867_v15, %s8273_s27  ;;  %s11030_s27 = sld [smem:[#allocation4 + $0x87]] }
 0x803   :  { %5476 = vrot.lane.b32.xlu1 %v10861_v27, %s8275_s2  ;;  %5383 = vrot.lane.b32.xlu0 %v10867_v15, %s8244_s20  ;;  %s13158_s20 = smov 126  }
 0x807   :  { %5497 = vrot.lane.b32.xlu1 %v10861_v27, %s8276_s4  ;;  %5403 = vrot.lane.b32.xlu0 %v10867_v15, %s8246_s0  ;;  %s8279_s0 = smov 125  }
 0x80a   :  { %v4397_v60 = vpop.xlane.xlu1 %4396 }
 0x80b   :  { %5518 = vrot.lane.b32.xlu1 %v10861_v27, %s8277_s29  ;;  %5423 = vrot.lane.b32.xlu0 %v10867_v15, %s8247_s15  ;;  %v4364_v37 = vpop.xlane.xlu0 %4363  ;;  %s8280_s15 = smov 115  }
 0x80c   :  { %v4375_v61 = vmul.f32 0.00390625, %v4364_v37 }
 0x80e   :  { %v4409_v12 = vpop.xlane.xlu1 %4408 }
 0x80f   :  { %5538 = vrot.lane.b32.xlu1 %v10861_v27, %s8248_s16  ;;  %5444 = vrot.lane.b32.xlu0 %v10867_v15, %s8274_s28  ;;  %v4381_v46 = vpop.xlane.xlu0 %4380  ;;  %s11032_s28 = sld [smem:[#allocation4 + $0x6]] }
 0x810   :  { %v4391_v41 = vmul.f32 0.00390625, %v4381_v46  ;;  %v4433_v46 = vld [vmem:[%s12953_s8] sm:$0x3]  ;;  %s11002_s8 = sld [smem:[#allocation4 + $0x82]] }
 0x812   :  { %v4367_v17 = vpop.xlane.xlu1 %4366  ;;  %v4419_v20 = vsel %vm13636_vm13, %v4375_v61, %v4391_v41  ;;  %vm13172_vm13 = vcmask 392192  }
 0x813   :  { %5576 = vrot.lane.b32.xlu1 %v10917_v4, %s8249_s17  ;;  %5466 = vrot.lane.b32.xlu0 %v10867_v15, %s8275_s2  ;;  %v4384_v23 = vpop.xlane.xlu0 %4383  ;;  %v4376_v49 = vmul.f32 0.00390625, %v4367_v17  ;;  %v4424_v38 = vsel %vm13163_vm4, %v4419_v20, %v4397_v60  ;;  %s11034_s2 = sld [smem:[#allocation4 + $0x88]]  ;;  %v11041_v20 = vld [vmem:[%s12946_s1 + $0x1] ss:$2 sm:$0xf] }
 0x814   :  { %v4392_v18 = vmul.f32 0.00390625, %v4384_v23  ;;  %v4429_v53 = vsel %vm13166_vm5, %v4424_v38, %v4409_v12  ;;  %vm75_vm0 = vcmp.ge.f32.partialorder %v11041_v20, 3.0  ;;  %vm76_vm1 = vcmp.lt.f32.partialorder %v11041_v20, 19.0 }
 0x815   :  { %vm78_vm3 = vcmp.ge.f32.partialorder %v11041_v20, 2.0  ;;  %vm79_vm2 = vcmp.lt.f32.partialorder %v11041_v20, 18.0 }
 0x816   :  { %v4420_v6 = vsel %vm13637_vm9, %v4376_v49, %v4392_v18  ;;  %vm13173_vm9 = vcmask 384000  }
 0x817   :  { %5598 = vrot.lane.b32.xlu1 %v10917_v4, %s13158_s20  ;;  %5488 = vrot.lane.b32.xlu0 %v10867_v15, %s8276_s4  ;;  %v4400_v1 = vpop.xlane.xlu0 %4399  ;;  %v4370_v24 = vpop.xlane.xlu1 %4369  ;;  %s11036_s4 = sld [smem:[#allocation4 + $0x7]] }
 0x818   :  { %v4425_v2 = vsel %vm13163_vm4, %v4420_v6, %v4400_v1  ;;  %v11054_v6 = vld [vmem:[%s12946_s1] ss:$2 sm:$0xf]  ;;  %s11120_s1 = sld [smem:[#allocation4 + $0x8f]] }
 0x819   :  { %vm54_vm7 = vcmp.ge.f32.partialorder %v11054_v6, 3.0  ;;  %vm55_vm15 = vcmp.lt.f32.partialorder %v11054_v6, 19.0 }
 0x81b   :  { %5620 = vrot.lane.b32.xlu1 %v10917_v4, %s8279_s0  ;;  %5509 = vrot.lane.b32.xlu0 %v10867_v15, %s8277_s29  ;;  %v4412_v22 = vpop.xlane.xlu0 %4411  ;;  %s11067_s29 = sld [smem:[#allocation4 + $0x8b]] }
 0x81c   :  { %v4430_v32 = vsel %vm13166_vm5, %v4425_v2, %v4412_v22  ;;  %v4387_v0 = vpop.xlane.xlu1 %4386  ;;  %v5071_v2 = vstv %s10996_s13  ;;  %s11499_s13 = sld [smem:[#allocation4 + $0x90]] }
 0x81d   :  { %v7206_v43 = vpack.c.bf16 %v4430_v32, %v4429_v53  ;;  %v4393_v58 = vmul.f32 0.00390625, %v4387_v0  ;;  %v5093_v53 = vstv %s11002_s8  ;;  %s11560_s8 = sld [smem:[#allocation4 + $0x11]] }
 0x81f   :  { %5642 = vrot.lane.b32.xlu1 %v10917_v4, %s8280_s15  ;;  %5529 = vrot.lane.b32.xlu0 %v10867_v15, %s8248_s16  ;;  %s8282_s16 = smov 110  }
 0x820   :  { %7207 = vmatpush3.bf16.msra.mxu0 %v7206_v43  ;;  %v4403_v34 = vpop.xlane.xlu1 %4402 }
 0x821   :  { %7208 = vmatprep.subr.bf16.mxu0 %v8256_v59  ;;  %v4377_v59 = vmul.f32 0.00390625, %v4370_v24 }
 0x823   :  { %5664 = vrot.lane.b32.xlu1 %v10917_v4, %s8281_s30  ;;  %5563 = vrot.lane.b32.xlu0 %v10938_v26, %s8249_s17  ;;  %s8283_s17 = smov 109   ;;  %v4421_v39 = vsel %vm13638_vm6, %v4377_v59, %v4393_v58  ;;  %vm90_vm6 = vcmp.ge.f32.partialorder %v11041_v20, -2.0  ;;  %v13688_v58 = vstv %s11034_s2  ;;  %s11776_s2 = sld [smem:[#allocation4 + $0x9e]] }
 0x824   :  { %v4415_v5 = vpop.xlane.xlu1 %4414  ;;  %v4426_v36 = vsel %vm13163_vm4, %v4421_v39, %v4403_v34 }
 0x825   :  { %v4431_v60 = vsel %vm13166_vm5, %v4426_v36, %v4415_v5  ;;  %v13647_v5 = vld [vmem:[#allocation24_spill] sm:$0xff] }
 0x827   :  { %5684 = vrot.lane.b32.xlu1 %v10917_v4, %s8250_s21  ;;  %5588 = vrot.lane.b32.xlu0 %v10938_v26, %s13158_s20  ;;  %s11082_s20 = sld [smem:[#allocation4 + $0x8d]] }
 0x828   :  { %v10947_v63 = vpop.permute.xlu1 %5043 }
 0x829   :  { %v5045_v39 = vrot.slane %v10947_v63, 1 }
 0x82b   :  { %5704 = vrot.lane.b32.xlu1 %v10917_v4, %s8251_s24  ;;  %5610 = vrot.lane.b32.xlu0 %v10938_v26, %s8279_s0  ;;  %s11069_s0 = sld [smem:[#allocation4 + $0xa]] }
 0x82c   :  { %v10952_v35 = vpop.permute.xlu1 %5065 }
 0x82e   :  { %v4373_v29 = vpop.xlane.xlu0 %4372 }
 0x82f   :  { %5724 = vrot.lane.b32.xlu1 %v10917_v4, %s8252_s26  ;;  %5632 = vrot.lane.b32.xlu0 %v10938_v26, %s8280_s15  ;;  %v4378_v56 = vmul.f32 0.00390625, %v4373_v29  ;;  %s11045_s15 = sld [smem:[#allocation4 + $0x89]] }
 0x830   :  { %v10957_v33 = vpop.permute.xlu1 %5087 }
 0x832   :  { %v4390_v47 = vpop.xlane.xlu0 %4389 }
 0x833   :  { %5746 = vrot.lane.b32.xlu1 %v10917_v4, %s8282_s16  ;;  %v4394_v51 = vmul.f32 0.00390625, %v4390_v47  ;;  %5654 = vrot.lane.b32.xlu0 %v10938_v26, %s8281_s30  ;;  %s11049_s30 = sld [smem:[#allocation4 + $0x8]] }
 0x834   :  { %v10962_v31 = vpop.permute.xlu1 %5109 }
 0x835   :  { %v4422_v27 = vsel %vm13639_vm11, %v4378_v56, %v4394_v51  ;;  %vm11095_vm11 = vmand %vm75_vm0, %vm76_vm1  ;;  %v5089_v56 = vrot.slane %v10957_v33, 1  ;;  %v5111_v36 = vrot.slane %v10962_v31, 1  ;;  %v5046_v51 = vsel %vm13171_vm14, %v10947_v63, %v5045_v39 }
 0x836   :  { %v4406_v45 = vpop.xlane.xlu0 %4405  ;;  %vm11110_vm0 = vmand %vm54_vm7, %vm55_vm15  ;;  %vm13655_vm15 = vcmask 375808  }
 0x837   :  { %5768 = vrot.lane.b32.xlu1 %v10917_v4, %s8283_s17  ;;  %5675 = vrot.lane.b32.xlu0 %v10938_v26, %s8250_s21  ;;  %v4427_v15 = vsel %vm13163_vm4, %v4422_v27, %v4406_v45  ;;  %s11058_s21 = sld [smem:[#allocation4 + $0x8a]]  ;;  %vm11129_vm7 = vmand %vm78_vm3, %vm79_vm2  ;;  %v5090_v29 = vsel %vm5080_vm10, %v10957_v33, %v5089_v56  ;;  %vm13652_vm4 = vnez %v13651_v14  ;;  %v13653_v56 = vld [vmem:[#allocation33_spill] sm:$0xff] }
 0x838   :  { %v10970_v48 = vpop.permute.xlu1 %5131  ;;  %vm5026_vm3 = vmand %vm11110_vm0, %vm11095_vm11 }
 0x839   :  { %vm5054_vm2 = vmand %vm11110_vm0, %vm11129_vm7  ;;  %v5133_v45 = vrot.slane %v10970_v48, 1 }
 0x83a   :  { %v4418_v11 = vpop.xlane.xlu0 %4417  ;;  %vm5098_vm14 = vmand %vm11110_vm0, %vm13652_vm4 }
 0x83b   :  { %v4432_v37 = vsel %vm13166_vm5, %v4427_v15, %v4418_v11  ;;  %5695 = vrot.lane.b32.xlu0 %v10938_v26, %s8251_s24  ;;  %s10992_s24 = sld [smem:[#allocation4 + $0x80]]  ;;  %vm13648_vm5 = vnez %v13647_v5 }
 0x83c   :  { %v7209_v8 = vpack.c.bf16 %v4432_v37, %v4431_v60  ;;  %v10978_v19 = vpop.permute.xlu1 %5153  ;;  %v5067_v37 = vrot.slane %v10952_v35, 1 }
 0x83d   :  { %v5155_v15 = vrot.slane %v10978_v19, 1 }
 0x83e   :  { %v10980_v12 = vpop.permute.xlu0 %5028  ;;  %7210 = vmatpush3.bf16.msra.mxu0 %v7209_v8  ;;  %v5068_v8 = vsel %vm5058_vm8, %v10952_v35, %v5067_v37  ;;  %v5112_v35 = vsel %vm13172_vm13, %v10962_v31, %v5111_v36  ;;  %vm13656_vm13 = vcmask 416768  }
 0x83f   :  { %5715 = vrot.lane.b32.xlu0 %v10938_v26, %s8252_s26  ;;  %s11004_s26 = sld [smem:[#allocation4 + $0x1]]  ;;  %v5030_v63 = vrot.slane %v10980_v12, 1  ;;  %v5070_v0 = vsel %vm5054_vm2, %v5068_v8, 0.0 }
 0x840   :  { %v10987_v41 = vpop.permute.xlu1 %5175 }
 0x841   :  { %6779 = vmatmul.mubr.msk.f32.vlgmr.msra.gmra.mrb[16].mxu0 %vm13640_vm12, %v4433_v46  ;;  %v5049_v24 = vstv %s10992_s24  ;;  %vm91_vm12 = vcmp.lt.f32.partialorder %v11041_v20, 14.0  ;;  %v5048_v46 = vsel %vm5026_vm3, %v5046_v51, 0.0  ;;  %v5134_v51 = vsel %vm13173_vm9, %v10970_v48, %v5133_v45  ;;  %vm13657_vm9 = vmand %vm11110_vm0, %vm13648_vm5  ;;  %s11477_s24 = sld [smem:[#allocation4 + $0xf]] }
 0x842   :  { %v10990_v17 = vpop.permute.xlu0 %5055  ;;  %vm11180_vm1 = vmand %vm90_vm6, %vm91_vm12  ;;  %vm13654_vm6 = vnez %v13653_v56  ;;  %v5032_v8 = vsel %vm13656_vm13, %v10980_v12, %v5030_v63  ;;  %v5092_v48 = vsel %vm13657_vm9, %v5090_v29, 0.0  ;;  %v5114_v45 = vsel %vm5098_vm14, %v5112_v35, 0.0 }
 0x843   :  { %5736 = vrot.lane.b32.xlu0 %v10938_v26, %s8282_s16  ;;  %s11073_s16 = sld [smem:[#allocation4 + $0x8c]]  ;;  %v5057_v16 = vrot.slane %v10990_v17, 1  ;;  %vm13174_vm12 = vmand %vm11110_vm0, %vm13654_vm6  ;;  %v5177_v36 = vrot.slane %v10987_v41, 1  ;;  %vm13658_vm13 = vcmp.lt.f32.partialorder %v11041_v20, 13.0  ;;  %vm13659_vm9 = vcmp.ge.f32.partialorder %v11041_v20, -3.0 }
 0x844   :  { %v11000_v23 = vpop.permute.xlu1 %5197  ;;  %v5116_v57 = vmul.f32 %v13667_v44, %v5114_v45 }
 0x845   :  { %v5062_v32 = vstv %s11004_s26  ;;  %v5059_v33 = vsel %vm5058_vm8, %v10990_v17, %v5057_v16  ;;  %vm13179_vm8 = vmand %vm11110_vm0, %vm11180_vm1  ;;  %v5156_v17 = vsel %vm13655_vm15, %v10978_v19, %v5155_v15  ;;  %v5199_v63 = vrot.slane %v11000_v23, 1  ;;  %s11606_s26 = sld [smem:[#allocation4 + $0x94]] }
 0x846   :  { %v11010_v61 = vpop.permute.xlu0 %5077  ;;  %v5061_v19 = vsel %vm5054_vm2, %v5059_v33, 0.0  ;;  %vm11252_vm15 = vmand %vm13659_vm9, %vm13658_vm13  ;;  %v5050_v33 = vmul.f32 %v5049_v24, %v5048_v46  ;;  %v5158_v20 = vsel %vm13179_vm8, %v5156_v17, 0.0  ;;  %vm13663_vm2 = vcmp.ge.f32.partialorder %v11054_v6, 2.0 }
 0x847   :  { %5758 = vrot.lane.b32.xlu0 %v10938_v26, %s8283_s17  ;;  %s11075_s17 = sld [smem:[#allocation4 + $0xb]]  ;;  %v5079_v37 = vrot.slane %v11010_v61, 1  ;;  %v5094_v17 = vmul.f32 %v5093_v53, %v5092_v48  ;;  %v5063_v59 = vmul.f32 %v5062_v32, %v5061_v19  ;;  %vm13671_vm8 = vcmask 285696  }
 0x848   :  { %v11022_v18 = vpop.permute.xlu1 %5219  ;;  %v5200_v44 = vsel %vm13671_vm8, %v11000_v23, %v5199_v63  ;;  %v13672_v48 = vstv %s10998_s14  ;;  %v13673_v19 = vstv %s11012_s19  ;;  %vm13676_vm8 = vcmask 375808   ;;  %s11522_s14 = sld [smem:[#allocation4 + $0x10]]  ;;  %s11750_s19 = sld [smem:[#allocation4 + $0x9a]] }
 0x849   :  { %v5081_v12 = vsel %vm5080_vm10, %v11010_v61, %v5079_v37  ;;  %v5072_v61 = vmul.f32 %v5071_v2, %v5070_v0  ;;  %v5136_v37 = vsel %vm13174_vm12, %v5134_v51, 0.0  ;;  %vm13662_vm10 = vcmp.lt.f32.partialorder %v11054_v6, 18.0 }
 0x84a   :  { %v11028_v49 = vpop.permute.xlu0 %5099  ;;  %vm11275_vm13 = vmand %vm13663_vm2, %vm13662_vm10  ;;  %v5034_v2 = vsel %vm5026_vm3, %v5032_v8, 0.0  ;;  %vm13666_vm12 = vcmask 392192   ;;  %v5221_v6 = vrot.slane %v11022_v18, 1  ;;  %vm13669_vm10 = vcmask 384000  }
 0x84b   :  { %v5101_v16 = vrot.slane %v11028_v49, 1  ;;  %vm13668_vm3 = vmand %vm11110_vm0, %vm13648_vm5  ;;  %vm13670_vm2 = vcmask 367616   ;;  %v5036_v45 = vmul.f32 %v13672_v48, %v5034_v2  ;;  %v5073_v2 = vadd.f32 %v5072_v61, %v5063_v59 }
 0x84c   :  { %v11047_v1 = vpop.permute.xlu1 %5241  ;;  %v5178_v53 = vsel %vm13670_vm2, %v10987_v41, %v5177_v36  ;;  %vm5186_vm9 = vmand %vm11275_vm13, %vm11095_vm11  ;;  %v13679_v59 = vstv %s11016_s22  ;;  %s11754_s22 = sld [smem:[#allocation4 + $0x19]] }
 0x84d   :  { %v5103_v0 = vsel %vm13666_vm12, %v11028_v49, %v5101_v16  ;;  %v5083_v49 = vsel %vm13668_vm3, %v5081_v12, 0.0  ;;  %vm5164_vm12 = vmand %vm11110_vm0, %vm11252_vm15  ;;  %v5138_v12 = vmul.f32 %v13673_v19, %v5136_v37  ;;  %v13681_v19 = vstv %s11020_s5  ;;  %s11758_s5 = sld [smem:[#allocation4 + $0x1a]] }
 0x84e   :  { %v11065_v38 = vpop.permute.xlu0 %5121  ;;  %v5105_v41 = vsel %vm5098_vm14, %v5103_v0, 0.0  ;;  %vm5208_vm3 = vmand %vm11275_vm13, %vm11129_vm7 }
 0x84f   :  { %v5123_v29 = vrot.slane %v11065_v38, 1  ;;  %vm13678_vm14 = vmand %vm11110_vm0, %vm13654_vm6  ;;  %v5107_v61 = vmul.f32 %v13679_v59, %v5105_v41  ;;  %v13684_v59 = vstv %s11030_s27  ;;  %s11765_s27 = sld [smem:[#allocation4 + $0x9d]] }
 0x850   :  { %v11080_v9 = vpop.permute.xlu1 %5262 }
 0x851   :  { %v5125_v16 = vsel %vm13669_vm10, %v11065_v38, %v5123_v29  ;;  %v13674_v38 = vstv %s11018_s23  ;;  %v13675_v29 = vstv %s11008_s3  ;;  %vm13677_vm10 = vcmask 277504   ;;  %s11624_s3 = sld [smem:[#allocation4 + $0x95]]  ;;  %s13730_s23 = sld [smem:[#allocation87_spill]] }
 0x852   :  { %v11102_v47 = vpop.permute.xlu0 %5143  ;;  %v5160_v36 = vmul.f32 %v13674_v38, %v5158_v20  ;;  %v5085_v3 = vmul.f32 %v13675_v29, %v5083_v49  ;;  %v5222_v63 = vsel %vm13677_vm10, %v11022_v18, %v5221_v6  ;;  %v5127_v20 = vsel %vm13678_vm14, %v5125_v16, 0.0  ;;  %vm13680_vm10 = vmand %vm11110_vm0, %vm11180_vm1 }
 0x853   :  { %v5145_v46 = vrot.slane %v11102_v47, 1  ;;  %v5202_v18 = vsel %vm5186_vm9, %v5200_v44, 0.0  ;;  %v5129_v41 = vmul.f32 %v13681_v19, %v5127_v20  ;;  %vm13682_vm14 = vcmask 285696   ;;  %vm5252_vm0 = vmand %vm11275_vm13, %vm13652_vm4 }
 0x854   :  { %v11138_v60 = vpop.permute.xlu1 %5284  ;;  %v5095_v48 = vadd.f32 %v5094_v17, %v5085_v3  ;;  %v13683_v29 = vstv %s11024_s10  ;;  %v5204_v25 = vmul.f32 %v13684_v59, %v5202_v18  ;;  %v5117_v17 = vadd.f32 %v5116_v57, %v5107_v61  ;;  %s11761_s10 = sld [smem:[#allocation4 + $0x9c]] }
 0x855   :  { %v5147_v23 = vsel %vm13676_vm8, %v11102_v47, %v5145_v46  ;;  %v5180_v47 = vsel %vm5164_vm12, %v5178_v53, 0.0  ;;  %v5243_v46 = vrot.slane %v11047_v1, 1  ;;  %v5051_v53 = vadd.f32 %v5050_v33, %v5036_v45 }
 0x856   :  { %v11150_v11 = vpop.permute.xlu0 %5165  ;;  %v5149_v44 = vsel %vm13680_vm10, %v5147_v23, 0.0  ;;  %v5182_v23 = vmul.f32 %v13683_v29, %v5180_v47  ;;  %vm5230_vm10 = vmand %vm11275_vm13, %vm13648_vm5  ;;  %vm5321_vm8 = vcmask 236544   ;;  %v5139_v61 = vadd.f32 %v5138_v12, %v5129_v41 }
 0x857   :  { %v5167_v32 = vrot.slane %v11150_v11, 1  ;;  %v5074_v38 = vadd.f32 %v5073_v2, %v5051_v53  ;;  %v5286_v12 = vrot.slane %v11138_v60, 1 }
 0x858   :  { %v11170_v43 = vpop.permute.xlu1 %5306 }
 0x859   :  { %v5169_v0 = vsel %vm13670_vm2, %v11150_v11, %v5167_v32  ;;  %v5224_v11 = vsel %vm5208_vm3, %v5222_v63, 0.0  ;;  %v5264_v32 = vrot.slane %v11080_v9, 1  ;;  %v13685_v63 = vstv %s11026_s25  ;;  %s11763_s25 = sld [smem:[#allocation4 + $0x1b]] }
 0x85a   :  { %v11195_v22 = vpop.permute.xlu0 %5187  ;;  %v5171_v3 = vsel %vm5164_vm12, %v5169_v0, 0.0  ;;  %v5151_v20 = vmul.f32 %v13685_v63, %v5149_v44  ;;  %vm13687_vm2 = vcmask 277504   ;;  %v5226_v47 = vmul.f32 %v13688_v58, %v5224_v11 }
 0x85b   :  { %v5189_v37 = vrot.slane %v11195_v22, 1  ;;  %vm13689_vm12 = vcmask 261120   ;;  %v5096_v18 = vadd.f32 %v5095_v48, %v5074_v38  ;;  %v13690_v0 = vstv %s11032_s28  ;;  %s11767_s28 = sld [smem:[#allocation4 + $0x1c]] }
 0x85c   :  { %v11225_v31 = vpop.permute.xlu1 %5328  ;;  %v13692_v48 = vstv %s11036_s4  ;;  %s13735_s4 = smov 126  }
 0x85d   :  { %v5191_v33 = vsel %vm13682_vm14, %v11195_v22, %v5189_v37  ;;  %vm13686_vm14 = vcmask 269312   ;;  %v5118_v11 = vadd.f32 %v5117_v17, %v5096_v18  ;;  %v13694_v17 = vstv %s11045_s15  ;;  %s8284_s15 = smov 99  }
 0x85e   :  { %v5210_v35 = vpop.permute.xlu0 %5209  ;;  %v5244_v22 = vsel %vm13686_vm14, %v11047_v1, %v5243_v46  ;;  %v5193_v57 = vsel %vm5186_vm9, %v5191_v33, 0.0  ;;  %v5265_v1 = vsel %vm13689_vm12, %v11080_v9, %v5264_v32  ;;  %v5173_v46 = vmul.f32 %v13690_v0, %v5171_v3 }
 0x85f   :  { %v5211_v6 = vrot.slane %v5210_v35, 1  ;;  %v5246_v44 = vsel %vm5230_vm10, %v5244_v22, 0.0  ;;  %v5161_v32 = vadd.f32 %v5160_v36, %v5151_v20  ;;  %v5195_v19 = vmul.f32 %v13692_v48, %v5193_v57 }
 0x860   :  { %v11288_v51 = vpop.permute.xlu1 %5350  ;;  %v5267_v41 = vsel %vm5252_vm0, %v5265_v1, 0.0  ;;  %vm5365_vm9 = vcmask 146432   ;;  %v5308_v36 = vrot.slane %v11170_v43, 1  ;;  %v5140_v59 = vadd.f32 %v5139_v61, %v5118_v11 }
 0x861   :  { %v5213_v37 = vsel %vm13687_vm2, %v5210_v35, %v5211_v6  ;;  %vm13691_vm2 = vmmov %vm13686_vm14  ;;  %vm5343_vm14 = vcmask 154624   ;;  %v5183_v3 = vadd.f32 %v5182_v23, %v5173_v46  ;;  %v5248_v63 = vmul.f32 %v13694_v17, %v5246_v44 }
 0x862   :  { %v5232_v8 = vpop.permute.xlu0 %5231  ;;  %v5215_v9 = vsel %vm5208_vm3, %v5213_v37, 0.0  ;;  %vm13693_vm3 = vmmov %vm13689_vm12  ;;  %v13695_v20 = vstv %s11049_s30  ;;  %v13696_v37 = vstv %s11058_s21  ;;  %v5330_v1 = vrot.slane %v11225_v31, 1  ;;  %s8285_s30 = smov 98   ;;  %s8286_s21 = smov 97  }
 0x863   :  { %v5233_v45 = vrot.slane %v5232_v8, 1  ;;  %v5217_v22 = vmul.f32 %v13695_v20, %v5215_v9  ;;  %v5269_v58 = vmul.f32 %v13696_v37, %v5267_v41  ;;  %vm5273_vm12 = vmand %vm11275_vm13, %vm13654_vm6  ;;  %v5205_v23 = vadd.f32 %v5204_v25, %v5195_v19 }
 0x864   :  { %v11358_v16 = vpop.permute.xlu1 %5372  ;;  %v13699_v18 = vstv %s11060_s12  ;;  %v13702_v11 = vstv %s11069_s0  ;;  %s8287_s12 = smov 96   ;;  %s8289_s0 = smov 94  }
 0x865   :  { %v5235_v6 = vsel %vm13691_vm2, %v5232_v8, %v5233_v45  ;;  %v5374_v19 = vrot.slane %v11358_v16, 1 }
 0x866   :  { %v5254_v49 = vpop.permute.xlu0 %5253  ;;  %v5237_v45 = vsel %vm5230_vm10, %v5235_v6, 0.0  ;;  %vm13697_vm10 = vcmask 252928  }
 0x867   :  { %v5255_v35 = vrot.slane %v5254_v49, 1  ;;  %v5287_v57 = vsel %vm13697_vm10, %v11138_v60, %v5286_v12  ;;  %vm13698_vm2 = vmmov %vm13697_vm10  ;;  %v5239_v61 = vmul.f32 %v13699_v18, %v5237_v45  ;;  %vm13700_vm10 = vcmask 244736  }
 0x868   :  { %v11409_v53 = vpop.permute.xlu1 %5392  ;;  %v5309_v60 = vsel %vm13700_vm10, %v11170_v43, %v5308_v36  ;;  %v5227_v12 = vadd.f32 %v5226_v47, %v5217_v22  ;;  %v5331_v47 = vsel %vm5321_vm8, %v11225_v31, %v5330_v1  ;;  %v13703_v36 = vstv %s11075_s17  ;;  %s8291_s17 = smov 83  }
 0x869   :  { %v5256_v38 = vsel %vm13693_vm3, %v5254_v49, %v5255_v35  ;;  %v5162_v35 = vadd.f32 %v5161_v32, %v5140_v59  ;;  %vm5295_vm3 = vmand %vm11275_vm13, %vm11180_vm1  ;;  %v13704_v59 = vld [vmem:[#allocation23_spill] sm:$0xff]  ;;  %v13706_v22 = vstv %s11067_s29  ;;  %v5375_v24 = vsel %vm5365_vm9, %v11358_v16, %v5374_v19  ;;  %s8288_s29 = smov 95  }
 0x86a   :  { %v5275_v2 = vpop.permute.xlu0 %5274  ;;  %v5258_v0 = vsel %vm5252_vm0, %v5256_v38, 0.0  ;;  %vm5317_vm0 = vmand %vm11275_vm13, %vm11252_vm15  ;;  %v5311_v45 = vsel %vm5295_vm3, %v5309_v60, 0.0  ;;  %vm13710_vm13 = vcmask 138240  }
 0x86b   :  { %v5276_v8 = vrot.slane %v5275_v2, 1  ;;  %v5184_v9 = vadd.f32 %v5183_v3, %v5162_v35  ;;  %v5260_v32 = vmul.f32 %v13702_v11, %v5258_v0  ;;  %v13707_v35 = vstv %s11087_s11  ;;  %s11545_s11 = sld [smem:[#allocation4 + $0x91]] }
 0x86c   :  { %v11457_v6 = vpop.permute.xlu1 %5412  ;;  %v13708_v0 = vstv %s11073_s16  ;;  %s8290_s16 = smov 93  }
 0x86d   :  { %v5278_v49 = vsel %vm13698_vm2, %v5275_v2, %v5276_v8  ;;  %vm13701_vm2 = vmmov %vm13700_vm10  ;;  %v5352_v2 = vrot.slane %v11288_v51, 1  ;;  %v5289_v8 = vsel %vm5273_vm12, %v5287_v57, 0.0  ;;  %v5206_v41 = vadd.f32 %v5205_v23, %v5184_v9 }
 0x86e   :  { %v5297_v33 = vpop.permute.xlu0 %5296  ;;  %v5280_v43 = vsel %vm5273_vm12, %v5278_v49, 0.0  ;;  %v5291_v37 = vmul.f32 %v13706_v22, %v5289_v8  ;;  %v5333_v57 = vsel %vm5317_vm0, %v5331_v47, 0.0  ;;  %v5270_v1 = vadd.f32 %v5269_v58, %v5260_v32  ;;  %vm13718_vm10 = vmmov %vm13710_vm13 }
 0x86f   :  { %v5298_v29 = vrot.slane %v5297_v33, 1  ;;  %v5353_v3 = vsel %vm5343_vm14, %v11288_v51, %v5352_v2  ;;  %v5228_v20 = vadd.f32 %v5227_v12, %v5206_v41  ;;  %v13709_v2 = vstv %s11104_s7  ;;  %s11582_s7 = sld [smem:[#allocation4 + $0x12]] }
 0x870   :  { %v5433_v51 = vpop.permute.xlu1 %5432  ;;  %v13711_v8 = vstv %s11082_s20  ;;  %v5369_v32 = vstv %s11477_s24  ;;  %v5414_v47 = vrot.slane %v11457_v6, 1  ;;  %v13712_v41 = vstv %s11122_s9  ;;  %s11593_s9 = sld [smem:[#allocation4 + $0x13]]  ;;  %s11604_s20 = sld [smem:[#allocation4 + $0x14]] }
 0x871   :  { %v5300_v25 = vsel %vm13701_vm2, %v5297_v33, %v5298_v29  ;;  %v5249_v33 = vadd.f32 %v5248_v63, %v5239_v61  ;;  %v5282_v29 = vmul.f32 %v13703_v36, %v5280_v43  ;;  %v5394_v63 = vrot.slane %v11409_v53, 1  ;;  %v13714_v36 = vld [vmem:[#allocation26_spill] sm:$0xff]  ;;  %s8292_s24 = smov 82  }
 0x872   :  { %v5319_v46 = vpop.permute.xlu0 %5318  ;;  %v5302_v38 = vsel %vm5295_vm3, %v5300_v25, 0.0  ;;  %v5335_v43 = vmul.f32 %v13711_v8, %v5333_v57  ;;  %v5409_v8 = vstv %s11560_s8  ;;  %s8296_s8 = smov 78  }
 0x873   :  { %v5320_v44 = vrot.slane %v5319_v46, 1  ;;  %v5304_v23 = vmul.f32 %v13707_v35, %v5302_v38  ;;  %v5250_v61 = vadd.f32 %v5249_v33, %v5228_v20  ;;  %v5292_v25 = vadd.f32 %v5291_v37, %v5282_v29 }
 0x874   :  { %v5395_v9 = vsel %vm13710_vm13, %v11409_v53, %v5394_v63  ;;  %v5455_v63 = vpop.permute.xlu1 %5454 }
 0x875   :  { %v5322_v48 = vsel %vm5321_vm8, %v5319_v46, %v5320_v44  ;;  %vm13705_vm8 = vnez %v13704_v59  ;;  %v5313_v46 = vmul.f32 %v13708_v0, %v5311_v45  ;;  %v13713_v45 = vstv %s11089_s6  ;;  %s11580_s6 = sld [smem:[#allocation4 + $0x92]]  ;;  %v13727_v59 = vld [vmem:[#allocation35_spill] sm:$0xff] }
 0x876   :  { %v5341_v31 = vpop.permute.xlu0 %5340  ;;  %vm5339_vm12 = vmand %vm13705_vm8, %vm11095_vm11  ;;  %v5324_v49 = vsel %vm5317_vm0, %v5322_v48, 0.0  ;;  %v5271_v48 = vadd.f32 %v5270_v1, %v5250_v61  ;;  %v5434_v0 = vrot.slane %v5433_v51, 1  ;;  %vm5447_vm0 = vcmask 113664  }
 0x877   :  { %v5342_v17 = vrot.slane %v5341_v31, 1  ;;  %vm5361_vm3 = vmand %vm13705_vm8, %vm11129_vm7  ;;  %v5355_v58 = vsel %vm5339_vm12, %v5353_v3, 0.0  ;;  %v5326_v44 = vmul.f32 %v13709_v2, %v5324_v49  ;;  %v5314_v19 = vadd.f32 %v5313_v46, %v5304_v23 }
 0x878   :  { %v5377_v11 = vsel %vm5361_vm3, %v5375_v24, 0.0  ;;  %v5357_v38 = vmul.f32 %v13713_v45, %v5355_v58  ;;  %v5293_v20 = vadd.f32 %v5292_v25, %v5271_v48  ;;  %v13716_v49 = vstv %s11120_s1  ;;  %s11588_s1 = sld [smem:[#allocation4 + $0x93]] }
 0x879   :  { %v5344_v18 = vsel %vm5343_vm14, %v5341_v31, %v5342_v17  ;;  %v5398_v31 = vstv %s11499_s13  ;;  %vm13715_vm14 = vnez %v13714_v36  ;;  %v5336_v22 = vadd.f32 %v5335_v43, %v5326_v44  ;;  %s8293_s13 = smov 81  }
 0x87a   :  { %v5346_v60 = vsel %vm5339_vm12, %v5344_v18, 0.0  ;;  %v5363_v16 = vpop.permute.xlu0 %5362  ;;  %v5397_v29 = vsel %vm13715_vm14, %v5395_v9, 0.0  ;;  %v5379_v1 = vmul.f32 %v13716_v49, %v5377_v11  ;;  %v5389_v23 = vstv %s11522_s14  ;;  %v13719_v9 = vld [vmem:[#allocation32_spill] sm:$0xff]  ;;  %v5477_v11 = vpop.permute.xlu1 %5476  ;;  %s8294_s14 = smov 80  }
 0x87b   :  { %v5364_v12 = vrot.slane %v5363_v16, 1  ;;  %v5348_v53 = vmul.f32 %v13712_v41, %v5346_v60  ;;  %v5315_v24 = vadd.f32 %v5314_v19, %v5293_v20  ;;  %v5399_v46 = vmul.f32 %v5398_v31, %v5397_v29  ;;  %v13723_v29 = vld [vmem:[#allocation34_spill] sm:$0xff] }
 0x87c   :  { %v5418_v58 = vstv %s11545_s11  ;;  %vm13720_vm2 = vnez %v13719_v9  ;;  %v5456_v43 = vrot.slane %v5455_v63, 1  ;;  %vm13721_vm12 = vcmask 121856   ;;  %s8295_s11 = smov 79  }
 0x87d   :  { %v5366_v33 = vsel %vm5365_vm9, %v5363_v16, %v5364_v12  ;;  %vm13717_vm9 = vcmask 130048   ;;  %v5358_v18 = vadd.f32 %v5357_v38, %v5348_v53  ;;  %v5337_v25 = vadd.f32 %v5336_v22, %v5315_v24 }
 0x87e   :  { %v5368_v3 = vsel %vm5361_vm3, %v5366_v33, 0.0  ;;  %v5384_v17 = vpop.permute.xlu0 %5383  ;;  %v5415_v35 = vsel %vm13717_vm9, %v11457_v6, %v5414_v47  ;;  %v5435_v48 = vsel %vm13721_vm12, %v5433_v51, %v5434_v0  ;;  %vm13722_vm3 = vmmov %vm13717_vm9  ;;  %v5438_v36 = vstv %s11580_s6  ;;  %s8297_s6 = smov 77  }
 0x87f   :  { %v5370_v37 = vmul.f32 %v5369_v32, %v5368_v3  ;;  %v5385_v57 = vrot.slane %v5384_v17, 1  ;;  %v5417_v12 = vsel %vm13720_vm2, %v5415_v35, 0.0  ;;  %v5359_v32 = vadd.f32 %v5358_v18, %v5337_v25  ;;  %vm5443_vm9 = vmand %vm13705_vm8, %vm11180_vm1 }
 0x880   :  { %v5419_v45 = vmul.f32 %v5418_v58, %v5417_v12  ;;  %vm13724_vm13 = vnez %v13723_v29  ;;  %v5429_v20 = vstv %s11582_s7  ;;  %v5460_v0 = vstv %s11588_s1  ;;  %s6445_s7 = sld [smem:[#allocation4 + $0x18]] }
 0x881   :  { %v5386_v61 = vsel %vm13718_vm10, %v5384_v17, %v5385_v57  ;;  %v5380_v2 = vadd.f32 %v5379_v1, %v5370_v37  ;;  %v5437_v3 = vsel %vm13724_vm13, %v5435_v48, 0.0  ;;  %v5457_v17 = vsel %vm5447_vm0, %v5455_v63, %v5456_v43  ;;  %v5498_v1 = vpop.permute.xlu1 %5497  ;;  %s6446_s1 = sld [smem:[#allocation4 + $0x98]] }
 0x882   :  { %v5388_v60 = vsel %vm13715_vm14, %v5386_v61, 0.0  ;;  %v5404_v16 = vpop.permute.xlu0 %5403  ;;  %vm13725_vm14 = vmmov %vm13721_vm12  ;;  %v5478_v57 = vrot.slane %v5477_v11, 1  ;;  %vm5469_vm10 = vcmask 105472   ;;  %v5439_v35 = vmul.f32 %v5438_v36, %v5437_v3 }
 0x883   :  { %v5390_v6 = vmul.f32 %v5389_v23, %v5388_v60  ;;  %v5405_v44 = vrot.slane %v5404_v16, 1  ;;  %v5381_v33 = vadd.f32 %v5380_v2, %v5359_v32  ;;  %v5451_v61 = vstv %s11593_s9  ;;  %s11738_s9 = sld [smem:[#allocation4 + $0x97]] }
 0x884   :  { %v5479_v60 = vsel %vm5469_vm10, %v5477_v11, %v5478_v57  ;;  %v5499_v25 = vrot.slane %v5498_v1, 1  ;;  %v5473_v43 = vstv %s11604_s20  ;;  %v5482_v11 = vstv %s11606_s26  ;;  %s11740_s20 = sld [smem:[#allocation4 + $0x96]] }
 0x885   :  { %v5400_v47 = vadd.f32 %v5399_v46, %v5390_v6  ;;  %v5406_v19 = vsel %vm13722_vm3, %v5404_v16, %v5405_v44  ;;  %v5459_v46 = vsel %vm5443_vm9, %v5457_v17, 0.0  ;;  %v5494_v36 = vstv %s11622_s18  ;;  %s11742_s26 = sld [smem:[#allocation4 + $0x16]]  ;;  %s11744_s18 = sld [smem:[#allocation4 + $0x99]] }
 0x886   :  { %v5408_v41 = vsel %vm13720_vm2, %v5406_v19, 0.0  ;;  %v5424_v53 = vpop.permute.xlu0 %5423  ;;  %vm5465_vm2 = vmand %vm13705_vm8, %vm11252_vm15  ;;  %v5461_v12 = vmul.f32 %v5460_v0, %v5459_v46  ;;  %vm13728_vm8 = vnez %v13727_v59  ;;  %v5503_v29 = vstv %s11624_s3  ;;  %v4511_v0 = vld [vmem:[%s13730_s23 + $0x18] sm:$0xff]  ;;  %s11748_s3 = sld [smem:[#allocation4 + $0x17]] }
 0x887   :  { %v5410_v38 = vmul.f32 %v5409_v8, %v5408_v41  ;;  %v5425_v31 = vrot.slane %v5424_v53, 1  ;;  %v5401_v51 = vadd.f32 %v5400_v47, %v5381_v33  ;;  %v5481_v32 = vsel %vm5465_vm2, %v5479_v60, 0.0  ;;  %vm5487_vm12 = vmand %vm13728_vm8, %vm11095_vm11 }
 0x889   :  { %v5420_v22 = vadd.f32 %v5419_v45, %v5410_v38  ;;  %v5426_v37 = vsel %vm13725_vm14, %v5424_v53, %v5425_v31  ;;  %v5483_v38 = vmul.f32 %v5482_v11, %v5481_v32  ;;  %vm4524_vm14 = vcmask 1041408  }
 0x88a   :  { %v5428_v63 = vsel %vm13724_vm13, %v5426_v37, 0.0  ;;  %v5445_v49 = vpop.permute.xlu0 %5444  ;;  %vm13731_vm13 = vcmask 15360  }
 0x88b   :  { %v5421_v23 = vadd.f32 %v5420_v22, %v5401_v51  ;;  %v5430_v24 = vmul.f32 %v5429_v20, %v5428_v63  ;;  %v5446_v18 = vrot.slane %v5445_v49, 1  ;;  %v4508_v63 = vld [vmem:[%s13730_s23] sm:$0xff] }
 0x88c   :  { %6783 = vmatprep.mubr.msk.f32.mxu1 %vm13731_vm13, %v4508_v63  ;;  %v5515_v63 = vstv %s11742_s26  ;;  %s12078_s26 = sld [smem:[#allocation4 + $0xa6]] }
 0x88d   :  { %v5440_v58 = vadd.f32 %v5439_v35, %v5430_v24  ;;  %v5448_v16 = vsel %vm5447_vm0, %v5445_v49, %v5446_v18  ;;  %vm13726_vm0 = vcmask 23552   ;;  %v4509_v18 = vld [vmem:[%s13730_s23 + $0x8] sm:$0xff] }
 0x88e   :  { %v5450_v2 = vsel %vm5443_vm9, %v5448_v16, 0.0  ;;  %v5467_v6 = vpop.permute.xlu0 %5466  ;;  %v5500_v48 = vsel %vm13726_vm0, %v5498_v1, %v5499_v25  ;;  %vm13729_vm3 = vmmov %vm13726_vm0 }
 0x88f   :  { %v5441_v44 = vadd.f32 %v5440_v58, %v5421_v23  ;;  %v5452_v9 = vmul.f32 %v5451_v61, %v5450_v2  ;;  %v5468_v8 = vrot.slane %v5467_v6, 1  ;;  %v5502_v3 = vsel %vm5487_vm12, %v5500_v48, 0.0  ;;  %v4510_v61 = vld [vmem:[%s13730_s23 + $0x10] sm:$0xff]  ;;  %vm13732_vm9 = vmmov %vm13731_vm13  ;;  %v11703_v2 = vpop.permute.xlu1 %5518  ;;  %s11756_s23 = sld [smem:[#allocation4 + $0x9b]] }
 0x890   :  { %v5504_v57 = vmul.f32 %v5503_v29, %v5502_v3  ;;  %v5520_v3 = vrot.slane %v11703_v2, 1  ;;  %vm5508_vm13 = vmand %vm13728_vm8, %vm11129_vm7 }
 0x891   :  { %v5462_v47 = vadd.f32 %v5461_v12, %v5452_v9  ;;  %v5470_v19 = vsel %vm5469_vm10, %v5467_v6, %v5468_v8  ;;  %vm13733_vm10 = vmmov %vm13732_vm9 }
 0x892   :  { %v5472_v41 = vsel %vm5465_vm2, %v5470_v19, 0.0  ;;  %v5489_v53 = vpop.permute.xlu0 %5488  ;;  %vm13734_vm2 = vmmov %vm13732_vm9 }
 0x893   :  { %v5463_v33 = vadd.f32 %v5462_v47, %v5441_v44  ;;  %v5474_v45 = vmul.f32 %v5473_v43, %v5472_v41  ;;  %v5490_v31 = vrot.slane %v5489_v53, 1  ;;  %v11710_v44 = vpop.permute.xlu1 %5538  ;;  %v5549_v41 = vld [vmem:[#allocation2 + $0x8] ss:$8 sm:$0xf]  ;;  %vm13736_vm0 = vmmov %vm13734_vm2 }
 0x895   :  { %v5484_v17 = vadd.f32 %v5483_v38, %v5474_v45  ;;  %v5491_v20 = vsel %vm13729_vm3, %v5489_v53, %v5490_v31  ;;  %v5553_v45 = vld [vmem:[#allocation2 + $0x9] ss:$8 sm:$0xf]  ;;  %v5554_v38 = vstv %s6446_s1  ;;  %vm13737_vm3 = vmmov %vm13736_vm0  ;;  %s12068_s1 = sld [smem:[#allocation4 + $0x27]] }
 0x896   :  { %v5493_v51 = vsel %vm5487_vm12, %v5491_v20, 0.0  ;;  %v11700_v25 = vpop.permute.xlu0 %5509  ;;  %v5555_v29 = vmul.f32 %v5554_v38, %v5553_v45  ;;  %vm5591_vm12 = vcmask 1031168  }
 0x897   :  { %v5485_v22 = vadd.f32 %v5484_v17, %v5463_v33  ;;  %v5495_v37 = vmul.f32 %v5494_v36, %v5493_v51  ;;  %v11717_v12 = vpop.permute.xlu1 %5576  ;;  %v5511_v36 = vrot.slane %v11700_v25, 1  ;;  %v5540_v51 = vrot.slane %v11710_v44, 1 }
 0x898   :  { %v5578_v45 = vrot.slane %v11717_v12, 1 }
 0x899   :  { %v5505_v49 = vadd.f32 %v5504_v57, %v5495_v37  ;;  %v5544_v57 = vstv %s11738_s9  ;;  %s12072_s9 = sld [smem:[#allocation4 + $0xa5]] }
 0x89a   :  { %v11708_v6 = vpop.permute.xlu0 %5529 }
 0x89b   :  { %v11652_v1 = vadd.f32 %v5505_v49, %v5485_v22  ;;  %v11723_v43 = vpop.permute.xlu1 %5598  ;;  %v5531_v17 = vrot.slane %v11708_v6, 1  ;;  %v5524_v49 = vstv %s11740_s20  ;;  %s12076_s20 = sld [smem:[#allocation4 + $0x28]] }
 0x89e   :  { %v11714_v9 = vpop.permute.xlu0 %5563 }
 0x89f   :  { %v11728_v32 = vpop.permute.xlu1 %5620  ;;  %v5565_v38 = vrot.slane %v11714_v9, 1 }
 0x8a2   :  { %v11721_v8 = vpop.permute.xlu0 %5588 }
 0x8a3   :  { %v11732_v48 = vpop.permute.xlu1 %5642 }
 0x8a6   :  { %v11726_v11 = vpop.permute.xlu0 %5610 }
 0x8a7   :  { %v11736_v19 = vpop.permute.xlu1 %5664 }
 0x8aa   :  { %v11730_v47 = vpop.permute.xlu0 %5632 }
 0x8ab   :  { %v11752_v33 = vpop.permute.xlu1 %5684 }
 0x8af   :  { %v11780_v37 = vpop.permute.xlu1 %5704 }
 0x914   :  { %v4503_v35 = vpop.f32.mrb[16].mxu0 }
 0x915   :  { %v4507_v23 = vmax.f32 %v4503_v35, 0.0  ;;  %v6780_v24 = vpop.f32.mrb[17].mxu0  ;;  %v5512_v35 = vsel %vm13736_vm0, %v11700_v25, %v5511_v36  ;;  %vm13187_vm0 = vcmask 932864   ;;  %v13740_v36 = vld [vmem:[#allocation36_spill] sm:$0xff] }
 0x916   :  { %v5535_v24 = vstv %s11748_s3  ;;  %s12082_s3 = sld [smem:[#allocation4 + $0xa7]] }
 0x917   :  { %6781 = vmatprep.subr.msk.mxu1 %vm4524_vm14, %v4507_v23 }
 0x918   :  { %6782 = vmatpush3.msk.msra.mxu1 %vm4524_vm14, %v4507_v23  ;;  %vm13738_vm14 = vcmask 7168   ;;  %v5644_v23 = vrot.slane %v11732_v48, 1 }
 0x919   :  { %6784 = vmatmul.mubr.msk.f32.vlgmr.msra.gmra.mrb[16].mxu1 %vm13732_vm9, %v4509_v18  ;;  %vm13186_vm9 = vcmask 1022976   ;;  %v5622_v18 = vrot.slane %v11728_v32, 1 }
 0x91a   :  { %6786 = vmatprep.mubr.msk.f32.mxu1 %vm13733_vm10, %v4510_v61  ;;  %v5521_v61 = vsel %vm13737_vm3, %v11703_v2, %v5520_v3  ;;  %vm13739_vm10 = vmmov %vm13738_vm14  ;;  %v5514_v2 = vsel %vm5508_vm13, %v5512_v35, 0.0  ;;  %vm13741_vm3 = vnez %v13740_v36 }
 0x91d   :  { %6787 = vmatmul.mubr.msk.f32.gmra.mrb[18].mxu1 %vm13734_vm2, %v4511_v0  ;;  %v5532_v0 = vsel %vm13738_vm14, %v11708_v6, %v5531_v17  ;;  %vm5635_vm2 = vcmask 941056   ;;  %v5516_v6 = vmul.f32 %v5515_v63, %v5514_v2  ;;  %v5666_v63 = vrot.slane %v11736_v19, 1 }
 0x9ec   :  { %v11666_v46 = vpop.f32.mrb[16].mxu1 }
 0x9ed   :  { %4619 = vrot.lane.b32.xlu0 %v11666_v46, %s13735_s4  ;;  %v11670_v58 = vpop.f32.mrb[17].mxu1 }
 0x9ee   :  { %4617 = vrot.lane.b32.xlu1 %v11670_v58, %s13735_s4 }
 0x9f0   :  { %v11674_v60 = vpop.f32.mrb[18].mxu1 }
 0x9f1   :  { %5780 = vrot.lane.b32.xlu0 %v10938_v26, %s8284_s15  ;;  %v11677_v16 = vpop.f32.mrb[19].mxu1 }
 0x9f2   :  { %4623 = vrot.lane.b32.xlu1 %v11674_v60, %s13735_s4 }
 0x9f5   :  { %5802 = vrot.lane.b32.xlu0 %v10938_v26, %s8285_s30 }
 0x9f6   :  { %4621 = vrot.lane.b32.xlu1 %v11677_v16, %s13735_s4  ;;  %s11778_s4 = sld [smem:[#allocation4 + $0x1d]] }
 0x9f9   :  { %5824 = vrot.lane.b32.xlu0 %v10938_v26, %s8286_s21 }
 0x9fa   :  { %5790 = vrot.lane.b32.xlu1 %v10917_v4, %s8284_s15  ;;  %s11787_s15 = sld [smem:[#allocation4 + $0x9f]] }
 0x9fd   :  { %5846 = vrot.lane.b32.xlu0 %v10938_v26, %s8287_s12 }
 0x9fe   :  { %5812 = vrot.lane.b32.xlu1 %v10917_v4, %s8285_s30  ;;  %s11792_s30 = sld [smem:[#allocation4 + $0x1e]] }
 0xa01   :  { %5868 = vrot.lane.b32.xlu0 %v10938_v26, %s8288_s29 }
 0xa02   :  { %5834 = vrot.lane.b32.xlu1 %v10917_v4, %s8286_s21  ;;  %s11794_s21 = sld [smem:[#allocation4 + $0xa0]] }
 0xa05   :  { %5890 = vrot.lane.b32.xlu0 %v10938_v26, %s8289_s0 }
 0xa06   :  { %5856 = vrot.lane.b32.xlu1 %v10917_v4, %s8287_s12  ;;  %s11813_s12 = sld [smem:[#allocation4 + $0x1f]] }
 0xa09   :  { %5912 = vrot.lane.b32.xlu0 %v10938_v26, %s8290_s16 }
 0xa0a   :  { %5878 = vrot.lane.b32.xlu1 %v10917_v4, %s8288_s29  ;;  %s11818_s29 = sld [smem:[#allocation4 + $0xa1]] }
 0xa0d   :  { %5934 = vrot.lane.b32.xlu0 %v10938_v26, %s8291_s17 }
 0xa0e   :  { %5900 = vrot.lane.b32.xlu1 %v10917_v4, %s8289_s0  ;;  %s11820_s0 = sld [smem:[#allocation4 + $0x20]] }
 0xa11   :  { %5956 = vrot.lane.b32.xlu0 %v10938_v26, %s8292_s24 }
 0xa12   :  { %5922 = vrot.lane.b32.xlu1 %v10917_v4, %s8290_s16  ;;  %s11845_s16 = sld [smem:[#allocation4 + $0x21]] }
 0xa15   :  { %5978 = vrot.lane.b32.xlu0 %v10938_v26, %s8293_s13 }
 0xa16   :  { %5944 = vrot.lane.b32.xlu1 %v10917_v4, %s8291_s17  ;;  %s11994_s17 = sld [smem:[#allocation4 + $0x22]] }
 0xa19   :  { %6000 = vrot.lane.b32.xlu0 %v10938_v26, %s8294_s14 }
 0xa1a   :  { %5966 = vrot.lane.b32.xlu1 %v10917_v4, %s8292_s24  ;;  %s12006_s24 = sld [smem:[#allocation4 + $0xa2]] }
 0xa1d   :  { %6022 = vrot.lane.b32.xlu0 %v10938_v26, %s8295_s11 }
 0xa1e   :  { %5988 = vrot.lane.b32.xlu1 %v10917_v4, %s8293_s13  ;;  %s12054_s13 = sld [smem:[#allocation4 + $0x23]] }
 0xa21   :  { %6044 = vrot.lane.b32.xlu0 %v10938_v26, %s8296_s8 }
 0xa22   :  { %6010 = vrot.lane.b32.xlu1 %v10917_v4, %s8294_s14  ;;  %s12056_s14 = sld [smem:[#allocation4 + $0x24]] }
 0xa25   :  { %6066 = vrot.lane.b32.xlu0 %v10938_v26, %s8297_s6  ;;  %v11734_v26 = vpop.permute.xlu0 %5654 }
 0xa26   :  { %6032 = vrot.lane.b32.xlu1 %v10917_v4, %s8295_s11  ;;  %s12060_s11 = sld [smem:[#allocation4 + $0x25]] }
 0xa29   :  { %v11746_v53 = vpop.permute.xlu0 %5675 }
 0xa2a   :  { %6054 = vrot.lane.b32.xlu1 %v10917_v4, %s8296_s8  ;;  %s12062_s8 = sld [smem:[#allocation4 + $0xa3]] }
 0xa2d   :  { %v11771_v20 = vpop.permute.xlu0 %5695 }
 0xa2e   :  { %6076 = vrot.lane.b32.xlu1 %v10917_v4, %s8297_s6  ;;  %v5550_v4 = vstv %s6445_s7  ;;  %s12064_s6 = sld [smem:[#allocation4 + $0x26]]  ;;  %s12066_s7 = sld [smem:[#allocation4 + $0xa4]] }
 0xa2f   :  { %v5551_v31 = vmul.f32 %v5550_v4, %v5549_v41  ;;  %v5541_v41 = vsel %vm13739_vm10, %v11710_v44, %v5540_v51  ;;  %v11833_v51 = vpop.permute.xlu1 %5724 }
 0xa30   :  { %v5543_v35 = vsel %vm13741_vm3, %v5541_v41, 0.0 }
 0xa31   :  { %v11774_v22 = vadd.f32 %v5555_v29, %v5551_v31  ;;  %v11822_v44 = vpop.permute.xlu0 %5715  ;;  %v5523_v31 = vsel %vm5508_vm13, %v5521_v61, 0.0  ;;  %v5534_v29 = vsel %vm13741_vm3, %v5532_v0, 0.0  ;;  %v5600_v61 = vrot.slane %v11723_v43, 1  ;;  %vm5609_vm3 = vmand %vm13728_vm8, %vm11252_vm15 }
 0xa32   :  { %v5661_v0 = vstv %s11778_s4  ;;  %v5525_v3 = vmul.f32 %v5524_v49, %v5523_v31  ;;  %v5536_v17 = vmul.f32 %v5535_v24, %v5534_v29  ;;  %v5545_v41 = vmul.f32 %v5544_v57, %v5543_v35  ;;  %v13744_v29 = vld [vmem:[#allocation43_spill] sm:$0xff]  ;;  %v13757_v35 = vld [vmem:[#allocation45_spill] sm:$0xff]  ;;  %s12127_s4 = sld [smem:[#allocation4 + $0x2d]] }
 0xa33   :  { %vm13742_vm13 = vcmask 1039360   ;;  %v5590_v57 = vrot.slane %v11721_v8, 1  ;;  %v5601_v31 = vsel %vm5591_vm12, %v11723_v43, %v5600_v61  ;;  %v5645_v43 = vsel %vm5635_vm2, %v11732_v48, %v5644_v23  ;;  %v13746_v61 = vld [vmem:[#allocation40_spill] sm:$0xff] }
 0xa34   :  { %v5526_v52 = vadd.f32 %v5525_v3, %v5516_v6  ;;  %v5579_v4 = vsel %vm13742_vm13, %v11717_v12, %v5578_v45  ;;  %vm13743_vm14 = vmmov %vm13742_vm13  ;;  %v5686_v12 = vrot.slane %v11752_v33, 1  ;;  %v5546_v6 = vadd.f32 %v5545_v41, %v5536_v17 }
 0xa35   :  { %v5566_v49 = vsel %vm13743_vm14, %v11714_v9, %v5565_v38  ;;  %v11859_v24 = vpop.permute.xlu0 %5736  ;;  %v5623_v9 = vsel %vm13186_vm9, %v11728_v32, %v5622_v18  ;;  %v11871_v38 = vpop.permute.xlu1 %5746  ;;  %vm13745_vm13 = vnez %v13744_v29  ;;  %vm13747_vm10 = vnez %v13746_v61 }
 0xa36   :  { %vm5631_vm14 = vmand %vm13745_vm13, %vm11095_vm11  ;;  %v5581_v32 = vsel %vm13747_vm10, %v5579_v4, 0.0  ;;  %v5568_v18 = vsel %vm13747_vm10, %v5566_v49, 0.0  ;;  %v5612_v17 = vrot.slane %v11726_v11, 1  ;;  %v5667_v48 = vsel %vm13187_vm0, %v11736_v19, %v5666_v63 }
 0xa37   :  { %vm5653_vm9 = vmand %vm13745_vm13, %vm11129_vm7  ;;  %v5527_v23 = vadd.f32 %v5526_v52, %v11652_v1  ;;  %v5625_v4 = vsel %vm5609_vm3, %v5623_v9, 0.0  ;;  %v5592_v41 = vsel %vm5591_vm12, %v11721_v8, %v5590_v57  ;;  %v5647_v52 = vsel %vm5631_vm14, %v5645_v43, 0.0 }
 0xa38   :  { %vm13748_vm10 = vmand %vm13728_vm8, %vm11180_vm1  ;;  %v5634_v1 = vrot.slane %v11730_v47, 1  ;;  %vm13749_vm0 = vcmask 924672   ;;  %v5706_v19 = vrot.slane %v11780_v37, 1  ;;  %v13750_v57 = vstv %s11754_s22 }
 0xa39   :  { %v5603_v49 = vsel %vm13748_vm10, %v5601_v31, 0.0  ;;  %v5687_v8 = vsel %vm13749_vm0, %v11752_v33, %v5686_v12  ;;  %v5547_v63 = vadd.f32 %v5546_v6, %v5527_v23  ;;  %v5570_v9 = vmul.f32 %v13750_v57, %v5568_v18  ;;  %v11922_v43 = vpop.permute.xlu0 %5758  ;;  %vm13752_vm12 = vmmov %vm13748_vm10  ;;  %v11934_v18 = vpop.permute.xlu1 %5768 }
 0xa3a   :  { %v5669_v31 = vsel %vm5653_vm9, %v5667_v48, 0.0  ;;  %v13751_v3 = vstv %s11744_s18  ;;  %v5594_v33 = vsel %vm13752_vm12, %v5592_v41, 0.0  ;;  %vm13753_vm0 = vcmask 1022976   ;;  %s12080_s18 = sld [smem:[#allocation4 + $0x29]] }
 0xa3b   :  { %v5583_v36 = vmul.f32 %v13751_v3, %v5581_v32  ;;  %v5614_v12 = vsel %vm13753_vm0, %v11726_v11, %v5612_v17  ;;  %v5656_v6 = vrot.slane %v11734_v26, 1  ;;  %v13754_v48 = vstv %s11756_s23  ;;  %s13781_s23 = sld [smem:[#allocation84_spill]] }
 0xa3c   :  { %v5627_v23 = vmul.f32 %v13754_v48, %v5625_v4  ;;  %v13755_v57 = vstv %s11750_s19  ;;  %v13756_v3 = vstv %s11761_s10  ;;  %vm13758_vm10 = vnez %v13757_v35  ;;  %s12092_s10 = sld [smem:[#allocation4 + $0xa8]] }
 0xa3d   :  { %v5605_v61 = vmul.f32 %v13755_v57, %v5603_v49  ;;  %v5649_v32 = vmul.f32 %v13756_v3, %v5647_v52  ;;  %v5689_v25 = vsel %vm13758_vm10, %v5687_v8, 0.0  ;;  %v13759_v45 = vstv %s11765_s27  ;;  %s12099_s27 = sld [smem:[#allocation4 + $0xa9]] }
 0xa3e   :  { %v5671_v2 = vmul.f32 %v13759_v45, %v5669_v31  ;;  %v5636_v41 = vsel %vm5635_vm2, %v11730_v47, %v5634_v1  ;;  %vm13760_vm12 = vcmask 916480   ;;  %v5677_v17 = vrot.slane %v11746_v53, 1 }
 0xa3f   :  { %v5707_v11 = vsel %vm13760_vm12, %v11780_v37, %v5706_v19  ;;  %vm5739_vm0 = vcmask 900096   ;;  %v5557_v4 = vadd.f32 %v11774_v22, %v5547_v63  ;;  %v5584_v49 = vadd.f32 %v5583_v36, %v5570_v9  ;;  %v13764_v36 = vld [vmem:[#allocation50_spill] sm:$0xff] }
 0xa40   :  { %v13761_v48 = vstv %s11758_s5  ;;  %v5616_v45 = vsel %vm5609_vm3, %v5614_v12, 0.0  ;;  %v13762_v47 = vstv %s11776_s2  ;;  %vm13763_vm2 = vcmask 932864   ;;  %s12090_s5 = sld [smem:[#allocation4 + $0x2a]] }
 0xa41   :  { %v5596_v52 = vmul.f32 %v13761_v48, %v5594_v33  ;;  %v5691_v1 = vmul.f32 %v13762_v47, %v5689_v25  ;;  %v5658_v37 = vsel %vm13763_vm2, %v11734_v26, %v5656_v6  ;;  %v5697_v19 = vrot.slane %v11771_v20, 1  ;;  %s12108_s2 = sld [smem:[#allocation4 + $0xaa]] }
 0xa42   :  { %v5638_v59 = vsel %vm5631_vm14, %v5636_v41, 0.0  ;;  %vm13765_vm8 = vnez %v13764_v36  ;;  %v5726_v25 = vrot.slane %v11833_v51, 1  ;;  %vm5761_vm3 = vcmask 891904   ;;  %v13773_v36 = vld [vmem:[#allocation55_spill] sm:$0xff] }
 0xa43   :  { %v5709_v63 = vsel %vm13765_vm8, %v5707_v11, 0.0  ;;  %v13766_v9 = vstv %s11763_s25  ;;  %vm13767_vm12 = vcmask 924672   ;;  %v5717_v12 = vrot.slane %v11822_v44, 1  ;;  %s12097_s25 = sld [smem:[#allocation4 + $0x2b]] }
 0xa44   :  { %v5618_v33 = vmul.f32 %v13766_v9, %v5616_v45  ;;  %v5585_v57 = vadd.f32 %v5584_v49, %v5557_v4  ;;  %v5606_v3 = vadd.f32 %v5605_v61, %v5596_v52  ;;  %v5660_v41 = vsel %vm5653_vm9, %v5658_v37, 0.0 }
 0xa45   :  { %vm13769_vm14 = vcmask 916480   ;;  %v5748_v49 = vrot.slane %v11871_v38, 1  ;;  %v5662_v47 = vmul.f32 %v5661_v0, %v5660_v41  ;;  %vm13770_vm9 = vcmask 908288  }
 0xa46   :  { %v5760_v37 = vrot.slane %v11922_v43, 1  ;;  %vm13771_vm2 = vmmov %vm13770_vm9  ;;  %v5774_v29 = vstv %s12006_s24  ;;  %s12433_s24 = sld [smem:[#allocation4 + $0xb0]] }
 0xa47   :  { %v5727_v35 = vsel %vm13771_vm2, %v11833_v51, %v5726_v25  ;;  %v5749_v51 = vsel %vm5739_vm0, %v11871_v38, %v5748_v49  ;;  %v13776_v38 = vstv %s11787_s15  ;;  %s12129_s15 = sld [smem:[#allocation4 + $0xab]] }
 0xa5f   :  { %v4620_v8 = vpop.permute.xlu0 %4619 }
 0xa60   :  { %v4630_v31 = vadd.f32 %v11666_v46, %v4620_v8  ;;  %v4618_v22 = vpop.permute.xlu1 %4617  ;;  %v5678_v46 = vsel %vm13767_vm12, %v11746_v53, %v5677_v17  ;;  %v5698_v53 = vsel %vm13769_vm14, %v11771_v20, %v5697_v19  ;;  %v5738_v17 = vrot.slane %v11859_v24, 1 }
 0xa61   :  { %v4629_v26 = vadd.f32 %v4618_v22, %v11670_v58  ;;  %v13768_v58 = vstv %s11767_s28  ;;  %v5680_v61 = vsel %vm13758_vm10, %v5678_v46, 0.0  ;;  %v5628_v8 = vadd.f32 %v5627_v23, %v5618_v33  ;;  %s12106_s28 = sld [smem:[#allocation4 + $0x2c]] }
 0xa62   :  { %v6395_v6 = vmul.f32 -1.442695, %v4630_v31  ;;  %v5640_v45 = vmul.f32 %v13768_v58, %v5638_v59  ;;  %v5718_v20 = vsel %vm13770_vm9, %v11822_v44, %v5717_v12  ;;  %v5607_v19 = vadd.f32 %v5606_v3, %v5585_v57 }
 0xa63   :  { %v6394_v11 = vmul.f32 -1.442695, %v4629_v26  ;;  %v11984_v48 = vpop.permute.xlu0 %5780  ;;  %v5700_v31 = vsel %vm13765_vm8, %v5698_v53, 0.0  ;;  %v13772_v23 = vstv %s11792_s30  ;;  %v5770_v44 = vrot.slane %v11934_v18, 1  ;;  %vm5735_vm8 = vmand %vm13745_vm13, %vm11180_vm1  ;;  %s12138_s30 = sld [smem:[#allocation4 + $0x2e]] }
 0xa64   :  { %8178 = vpow2.f32 %v6395_v6  ;;  %v4624_v4 = vpop.permute.xlu1 %4623  ;;  %v5650_v0 = vadd.f32 %v5649_v32, %v5640_v45  ;;  %v5682_v59 = vmul.f32 %v13772_v23, %v5680_v61  ;;  %v5740_v26 = vsel %vm5739_vm0, %v11859_v24, %v5738_v17  ;;  %vm5757_vm0 = vmand %vm13745_vm13, %vm11252_vm15 }
 0xa65   :  { %8180 = vpow2.f32 %v6394_v11  ;;  %v4632_v52 = vadd.f32 %v11674_v60, %v4624_v4  ;;  %vm13774_vm10 = vnez %v13773_v36  ;;  %v5629_v46 = vadd.f32 %v5628_v8, %v5607_v19 }
 0xa66   :  { %v5720_v25 = vsel %vm13774_vm10, %v5718_v20, 0.0  ;;  %v5672_v32 = vadd.f32 %v5671_v2, %v5662_v47  ;;  %v13775_v12 = vstv %s11813_s12  ;;  %v5762_v24 = vsel %vm5761_vm3, %v11922_v43, %v5760_v37  ;;  %s12286_s12 = sld [smem:[#allocation4 + $0x2f]] }
 0xa67   :  { %v6397_v22 = vmul.f32 -1.442695, %v4632_v52  ;;  %v12008_v60 = vpop.permute.xlu0 %5802  ;;  %v5702_v6 = vmul.f32 %v13775_v12, %v5700_v31  ;;  %v5711_v57 = vmul.f32 %v13776_v38, %v5709_v63  ;;  %v5729_v3 = vsel %vm13774_vm10, %v5727_v35, 0.0 }
 0xa68   :  { %v4622_v9 = vpop.permute.xlu1 %4621  ;;  %v5651_v11 = vadd.f32 %v5650_v0, %v5629_v46  ;;  %v5692_v58 = vadd.f32 %v5691_v1, %v5682_v59  ;;  %v13777_v45 = vstv %s11820_s0  ;;  %v5771_v43 = vsel %vm5761_vm3, %v11934_v18, %v5770_v44  ;;  %s12362_s0 = sld [smem:[#allocation4 + $0xae]] }
 0xa69   :  { %8182 = vpow2.f32 %v6397_v22  ;;  %v4631_v33 = vadd.f32 %v4622_v9, %v11677_v16  ;;  %v5742_v16 = vsel %vm5735_vm8, %v5740_v26, 0.0  ;;  %v5722_v53 = vmul.f32 %v13777_v45, %v5720_v25 }
 0xa6a   :  { %v5751_v17 = vsel %vm5735_vm8, %v5749_v51, 0.0  ;;  %v5765_v4 = vstv %s11994_s17  ;;  %v5764_v61 = vsel %vm5757_vm0, %v5762_v24, 0.0  ;;  %v5673_v52 = vadd.f32 %v5672_v32, %v5651_v11  ;;  %s12431_s17 = sld [smem:[#allocation4 + $0x30]] }
 0xa6b   :  { %v6396_v41 = vmul.f32 -1.442695, %v4631_v33  ;;  %v12032_v2 = vpop.permute.xlu0 %5824  ;;  %v13778_v1 = vstv %s11794_s21  ;;  %v5712_v47 = vadd.f32 %v5711_v57, %v5702_v6  ;;  %v13779_v20 = vstv %s11845_s16  ;;  %v12087_v57 = vld [vmem:[%s13781_s23] ss:$2 sm:$0xf]  ;;  %s12163_s21 = sld [smem:[#allocation4 + $0xac]] }
 0xa6c   :  { %v12042_v63 = vpop.permute.xlu1 %5790  ;;  %v5731_v8 = vmul.f32 %v13778_v1, %v5729_v3  ;;  %v5744_v37 = vmul.f32 %v13779_v20, %v5742_v16  ;;  %v5773_v35 = vsel %vm5757_vm0, %v5771_v43, 0.0  ;;  %v5693_v18 = vadd.f32 %v5692_v58, %v5673_v52  ;;  %s12395_s16 = sld [smem:[#allocation4 + $0xaf]] }
 0xa6d   :  { %8184 = vpow2.f32 %v6396_v41  ;;  %v13780_v0 = vstv %s11818_s29  ;;  %v5766_v44 = vmul.f32 %v5765_v4, %v5764_v61  ;;  %v5775_v51 = vmul.f32 %v5774_v29, %v5773_v35  ;;  %s12345_s29 = sld [smem:[#allocation4 + $0xad]] }
 0xa6e   :  { %v8179_v49 = vpop.eup %8178  ;;  %v5753_v23 = vmul.f32 %v13780_v0, %v5751_v17  ;;  %v5732_v59 = vadd.f32 %v5731_v8, %v5722_v53  ;;  %v5713_v9 = vadd.f32 %v5712_v47, %v5693_v18  ;;  %vm69_vm13 = vcmp.ge.f32.partialorder %v12087_v57, -2.0 }
 0xa6f   :  { %v8181_v19 = vpop.eup %8180  ;;  %v4646_v31 = vadd.f32 1.0, %v8179_v49  ;;  %v12050_v22 = vpop.permute.xlu0 %5846  ;;  %v5776_v12 = vadd.f32 %v5775_v51, %v5766_v44  ;;  %vm70_vm3 = vcmp.lt.f32.partialorder %v12087_v57, 14.0  ;;  %vm5783_vm12 = vcmask 809984  }
 0xa70   :  { %v12058_v26 = vpop.permute.xlu1 %5812  ;;  %v5754_v36 = vadd.f32 %v5753_v23, %v5744_v37  ;;  %v4645_v25 = vadd.f32 1.0, %v8181_v19  ;;  %v5733_v32 = vadd.f32 %v5732_v59, %v5713_v9  ;;  %v5792_v58 = vrot.slane %v12042_v63, 1  ;;  %vm12118_vm2 = vmand %vm69_vm13, %vm70_vm3 }
 0xa71   :  { %8186 = vrcp.f32 %v4646_v31  ;;  %v5787_v53 = vstv %s12054_s13  ;;  %vm5805_vm14 = vcmask 801792   ;;  %v5809_v43 = vstv %s12056_s14  ;;  %vm5779_vm13 = vmand %vm12118_vm2, %vm11095_vm11 }
 0xa72   :  { %v5755_v38 = vadd.f32 %v5754_v36, %v5733_v32  ;;  %8188 = vrcp.f32 %v4645_v25  ;;  %v5782_v17 = vrot.slane %v11984_v48, 1  ;;  %vm5827_vm9 = vcmask 793600   ;;  %vm5801_vm3 = vmand %vm12118_vm2, %vm11129_vm7 }
 0xa73   :  { %v8183_v33 = vpop.eup %8182  ;;  %v12070_v46 = vpop.permute.xlu0 %5868  ;;  %v5831_v4 = vstv %s12060_s11  ;;  %v5796_v52 = vstv %s12062_s8  ;;  %vm5849_vm10 = vcmask 785408   ;;  %v5853_v1 = vstv %s12064_s6  ;;  %s13808_s11 = sld [smem:[#allocation86_spill]] }
 0xa74   :  { %v12074_v6 = vpop.permute.xlu1 %5834  ;;  %v4648_v24 = vadd.f32 1.0, %v8183_v33  ;;  %v12101_v41 = vadd.f32 %v5776_v12, %v5755_v38  ;;  %v5818_v8 = vstv %s12066_s7  ;;  %v5793_v20 = vsel %vm5783_vm12, %v12042_v63, %v5792_v58  ;;  %s13810_s7 = sld [smem:[#allocation88_spill]] }
 0xa75   :  { %v5814_v37 = vrot.slane %v12058_v26, 1  ;;  %vm5871_vm8 = vcmask 777216   ;;  %v5875_v19 = vstv %s12068_s1  ;;  %v5840_v29 = vstv %s12072_s9 }
 0xa76   :  { %8190 = vrcp.f32 %v4648_v24  ;;  %v5804_v31 = vrot.slane %v12008_v60, 1  ;;  %v5826_v63 = vrot.slane %v12032_v2, 1  ;;  %v5897_v18 = vstv %s12076_s20 }
 0xa77   :  { %v8185_v3 = vpop.eup %8184  ;;  %v12095_v16 = vpop.permute.xlu0 %5890  ;;  %v5862_v0 = vstv %s12078_s26  ;;  %v5784_v23 = vsel %vm5783_vm12, %v11984_v48, %v5782_v17  ;;  %v5836_v59 = vrot.slane %v12074_v6, 1  ;;  %v5919_v44 = vstv %s12080_s18 }
 0xa78   :  { %v4647_v11 = vadd.f32 1.0, %v8185_v3  ;;  %v12104_v45 = vpop.permute.xlu1 %5856  ;;  %v5884_v9 = vstv %s12082_s3  ;;  %v5795_v51 = vsel %vm5779_vm13, %v5793_v20, 0.0  ;;  %v5906_v33 = vstv %s12092_s10  ;;  %s13809_s3 = sld [smem:[#allocation85_spill]] }
 0xa79   :  { %v5815_v12 = vsel %vm5805_vm14, %v12058_v26, %v5814_v37  ;;  %v13784_v24 = vmov 1   ;;  %v5928_v3 = vstv %s12099_s27  ;;  %v5786_v17 = vsel %vm5779_vm13, %v5784_v23, 0.0 }
 0xa7a   :  { %8192 = vrcp.f32 %v4647_v11  ;;  %v5806_v26 = vsel %vm5805_vm14, %v12008_v60, %v5804_v31  ;;  %v5858_v20 = vrot.slane %v12104_v45, 1  ;;  %vm5915_vm12 = vcmask 760832   ;;  %vm5823_vm14 = vmand %vm12118_vm2, %vm13648_vm5 }
 0xa7b   :  { %v8187_v61 = vpop.eup %8186  ;;  %v12125_v47 = vpop.permute.xlu0 %5912  ;;  %vm72_vm0 = vcmp.ge.f32.partialorder %v12087_v57, -3.0  ;;  %vm73_vm13 = vcmp.lt.f32.partialorder %v12087_v57, 13.0  ;;  %v5797_v60 = vmul.f32 %v5796_v52, %v5795_v51  ;;  %v5837_v37 = vsel %vm5827_vm9, %v12074_v6, %v5836_v59 }
 0xa7c   :  { %4690 = vperm.xlu0 %8140, %v8187_v61   ;;  %4664 = vperm.xlu1 %8139, %v8187_v61   ;;  %v12136_v35 = vpop.permute.xlu1 %5878  ;;  %v8189_v48 = vpop.eup %8188  ;;  %v5828_v61 = vsel %vm5827_vm9, %v12032_v2, %v5826_v63  ;;  %v5848_v2 = vrot.slane %v12050_v22, 1  ;;  %v5817_v23 = vsel %vm5801_vm3, %v5815_v12, 0.0  ;;  %v5972_v51 = vstv %s12129_s15  ;;  %vm5867_vm9 = vmand %vm12118_vm2, %vm13654_vm6 }
 0xa7d   :  { %v5880_v31 = vrot.slane %v12136_v35, 1  ;;  %v5788_v6 = vmul.f32 %v5787_v53, %v5786_v17  ;;  %v5808_v59 = vsel %vm5801_vm3, %v5806_v26, 0.0  ;;  %v5892_v36 = vrot.slane %v12095_v16, 1  ;;  %vm5845_vm3 = vmand %vm12118_vm2, %vm13652_vm4 }
 0xa7e   :  { %v5830_v52 = vsel %vm5823_vm14, %v5828_v61, 0.0  ;;  %v5839_v53 = vsel %vm5823_vm14, %v5837_v37, 0.0  ;;  %v5859_v17 = vsel %vm5849_vm10, %v12104_v45, %v5858_v20  ;;  %v5850_v61 = vsel %vm5849_vm10, %v12050_v22, %v5848_v2  ;;  %vm5889_vm10 = vmand %vm12118_vm2, %vm11180_vm1 }
 0xa7f   :  { %v12159_v25 = vpop.permute.xlu0 %5934  ;;  %v5798_v58 = vadd.f32 %v5797_v60, %v5788_v6  ;;  %v5819_v37 = vmul.f32 %v5818_v8, %v5817_v23  ;;  %v5881_v45 = vsel %vm5871_vm8, %v12136_v35, %v5880_v31  ;;  %v5994_v8 = vstv %s12163_s21 }
 0xa80   :  { %8141 = vset.pattern.permute.xlu0 %v13628_v10  ;;  %8142 = vset.pattern.permute.xlu1 %v13784_v24  ;;  %v5901_v38 = vpop.permute.xlu1 %5900  ;;  %v12196_v63 = vpop.eup %8190  ;;  %v5841_v2 = vmul.f32 %v5840_v29, %v5839_v53  ;;  %vm13785_vm14 = vcmask 769024   ;;  %v5914_v35 = vrot.slane %v12125_v47, 1  ;;  %v5832_v29 = vmul.f32 %v5831_v4, %v5830_v52 }
 0xa81   :  { %4686 = vperm.xlu1 %8142, %v8189_v48   ;;  %4659 = vperm.xlu0 %8141, %v8189_v48   ;;  %v5870_v48 = vrot.slane %v12070_v46, 1  ;;  %v5902_v26 = vrot.slane %v5901_v38, 1  ;;  %v5852_v23 = vsel %vm5845_vm3, %v5850_v61, 0.0 }
 0xa82   :  { %v5842_v53 = vadd.f32 %v5841_v2, %v5832_v29 }
 0xa83   :  { %v12204_v11 = vpop.permute.xlu0 %5956  ;;  %v5872_v20 = vsel %vm5871_vm8, %v12070_v46, %v5870_v48  ;;  %v5861_v46 = vsel %vm5845_vm3, %v5859_v17, 0.0  ;;  %vm13786_vm8 = vmmov %vm13785_vm14  ;;  %v5799_v48 = vadd.f32 %v5798_v58, %v12101_v41  ;;  %v5936_v58 = vrot.slane %v12159_v25, 1 }
 0xa84   :  { %v8193_v32 = vpop.eup %8192  ;;  %v5923_v12 = vpop.permute.xlu1 %5922  ;;  %v5874_v4 = vsel %vm5867_vm9, %v5872_v20, 0.0  ;;  %vm6003_vm3 = vcmask 654336   ;;  %v5916_v17 = vsel %vm5915_vm12, %v12125_v47, %v5914_v35  ;;  %v5854_v47 = vmul.f32 %v5853_v1, %v5852_v23 }
 0xa85   :  { %8143 = vset.pattern.permute.xlu1 %v13628_v10  ;;  %4674 = vperm.xlu0 %8141, %v12196_v63   ;;  %v5810_v10 = vmul.f32 %v5809_v43, %v5808_v59  ;;  %v5924_v60 = vrot.slane %v5923_v12, 1  ;;  %v5894_v43 = vsel %vm13785_vm14, %v12095_v16, %v5892_v36  ;;  %v5883_v16 = vsel %vm5867_vm9, %v5881_v45, 0.0  ;;  %vm5911_vm9 = vmand %vm12118_vm2, %vm11252_vm15 }
 0xa86   :  { %4669 = vperm.xlu1 %8143, %v8193_v32   ;;  %v5903_v36 = vsel %vm13786_vm8, %v5901_v38, %v5902_v26  ;;  %vm5981_vm14 = vcmask 662528   ;;  %v5896_v41 = vsel %vm5889_vm10, %v5894_v43, 0.0  ;;  %v5863_v38 = vmul.f32 %v5862_v0, %v5861_v46  ;;  %vm12309_vm8 = vmand %vm72_vm0, %vm73_vm13 }
 0xa87   :  { %v12249_v22 = vpop.permute.xlu0 %5978  ;;  %v5820_v6 = vadd.f32 %v5819_v37, %v5810_v10  ;;  %v5885_v26 = vmul.f32 %v5884_v9, %v5883_v16  ;;  %v5876_v9 = vmul.f32 %v5875_v19, %v5874_v4  ;;  %v5958_v61 = vrot.slane %v12204_v11, 1  ;;  %vm5933_vm13 = vmand %vm12309_vm8, %vm11095_vm11 }
 0xa88   :  { %v5945_v31 = vpop.permute.xlu1 %5944  ;;  %v5898_v45 = vmul.f32 %v5897_v18, %v5896_v41  ;;  %vm13789_vm0 = vcmask 678912   ;;  %v5918_v1 = vsel %vm5911_vm9, %v5916_v17, 0.0  ;;  %v5980_v46 = vrot.slane %v12249_v22, 1  ;;  %vm5999_vm11 = vmand %vm12309_vm8, %vm13652_vm4 }
 0xa89   :  { %v5946_v52 = vrot.slane %v5945_v31, 1  ;;  %v5821_v57 = vadd.f32 %v5820_v6, %v5799_v48  ;;  %v5886_v43 = vadd.f32 %v5885_v26, %v5876_v9  ;;  %vm13791_vm2 = vcmask 670720  }
 0xa8a   :  { %8144 = vset.pattern.permute.xlu1 %v13784_v24  ;;  %v5925_v24 = vsel %vm5915_vm12, %v5923_v12, %v5924_v60  ;;  %vm6025_vm12 = vcmask 646144   ;;  %v5864_v60 = vadd.f32 %v5863_v38, %v5854_v47  ;;  %v5920_v27 = vmul.f32 %v5919_v44, %v5918_v1 }
 0xa8b   :  { %v6001_v59 = vpop.permute.xlu0 %6000  ;;  %4694 = vperm.xlu1 %8144, %v8193_v32   ;;  %v5905_v32 = vsel %vm5889_vm10, %v5903_v36, 0.0  ;;  %v5927_v10 = vsel %vm5911_vm9, %v5925_v24, 0.0  ;;  %v5947_v20 = vsel %vm13789_vm0, %v5945_v31, %v5946_v52  ;;  %vm13790_vm10 = vmmov %vm13789_vm0  ;;  %vm6047_vm0 = vcmask 637952  }
 0xa8c   :  { %v5967_v12 = vpop.permute.xlu1 %5966  ;;  %v5938_v19 = vsel %vm13790_vm10, %v12159_v25, %v5936_v58  ;;  %v5907_v18 = vmul.f32 %v5906_v33, %v5905_v32  ;;  %v5843_v49 = vadd.f32 %v5842_v53, %v5821_v57  ;;  %vm5955_vm9 = vmand %vm12309_vm8, %vm11129_vm7  ;;  %v5929_v33 = vmul.f32 %v5928_v3, %v5927_v10 }
 0xa8d   :  { %v5968_v37 = vrot.slane %v5967_v12, 1  ;;  %vm13792_vm10 = vmmov %vm13791_vm2  ;;  %v6002_v3 = vrot.slane %v6001_v59, 1  ;;  %v6051_v23 = vstv %s12286_s12  ;;  %v5982_v34 = vsel %vm5981_vm14, %v12249_v22, %v5980_v46 }
 0xa8e   :  { %v5960_v25 = vsel %vm13792_vm10, %v12204_v11, %v5958_v61  ;;  %v5940_v11 = vsel %vm5933_vm13, %v5938_v19, 0.0  ;;  %v5865_v16 = vadd.f32 %v5864_v60, %v5843_v49  ;;  %v5908_v36 = vadd.f32 %v5907_v18, %v5898_v45  ;;  %vm5977_vm7 = vmand %vm12309_vm8, %vm13648_vm5 }
 0xa8f   :  { %v6023_v2 = vpop.permute.xlu0 %6022  ;;  %4698 = vperm.xlu1 %8144, %v12196_v63   ;;  %v5969_v35 = vsel %vm13791_vm2, %v5967_v12, %v5968_v37  ;;  %v5949_v63 = vsel %vm5933_vm13, %v5947_v20, 0.0  ;;  %v5962_v52 = vsel %vm5955_vm9, %v5960_v25, 0.0  ;;  %v13793_v44 = vstv %s12108_s2  ;;  %vm6043_vm5 = vmand %vm12309_vm8, %vm11180_vm1 }
 0xa90   :  { %v5989_v31 = vpop.permute.xlu1 %5988  ;;  %v5971_v48 = vsel %vm5955_vm9, %v5969_v35, 0.0  ;;  %v5951_v41 = vmul.f32 %v13793_v44, %v5949_v63  ;;  %v6024_v38 = vrot.slane %v6023_v2, 1  ;;  %v5887_v24 = vadd.f32 %v5886_v43, %v5865_v16 }
 0xa91   :  { %v5990_v29 = vrot.slane %v5989_v31, 1  ;;  %v13794_v53 = vstv %s12090_s5  ;;  %v5930_v26 = vadd.f32 %v5929_v33, %v5920_v27  ;;  %v6004_v12 = vsel %vm6003_vm3, %v6001_v59, %v6002_v3 }
 0xa92   :  { %v5942_v17 = vmul.f32 %v13794_v53, %v5940_v11  ;;  %v5973_v47 = vmul.f32 %v5972_v51, %v5971_v48  ;;  %v13795_v61 = vstv %s12097_s25  ;;  %v5984_v51 = vsel %vm5977_vm7, %v5982_v34, 0.0 }
 0xa93   :  { %v5991_v6 = vsel %vm5981_vm14, %v5989_v31, %v5990_v29  ;;  %v6045_v4 = vpop.permute.xlu0 %6044  ;;  %v5964_v37 = vmul.f32 %v13795_v61, %v5962_v52  ;;  %v6016_v59 = vstv %s12345_s29  ;;  %v5909_v45 = vadd.f32 %v5908_v36, %v5887_v24  ;;  %vm6021_vm14 = vmand %vm12309_vm8, %vm13654_vm6 }
 0xa94   :  { %v6011_v58 = vpop.permute.xlu1 %6010  ;;  %v5993_v22 = vsel %vm5977_vm7, %v5991_v6, 0.0  ;;  %v6046_v9 = vrot.slane %v6045_v4, 1  ;;  %v5952_v10 = vadd.f32 %v5951_v41, %v5942_v17  ;;  %v6026_v20 = vsel %vm6025_vm12, %v6023_v2, %v6024_v38  ;;  %vm6065_vm6 = vmand %vm12309_vm8, %vm11252_vm15 }
 0xa95   :  { %v6012_v32 = vrot.slane %v6011_v58, 1  ;;  %v6006_v19 = vsel %vm5999_vm11, %v6004_v12, 0.0  ;;  %v5995_v18 = vmul.f32 %v5994_v8, %v5993_v22  ;;  %v6038_v49 = vstv %s12362_s0 }
 0xa96   :  { %v5931_v2 = vadd.f32 %v5930_v26, %v5909_v45  ;;  %v13796_v46 = vstv %s12106_s28  ;;  %v5974_v31 = vadd.f32 %v5973_v47, %v5964_v37  ;;  %v6048_v25 = vsel %vm6047_vm0, %v6045_v4, %v6046_v9 }
 0xa97   :  { %v6013_v57 = vsel %vm6003_vm3, %v6011_v58, %v6012_v32  ;;  %v6067_v60 = vpop.permute.xlu0 %6066  ;;  %v5986_v35 = vmul.f32 %v13796_v46, %v5984_v51  ;;  %v6028_v14 = vsel %vm6021_vm14, %v6026_v20, 0.0  ;;  %v13797_v27 = vstv %s12127_s4  ;;  %v13801_v46 = vld [vmem:[#allocation30_spill] sm:$0xff] }
 0xa98   :  { %v6015_v5 = vsel %vm5999_vm11, %v6013_v57, 0.0  ;;  %v6033_v1 = vpop.permute.xlu1 %6032  ;;  %v6068_v33 = vrot.slane %v6067_v60, 1  ;;  %v5953_v29 = vadd.f32 %v5952_v10, %v5931_v2  ;;  %v6008_v11 = vmul.f32 %v13797_v27, %v6006_v19  ;;  %v13800_v2 = vld [vmem:[#allocation27_spill] sm:$0xff] }
 0xa99   :  { %v6034_v43 = vrot.slane %v6033_v1, 1  ;;  %v6017_v8 = vmul.f32 %v6016_v59, %v6015_v5  ;;  %vm6069_vm4 = vcmask 629760   ;;  %v5996_v36 = vadd.f32 %v5995_v18, %v5986_v35  ;;  %v13802_v35 = vld [vmem:[#allocation29_spill] sm:$0xff] }
 0xa9a   :  { %v6050_v48 = vsel %vm6043_vm5, %v6048_v25, 0.0  ;;  %v13798_v52 = vstv %s12138_s30  ;;  %v6060_v44 = vstv %s12395_s16  ;;  %v5975_v41 = vadd.f32 %v5974_v31, %v5953_v29 }
 0xa9b   :  { %v6035_v63 = vsel %vm6025_vm12, %v6033_v1, %v6034_v43  ;;  %v6030_v34 = vmul.f32 %v13798_v52, %v6028_v14  ;;  %v6018_v38 = vadd.f32 %v6017_v8, %v6008_v11  ;;  %v6070_v56 = vsel %vm6069_vm4, %v6067_v60, %v6068_v33 }
 0xa9c   :  { %v6037_v3 = vsel %vm6021_vm14, %v6035_v63, 0.0  ;;  %v6055_v16 = vpop.permute.xlu1 %6054  ;;  %v6052_v24 = vmul.f32 %v6051_v23, %v6050_v48  ;;  %v5997_v26 = vadd.f32 %v5996_v36, %v5975_v41  ;;  %v6073_v22 = vstv %s12431_s17 }
 0xa9d   :  { %v6039_v6 = vmul.f32 %v6038_v49, %v6037_v3  ;;  %v6056_v4 = vrot.slane %v6055_v16, 1  ;;  %v6072_v9 = vsel %vm6065_vm6, %v6070_v56, 0.0  ;;  %v6082_v61 = vstv %s12433_s24  ;;  %v13799_v49 = vld [vmem:[#allocation28_spill] sm:$0xff]  ;;  %v13805_v56 = vld [vmem:[#allocation67_spill] sm:$0xff] }
 0xa9e   :  { %v6019_v23 = vadd.f32 %v6018_v38, %v5997_v26  ;;  %v6074_v59 = vmul.f32 %v6073_v22, %v6072_v9 }
 0xa9f   :  { %v6057_v58 = vsel %vm6047_vm0, %v6055_v16, %v6056_v4  ;;  %v6040_v32 = vadd.f32 %v6039_v6, %v6030_v34  ;;  %v13803_v4 = vld [vmem:[#allocation63_spill] sm:$0xff] }
 0xaa0   :  { %v6059_v53 = vsel %vm6043_vm5, %v6057_v58, 0.0  ;;  %v6077_v17 = vpop.permute.xlu1 %6076 }
 0xaa1   :  { %v6061_v12 = vmul.f32 %v6060_v44, %v6059_v53  ;;  %v6078_v47 = vrot.slane %v6077_v17, 1  ;;  %v6041_v57 = vadd.f32 %v6040_v32, %v6019_v23  ;;  %v13804_v44 = vld [vmem:[#allocation64_spill] sm:$0xff]  ;;  %v13806_v23 = vld [vmem:[#allocation65_spill] sm:$0xff] }
 0xaa3   :  { %v6062_v37 = vadd.f32 %v6061_v12, %v6052_v24  ;;  %v6079_v51 = vsel %vm6069_vm4, %v6077_v17, %v6078_v47 }
 0xaa4   :  { %v6081_v39 = vsel %vm6065_vm6, %v6079_v51, 0.0 }
 0xaa5   :  { %v6083_v45 = vmul.f32 %v6082_v61, %v6081_v39  ;;  %v6063_v10 = vadd.f32 %v6062_v37, %v6041_v57 }
 0xaa7   :  { %v6084_v20 = vadd.f32 %v6083_v45, %v6074_v59  ;;  %v13807_v59 = vld [vmem:[#allocation39_spill] sm:$0xff] }
 0xaa9   :  { %v6085_v5 = vadd.f32 %v6084_v20, %v6063_v10 }
 0xaab   :  { %v6495_v60 = vmul.f32 -1.442695, %v6085_v5 }
 0xaad   :  { %8194 = vpow2.f32 %v6495_v60 }
 0xab7   :  { %v8195_v1 = vpop.eup %8194 }
 0xab8   :  { %v6089_v19 = vadd.f32 1.0, %v8195_v1 }
 0xaba   :  { %8196 = vrcp.f32 %v6089_v19 }
 0xac4   :  { %v8197_v18 = vpop.eup %8196 }
 0xac5   :  { %v6096_v43 = vrot.slane %v8197_v18, %v13799_v49  ;;  %v6100_v0 = vrot.slane %v8197_v18, %v13800_v2  ;;  %v6104_v15 = vrot.slane %v8197_v18, %v13801_v46  ;;  %v6108_v31 = vrot.slane %v8197_v18, %v13802_v35 }
 0xac6   :  { %v8298_v2 = vmov 3  }
 0xac7   :  { %v12487_v25 = vmul.f32 %v6096_v43, %v10750_v40  ;;  %v12490_v14 = vmul.f32 %v6100_v0, %v10752_v54  ;;  %v12493_v8 = vmul.f32 %v6104_v15, %v10756_v62  ;;  %v12496_v33 = vmul.f32 %v6108_v31, %v10758_v28  ;;  %8145 = vset.pattern.permute.xlu1 %v8298_v2 }
 0xac8   :  { %v12499_v63 = vmul.f32 %v6096_v43, %v10730_v55  ;;  %v12502_v29 = vmul.f32 %v6100_v0, %v10732_v30  ;;  %v12507_v11 = vmul.f32 %v6104_v15, %v10742_v50  ;;  %v12510_v3 = vmul.f32 %v6096_v43, %v10823_v21 }
 0xac9   :  { %v6134_v27 = vadd.f32 %v12490_v14, %v12487_v25  ;;  %v12513_v16 = vmul.f32 %v6100_v0, %v10825_v7  ;;  %v12516_v36 = vmul.f32 %v6108_v31, %v10744_v42  ;;  %v12521_v6 = vmul.f32 %v6096_v43, %v10780_v13 }
 0xaca   :  { %v6129_v48 = vadd.f32 %v12502_v29, %v12499_v63  ;;  %v12524_v52 = vmul.f32 %v6100_v0, %v13803_v4  ;;  %v12528_v41 = vmul.f32 %v6104_v15, %v13804_v44  ;;  %v12533_v58 = vmul.f32 %v6104_v15, %v13805_v56 }
 0xacb   :  { %v6135_v34 = vadd.f32 %v6134_v27, %v12493_v8  ;;  %v6144_v38 = vadd.f32 %v12513_v16, %v12510_v3  ;;  %v6157_v17 = vmul.f32 %v12487_v25, %v12487_v25  ;;  %v6158_v26 = vmul.f32 %v12490_v14, %v12490_v14 }
 0xacc   :  { %v6130_v24 = vadd.f32 %v6129_v48, %v12507_v11  ;;  %v6139_v53 = vadd.f32 %v12524_v52, %v12521_v6  ;;  %v6153_v61 = vmul.f32 %v12499_v63, %v12499_v63  ;;  %v12549_v37 = vmul.f32 %v6108_v31, %v13806_v23 }
 0xacd   :  { %v6136_v32 = vadd.f32 %v6135_v34, %v12496_v33  ;;  %v6145_v12 = vadd.f32 %v6144_v38, %v12528_v41  ;;  %v6174_v9 = vadd.f32 %v6158_v26, %v6157_v17  ;;  %v6159_v51 = vmul.f32 %v12493_v8, %v12493_v8 }
 0xace   :  { %v6131_v47 = vadd.f32 %v6130_v24, %v12516_v36  ;;  %v6140_v22 = vadd.f32 %v6139_v53, %v12533_v58  ;;  %v6154_v39 = vmul.f32 %v12502_v29, %v12502_v29  ;;  %v12556_v57 = vmul.f32 %v6108_v31, %v13807_v59 }
 0xacf   :  { %6137 = vadd.xlane.f32.xlu0 %v6136_v32  ;;  %v6146_v45 = vadd.f32 %v6145_v12, %v12549_v37  ;;  %v6175_v10 = vadd.f32 %v6174_v9, %v6159_v51  ;;  %v6155_v20 = vmul.f32 %v12507_v11, %v12507_v11  ;;  %v6160_v1 = vmul.f32 %v12496_v33, %v12496_v33 }
 0xad0   :  { %6132 = vadd.xlane.f32.xlu1 %v6131_v47  ;;  %v6169_v5 = vadd.f32 %v6154_v39, %v6153_v61  ;;  %v6141_v60 = vadd.f32 %v6140_v22, %v12556_v57  ;;  %v6156_v18 = vmul.f32 %v12516_v36, %v12516_v36  ;;  %v8299_v0 = vmov 4  }
 0xad1   :  { %v6176_v49 = vadd.f32 %v6175_v10, %v6160_v1  ;;  %8148 = vset.pattern.permute.xlu0 %v8299_v0 }
 0xad2   :  { %v6170_v19 = vadd.f32 %v6169_v5, %v6155_v20 }
 0xad3   :  { %6147 = vadd.xlane.f32.xlu0 %v6146_v45 }
 0xad4   :  { %6142 = vadd.xlane.f32.xlu1 %v6141_v60  ;;  %v6171_v43 = vadd.f32 %v6170_v19, %v6156_v18 }
 0xad7   :  { %6177 = vadd.xlane.f32.xlu0 %v6176_v49 }
 0xad8   :  { %6172 = vadd.xlane.f32.xlu1 %v6171_v43 }
 0xafb   :  { %v4691_v46 = vpop.permute.xlu0 %4690  ;;  %v4665_v15 = vpop.permute.xlu1 %4664 }
 0xafc   :  { %v12569_v35 = vmul.f32 %v4665_v15, %v10750_v40  ;;  %v12572_v31 = vmul.f32 %v4665_v15, %v10752_v54  ;;  %v12575_v27 = vmul.f32 %v4691_v46, %v10756_v62  ;;  %v12584_v24 = vmul.f32 %v4691_v46, %v10758_v28 }
 0xafe   :  { %v4714_v48 = vadd.f32 %v12572_v31, %v12569_v35  ;;  %v4737_v34 = vmul.f32 %v12569_v35, %v12569_v35  ;;  %v4738_v38 = vmul.f32 %v12572_v31, %v12572_v31  ;;  %v4740_v19 = vmul.f32 %v12584_v24, %v12584_v24 }
 0xb00   :  { %v4660_v40 = vpop.permute.xlu0 %4659  ;;  %v4687_v53 = vpop.permute.xlu1 %4686  ;;  %v4715_v54 = vadd.f32 %v4714_v48, %v12575_v27  ;;  %v4754_v12 = vadd.f32 %v4738_v38, %v4737_v34 }
 0xb01   :  { %v12588_v17 = vmul.f32 %v4660_v40, %v10730_v55  ;;  %v12591_v62 = vmul.f32 %v4660_v40, %v10732_v30  ;;  %v12594_v26 = vmul.f32 %v4687_v53, %v10742_v50  ;;  %v4739_v55 = vmul.f32 %v12575_v27, %v12575_v27 }
 0xb02   :  { %v4716_v32 = vadd.f32 %v4715_v54, %v12584_v24  ;;  %v12606_v30 = vmul.f32 %v4687_v53, %v10744_v42  ;;  %v6161_v42 = vmul.f32 %v12521_v6, %v12521_v6 }
 0xb03   :  { %v4709_v28 = vadd.f32 %v12591_v62, %v12588_v17  ;;  %v4733_v47 = vmul.f32 %v12588_v17, %v12588_v17  ;;  %v4734_v22 = vmul.f32 %v12591_v62, %v12591_v62  ;;  %v4735_v51 = vmul.f32 %v12594_v26, %v12594_v26 }
 0xb04   :  { %4717 = vadd.xlane.f32.xlu1 %v4716_v32  ;;  %v4755_v10 = vadd.f32 %v4754_v12, %v4739_v55  ;;  %v4675_v5 = vpop.permute.xlu0 %4674  ;;  %v4736_v60 = vmul.f32 %v12606_v30, %v12606_v30 }
 0xb05   :  { %v4670_v50 = vpop.permute.xlu1 %4669  ;;  %v4710_v9 = vadd.f32 %v4709_v28, %v12594_v26  ;;  %v4749_v61 = vadd.f32 %v4734_v22, %v4733_v47  ;;  %v12631_v15 = vmul.f32 %v4675_v5, %v10823_v21  ;;  %v12634_v48 = vmul.f32 %v4675_v5, %v10825_v7 }
 0xb06   :  { %v12612_v39 = vmul.f32 %v4670_v50, %v10780_v13  ;;  %v12615_v45 = vmul.f32 %v4670_v50, %v13803_v4  ;;  %v6162_v13 = vmul.f32 %v12524_v52, %v12524_v52  ;;  %v4756_v46 = vadd.f32 %v4755_v10, %v4740_v19 }
 0xb07   :  { %v4711_v20 = vadd.f32 %v4710_v9, %v12606_v30  ;;  %v4750_v1 = vadd.f32 %v4749_v61, %v4735_v51  ;;  %v6163_v21 = vmul.f32 %v12533_v58, %v12533_v58  ;;  %v4724_v7 = vadd.f32 %v12634_v48, %v12631_v15 }
 0xb08   :  { %v4741_v4 = vmul.f32 %v12612_v39, %v12612_v39  ;;  %v4742_v18 = vmul.f32 %v12615_v45, %v12615_v45  ;;  %v6179_v40 = vadd.f32 %v6162_v13, %v6161_v42  ;;  %v4745_v28 = vmul.f32 %v12631_v15, %v12631_v15 }
 0xb09   :  { %4712 = vadd.xlane.f32.xlu0 %v4711_v20  ;;  %v4751_v43 = vadd.f32 %v4750_v1, %v4736_v60  ;;  %v4746_v47 = vmul.f32 %v12634_v48, %v12634_v48  ;;  %v4719_v55 = vadd.f32 %v12615_v45, %v12612_v39  ;;  %v6164_v61 = vmul.f32 %v12556_v57, %v12556_v57 }
 0xb0a   :  { %v4695_v49 = vpop.permute.xlu1 %4694  ;;  %v4759_v54 = vadd.f32 %v4742_v18, %v4741_v4  ;;  %v6180_v22 = vadd.f32 %v6179_v40, %v6163_v21  ;;  %v6165_v51 = vmul.f32 %v12510_v3, %v12510_v3  ;;  %v6167_v18 = vmul.f32 %v12528_v41, %v12528_v41  ;;  %v8222_v21 = vld [vmem:[%s13808_s11 + $0x10] sm:$0xff] }
 0xb0b   :  { %v12637_v34 = vmul.f32 %v4695_v49, %v13805_v56  ;;  %v12640_v38 = vmul.f32 %v4695_v49, %v13807_v59  ;;  %4752 = vadd.xlane.f32.xlu1 %v4751_v43  ;;  %v4764_v60 = vadd.f32 %v4746_v47, %v4745_v28 }
 0xb0c   :  { %v6181_v5 = vadd.f32 %v6180_v22, %v6164_v61 }
 0xb0d   :  { %v4743_v53 = vmul.f32 %v12637_v34, %v12637_v34  ;;  %4757 = vadd.xlane.f32.xlu0 %v4756_v46  ;;  %v4744_v59 = vmul.f32 %v12640_v38, %v12640_v38  ;;  %v4720_v42 = vadd.f32 %v4719_v55, %v12637_v34  ;;  %v6168_v46 = vmul.f32 %v12549_v37, %v12549_v37 }
 0xb0e   :  { %v4699_v32 = vpop.permute.xlu1 %4698 }
 0xb0f   :  { %v12649_v56 = vmul.f32 %v4699_v32, %v13804_v44  ;;  %v4760_v12 = vadd.f32 %v4759_v54, %v4743_v53  ;;  %v12660_v50 = vmul.f32 %v4699_v32, %v13806_v23  ;;  %v6166_v23 = vmul.f32 %v12513_v16, %v12513_v16  ;;  %v8220_v53 = vld [vmem:[%s13808_s11] sm:$0xff]  ;;  %v8221_v54 = vld [vmem:[%s13808_s11 + $0x8] sm:$0xff] }
 0xb10   :  { %v4721_v1 = vadd.f32 %v4720_v42, %v12640_v38  ;;  %v6269_v32 = vld [vmem:[%s13808_s11] sm:$0xff] }
 0xb11   :  { %v4761_v9 = vadd.f32 %v4760_v12, %v4744_v59  ;;  %v4725_v44 = vadd.f32 %v4724_v7, %v12649_v56  ;;  %v4747_v10 = vmul.f32 %v12649_v56, %v12649_v56  ;;  %v6184_v13 = vadd.f32 %v6166_v23, %v6165_v51 }
 0xb12   :  { %v4748_v4 = vmul.f32 %v12660_v50, %v12660_v50 }
 0xb13   :  { %4762 = vadd.xlane.f32.xlu1 %v4761_v9  ;;  %v4726_v20 = vadd.f32 %v4725_v44, %v12660_v50  ;;  %v4765_v19 = vadd.f32 %v4764_v60, %v4747_v10  ;;  %v6185_v43 = vadd.f32 %v6184_v13, %v6167_v18  ;;  %v6209_v60 = vld [vmem:[%s13809_s3] sm:$0xff] }
 0xb15   :  { %4727 = vadd.xlane.f32.xlu0 %v4726_v20  ;;  %v4766_v49 = vadd.f32 %v4765_v19, %v4748_v4  ;;  %v6186_v40 = vadd.f32 %v6185_v43, %v6168_v46  ;;  %v6210_v4 = vld [vmem:[%s13809_s3 + $0x8] sm:$0xff] }
 0xb17   :  { %6182 = vadd.xlane.f32.xlu1 %v6181_v5 }
 0xb19   :  { %4722 = vadd.xlane.f32.xlu0 %v4721_v1 }
 0xb1d   :  { %4767 = vadd.xlane.f32.xlu0 %v4766_v49 }
 0xb21   :  { %6187 = vadd.xlane.f32.xlu0 %v6186_v40 }
 0xb28   :  { %4846 = vperm.xlu1 %8145, %v8220_v53  }
 0xb2c   :  { %4850 = vperm.xlu1 %8145, %v8221_v54  }
 0xb30   :  { %8146 = vset.pattern.permute.xlu1 %v8299_v0 }
 0xb37   :  { %6275 = vperm.xlu0 %8148, %v6269_v32  }
 0xb3b   :  { %8149 = vset.pattern.permute.xlu0 %v8298_v2 }
 0xb3c   :  { %4854 = vperm.xlu0 %8149, %v8222_v21  }
 0xb5c   :  { %v6138_v7 = vpop.xlane.xlu0 %6137 }
 0xb5d   :  { %v6133_v59 = vpop.xlane.xlu1 %6132  ;;  %v12694_v28 = vmul.f32 0.001953125, %v6138_v7 }
 0xb5e   :  { %v12696_v22 = vmul.f32 0.001953125, %v6133_v59 }
 0xb5f   :  { %v6194_v9 = vmul.f32 %v12694_v28, %v12694_v28 }
 0xb60   :  { %v6148_v12 = vpop.xlane.xlu0 %6147  ;;  %v6193_v51 = vmul.f32 %v12696_v22, %v12696_v22 }
 0xb61   :  { %v6143_v47 = vpop.xlane.xlu1 %6142 }
 0xb64   :  { %v6178_v55 = vpop.xlane.xlu0 %6177 }
 0xb65   :  { %v6190_v44 = vmul.f32 0.001953125, %v6178_v55  ;;  %v6173_v61 = vpop.xlane.xlu1 %6172  ;;  %v12712_v55 = vmul.f32 0.001953125, %v6143_v47  ;;  %v8223_v47 = vld [vmem:[%s13809_s3 + $0x8] sm:$0xff] }
 0xb66   :  { %v6189_v10 = vmul.f32 0.001953125, %v6173_v61 }
 0xb67   :  { %v6198_v20 = vsub.f32 %v6190_v44, %v6194_v9  ;;  %v6195_v61 = vmul.f32 %v12712_v55, %v12712_v55 }
 0xb68   :  { %v6197_v42 = vsub.f32 %v6189_v10, %v6193_v51 }
 0xb69   :  { %v6202_v23 = vadd.f32 1e-05, %v6198_v20 }
 0xb6a   :  { %v6201_v5 = vadd.f32 1e-05, %v6197_v42 }
 0xb6c   :  { %8198 = vrsqrt.f32 %v6201_v5 }
 0xb6d   :  { %8200 = vrsqrt.f32 %v6202_v23 }
 0xb76   :  { %v8199_v1 = vpop.eup %8198 }
 0xb77   :  { %v6213_v19 = vmul.f32 %v8199_v1, %v6209_v60  ;;  %v8201_v13 = vpop.eup %8200  ;;  %v12716_v60 = vmul.f32 0.001953125, %v6148_v12 }
 0xb78   :  { %v6214_v18 = vmul.f32 %v8201_v13, %v6210_v4 }
 0xb79   :  { %6235 = vperm.xlu1 %8146, %v6213_v19   ;;  %v6196_v13 = vmul.f32 %v12716_v60, %v12716_v60 }
 0xb7d   :  { %6240 = vperm.xlu1 %8146, %v6214_v18   ;;  %v6272_v18 = vld [vmem:[%s13808_s11 + $0x18] sm:$0xff] }
 0xb91   :  { %v4718_v49 = vpop.xlane.xlu1 %4717 }
 0xb92   :  { %v12708_v46 = vmul.f32 0.001953125, %v4718_v49 }
 0xb94   :  { %v4774_v54 = vmul.f32 %v12708_v46, %v12708_v46 }
 0xb96   :  { %v4713_v43 = vpop.xlane.xlu0 %4712 }
 0xb98   :  { %v4753_v32 = vpop.xlane.xlu1 %4752 }
 0xb9a   :  { %v4758_v40 = vpop.xlane.xlu0 %4757 }
 0xb9b   :  { %v4770_v53 = vmul.f32 0.001953125, %v4758_v40  ;;  %v12726_v40 = vmul.f32 0.001953125, %v4713_v43 }
 0xb9d   :  { %v4778_v21 = vsub.f32 %v4770_v53, %v4774_v54  ;;  %v6211_v53 = vld [vmem:[%s13809_s3 + $0x10] sm:$0xff] }
 0xb9f   :  { %v4782_v7 = vadd.f32 1e-05, %v4778_v21  ;;  %v4773_v21 = vmul.f32 %v12726_v40, %v12726_v40 }
 0xba0   :  { %v4763_v59 = vpop.xlane.xlu1 %4762 }
 0xba1   :  { %8202 = vrsqrt.f32 %v4782_v7  ;;  %v4769_v7 = vmul.f32 0.001953125, %v4753_v32 }
 0xba2   :  { %v4728_v9 = vpop.xlane.xlu0 %4727 }
 0xba3   :  { %v4777_v43 = vsub.f32 %v4769_v7, %v4773_v21  ;;  %v8226_v21 = vld [vmem:[%s13809_s3 + $0x18] sm:$0xff] }
 0xba4   :  { %v6183_v44 = vpop.xlane.xlu1 %6182 }
 0xba5   :  { %v6191_v51 = vmul.f32 0.001953125, %v6183_v44 }
 0xba6   :  { %v4723_v10 = vpop.xlane.xlu0 %4722 }
 0xba7   :  { %v6199_v20 = vsub.f32 %v6191_v51, %v6195_v61  ;;  %v12734_v61 = vmul.f32 0.001953125, %v4728_v9  ;;  %v12736_v51 = vmul.f32 0.001953125, %v4723_v10  ;;  %v4771_v9 = vmul.f32 0.001953125, %v4763_v59 }
 0xba9   :  { %v6203_v42 = vadd.f32 1e-05, %v6199_v20 }
 0xbaa   :  { %v4768_v23 = vpop.xlane.xlu0 %4767 }
 0xbab   :  { %v8203_v5 = vpop.eup %8202  ;;  %8204 = vrsqrt.f32 %v6203_v42  ;;  %v4772_v20 = vmul.f32 0.001953125, %v4768_v23  ;;  %v4776_v42 = vmul.f32 %v12734_v61, %v12734_v61 }
 0xbac   :  { %v4790_v1 = vmul.f32 %v8223_v47, %v8203_v5  ;;  %v6212_v5 = vld [vmem:[%s13809_s3 + $0x18] sm:$0xff]  ;;  %v4781_v47 = vadd.f32 1e-05, %v4777_v43  ;;  %v8227_v43 = vld [vmem:[%s13809_s3 + $0x10] sm:$0xff] }
 0xbad   :  { %v4780_v32 = vsub.f32 %v4772_v20, %v4776_v42  ;;  %v6271_v42 = vld [vmem:[%s13808_s11 + $0x10] sm:$0xff] }
 0xbae   :  { %v6188_v19 = vpop.xlane.xlu0 %6187  ;;  %4816 = vperm.xlu0 %8149, %v4790_v1   ;;  %v4775_v1 = vmul.f32 %v12736_v51, %v12736_v51 }
 0xbaf   :  { %v6192_v4 = vmul.f32 0.001953125, %v6188_v19  ;;  %v4784_v10 = vadd.f32 1e-05, %v4780_v32 }
 0xbb1   :  { %v6200_v49 = vsub.f32 %v6192_v4, %v6196_v13  ;;  %v4779_v4 = vsub.f32 %v4771_v9, %v4775_v1 }
 0xbb2   :  { %8153 = vset.pattern.permute.xlu0 %v8299_v0 }
 0xbb3   :  { %v6204_v12 = vadd.f32 1e-05, %v6200_v49  ;;  %6290 = vperm.xlu0 %8153, %v6272_v18   ;;  %v4783_v23 = vadd.f32 1e-05, %v4779_v4  ;;  %v8224_v18 = vld [vmem:[%s13808_s11 + $0x18] sm:$0xff]  ;;  %v6270_v49 = vld [vmem:[%s13808_s11 + $0x8] sm:$0xff]  ;;  %v6221_v4 = vsub.f32 %v12487_v25, %v12694_v28  ;;  %v6229_v25 = vsub.f32 %v12510_v3, %v12716_v60 }
 0xbb5   :  { %v8205_v54 = vpop.eup %8204  ;;  %8206 = vrsqrt.f32 %v6204_v12  ;;  %v8225_v12 = vld [vmem:[%s13809_s3] sm:$0xff] }
 0xbb6   :  { %v6215_v44 = vmul.f32 %v8205_v54, %v6211_v53  ;;  %8208 = vrsqrt.f32 %v4781_v47  ;;  %v12769_v32 = vpop.permute.xlu0 %6275 }
 0xbb7   :  { %8210 = vrsqrt.f32 %v4784_v10  ;;  %v6223_v10 = vsub.f32 %v12493_v8, %v12694_v28  ;;  %v6231_v8 = vsub.f32 %v12528_v41, %v12716_v60  ;;  %v4798_v41 = vsub.f32 %v12572_v31, %v12708_v46 }
 0xbb8   :  { %6245 = vperm.xlu1 %8146, %v6215_v44   ;;  %8212 = vrsqrt.f32 %v4783_v23  ;;  %v4796_v31 = vsub.f32 %v12606_v30, %v12726_v40 }
 0xbbb   :  { %v12773_v9 = vpop.permute.xlu0 %4854 }
 0xbbf   :  { %v8207_v19 = vpop.eup %8206 }
 0xbc0   :  { %v6216_v13 = vmul.f32 %v8207_v19, %v6212_v5  ;;  %v8209_v59 = vpop.eup %8208 }
 0xbc1   :  { %v4789_v53 = vmul.f32 %v8225_v12, %v8209_v59  ;;  %v8211_v54 = vpop.eup %8210  ;;  %v6220_v59 = vsub.f32 %v12516_v36, %v12696_v22 }
 0xbc2   :  { %6250 = vperm.xlu1 %8146, %v6216_v13   ;;  %v4792_v7 = vmul.f32 %v8226_v21, %v8211_v54  ;;  %v8213_v44 = vpop.eup %8212  ;;  %v6217_v13 = vsub.f32 %v12499_v63, %v12696_v22  ;;  %v6224_v63 = vsub.f32 %v12496_v33, %v12694_v28 }
 0xbc3   :  { %v4791_v20 = vmul.f32 %v8227_v43, %v8213_v44 }
 0xbc6   :  { %8147 = vset.pattern.permute.xlu1 %v8298_v2 }
 0xbc7   :  { %4858 = vperm.xlu1 %8147, %v8224_v18   ;;  %v6218_v18 = vsub.f32 %v12502_v29, %v12696_v22  ;;  %v6232_v29 = vsub.f32 %v12549_v37, %v12716_v60  ;;  %v4799_v37 = vsub.f32 %v12575_v27, %v12708_v46 }
 0xbcb   :  { %8150 = vset.pattern.permute.xlu1 %v8299_v0 }
 0xbcc   :  { %6280 = vperm.xlu1 %8150, %v6270_v49   ;;  %v6219_v49 = vsub.f32 %v12507_v11, %v12696_v22 }
 0xbd0   :  { %8151 = vset.pattern.permute.xlu1 %v8298_v2  ;;  %v12767_v2 = vpop.permute.xlu1 %4846 }
 0xbd1   :  { %4811 = vperm.xlu1 %8151, %v4789_v53   ;;  %v4794_v53 = vsub.f32 %v12591_v62, %v12726_v40 }
 0xbd4   :  { %v4851_v5 = vpop.permute.xlu1 %4850 }
 0xbd5   :  { %4826 = vperm.xlu1 %8151, %v4792_v7  }
 0xbd9   :  { %4821 = vperm.xlu1 %8151, %v4791_v20  }
 0xbdd   :  { %8152 = vset.pattern.permute.xlu1 %v8299_v0  ;;  %v6222_v0 = vsub.f32 %v12490_v14, %v12694_v28  ;;  %v6230_v14 = vsub.f32 %v12513_v16, %v12716_v60  ;;  %v4797_v16 = vsub.f32 %v12569_v35, %v12708_v46  ;;  %v4800_v28 = vsub.f32 %v12584_v24, %v12708_v46 }
 0xbde   :  { %6285 = vperm.xlu1 %8152, %v6271_v42   ;;  %v4793_v60 = vsub.f32 %v12588_v17, %v12726_v40  ;;  %v4795_v35 = vsub.f32 %v12594_v26, %v12726_v40 }
 0xbf8   :  { %v6236_v47 = vpop.permute.xlu1 %6235 }
 0xbf9   :  { %v6253_v30 = vmul.f32 %v6236_v47, %v6217_v13  ;;  %v6254_v62 = vmul.f32 %v6236_v47, %v6218_v18  ;;  %v6255_v17 = vmul.f32 %v6236_v47, %v6219_v49  ;;  %v6256_v40 = vmul.f32 %v6236_v47, %v6220_v59 }
 0xbfb   :  { %v6293_v47 = vadd.f32 %v12769_v32, %v6253_v30  ;;  %v6294_v49 = vadd.f32 %v12769_v32, %v6254_v62  ;;  %v6295_v59 = vadd.f32 %v12769_v32, %v6255_v17  ;;  %v13812_v62 = vsub.f32 %v12634_v48, %v12734_v61 }
 0xbfc   :  { %v6241_v1 = vpop.permute.xlu1 %6240 }
 0xbfd   :  { %v6257_v43 = vmul.f32 %v6241_v1, %v6221_v4  ;;  %v6258_v20 = vmul.f32 %v6241_v1, %v6222_v0  ;;  %v6259_v42 = vmul.f32 %v6241_v1, %v6223_v10 }
 0xc2d   :  { %v4817_v12 = vpop.permute.xlu0 %4816 }
 0xc2e   :  { %v4833_v54 = vmul.f32 %v4817_v12, %v4797_v16  ;;  %v4834_v21 = vmul.f32 %v4817_v12, %v4798_v41  ;;  %v4835_v27 = vmul.f32 %v4817_v12, %v4799_v37  ;;  %v4836_v7 = vmul.f32 %v4817_v12, %v4800_v28 }
 0xc2f   :  { %v6260_v12 = vmul.f32 %v6241_v1, %v6224_v63 }
 0xc30   :  { %v4865_v16 = vadd.f32 %v4851_v5, %v4833_v54  ;;  %v4866_v41 = vadd.f32 %v4851_v5, %v4834_v21  ;;  %v4867_v37 = vadd.f32 %v4851_v5, %v4835_v27  ;;  %v4868_v28 = vadd.f32 %v4851_v5, %v4836_v7 }
 0xc37   :  { %v12771_v19 = vpop.permute.xlu1 %6245 }
 0xc41   :  { %v6251_v23 = vpop.permute.xlu1 %6250 }
 0xc42   :  { %v6265_v0 = vmul.f32 %v6251_v23, %v6229_v25  ;;  %v6266_v10 = vmul.f32 %v6251_v23, %v6230_v14  ;;  %v6267_v1 = vmul.f32 %v6251_v23, %v6231_v8  ;;  %v6268_v63 = vmul.f32 %v6251_v23, %v6232_v29 }
 0xc43   :  { %v6296_v25 = vadd.f32 %v12769_v32, %v6256_v40  ;;  %v13814_v40 = vsub.f32 %v12660_v50, %v12734_v61 }
 0xc46   :  { %v12815_v22 = vpop.permute.xlu1 %4858 }
 0xc4b   :  { %v6281_v3 = vpop.permute.xlu1 %6280 }
 0xc4c   :  { %v6297_v33 = vadd.f32 %v6281_v3, %v6257_v43  ;;  %v6298_v36 = vadd.f32 %v6281_v3, %v6258_v20  ;;  %v6299_v11 = vadd.f32 %v6281_v3, %v6259_v42  ;;  %v6300_v26 = vadd.f32 %v6281_v3, %v6260_v12  ;;  %v6291_v43 = vpop.permute.xlu0 %6290 }
 0xc4d   :  { %v6305_v29 = vadd.f32 %v6291_v43, %v6265_v0  ;;  %v13817_v0 = vsub.f32 %v12637_v34, %v12736_v51  ;;  %v13821_v34 = vsub.f32 %v12533_v58, %v12712_v55 }
 0xc4e   :  { %v6313_v46 = vadd.f32 %v6297_v33, %v4865_v16  ;;  %v6314_v24 = vadd.f32 %v6298_v36, %v4866_v41  ;;  %v6315_v44 = vadd.f32 %v6299_v11, %v4867_v37  ;;  %v6316_v4 = vadd.f32 %v6300_v26, %v4868_v28 }
 0xc4f   :  { %v6306_v11 = vadd.f32 %v6291_v43, %v6266_v10  ;;  %v6307_v36 = vadd.f32 %v6291_v43, %v6267_v1  ;;  %v6308_v33 = vadd.f32 %v6291_v43, %v6268_v63  ;;  %v13818_v1 = vsub.f32 %v12640_v38, %v12736_v51 }
 0xc50   :  { %v6329_v54 = vmax.f32 %v6313_v46, 0.0  ;;  %v6330_v21 = vmax.f32 %v6314_v24, 0.0  ;;  %v6331_v5 = vmax.f32 %v6315_v44, 0.0  ;;  %v6332_v27 = vmax.f32 %v6316_v4, 0.0  ;;  %v4812_v7 = vpop.permute.xlu1 %4811 }
 0xc51   :  { %v4829_v20 = vmul.f32 %v4812_v7, %v4793_v60  ;;  %v4830_v3 = vmul.f32 %v4812_v7, %v4794_v53  ;;  %v4831_v13 = vmul.f32 %v4812_v7, %v4795_v35  ;;  %v4832_v18 = vmul.f32 %v4812_v7, %v4796_v31 }
 0xc52   :  { %6343 = vst [vmem:[%s13810_s7 + $0x10] sm:$0xff] %v6329_v54  ;;  %6344 = vst [vmem:[%s13810_s7 + $0x18] sm:$0xff] %v6330_v21  ;;  %v13811_v46 = vsub.f32 %v12631_v15, %v12734_v61  ;;  %v6263_v38 = vmul.f32 %v12771_v19, %v13821_v34 }
 0xc53   :  { %6498 = vst [vmem:[%s13810_s7 + $0x50] sm:$0xff] %v6331_v5  ;;  %6499 = vst [vmem:[%s13810_s7 + $0x58] sm:$0xff] %v6332_v27  ;;  %v4861_v23 = vadd.f32 %v12767_v2, %v4829_v20  ;;  %v4862_v32 = vadd.f32 %v12767_v2, %v4830_v3  ;;  %v4863_v14 = vadd.f32 %v12767_v2, %v4831_v13 }
 0xc54   :  { %v4864_v8 = vadd.f32 %v12767_v2, %v4832_v18  ;;  %v4827_v60 = vpop.permute.xlu1 %4826  ;;  %v13813_v2 = vsub.f32 %v12649_v56, %v12734_v61  ;;  %v13815_v56 = vsub.f32 %v12612_v39, %v12736_v51  ;;  %v13816_v61 = vsub.f32 %v12615_v45, %v12736_v51 }
 0xc55   :  { %v6309_v53 = vadd.f32 %v6293_v47, %v4861_v23  ;;  %v6310_v35 = vadd.f32 %v6294_v49, %v4862_v32  ;;  %v6311_v31 = vadd.f32 %v6295_v59, %v4863_v14  ;;  %v4841_v17 = vmul.f32 %v4827_v60, %v13811_v46 }
 0xc56   :  { %v6312_v24 = vadd.f32 %v6296_v25, %v4864_v8  ;;  %v4842_v26 = vmul.f32 %v4827_v60, %v13812_v62  ;;  %v4843_v30 = vmul.f32 %v4827_v60, %v13813_v2  ;;  %v4844_v44 = vmul.f32 %v4827_v60, %v13814_v40 }
 0xc57   :  { %v6325_v42 = vmax.f32 %v6309_v53, 0.0  ;;  %v6326_v12 = vmax.f32 %v6310_v35, 0.0  ;;  %v6327_v16 = vmax.f32 %v6311_v31, 0.0  ;;  %v4873_v37 = vadd.f32 %v12815_v22, %v4841_v17 }
 0xc58   :  { %v6328_v41 = vmax.f32 %v6312_v24, 0.0  ;;  %v4874_v15 = vadd.f32 %v12815_v22, %v4842_v26  ;;  %v4875_v28 = vadd.f32 %v12815_v22, %v4843_v30  ;;  %v4876_v48 = vadd.f32 %v12815_v22, %v4844_v44  ;;  %v4822_v4 = vpop.permute.xlu1 %4821 }
 0xc59   :  { %6341 = vst [vmem:[%s13810_s7] sm:$0xff] %v6325_v42  ;;  %6342 = vst [vmem:[%s13810_s7 + $0x8] sm:$0xff] %v6326_v12  ;;  %v4837_v50 = vmul.f32 %v4822_v4, %v13815_v56  ;;  %v4838_v22 = vmul.f32 %v4822_v4, %v13816_v61  ;;  %v4839_v10 = vmul.f32 %v4822_v4, %v13817_v0 }
 0xc5a   :  { %6496 = vst [vmem:[%s13810_s7 + $0x40] sm:$0xff] %v6327_v16  ;;  %6497 = vst [vmem:[%s13810_s7 + $0x48] sm:$0xff] %v6328_v41  ;;  %v4840_v63 = vmul.f32 %v4822_v4, %v13818_v1  ;;  %v6321_v54 = vadd.f32 %v6305_v29, %v4873_v37  ;;  %v6322_v21 = vadd.f32 %v6306_v11, %v4874_v15 }
 0xc5b   :  { %v6323_v5 = vadd.f32 %v6307_v36, %v4875_v28  ;;  %v6324_v27 = vadd.f32 %v6308_v33, %v4876_v48  ;;  %v13819_v39 = vsub.f32 %v12521_v6, %v12712_v55  ;;  %v13820_v45 = vsub.f32 %v12524_v52, %v12712_v55 }
 0xc5c   :  { %v13822_v51 = vsub.f32 %v12556_v57, %v12712_v55  ;;  %v6337_v3 = vmax.f32 %v6321_v54, 0.0  ;;  %v6338_v13 = vmax.f32 %v6322_v21, 0.0  ;;  %v4869_v47 = vadd.f32 %v12773_v9, %v4837_v50 }
 0xc5d   :  { %v6261_v7 = vmul.f32 %v12771_v19, %v13819_v39  ;;  %v6262_v43 = vmul.f32 %v12771_v19, %v13820_v45  ;;  %v6339_v6 = vmax.f32 %v6323_v5, 0.0  ;;  %v6340_v18 = vmax.f32 %v6324_v27, 0.0  ;;  %v6286_v58 = vpop.permute.xlu1 %6285 }
 0xc5e   :  { %v6264_v20 = vmul.f32 %v12771_v19, %v13822_v51  ;;  %v4870_v52 = vadd.f32 %v12773_v9, %v4838_v22  ;;  %v4871_v49 = vadd.f32 %v12773_v9, %v4839_v10  ;;  %v4872_v59 = vadd.f32 %v12773_v9, %v4840_v63  ;;  %6347 = vst [vmem:[%s13810_s7 + $0x30] sm:$0xff] %v6337_v3 }
 0xc5f   :  { %6348 = vst [vmem:[%s13810_s7 + $0x38] sm:$0xff] %v6338_v13  ;;  %6502 = vst [vmem:[%s13810_s7 + $0x70] sm:$0xff] %v6339_v6  ;;  %v6301_v57 = vadd.f32 %v6286_v58, %v6261_v7  ;;  %v6302_v55 = vadd.f32 %v6286_v58, %v6262_v43  ;;  %v6303_v19 = vadd.f32 %v6286_v58, %v6263_v38 }
 0xc60   :  { %6503 = vst [vmem:[%s13810_s7 + $0x78] sm:$0xff] %v6340_v18  ;;  %v6304_v9 = vadd.f32 %v6286_v58, %v6264_v20 }
 0xc61   :  { %v6317_v25 = vadd.f32 %v6301_v57, %v4869_v47  ;;  %v6318_v23 = vadd.f32 %v6302_v55, %v4870_v52  ;;  %v6319_v32 = vadd.f32 %v6303_v19, %v4871_v49 }
 0xc62   :  { %v6320_v14 = vadd.f32 %v6304_v9, %v4872_v59 }
 0xc63   :  { %v6333_v8 = vmax.f32 %v6317_v25, 0.0  ;;  %v6334_v29 = vmax.f32 %v6318_v23, 0.0  ;;  %v6335_v11 = vmax.f32 %v6319_v32, 0.0 }
 0xc64   :  { %v6336_v36 = vmax.f32 %v6320_v14, 0.0 }
 0xc65   :  { %6345 = vst [vmem:[%s13810_s7 + $0x20] sm:$0xff] %v6333_v8  ;;  %6346 = vst [vmem:[%s13810_s7 + $0x28] sm:$0xff] %v6334_v29 }
 0xc66   :  { %6500 = vst [vmem:[%s13810_s7 + $0x60] sm:$0xff] %v6335_v11  ;;  %6501 = vst [vmem:[%s13810_s7 + $0x68] sm:$0xff] %v6336_v36 }
 0xc67   :  { %6362 = vsyncpa [#allocation5], 1 }

</bundles_post_ra>
